<compile_context>
chip_gen: v7x
topology: tpu7x:2x2x1
jax: 0.10.0
libtpu: 0.0.40
codegen_flags: <defaults>
</compile_context>

<pallas_src>
import jax
import jax.numpy as jnp
from jax import lax
from jax.experimental import pallas as pl
from jax.experimental.pallas import tpu as pltpu

NUM_NODES = 20
NODE_FEATURES = 4
HIDDEN = 32
BN_EPS = 1e-5

NUM_SNAPSHOTS = 48                                   # total graph snapshots per pallas_call
SNAPSHOTS_PER_TILE = 12                              # snapshots stacked per block-diag A tile
TILE_ROWS = SNAPSHOTS_PER_TILE * NUM_NODES           # 240 rows per A tile
# 2 grid steps: one per TensorCore on v7x ("parallel"); on single-TC v5e/v6e the extra
# step only costs one ~0.35 us grid-step overhead (set to 1 there if that matters).
GRID_STEPS = 2
GROUPS_PER_STEP = NUM_SNAPSHOTS // (GRID_STEPS * SNAPSHOTS_PER_TILE)   # 2
ROWS_PER_STEP = GROUPS_PER_STEP * TILE_ROWS          # 480


def _sigmoid(z):
    # One EUP op (tanh) instead of exp + reciprocal; numerically stable.
    return 0.5 * jnp.tanh(0.5 * z) + 0.5


# ---------------------------------------------------------------------------
# Pallas kernel: GCN x2 + BN + fused-gate single-step LSTM x2 + ReLU + Linear head.
# One grid step processes GROUPS_PER_STEP groups of SNAPSHOTS_PER_TILE snapshots.
# ---------------------------------------------------------------------------
def recurrent_gcn_kernel(
    a_ref,                                # (TILE_ROWS, TILE_ROWS) bf16 block-diag normalized adjacency (resident)
    x_ref,                                # (ROWS_PER_STEP, F) f32 node features for this grid step
    w1_ref, b1_ref, s1_ref, t1_ref,       # GCNConv1: weight (F,H) bf16; bias / BN scale / BN shift (1,H) f32
    w2_ref, b2_ref, s2_ref, t2_ref,       # GCNConv2: weight (H,H) bf16; bias / BN scale / BN shift (1,H) f32
    lw1t_ref, lw1b_ref, lb1_ref,          # LSTM1 fused [i|o|g] gates: top (H,3H) bf16, bottom (H,3H) bf16, bias (1,3H) f32
    lw2_ref, lb2_ref,                     # LSTM2 fused [i|o|g] gates: (H,3H) bf16, bias (1,3H) f32
    wla_ref, wlb_ref, wlc_ref, bl_ref,    # head Linear split as row vectors: (1,H), (1,H), (1,F), (1,1) f32
    out_ref,                              # (ROWS_PER_STEP, 1) f32
):
    f32 = jnp.float32
    bf16 = jnp.bfloat16
    H = HIDDEN

    # Load weights / adjacency once; reused by every unrolled group iteration.
    a = a_ref[...]
    w1 = w1_ref[...]
    w2 = w2_ref[...]
    lw1t = lw1t_ref[...]
    lw1b = lw1b_ref[...]
    lw2 = lw2_ref[...]
    b1 = b1_ref[...]; s1 = s1_ref[...]; t1 = t1_ref[...]
    b2 = b2_ref[...]; s2 = s2_ref[...]; t2 = t2_ref[...]
    lb1 = lb1_ref[...]; lb2 = lb2_ref[...]
    wla = wla_ref[...]; wlb = wlb_ref[...]; wlc = wlc_ref[...]; bl = bl_ref[...]

    def lstm_single_step(gates):
        # Fused gate layout along lanes: [ i | o | g ], each H wide.  The forget gate is
        # dropped (window=1, zero init state => f only ever multiplies c0 == 0).
        # Sigmoid only on the i/o lanes, tanh only on the g lanes -> minimal EUP traffic.
        io = _sigmoid(gates[:, : 2 * H])
        g = jnp.tanh(gates[:, 2 * H:])
        c = io[:, :H] * g
        return io[:, H:] * jnp.tanh(c)       # (TILE_ROWS, H) f32

    # In-kernel (statically unrolled) loop over block-diag A groups — replaces extra
    # grid steps.  Live data per iteration is ~100 KB, so live-range growth is moot.
    for gidx in range(GROUPS_PER_STEP):
        r0, r1 = gidx * TILE_ROWS, (gidx + 1) * TILE_ROWS
        x = x_ref[r0:r1, :]                  # (TILE_ROWS, F) f32 (also the "S" head input)
        x16 = x.astype(bf16)

        # --- GCNConv1 -> ReLU -> BatchNorm1d (eval affine) -> dropout (identity) ---
        h1 = jnp.dot(a, jnp.dot(x16, w1, preferred_element_type=f32).astype(bf16),
                     preferred_element_type=f32) + b1
        h1 = jnp.maximum(h1, 0.0) * s1 + t1
        # TODO(synk): dropout (p=0.5) is eval-mode identity; training-mode stochastic
        #             dropout / batch-stat BatchNorm is not reproduced.

        # --- GCNConv2 -> ReLU -> BatchNorm1d (eval affine) -> dropout (identity) ---
        h2 = jnp.dot(a, jnp.dot(h1.astype(bf16), w2, preferred_element_type=f32).astype(bf16),
                     preferred_element_type=f32) + b2
        h2 = jnp.maximum(h2, 0.0) * s2 + t2

        # --- single-step LSTMs (window=1, zero init state), concat-free fused gates ---
        # LSTM1 input is cat([h1, h2]); the concat is replaced by two partial dots.
        gates1 = (jnp.dot(h1.astype(bf16), lw1t, preferred_element_type=f32)
                  + jnp.dot(h2.astype(bf16), lw1b, preferred_element_type=f32)
                  + lb1)
        h_lstm1 = lstm_single_step(gates1)   # (TILE_ROWS, H)

        gates2 = jnp.dot(h_lstm1.astype(bf16), lw2, preferred_element_type=f32) + lb2
        h_lstm2 = lstm_single_step(gates2)   # (TILE_ROWS, H)

        # --- head: relu(cat([H_1, H_2, S])) @ wl + bl, with S == X for window=1 ---
        # N=1 MXU dots replaced by VPU multiply + XLU lane reduction (XLU is idle here).
        out = (jnp.sum(jnp.maximum(h_lstm1, 0.0) * wla, axis=-1, keepdims=True)
               + jnp.sum(jnp.maximum(h_lstm2, 0.0) * wlb, axis=-1, keepdims=True)
               + jnp.sum(jnp.maximum(x, 0.0) * wlc, axis=-1, keepdims=True)
               + bl)
        out_ref[r0:r1, :] = out


# ---------------------------------------------------------------------------
# Dense GCN normalization (PyG gcn_norm semantics, add_self_loops=True).
# ---------------------------------------------------------------------------
def gcn_norm_dense(edge_index, edge_weight, num_nodes):
    src = edge_index[0]
    dst = edge_index[1]
    A = jnp.zeros((num_nodes, num_nodes), jnp.float32).at[dst, src].add(edge_weight)
    A = A + jnp.eye(num_nodes, dtype=jnp.float32)        # self loops, fill value 1.0
    deg = A.sum(axis=1)
    dinv = jnp.where(deg > 0, lax.rsqrt(deg), 0.0)
    return dinv[:, None] * A * dinv[None, :]             # D^-1/2 (A+I) D^-1/2


# ---------------------------------------------------------------------------
# Wrapper: tiny grid (1 step per TensorCore), weights + block-diag A stay resident.
# ---------------------------------------------------------------------------
def recurrent_gcn_forward(a_blk, x_flat, params):
    total = x_flat.shape[0]
    feat = x_flat.shape[1]
    assert total == GRID_STEPS * ROWS_PER_STEP
    assert a_blk.shape == (TILE_ROWS, TILE_ROWS)

    def resident(arr):
        # Whole-array block, constant index_map -> DMA'd once, stays resident in VMEM.
        return pl.BlockSpec(arr.shape, lambda g: (0,) * arr.ndim)

    weight_args = (
        params["w1"], params["b1"], params["s1"], params["t1"],
        params["w2"], params["b2"], params["s2"], params["t2"],
        params["lw1_top"], params["lw1_bot"], params["lb1"],
        params["lw2"], params["lb2"],
        params["wl_a"], params["wl_b"], params["wl_c"], params["bl"],
    )

    in_specs = ([resident(a_blk),
                 pl.BlockSpec((ROWS_PER_STEP, feat), lambda g: (g, 0))]
                + [resident(w) for w in weight_args])

    return pl.pallas_call(
        recurrent_gcn_kernel,
        out_shape=jax.ShapeDtypeStruct((total, 1), jnp.float32),
        grid_spec=pltpu.PrefetchScalarGridSpec(
            num_scalar_prefetch=0,
            grid=(GRID_STEPS,),
            in_specs=in_specs,
            out_specs=pl.BlockSpec((ROWS_PER_STEP, 1), lambda g: (g, 0)),
        ),
        compiler_params=pltpu.CompilerParams(
            dimension_semantics=("parallel",)),   # v7x: one grid step per TensorCore
    )(a_blk, x_flat, *weight_args)


# ---------------------------------------------------------------------------
# Deterministic parameter construction (synthetic init; shapes from __init__).
# Gate fusion / weight splits / bf16 casts are done ONCE here, not inside the kernel.
# ---------------------------------------------------------------------------
def make_params(key, node_features, hidden):
    ks = jax.random.split(key, 10)
    f32 = jnp.float32
    bf16 = jnp.bfloat16

    def normal(k, shape, scale, dtype=f32):
        return (scale * jax.random.normal(k, shape)).astype(dtype)

    # GCNConv layers: weight (bf16 MXU operand) + bias (f32, added to f32 accumulator).
    w1 = normal(ks[0], (node_features, hidden), 0.3, bf16)
    b1 = normal(ks[1], (1, hidden), 0.1)
    w2 = normal(ks[2], (hidden, hidden), 0.15, bf16)
    b2 = normal(ks[3], (1, hidden), 0.1)

    # BatchNorm1d (eval): gamma=1, beta=0, running stats (0, 1) -> identity affine.
    gamma = jnp.ones((1, hidden), f32)
    beta = jnp.zeros((1, hidden), f32)
    run_mean = jnp.zeros((1, hidden), f32)
    run_var = jnp.ones((1, hidden), f32)
    s = gamma * lax.rsqrt(run_var + BN_EPS)
    t = beta - run_mean * s
    # NOTE: BN1/BN2 share s/t only because this init is identity; a real checkpoint
    # would populate them separately.

    # LSTMs (single step, zero init state): fused input-projection weights with the dead
    # forget gate dropped, column layout [ i | o | g ] (3H = 96 lanes).  From a PyTorch
    # checkpoint: take weight_ih_l0 rows for [i, o, g], transpose to (in, 3H), and fuse
    # (bias_ih_l0 + bias_hh_l0)[i, o, g]; W_hh contributes exactly zero for window=1.
    lw1 = normal(ks[4], (2 * hidden, 3 * hidden), 0.1, bf16)       # (64, 96)
    lb1 = normal(ks[5], (1, 3 * hidden), 0.05)
    lw2 = normal(ks[6], (hidden, 3 * hidden), 0.1, bf16)           # (32, 96)
    lb2 = normal(ks[7], (1, 3 * hidden), 0.05)

    # Final Linear(2*hidden + node_features, 1) split into row vectors for the
    # concat-free VPU-multiply / lane-reduce head (f32 — head math stays on the VPU).
    wl = normal(ks[8], (2 * hidden + node_features, 1), 0.2)
    bl = normal(ks[9], (1, 1), 0.1)

    return dict(
        w1=w1, b1=b1, s1=s, t1=t,
        w2=w2, b2=b2, s2=s, t2=t,
        lw1_top=lw1[:hidden], lw1_bot=lw1[hidden:], lb1=lb1,
        lw2=lw2, lb2=lb2,
        wl_a=wl[:hidden].reshape(1, hidden),
        wl_b=wl[hidden:2 * hidden].reshape(1, hidden),
        wl_c=wl[2 * hidden:].reshape(1, node_features),
        bl=bl,
    )


# ---------------------------------------------------------------------------
# Pure-JAX replica of the kernel math (same bf16 casts) for validation.
# ---------------------------------------------------------------------------
def forward_reference(a_blk, x_flat, params):
    H = HIDDEN
    f32, bf16 = jnp.float32, jnp.bfloat16
    rows = a_blk.shape[0]

    def lstm(gates):
        io = _sigmoid(gates[:, : 2 * H])
        g = jnp.tanh(gates[:, 2 * H:])
        c = io[:, :H] * g
        return io[:, H:] * jnp.tanh(c)

    outs = []
    for gidx in range(x_flat.shape[0] // rows):
        x = x_flat[gidx * rows:(gidx + 1) * rows]
        x16 = x.astype(bf16)
        h1 = jnp.dot(a_blk, jnp.dot(x16, params["w1"], preferred_element_type=f32).astype(bf16),
                     preferred_element_type=f32) + params["b1"]
        h1 = jnp.maximum(h1, 0.0) * params["s1"] + params["t1"]
        h2 = jnp.dot(a_blk, jnp.dot(h1.astype(bf16), params["w2"], preferred_element_type=f32).astype(bf16),
                     preferred_element_type=f32) + params["b2"]
        h2 = jnp.maximum(h2, 0.0) * params["s2"] + params["t2"]
        gates1 = (jnp.dot(h1.astype(bf16), params["lw1_top"], preferred_element_type=f32)
                  + jnp.dot(h2.astype(bf16), params["lw1_bot"], preferred_element_type=f32)
                  + params["lb1"])
        hl1 = lstm(gates1)
        gates2 = jnp.dot(hl1.astype(bf16), params["lw2"], preferred_element_type=f32) + params["lb2"]
        hl2 = lstm(gates2)
        out = (jnp.sum(jnp.maximum(hl1, 0.0) * params["wl_a"], axis=-1, keepdims=True)
               + jnp.sum(jnp.maximum(hl2, 0.0) * params["wl_b"], axis=-1, keepdims=True)
               + jnp.sum(jnp.maximum(x, 0.0) * params["wl_c"], axis=-1, keepdims=True)
               + params["bl"])
        outs.append(out)
    return jnp.concatenate(outs, axis=0)


if __name__ == "__main__":
    key = jax.random.PRNGKey(0)
    k_x, k_w, k_p = jax.random.split(key, 3)

    # Static graph (as in the example dataset): 20 nodes, bidirectional ring
    # (40 directed edges), random positive edge weights.
    src = jnp.arange(NUM_NODES, dtype=jnp.int32)
    dst = (src + 1) % NUM_NODES
    edge_index = jnp.concatenate(
        [jnp.stack([src, dst], axis=0), jnp.stack([dst, src], axis=0)], axis=1)  # (2, 40)
    edge_weight = jax.random.uniform(
        k_w, (edge_index.shape[1],), minval=0.5, maxval=1.5).astype(jnp.float32)

    # Node features over NUM_SNAPSHOTS timesteps of the same static graph.
    x = jax.random.normal(k_x, (NUM_SNAPSHOTS, NUM_NODES, NODE_FEATURES), jnp.float32)
    x_flat = x.reshape(NUM_SNAPSHOTS * NUM_NODES, NODE_FEATURES)

    params = make_params(k_p, NODE_FEATURES, HIDDEN)

    # Dense normalized adjacency; modest block-diag replication (kept at 12 snapshots —
    # growing it further only streams zeros through the MXU).  bf16 MXU operand.
    a_norm = gcn_norm_dense(edge_index, edge_weight, NUM_NODES)                # (20, 20)
    a_blk = jnp.kron(jnp.eye(SNAPSHOTS_PER_TILE, dtype=jnp.float32), a_norm)   # (240, 240)
    a_blk = a_blk.astype(jnp.bfloat16)

    out = recurrent_gcn_forward(a_blk, x_flat, params)
    out = jax.block_until_ready(out)
    assert out.shape == (NUM_SNAPSHOTS * NUM_NODES, 1) and out.dtype == jnp.float32
    assert bool(jnp.isfinite(out).all())

    ref = forward_reference(a_blk, x_flat, params)
    max_err = float(jnp.max(jnp.abs(out - ref)))
    assert max_err < 1e-2, f"kernel/reference mismatch: max_err={max_err}"

    print("KERNEL_OK")
</pallas_src>

<mosaic_0001>
module attributes {stable_mosaic.version = 11 : i64} {
  func.func @recurrent_gcn_kernel(%arg0: i32, %arg1: memref<240x240xbf16, #tpu.memory_space<vmem>>, %arg2: memref<480x4xf32, #tpu.memory_space<vmem>>, %arg3: memref<4x32xbf16, #tpu.memory_space<vmem>>, %arg4: memref<1x32xf32, #tpu.memory_space<vmem>>, %arg5: memref<1x32xf32, #tpu.memory_space<vmem>>, %arg6: memref<1x32xf32, #tpu.memory_space<vmem>>, %arg7: memref<32x32xbf16, #tpu.memory_space<vmem>>, %arg8: memref<1x32xf32, #tpu.memory_space<vmem>>, %arg9: memref<1x32xf32, #tpu.memory_space<vmem>>, %arg10: memref<1x32xf32, #tpu.memory_space<vmem>>, %arg11: memref<32x96xbf16, #tpu.memory_space<vmem>>, %arg12: memref<32x96xbf16, #tpu.memory_space<vmem>>, %arg13: memref<1x96xf32, #tpu.memory_space<vmem>>, %arg14: memref<32x96xbf16, #tpu.memory_space<vmem>>, %arg15: memref<1x96xf32, #tpu.memory_space<vmem>>, %arg16: memref<1x32xf32, #tpu.memory_space<vmem>>, %arg17: memref<1x32xf32, #tpu.memory_space<vmem>>, %arg18: memref<1x4xf32, #tpu.memory_space<vmem>>, %arg19: memref<1x1xf32, #tpu.memory_space<vmem>>, %arg20: memref<480x1xf32, #tpu.memory_space<vmem>>) attributes {dimension_semantics = [#tpu.dimension_semantics<parallel>], iteration_bounds = array<i64: 2>, scalar_prefetch = 0 : i64, scratch_operands = 0 : i64, tpu.core_type = #tpu.core_type<tc>, window_params = [{pipeline_mode = #tpu.pipeline_mode<synchronous>, transform_indices = @transform_0, window_bounds = array<i64: 240, 240>}, {transform_indices = @transform_1, window_bounds = array<i64: 480, 4>}, {pipeline_mode = #tpu.pipeline_mode<synchronous>, transform_indices = @transform_2, window_bounds = array<i64: 4, 32>}, {pipeline_mode = #tpu.pipeline_mode<synchronous>, transform_indices = @transform_3, window_bounds = array<i64: 1, 32>}, {pipeline_mode = #tpu.pipeline_mode<synchronous>, transform_indices = @transform_4, window_bounds = array<i64: 1, 32>}, {pipeline_mode = #tpu.pipeline_mode<synchronous>, transform_indices = @transform_5, window_bounds = array<i64: 1, 32>}, {pipeline_mode = #tpu.pipeline_mode<synchronous>, transform_indices = @transform_6, window_bounds = array<i64: 32, 32>}, {pipeline_mode = #tpu.pipeline_mode<synchronous>, transform_indices = @transform_7, window_bounds = array<i64: 1, 32>}, {pipeline_mode = #tpu.pipeline_mode<synchronous>, transform_indices = @transform_8, window_bounds = array<i64: 1, 32>}, {pipeline_mode = #tpu.pipeline_mode<synchronous>, transform_indices = @transform_9, window_bounds = array<i64: 1, 32>}, {pipeline_mode = #tpu.pipeline_mode<synchronous>, transform_indices = @transform_10, window_bounds = array<i64: 32, 96>}, {pipeline_mode = #tpu.pipeline_mode<synchronous>, transform_indices = @transform_11, window_bounds = array<i64: 32, 96>}, {pipeline_mode = #tpu.pipeline_mode<synchronous>, transform_indices = @transform_12, window_bounds = array<i64: 1, 96>}, {pipeline_mode = #tpu.pipeline_mode<synchronous>, transform_indices = @transform_13, window_bounds = array<i64: 32, 96>}, {pipeline_mode = #tpu.pipeline_mode<synchronous>, transform_indices = @transform_14, window_bounds = array<i64: 1, 96>}, {pipeline_mode = #tpu.pipeline_mode<synchronous>, transform_indices = @transform_15, window_bounds = array<i64: 1, 32>}, {pipeline_mode = #tpu.pipeline_mode<synchronous>, transform_indices = @transform_16, window_bounds = array<i64: 1, 32>}, {pipeline_mode = #tpu.pipeline_mode<synchronous>, transform_indices = @transform_17, window_bounds = array<i64: 1, 4>}, {pipeline_mode = #tpu.pipeline_mode<synchronous>, transform_indices = @transform_18, window_bounds = array<i64: 1, 1>}, {transform_indices = @transform_19, window_bounds = array<i64: 480, 1>}]} {
    %c0 = arith.constant 0 : index
    %c0_0 = arith.constant 0 : index
    %0 = vector.load %arg1[%c0, %c0_0] : memref<240x240xbf16, #tpu.memory_space<vmem>>, vector<240x240xbf16>
    %c0_1 = arith.constant 0 : index
    %c0_2 = arith.constant 0 : index
    %1 = vector.load %arg3[%c0_1, %c0_2] : memref<4x32xbf16, #tpu.memory_space<vmem>>, vector<4x32xbf16>
    %c0_3 = arith.constant 0 : index
    %c0_4 = arith.constant 0 : index
    %2 = vector.load %arg7[%c0_3, %c0_4] : memref<32x32xbf16, #tpu.memory_space<vmem>>, vector<32x32xbf16>
    %c0_5 = arith.constant 0 : index
    %c0_6 = arith.constant 0 : index
    %3 = vector.load %arg11[%c0_5, %c0_6] : memref<32x96xbf16, #tpu.memory_space<vmem>>, vector<32x96xbf16>
    %c0_7 = arith.constant 0 : index
    %c0_8 = arith.constant 0 : index
    %4 = vector.load %arg12[%c0_7, %c0_8] : memref<32x96xbf16, #tpu.memory_space<vmem>>, vector<32x96xbf16>
    %c0_9 = arith.constant 0 : index
    %c0_10 = arith.constant 0 : index
    %5 = vector.load %arg14[%c0_9, %c0_10] : memref<32x96xbf16, #tpu.memory_space<vmem>>, vector<32x96xbf16>
    %c0_11 = arith.constant 0 : index
    %c0_12 = arith.constant 0 : index
    %6 = vector.load %arg4[%c0_11, %c0_12] : memref<1x32xf32, #tpu.memory_space<vmem>>, vector<1x32xf32>
    %c0_13 = arith.constant 0 : index
    %c0_14 = arith.constant 0 : index
    %7 = vector.load %arg5[%c0_13, %c0_14] : memref<1x32xf32, #tpu.memory_space<vmem>>, vector<1x32xf32>
    %c0_15 = arith.constant 0 : index
    %c0_16 = arith.constant 0 : index
    %8 = vector.load %arg6[%c0_15, %c0_16] : memref<1x32xf32, #tpu.memory_space<vmem>>, vector<1x32xf32>
    %c0_17 = arith.constant 0 : index
    %c0_18 = arith.constant 0 : index
    %9 = vector.load %arg8[%c0_17, %c0_18] : memref<1x32xf32, #tpu.memory_space<vmem>>, vector<1x32xf32>
    %c0_19 = arith.constant 0 : index
    %c0_20 = arith.constant 0 : index
    %10 = vector.load %arg9[%c0_19, %c0_20] : memref<1x32xf32, #tpu.memory_space<vmem>>, vector<1x32xf32>
    %c0_21 = arith.constant 0 : index
    %c0_22 = arith.constant 0 : index
    %11 = vector.load %arg10[%c0_21, %c0_22] : memref<1x32xf32, #tpu.memory_space<vmem>>, vector<1x32xf32>
    %c0_23 = arith.constant 0 : index
    %c0_24 = arith.constant 0 : index
    %12 = vector.load %arg13[%c0_23, %c0_24] : memref<1x96xf32, #tpu.memory_space<vmem>>, vector<1x96xf32>
    %c0_25 = arith.constant 0 : index
    %c0_26 = arith.constant 0 : index
    %13 = vector.load %arg15[%c0_25, %c0_26] : memref<1x96xf32, #tpu.memory_space<vmem>>, vector<1x96xf32>
    %c0_27 = arith.constant 0 : index
    %c0_28 = arith.constant 0 : index
    %14 = vector.load %arg16[%c0_27, %c0_28] : memref<1x32xf32, #tpu.memory_space<vmem>>, vector<1x32xf32>
    %c0_29 = arith.constant 0 : index
    %c0_30 = arith.constant 0 : index
    %15 = vector.load %arg17[%c0_29, %c0_30] : memref<1x32xf32, #tpu.memory_space<vmem>>, vector<1x32xf32>
    %c0_31 = arith.constant 0 : index
    %c0_32 = arith.constant 0 : index
    %16 = vector.load %arg18[%c0_31, %c0_32] : memref<1x4xf32, #tpu.memory_space<vmem>>, vector<1x4xf32>
    %c0_33 = arith.constant 0 : index
    %c0_34 = arith.constant 0 : index
    %17 = vector.load %arg19[%c0_33, %c0_34] : memref<1x1xf32, #tpu.memory_space<vmem>>, vector<1x1xf32>
    %c0_35 = arith.constant 0 : index
    %c0_36 = arith.constant 0 : index
    %18 = vector.load %arg2[%c0_35, %c0_36] : memref<480x4xf32, #tpu.memory_space<vmem>>, vector<240x4xf32>
    %19 = arith.truncf %18 : vector<240x4xf32> to vector<240x4xbf16>
    %cst = arith.constant dense<0.000000e+00> : vector<240x32xf32>
    %20 = tpu.matmul %19, %1, %cst {dimension_numbers = #tpu.dot_dimension_numbers<[1], [0], [0], [1], [0, 0, 1, 1], [], []>} : vector<240x4xbf16>, vector<4x32xbf16>, vector<240x32xf32> -> vector<240x32xf32>
    %21 = arith.truncf %20 : vector<240x32xf32> to vector<240x32xbf16>
    %cst_37 = arith.constant dense<0.000000e+00> : vector<240x32xf32>
    %22 = tpu.matmul %0, %21, %cst_37 {dimension_numbers = #tpu.dot_dimension_numbers<[1], [0], [0], [1], [0, 0, 1, 1], [], []>} : vector<240x240xbf16>, vector<240x32xbf16>, vector<240x32xf32> -> vector<240x32xf32>
    %23 = vector.broadcast %6 : vector<1x32xf32> to vector<240x32xf32>
    %24 = arith.addf %22, %23 : vector<240x32xf32>
    %cst_38 = arith.constant 0.000000e+00 : f32
    %25 = vector.broadcast %cst_38 : f32 to vector<240x32xf32>
    %26 = arith.maximumf %24, %25 : vector<240x32xf32>
    %27 = vector.broadcast %7 : vector<1x32xf32> to vector<240x32xf32>
    %28 = arith.mulf %26, %27 : vector<240x32xf32>
    %29 = vector.broadcast %8 : vector<1x32xf32> to vector<240x32xf32>
    %30 = arith.addf %28, %29 : vector<240x32xf32>
    %31 = arith.truncf %30 : vector<240x32xf32> to vector<240x32xbf16>
    %cst_39 = arith.constant dense<0.000000e+00> : vector<240x32xf32>
    %32 = tpu.matmul %31, %2, %cst_39 {dimension_numbers = #tpu.dot_dimension_numbers<[1], [0], [0], [1], [0, 0, 1, 1], [], []>} : vector<240x32xbf16>, vector<32x32xbf16>, vector<240x32xf32> -> vector<240x32xf32>
    %33 = arith.truncf %32 : vector<240x32xf32> to vector<240x32xbf16>
    %cst_40 = arith.constant dense<0.000000e+00> : vector<240x32xf32>
    %34 = tpu.matmul %0, %33, %cst_40 {dimension_numbers = #tpu.dot_dimension_numbers<[1], [0], [0], [1], [0, 0, 1, 1], [], []>} : vector<240x240xbf16>, vector<240x32xbf16>, vector<240x32xf32> -> vector<240x32xf32>
    %35 = vector.broadcast %9 : vector<1x32xf32> to vector<240x32xf32>
    %36 = arith.addf %34, %35 : vector<240x32xf32>
    %cst_41 = arith.constant 0.000000e+00 : f32
    %37 = vector.broadcast %cst_41 : f32 to vector<240x32xf32>
    %38 = arith.maximumf %36, %37 : vector<240x32xf32>
    %39 = vector.broadcast %10 : vector<1x32xf32> to vector<240x32xf32>
    %40 = arith.mulf %38, %39 : vector<240x32xf32>
    %41 = vector.broadcast %11 : vector<1x32xf32> to vector<240x32xf32>
    %42 = arith.addf %40, %41 : vector<240x32xf32>
    %43 = arith.truncf %30 : vector<240x32xf32> to vector<240x32xbf16>
    %cst_42 = arith.constant dense<0.000000e+00> : vector<240x96xf32>
    %44 = tpu.matmul %43, %3, %cst_42 {dimension_numbers = #tpu.dot_dimension_numbers<[1], [0], [0], [1], [0, 0, 1, 1], [], []>} : vector<240x32xbf16>, vector<32x96xbf16>, vector<240x96xf32> -> vector<240x96xf32>
    %45 = arith.truncf %42 : vector<240x32xf32> to vector<240x32xbf16>
    %cst_43 = arith.constant dense<0.000000e+00> : vector<240x96xf32>
    %46 = tpu.matmul %45, %4, %cst_43 {dimension_numbers = #tpu.dot_dimension_numbers<[1], [0], [0], [1], [0, 0, 1, 1], [], []>} : vector<240x32xbf16>, vector<32x96xbf16>, vector<240x96xf32> -> vector<240x96xf32>
    %47 = arith.addf %44, %46 : vector<240x96xf32>
    %48 = vector.broadcast %12 : vector<1x96xf32> to vector<240x96xf32>
    %49 = arith.addf %47, %48 : vector<240x96xf32>
    %50 = vector.extract_strided_slice %49 {offsets = [0, 0], sizes = [240, 64], strides = [1, 1]} : vector<240x96xf32> to vector<240x64xf32>
    %cst_44 = arith.constant 5.000000e-01 : f32
    %51 = vector.broadcast %cst_44 : f32 to vector<240x64xf32>
    %52 = arith.mulf %51, %50 : vector<240x64xf32>
    %53 = math.tanh %52 : vector<240x64xf32>
    %cst_45 = arith.constant 5.000000e-01 : f32
    %54 = vector.broadcast %cst_45 : f32 to vector<240x64xf32>
    %55 = arith.mulf %54, %53 : vector<240x64xf32>
    %cst_46 = arith.constant 5.000000e-01 : f32
    %56 = vector.broadcast %cst_46 : f32 to vector<240x64xf32>
    %57 = arith.addf %55, %56 : vector<240x64xf32>
    %58 = vector.extract_strided_slice %49 {offsets = [0, 64], sizes = [240, 32], strides = [1, 1]} : vector<240x96xf32> to vector<240x32xf32>
    %59 = math.tanh %58 : vector<240x32xf32>
    %60 = vector.extract_strided_slice %57 {offsets = [0, 0], sizes = [240, 32], strides = [1, 1]} : vector<240x64xf32> to vector<240x32xf32>
    %61 = arith.mulf %60, %59 : vector<240x32xf32>
    %62 = vector.extract_strided_slice %57 {offsets = [0, 32], sizes = [240, 32], strides = [1, 1]} : vector<240x64xf32> to vector<240x32xf32>
    %63 = math.tanh %61 : vector<240x32xf32>
    %64 = arith.mulf %62, %63 : vector<240x32xf32>
    %65 = arith.truncf %64 : vector<240x32xf32> to vector<240x32xbf16>
    %cst_47 = arith.constant dense<0.000000e+00> : vector<240x96xf32>
    %66 = tpu.matmul %65, %5, %cst_47 {dimension_numbers = #tpu.dot_dimension_numbers<[1], [0], [0], [1], [0, 0, 1, 1], [], []>} : vector<240x32xbf16>, vector<32x96xbf16>, vector<240x96xf32> -> vector<240x96xf32>
    %67 = vector.broadcast %13 : vector<1x96xf32> to vector<240x96xf32>
    %68 = arith.addf %66, %67 : vector<240x96xf32>
    %69 = vector.extract_strided_slice %68 {offsets = [0, 0], sizes = [240, 64], strides = [1, 1]} : vector<240x96xf32> to vector<240x64xf32>
    %cst_48 = arith.constant 5.000000e-01 : f32
    %70 = vector.broadcast %cst_48 : f32 to vector<240x64xf32>
    %71 = arith.mulf %70, %69 : vector<240x64xf32>
    %72 = math.tanh %71 : vector<240x64xf32>
    %cst_49 = arith.constant 5.000000e-01 : f32
    %73 = vector.broadcast %cst_49 : f32 to vector<240x64xf32>
    %74 = arith.mulf %73, %72 : vector<240x64xf32>
    %cst_50 = arith.constant 5.000000e-01 : f32
    %75 = vector.broadcast %cst_50 : f32 to vector<240x64xf32>
    %76 = arith.addf %74, %75 : vector<240x64xf32>
    %77 = vector.extract_strided_slice %68 {offsets = [0, 64], sizes = [240, 32], strides = [1, 1]} : vector<240x96xf32> to vector<240x32xf32>
    %78 = math.tanh %77 : vector<240x32xf32>
    %79 = vector.extract_strided_slice %76 {offsets = [0, 0], sizes = [240, 32], strides = [1, 1]} : vector<240x64xf32> to vector<240x32xf32>
    %80 = arith.mulf %79, %78 : vector<240x32xf32>
    %81 = vector.extract_strided_slice %76 {offsets = [0, 32], sizes = [240, 32], strides = [1, 1]} : vector<240x64xf32> to vector<240x32xf32>
    %82 = math.tanh %80 : vector<240x32xf32>
    %83 = arith.mulf %81, %82 : vector<240x32xf32>
    %cst_51 = arith.constant 0.000000e+00 : f32
    %84 = vector.broadcast %cst_51 : f32 to vector<240x32xf32>
    %85 = arith.maximumf %64, %84 : vector<240x32xf32>
    %86 = vector.broadcast %14 : vector<1x32xf32> to vector<240x32xf32>
    %87 = arith.mulf %85, %86 : vector<240x32xf32>
    %cst_52 = arith.constant dense<0.000000e+00> : vector<240xf32>
    %88 = vector.multi_reduction <add>, %87, %cst_52 [1] : vector<240x32xf32> to vector<240xf32>
    %89 = vector.shape_cast %88 : vector<240xf32> to vector<240x1xf32>
    %cst_53 = arith.constant 0.000000e+00 : f32
    %90 = vector.broadcast %cst_53 : f32 to vector<240x32xf32>
    %91 = arith.maximumf %83, %90 : vector<240x32xf32>
    %92 = vector.broadcast %15 : vector<1x32xf32> to vector<240x32xf32>
    %93 = arith.mulf %91, %92 : vector<240x32xf32>
    %cst_54 = arith.constant dense<0.000000e+00> : vector<240xf32>
    %94 = vector.multi_reduction <add>, %93, %cst_54 [1] : vector<240x32xf32> to vector<240xf32>
    %95 = vector.shape_cast %94 : vector<240xf32> to vector<240x1xf32>
    %96 = arith.addf %89, %95 : vector<240x1xf32>
    %cst_55 = arith.constant 0.000000e+00 : f32
    %97 = vector.broadcast %cst_55 : f32 to vector<240x4xf32>
    %98 = arith.maximumf %18, %97 : vector<240x4xf32>
    %99 = vector.broadcast %16 : vector<1x4xf32> to vector<240x4xf32>
    %100 = arith.mulf %98, %99 : vector<240x4xf32>
    %cst_56 = arith.constant dense<0.000000e+00> : vector<240xf32>
    %101 = vector.multi_reduction <add>, %100, %cst_56 [1] : vector<240x4xf32> to vector<240xf32>
    %102 = vector.shape_cast %101 : vector<240xf32> to vector<240x1xf32>
    %103 = arith.addf %96, %102 : vector<240x1xf32>
    %104 = vector.broadcast %17 : vector<1x1xf32> to vector<240x1xf32>
    %105 = arith.addf %103, %104 : vector<240x1xf32>
    %c0_57 = arith.constant 0 : index
    %c0_58 = arith.constant 0 : index
    %106 = vector.load %arg20[%c0_57, %c0_58] : memref<480x1xf32, #tpu.memory_space<vmem>>, vector<240x1xf32>
    tpu.vector_store %arg20[%c0_57, %c0_58], %105 {strides = array<i32>} : memref<480x1xf32, #tpu.memory_space<vmem>>, vector<240x1xf32>,
    %c240 = arith.constant 240 : index
    %c0_59 = arith.constant 0 : index
    %107 = vector.load %arg2[%c240, %c0_59] : memref<480x4xf32, #tpu.memory_space<vmem>>, vector<240x4xf32>
    %108 = arith.truncf %107 : vector<240x4xf32> to vector<240x4xbf16>
    %cst_60 = arith.constant dense<0.000000e+00> : vector<240x32xf32>
    %109 = tpu.matmul %108, %1, %cst_60 {dimension_numbers = #tpu.dot_dimension_numbers<[1], [0], [0], [1], [0, 0, 1, 1], [], []>} : vector<240x4xbf16>, vector<4x32xbf16>, vector<240x32xf32> -> vector<240x32xf32>
    %110 = arith.truncf %109 : vector<240x32xf32> to vector<240x32xbf16>
    %cst_61 = arith.constant dense<0.000000e+00> : vector<240x32xf32>
    %111 = tpu.matmul %0, %110, %cst_61 {dimension_numbers = #tpu.dot_dimension_numbers<[1], [0], [0], [1], [0, 0, 1, 1], [], []>} : vector<240x240xbf16>, vector<240x32xbf16>, vector<240x32xf32> -> vector<240x32xf32>
    %112 = vector.broadcast %6 : vector<1x32xf32> to vector<240x32xf32>
    %113 = arith.addf %111, %112 : vector<240x32xf32>
    %cst_62 = arith.constant 0.000000e+00 : f32
    %114 = vector.broadcast %cst_62 : f32 to vector<240x32xf32>
    %115 = arith.maximumf %113, %114 : vector<240x32xf32>
    %116 = vector.broadcast %7 : vector<1x32xf32> to vector<240x32xf32>
    %117 = arith.mulf %115, %116 : vector<240x32xf32>
    %118 = vector.broadcast %8 : vector<1x32xf32> to vector<240x32xf32>
    %119 = arith.addf %117, %118 : vector<240x32xf32>
    %120 = arith.truncf %119 : vector<240x32xf32> to vector<240x32xbf16>
    %cst_63 = arith.constant dense<0.000000e+00> : vector<240x32xf32>
    %121 = tpu.matmul %120, %2, %cst_63 {dimension_numbers = #tpu.dot_dimension_numbers<[1], [0], [0], [1], [0, 0, 1, 1], [], []>} : vector<240x32xbf16>, vector<32x32xbf16>, vector<240x32xf32> -> vector<240x32xf32>
    %122 = arith.truncf %121 : vector<240x32xf32> to vector<240x32xbf16>
    %cst_64 = arith.constant dense<0.000000e+00> : vector<240x32xf32>
    %123 = tpu.matmul %0, %122, %cst_64 {dimension_numbers = #tpu.dot_dimension_numbers<[1], [0], [0], [1], [0, 0, 1, 1], [], []>} : vector<240x240xbf16>, vector<240x32xbf16>, vector<240x32xf32> -> vector<240x32xf32>
    %124 = vector.broadcast %9 : vector<1x32xf32> to vector<240x32xf32>
    %125 = arith.addf %123, %124 : vector<240x32xf32>
    %cst_65 = arith.constant 0.000000e+00 : f32
    %126 = vector.broadcast %cst_65 : f32 to vector<240x32xf32>
    %127 = arith.maximumf %125, %126 : vector<240x32xf32>
    %128 = vector.broadcast %10 : vector<1x32xf32> to vector<240x32xf32>
    %129 = arith.mulf %127, %128 : vector<240x32xf32>
    %130 = vector.broadcast %11 : vector<1x32xf32> to vector<240x32xf32>
    %131 = arith.addf %129, %130 : vector<240x32xf32>
    %132 = arith.truncf %119 : vector<240x32xf32> to vector<240x32xbf16>
    %cst_66 = arith.constant dense<0.000000e+00> : vector<240x96xf32>
    %133 = tpu.matmul %132, %3, %cst_66 {dimension_numbers = #tpu.dot_dimension_numbers<[1], [0], [0], [1], [0, 0, 1, 1], [], []>} : vector<240x32xbf16>, vector<32x96xbf16>, vector<240x96xf32> -> vector<240x96xf32>
    %134 = arith.truncf %131 : vector<240x32xf32> to vector<240x32xbf16>
    %cst_67 = arith.constant dense<0.000000e+00> : vector<240x96xf32>
    %135 = tpu.matmul %134, %4, %cst_67 {dimension_numbers = #tpu.dot_dimension_numbers<[1], [0], [0], [1], [0, 0, 1, 1], [], []>} : vector<240x32xbf16>, vector<32x96xbf16>, vector<240x96xf32> -> vector<240x96xf32>
    %136 = arith.addf %133, %135 : vector<240x96xf32>
    %137 = vector.broadcast %12 : vector<1x96xf32> to vector<240x96xf32>
    %138 = arith.addf %136, %137 : vector<240x96xf32>
    %139 = vector.extract_strided_slice %138 {offsets = [0, 0], sizes = [240, 64], strides = [1, 1]} : vector<240x96xf32> to vector<240x64xf32>
    %cst_68 = arith.constant 5.000000e-01 : f32
    %140 = vector.broadcast %cst_68 : f32 to vector<240x64xf32>
    %141 = arith.mulf %140, %139 : vector<240x64xf32>
    %142 = math.tanh %141 : vector<240x64xf32>
    %cst_69 = arith.constant 5.000000e-01 : f32
    %143 = vector.broadcast %cst_69 : f32 to vector<240x64xf32>
    %144 = arith.mulf %143, %142 : vector<240x64xf32>
    %cst_70 = arith.constant 5.000000e-01 : f32
    %145 = vector.broadcast %cst_70 : f32 to vector<240x64xf32>
    %146 = arith.addf %144, %145 : vector<240x64xf32>
    %147 = vector.extract_strided_slice %138 {offsets = [0, 64], sizes = [240, 32], strides = [1, 1]} : vector<240x96xf32> to vector<240x32xf32>
    %148 = math.tanh %147 : vector<240x32xf32>
    %149 = vector.extract_strided_slice %146 {offsets = [0, 0], sizes = [240, 32], strides = [1, 1]} : vector<240x64xf32> to vector<240x32xf32>
    %150 = arith.mulf %149, %148 : vector<240x32xf32>
    %151 = vector.extract_strided_slice %146 {offsets = [0, 32], sizes = [240, 32], strides = [1, 1]} : vector<240x64xf32> to vector<240x32xf32>
    %152 = math.tanh %150 : vector<240x32xf32>
    %153 = arith.mulf %151, %152 : vector<240x32xf32>
    %154 = arith.truncf %153 : vector<240x32xf32> to vector<240x32xbf16>
    %cst_71 = arith.constant dense<0.000000e+00> : vector<240x96xf32>
    %155 = tpu.matmul %154, %5, %cst_71 {dimension_numbers = #tpu.dot_dimension_numbers<[1], [0], [0], [1], [0, 0, 1, 1], [], []>} : vector<240x32xbf16>, vector<32x96xbf16>, vector<240x96xf32> -> vector<240x96xf32>
    %156 = vector.broadcast %13 : vector<1x96xf32> to vector<240x96xf32>
    %157 = arith.addf %155, %156 : vector<240x96xf32>
    %158 = vector.extract_strided_slice %157 {offsets = [0, 0], sizes = [240, 64], strides = [1, 1]} : vector<240x96xf32> to vector<240x64xf32>
    %cst_72 = arith.constant 5.000000e-01 : f32
    %159 = vector.broadcast %cst_72 : f32 to vector<240x64xf32>
    %160 = arith.mulf %159, %158 : vector<240x64xf32>
    %161 = math.tanh %160 : vector<240x64xf32>
    %cst_73 = arith.constant 5.000000e-01 : f32
    %162 = vector.broadcast %cst_73 : f32 to vector<240x64xf32>
    %163 = arith.mulf %162, %161 : vector<240x64xf32>
    %cst_74 = arith.constant 5.000000e-01 : f32
    %164 = vector.broadcast %cst_74 : f32 to vector<240x64xf32>
    %165 = arith.addf %163, %164 : vector<240x64xf32>
    %166 = vector.extract_strided_slice %157 {offsets = [0, 64], sizes = [240, 32], strides = [1, 1]} : vector<240x96xf32> to vector<240x32xf32>
    %167 = math.tanh %166 : vector<240x32xf32>
    %168 = vector.extract_strided_slice %165 {offsets = [0, 0], sizes = [240, 32], strides = [1, 1]} : vector<240x64xf32> to vector<240x32xf32>
    %169 = arith.mulf %168, %167 : vector<240x32xf32>
    %170 = vector.extract_strided_slice %165 {offsets = [0, 32], sizes = [240, 32], strides = [1, 1]} : vector<240x64xf32> to vector<240x32xf32>
    %171 = math.tanh %169 : vector<240x32xf32>
    %172 = arith.mulf %170, %171 : vector<240x32xf32>
    %cst_75 = arith.constant 0.000000e+00 : f32
    %173 = vector.broadcast %cst_75 : f32 to vector<240x32xf32>
    %174 = arith.maximumf %153, %173 : vector<240x32xf32>
    %175 = vector.broadcast %14 : vector<1x32xf32> to vector<240x32xf32>
    %176 = arith.mulf %174, %175 : vector<240x32xf32>
    %cst_76 = arith.constant dense<0.000000e+00> : vector<240xf32>
    %177 = vector.multi_reduction <add>, %176, %cst_76 [1] : vector<240x32xf32> to vector<240xf32>
    %178 = vector.shape_cast %177 : vector<240xf32> to vector<240x1xf32>
    %cst_77 = arith.constant 0.000000e+00 : f32
    %179 = vector.broadcast %cst_77 : f32 to vector<240x32xf32>
    %180 = arith.maximumf %172, %179 : vector<240x32xf32>
    %181 = vector.broadcast %15 : vector<1x32xf32> to vector<240x32xf32>
    %182 = arith.mulf %180, %181 : vector<240x32xf32>
    %cst_78 = arith.constant dense<0.000000e+00> : vector<240xf32>
    %183 = vector.multi_reduction <add>, %182, %cst_78 [1] : vector<240x32xf32> to vector<240xf32>
    %184 = vector.shape_cast %183 : vector<240xf32> to vector<240x1xf32>
    %185 = arith.addf %178, %184 : vector<240x1xf32>
    %cst_79 = arith.constant 0.000000e+00 : f32
    %186 = vector.broadcast %cst_79 : f32 to vector<240x4xf32>
    %187 = arith.maximumf %107, %186 : vector<240x4xf32>
    %188 = vector.broadcast %16 : vector<1x4xf32> to vector<240x4xf32>
    %189 = arith.mulf %187, %188 : vector<240x4xf32>
    %cst_80 = arith.constant dense<0.000000e+00> : vector<240xf32>
    %190 = vector.multi_reduction <add>, %189, %cst_80 [1] : vector<240x4xf32> to vector<240xf32>
    %191 = vector.shape_cast %190 : vector<240xf32> to vector<240x1xf32>
    %192 = arith.addf %185, %191 : vector<240x1xf32>
    %193 = vector.broadcast %17 : vector<1x1xf32> to vector<240x1xf32>
    %194 = arith.addf %192, %193 : vector<240x1xf32>
    %c240_81 = arith.constant 240 : index
    %c0_82 = arith.constant 0 : index
    %195 = vector.load %arg20[%c240_81, %c0_82] : memref<480x1xf32, #tpu.memory_space<vmem>>, vector<240x1xf32>
    tpu.vector_store %arg20[%c240_81, %c0_82], %194 {strides = array<i32>} : memref<480x1xf32, #tpu.memory_space<vmem>>, vector<240x1xf32>,
    return
  }
  func.func @transform_0(%arg0: i32) -> (i32, i32) {
    %c0_i32 = arith.constant 0 : i32
    %c0_i32_0 = arith.constant 0 : i32
    %c0_i32_1 = arith.constant 0 : i32
    return %c0_i32, %c0_i32_0 : i32, i32
  }
  func.func @transform_1(%arg0: i32) -> (i32, i32) {
    %c0_i32 = arith.constant 0 : i32
    %c0_i32_0 = arith.constant 0 : i32
    return %arg0, %c0_i32 : i32, i32
  }
  func.func @transform_2(%arg0: i32) -> (i32, i32) {
    %c0_i32 = arith.constant 0 : i32
    %c0_i32_0 = arith.constant 0 : i32
    %c0_i32_1 = arith.constant 0 : i32
    return %c0_i32, %c0_i32_0 : i32, i32
  }
  func.func @transform_3(%arg0: i32) -> (i32, i32) {
    %c0_i32 = arith.constant 0 : i32
    %c0_i32_0 = arith.constant 0 : i32
    %c0_i32_1 = arith.constant 0 : i32
    return %c0_i32, %c0_i32_0 : i32, i32
  }
  func.func @transform_4(%arg0: i32) -> (i32, i32) {
    %c0_i32 = arith.constant 0 : i32
    %c0_i32_0 = arith.constant 0 : i32
    %c0_i32_1 = arith.constant 0 : i32
    return %c0_i32, %c0_i32_0 : i32, i32
  }
  func.func @transform_5(%arg0: i32) -> (i32, i32) {
    %c0_i32 = arith.constant 0 : i32
    %c0_i32_0 = arith.constant 0 : i32
    %c0_i32_1 = arith.constant 0 : i32
    return %c0_i32, %c0_i32_0 : i32, i32
  }
  func.func @transform_6(%arg0: i32) -> (i32, i32) {
    %c0_i32 = arith.constant 0 : i32
    %c0_i32_0 = arith.constant 0 : i32
    %c0_i32_1 = arith.constant 0 : i32
    return %c0_i32, %c0_i32_0 : i32, i32
  }
  func.func @transform_7(%arg0: i32) -> (i32, i32) {
    %c0_i32 = arith.constant 0 : i32
    %c0_i32_0 = arith.constant 0 : i32
    %c0_i32_1 = arith.constant 0 : i32
    return %c0_i32, %c0_i32_0 : i32, i32
  }
  func.func @transform_8(%arg0: i32) -> (i32, i32) {
    %c0_i32 = arith.constant 0 : i32
    %c0_i32_0 = arith.constant 0 : i32
    %c0_i32_1 = arith.constant 0 : i32
    return %c0_i32, %c0_i32_0 : i32, i32
  }
  func.func @transform_9(%arg0: i32) -> (i32, i32) {
    %c0_i32 = arith.constant 0 : i32
    %c0_i32_0 = arith.constant 0 : i32
    %c0_i32_1 = arith.constant 0 : i32
    return %c0_i32, %c0_i32_0 : i32, i32
  }
  func.func @transform_10(%arg0: i32) -> (i32, i32) {
    %c0_i32 = arith.constant 0 : i32
    %c0_i32_0 = arith.constant 0 : i32
    %c0_i32_1 = arith.constant 0 : i32
    return %c0_i32, %c0_i32_0 : i32, i32
  }
  func.func @transform_11(%arg0: i32) -> (i32, i32) {
    %c0_i32 = arith.constant 0 : i32
    %c0_i32_0 = arith.constant 0 : i32
    %c0_i32_1 = arith.constant 0 : i32
    return %c0_i32, %c0_i32_0 : i32, i32
  }
  func.func @transform_12(%arg0: i32) -> (i32, i32) {
    %c0_i32 = arith.constant 0 : i32
    %c0_i32_0 = arith.constant 0 : i32
    %c0_i32_1 = arith.constant 0 : i32
    return %c0_i32, %c0_i32_0 : i32, i32
  }
  func.func @transform_13(%arg0: i32) -> (i32, i32) {
    %c0_i32 = arith.constant 0 : i32
    %c0_i32_0 = arith.constant 0 : i32
    %c0_i32_1 = arith.constant 0 : i32
    return %c0_i32, %c0_i32_0 : i32, i32
  }
  func.func @transform_14(%arg0: i32) -> (i32, i32) {
    %c0_i32 = arith.constant 0 : i32
    %c0_i32_0 = arith.constant 0 : i32
    %c0_i32_1 = arith.constant 0 : i32
    return %c0_i32, %c0_i32_0 : i32, i32
  }
  func.func @transform_15(%arg0: i32) -> (i32, i32) {
    %c0_i32 = arith.constant 0 : i32
    %c0_i32_0 = arith.constant 0 : i32
    %c0_i32_1 = arith.constant 0 : i32
    return %c0_i32, %c0_i32_0 : i32, i32
  }
  func.func @transform_16(%arg0: i32) -> (i32, i32) {
    %c0_i32 = arith.constant 0 : i32
    %c0_i32_0 = arith.constant 0 : i32
    %c0_i32_1 = arith.constant 0 : i32
    return %c0_i32, %c0_i32_0 : i32, i32
  }
  func.func @transform_17(%arg0: i32) -> (i32, i32) {
    %c0_i32 = arith.constant 0 : i32
    %c0_i32_0 = arith.constant 0 : i32
    %c0_i32_1 = arith.constant 0 : i32
    return %c0_i32, %c0_i32_0 : i32, i32
  }
  func.func @transform_18(%arg0: i32) -> (i32, i32) {
    %c0_i32 = arith.constant 0 : i32
    %c0_i32_0 = arith.constant 0 : i32
    %c0_i32_1 = arith.constant 0 : i32
    return %c0_i32, %c0_i32_0 : i32, i32
  }
  func.func @transform_19(%arg0: i32) -> (i32, i32) {
    %c0_i32 = arith.constant 0 : i32
    %c0_i32_0 = arith.constant 0 : i32
    return %arg0, %c0_i32 : i32, i32
  }
}

</mosaic_0001>

<bundles_post_ra>
// kernel: tpu_custom_call.1
= control target key start
LH: loop header
LB: loop body
LE: loop exit
PB: predicated region body
PF: predicated region fallthrough
CT: control target
= control target key end

     0   :  { %s9976_s20 = smov 0   ;;  %s14756_s0 = inlined_call_operand.vmem [shape: bf16[240,240], index: 0, kind: input, shape index: {}]   ;;  %s14757_s1 = inlined_call_operand.vmem [shape: f32[960,4], index: 1, kind: input, shape index: {}]   ;;  %s14758_s2 = inlined_call_operand.vmem [shape: bf16[4,32], index: 2, kind: input, shape index: {}]   ;;  %s14759_s3 = inlined_call_operand.vmem [shape: f32[1,32], index: 3, kind: input, shape index: {}]   ;;  %s14760_s4 = inlined_call_operand.vmem [shape: f32[1,32], index: 4, kind: input, shape index: {}]   ;;  %s14761_s5 = inlined_call_operand.vmem [shape: f32[1,32], index: 5, kind: input, shape index: {}]   ;;  %s14762_s6 = inlined_call_operand.vmem [shape: bf16[32,32], index: 6, kind: input, shape index: {}]   ;;  %s14763_s7 = inlined_call_operand.vmem [shape: f32[1,32], index: 7, kind: input, shape index: {}]   ;;  %s14764_s8 = inlined_call_operand.vmem [shape: f32[1,32], index: 8, kind: input, shape index: {}]   ;;  %s14765_s9 = inlined_call_operand.vmem [shape: f32[1,32], index: 9, kind: input, shape index: {}]   ;;  %s14766_s10 = inlined_call_operand.vmem [shape: bf16[32,96], index: 10, kind: input, shape index: {}]   ;;  %s14767_s11 = inlined_call_operand.vmem [shape: bf16[32,96], index: 11, kind: input, shape index: {}]   ;;  %s14768_s12 = inlined_call_operand.vmem [shape: f32[1,96], index: 12, kind: input, shape index: {}]   ;;  %s14769_s13 = inlined_call_operand.vmem [shape: bf16[32,96], index: 13, kind: input, shape index: {}]   ;;  %s14770_s14 = inlined_call_operand.vmem [shape: f32[1,96], index: 14, kind: input, shape index: {}]   ;;  %s14771_s15 = inlined_call_operand.vmem [shape: f32[1,32], index: 15, kind: input, shape index: {}]   ;;  %s14772_s16 = inlined_call_operand.vmem [shape: f32[1,32], index: 16, kind: input, shape index: {}]   ;;  %s14773_s17 = inlined_call_operand.vmem [shape: f32[1,4], index: 17, kind: input, shape index: {}]   ;;  %s14774_s18 = inlined_call_operand.<no memory space> [shape: f32[1,1], index: 18, kind: input, shape index: {}]   ;;  %s14775_s19 = inlined_call_operand.vmem [shape: f32[960,1], index: 19, kind: output, shape index: {}]  }
   0x1   :  { %14786 = sst [smem:[#allocation61_spill]] %s14756_s0  ;;  %v24_v0 = vstv %s14774_s18 }
   0x2   :  { %14787 = sst [smem:[#allocation62_spill]] %s14757_s1  ;;  %25 = vst [vmem:[#allocation2] sm:$0x1] %v24_v0 }
   0x3   :  { %14788 = sst [smem:[#allocation63_spill]] %s14758_s2 }
   0x4   :  { %14789 = sst [smem:[#allocation64_spill]] %s14759_s3 }
   0x5 LB: > { %s7828_s21 = sadd.s32 4294967295, %s9865_s20   ;;  %p7832_p0 = scmp.ge.s32.totalorder %s9865_s20, 1  ;;  %s9865_s20 = sphi %s9976_s20, %s31_s20  }
   0x6   : > { %p540_p1 = scmp.lt.s32.totalorder %s9865_s20, 3 }
   0x8   : > { %p541_p2 = pnand %p7832_p0, %p540_p1 }
   0xa   : > { %544 = sbr.rel (%p541_p2) target bundleno = 4239 (0x108f), region = 96 }
  0x11   : > { %s14790_s2 = sld [smem:[#allocation63_spill]]  ;;  %vm759_vm0 = vcmask 1041408   ;;  %s596_s18 = smul.u32 60, %s7828_s21  ;;  %v14780_v2 = vmov 0.0   ;;  %vm9868_vm1 = vmmov 0   ;;  %vm713_vm2 = vcmask 31744  }
  0x12   : > { %8265 = vmatprep.subr.bf16.mxu0 %v14780_v2  ;;  %8267 = vmatprep.mubr.msk.bf16.mxu0 %vm9868_vm1, %v14780_v2  ;;  %s14791_s3 = sld [smem:[#allocation62_spill]]  ;;  %v14778_v40 = vmov 0   ;;  %s14792_s29 = sld [smem:[#allocation61_spill]]  ;;  %vm1072_vm3 = vcmask 916480   ;;  %vm1400_vm4 = vcmask 261120   ;;  %vm4345_vm5 = vcmask 7168  }
  0x13   : > { %p597_p3 = scmp.lt.s32.totalorder %s596_s18, 119  ;;  %8901 = vmatprep.subr.bf16.mxu1 %v14778_v40  ;;  %s14793_s27 = sld [smem:[#allocation64_spill]] }
  0x14   : > { %s9870_s30 = smov 64   ;;  %s14784_s24 = smov 32  }
  0x15   : > { %s14990_s18 = smov (!%p597_p3, %s596_s18), 119  ;;  %s9872_s21 = smov 96  }
  0x16   : > { %s7833_s23 = sshll.u32 %s14990_s18, 3 }
  0x17   : > { %v639_v1 = vld [vmem:[%s14790_s2] sm:$0x3]  ;;  %s13011_s22 = scalar_lea.vmem %s14775_s19, %s7833_s23  ;;  %s14908_s2 = smov 32  }
  0x18   : > { %v9988_v3 = vsel %vm759_vm0, %v639_v1, 0  ;;  %s10001_s26 = scalar_lea.vmem %s14791_s3, %s7833_s23  ;;  %v10081_v50 = vld [vmem:[%s14792_s29 + $0x4] ss:$8 sps:$4 sm:$0xff]   ;;  %v8954_v57 = vld [vmem:[%s14792_s29 + $0x34] ss:$8 sps:$4 sm:$0xff]  }
  0x19   : > { %8266 = vmatpush3.bf16.msra.mxu0 %v9988_v3  ;;  %v668_v4 = vld [vmem:[%s10001_s26] sm:$0xff]  ;;  %v669_v5 = vld [vmem:[%s10001_s26 + $0x8] sm:$0xff]  ;;  %v670_v7 = vld [vmem:[%s10001_s26 + $0x10] sm:$0xff]  ;;  %7884 = vmatprep.mubr.msk.bf16.mxu1 %vm1072_vm3, %v8954_v57 }
  0x1a   : > { %v698_v6 = vpack.c.bf16 %v669_v5, %v668_v4  ;;  %v671_v8 = vld [vmem:[%s10001_s26 + $0x18] sm:$0xff]  ;;  %v672_v10 = vld [vmem:[%s10001_s26 + $0x20] sm:$0xff]  ;;  %v673_v11 = vld [vmem:[%s10001_s26 + $0x28] sm:$0xff]  ;;  %1118 = vmatprep.subr.bf16.mxu0 %v14778_v40 }
  0x1b   : > { %v699_v9 = vpack.c.bf16 %v671_v8, %v670_v7  ;;  %v700_v12 = vpack.c.bf16 %v673_v11, %v672_v10  ;;  %v674_v13 = vld [vmem:[%s10001_s26 + $0x30] sm:$0xff]  ;;  %v675_v14 = vld [vmem:[%s10001_s26 + $0x38] sm:$0xff]  ;;  %v676_v16 = vld [vmem:[%s10001_s26 + $0x40] sm:$0xff] }
  0x1c   : > { %8268 = vmatmul.mubr.msk.bf16.vlgmr.msra.gmra.mrb[0].mxu0 %vm713_vm2, %v698_v6  ;;  %v701_v15 = vpack.c.bf16 %v675_v14, %v674_v13  ;;  %v677_v17 = vld [vmem:[%s10001_s26 + $0x48] sm:$0xff]  ;;  %v678_v19 = vld [vmem:[%s10001_s26 + $0x50] sm:$0xff]  ;;  %v679_v20 = vld [vmem:[%s10001_s26 + $0x58] sm:$0xff] }
  0x1d   : > { %8271 = vmatprep.mubr.msk.bf16.mxu0 %vm9868_vm1, %v14780_v2  ;;  %v702_v18 = vpack.c.bf16 %v677_v17, %v676_v16  ;;  %v703_v21 = vpack.c.bf16 %v679_v20, %v678_v19  ;;  %v680_v22 = vld [vmem:[%s10001_s26 + $0x60] sm:$0xff]  ;;  %v681_v23 = vld [vmem:[%s10001_s26 + $0x68] sm:$0xff]  ;;  %v682_v25 = vld [vmem:[%s10001_s26 + $0x70] sm:$0xff] }
  0x1e   : > { %v704_v24 = vpack.c.bf16 %v681_v23, %v680_v22  ;;  %v683_v26 = vld [vmem:[%s10001_s26 + $0x78] sm:$0xff]  ;;  %v684_v28 = vld [vmem:[%s10001_s26 + $0x80] sm:$0xff]  ;;  %v685_v29 = vld [vmem:[%s10001_s26 + $0x88] sm:$0xff] }
  0x1f   : > { %v705_v27 = vpack.c.bf16 %v683_v26, %v682_v25  ;;  %v706_v30 = vpack.c.bf16 %v685_v29, %v684_v28  ;;  %v686_v31 = vld [vmem:[%s10001_s26 + $0x90] sm:$0xff]  ;;  %v687_v32 = vld [vmem:[%s10001_s26 + $0x98] sm:$0xff]  ;;  %v688_v34 = vld [vmem:[%s10001_s26 + $0xa0] sm:$0xff] }
  0x20   : > { %v707_v33 = vpack.c.bf16 %v687_v32, %v686_v31  ;;  %v689_v35 = vld [vmem:[%s10001_s26 + $0xa8] sm:$0xff]  ;;  %v690_v37 = vld [vmem:[%s10001_s26 + $0xb0] sm:$0xff]  ;;  %v691_v38 = vld [vmem:[%s10001_s26 + $0xb8] sm:$0xff] }
  0x21   : > { %v708_v36 = vpack.c.bf16 %v689_v35, %v688_v34  ;;  %v709_v39 = vpack.c.bf16 %v691_v38, %v690_v37  ;;  %v692_v41 = vld [vmem:[%s10001_s26 + $0xc0] sm:$0xff]  ;;  %v693_v42 = vld [vmem:[%s10001_s26 + $0xc8] sm:$0xff]  ;;  %v694_v44 = vld [vmem:[%s10001_s26 + $0xd0] sm:$0xff] }
  0x22   : > { %v710_v43 = vpack.c.bf16 %v693_v42, %v692_v41  ;;  %v695_v45 = vld [vmem:[%s10001_s26 + $0xd8] sm:$0xff]  ;;  %v696_v47 = vld [vmem:[%s10001_s26 + $0xe0] sm:$0xff]  ;;  %v697_v48 = vld [vmem:[%s10001_s26 + $0xe8] sm:$0xff] }
  0x23   : > { %v711_v46 = vpack.c.bf16 %v695_v45, %v694_v44  ;;  %v712_v49 = vpack.c.bf16 %v697_v48, %v696_v47 }
  0x24   : > { %8272 = vmatmul.mubr.msk.bf16.gmra.mrb[4].mxu0 %vm713_vm2, %v699_v9 }
  0x25   : > { %8275 = vmatprep.mubr.msk.bf16.mxu0 %vm9868_vm1, %v14780_v2 }
  0x2c   : > { %8276 = vmatmul.mubr.msk.bf16.gmra.mrb[8].mxu0 %vm713_vm2, %v700_v12 }
  0x2d   : > { %8279 = vmatprep.mubr.msk.bf16.mxu0 %vm9868_vm1, %v14780_v2 }
  0x34   : > { %8280 = vmatmul.mubr.msk.bf16.gmra.mrb[12].mxu0 %vm713_vm2, %v701_v15 }
  0x35   : > { %8283 = vmatprep.mubr.msk.bf16.mxu0 %vm9868_vm1, %v14780_v2 }
  0x3c   : > { %8284 = vmatmul.mubr.msk.bf16.gmra.mrb[16].mxu0 %vm713_vm2, %v702_v18 }
  0x3d   : > { %8287 = vmatprep.mubr.msk.bf16.mxu0 %vm9868_vm1, %v14780_v2 }
  0x44   : > { %8288 = vmatmul.mubr.msk.bf16.gmra.mrb[20].mxu0 %vm713_vm2, %v703_v21 }
  0x45   : > { %8291 = vmatprep.mubr.msk.bf16.mxu0 %vm9868_vm1, %v14780_v2 }
  0x4c   : > { %8292 = vmatmul.mubr.msk.bf16.gmra.mrb[24].mxu0 %vm713_vm2, %v704_v24 }
  0x4d   : > { %8295 = vmatprep.mubr.msk.bf16.mxu0 %vm9868_vm1, %v14780_v2 }
  0x54   : > { %8296 = vmatmul.mubr.msk.bf16.gmra.mrb[28].mxu0 %vm713_vm2, %v705_v27 }
  0x55   : > { %8299 = vmatprep.mubr.msk.bf16.mxu0 %vm9868_vm1, %v14780_v2 }
  0x5c   : > { %8300 = vmatmul.mubr.msk.bf16.gmra.mrb[32].mxu0 %vm713_vm2, %v706_v30 }
  0x5d   : > { %8303 = vmatprep.mubr.msk.bf16.mxu0 %vm9868_vm1, %v14780_v2 }
  0x64   : > { %8304 = vmatmul.mubr.msk.bf16.gmra.mrb[36].mxu0 %vm713_vm2, %v707_v33 }
  0x65   : > { %8307 = vmatprep.mubr.msk.bf16.mxu0 %vm9868_vm1, %v14780_v2 }
  0x6c   : > { %8308 = vmatmul.mubr.msk.bf16.gmra.mrb[40].mxu0 %vm713_vm2, %v708_v36 }
  0x6d   : > { %8311 = vmatprep.mubr.msk.bf16.mxu0 %vm9868_vm1, %v14780_v2 }
  0x74   : > { %8312 = vmatmul.mubr.msk.bf16.gmra.mrb[44].mxu0 %vm713_vm2, %v709_v39 }
  0x75   : > { %8315 = vmatprep.mubr.msk.bf16.mxu0 %vm9868_vm1, %v14780_v2 }
  0x7c   : > { %8316 = vmatmul.mubr.msk.bf16.gmra.mrb[48].mxu0 %vm713_vm2, %v710_v43 }
  0x7d   : > { %8319 = vmatprep.mubr.msk.bf16.mxu0 %vm9868_vm1, %v14780_v2 }
  0x84   : > { %8320 = vmatmul.mubr.msk.bf16.gmra.mrb[52].mxu0 %vm713_vm2, %v711_v46 }
  0x85   : > { %8323 = vmatprep.mubr.msk.bf16.mxu0 %vm9868_vm1, %v14780_v2 }
  0x8c   : > { %8324 = vmatmul.mubr.msk.bf16.gmra.mrb[56].mxu0 %vm713_vm2, %v712_v49 }
  0x8d   : > { %7881 = vmatprep.mubr.msk.bf16.mxu0 %vm1072_vm3, %v10081_v50 }
  0xef   : > { %v797_v51 = vpop.f32.mrb[0].mxu0 }
  0xf0   : > { %v8269_v52 = vpop.f32.mrb[1].mxu0 }
  0xf1   : > { %v800_v53 = vpop.f32.mrb[2].mxu0 }
  0xf2   : > { %v916_v54 = vpack.c.bf16 %v800_v53, %v797_v51  ;;  %v8270_v55 = vpop.f32.mrb[3].mxu0 }
  0xf4   : > { %1119 = vmatpush1.bf16.msra.mxu0 %v916_v54  ;;  %8916 = vmatpush1.bf16.msra.mxu1 %v916_v54 }
  0xf5   : > { %1120 = vmatprep.subr.bf16.mxu0 %v14778_v40  ;;  %8902 = vmatprep.subr.bf16.mxu1 %v14778_v40 }
  0xf7   : > { %v805_v56 = vpop.f32.mrb[4].mxu0 }
  0xf8   : > { %v8273_v58 = vpop.f32.mrb[5].mxu0 }
  0xf9   : > { %v808_v59 = vpop.f32.mrb[6].mxu0 }
  0xfa   : > { %v917_v60 = vpack.c.bf16 %v808_v59, %v805_v56  ;;  %v8274_v61 = vpop.f32.mrb[7].mxu0 }
  0xfc   : > { %1121 = vmatpush1.bf16.msra.mxu0 %v917_v60  ;;  %8917 = vmatpush1.bf16.msra.mxu1 %v917_v60 }
  0xfd   : > { %1122 = vmatprep.subr.bf16.mxu0 %v14778_v40  ;;  %8903 = vmatprep.subr.bf16.mxu1 %v14778_v40 }
  0xff   : > { %v813_v62 = vpop.f32.mrb[8].mxu0 }
 0x100   : > { %v8277_v63 = vpop.f32.mrb[9].mxu0 }
 0x101   : > { %v816_v0 = vpop.f32.mrb[10].mxu0 }
 0x102   : > { %v918_v1 = vpack.c.bf16 %v816_v0, %v813_v62  ;;  %v8278_v4 = vpop.f32.mrb[11].mxu0 }
 0x104   : > { %1123 = vmatpush1.bf16.msra.mxu0 %v918_v1  ;;  %8918 = vmatpush1.bf16.msra.mxu1 %v918_v1 }
 0x105   : > { %1124 = vmatprep.subr.bf16.mxu0 %v14778_v40  ;;  %8904 = vmatprep.subr.bf16.mxu1 %v14778_v40 }
 0x107   : > { %v821_v5 = vpop.f32.mrb[12].mxu0 }
 0x108   : > { %v8281_v6 = vpop.f32.mrb[13].mxu0 }
 0x109   : > { %v824_v7 = vpop.f32.mrb[14].mxu0  ;;  %v10125_v6 = vld [vmem:[%s14792_s29 + $0x30] ss:$8 sps:$4 sm:$0xff]  }
 0x10a   : > { %v919_v8 = vpack.c.bf16 %v824_v7, %v821_v5  ;;  %v8282_v9 = vpop.f32.mrb[15].mxu0  ;;  %v10120_v5 = vld [vmem:[%s14792_s29] ss:$8 sps:$4 sm:$0xff]   ;;  %v10130_v7 = vld [vmem:[%s14792_s29 + $0x14] ss:$8 sps:$4 sm:$0xff]  }
 0x10b   : > { %v8990_v9 = vld [vmem:[%s14762_s6] sm:$0xff]  }
 0x10c   : > { %1125 = vmatpush1.bf16.msra.mxu0 %v919_v8  ;;  %8919 = vmatpush1.bf16.msra.mxu1 %v919_v8  ;;  %v10135_v8 = vld [vmem:[%s14792_s29 + $0x44] ss:$8 sps:$4 sm:$0xff]  }
 0x10d   : > { %1126 = vmatprep.subr.bf16.mxu0 %v14778_v40  ;;  %8905 = vmatprep.subr.bf16.mxu1 %v14778_v40 }
 0x10f   : > { %v829_v10 = vpop.f32.mrb[16].mxu0 }
 0x110   : > { %v8285_v11 = vpop.f32.mrb[17].mxu0 }
 0x111   : > { %v832_v12 = vpop.f32.mrb[18].mxu0  ;;  %v10157_v11 = vld [vmem:[%s14792_s29 + $0x40] ss:$8 sps:$4 sm:$0xff]  }
 0x112   : > { %v920_v13 = vpack.c.bf16 %v832_v12, %v829_v10  ;;  %v8286_v14 = vpop.f32.mrb[19].mxu0  ;;  %v10152_v10 = vld [vmem:[%s14792_s29 + $0x10] ss:$8 sps:$4 sm:$0xff]   ;;  %v10162_v12 = vld [vmem:[%s14792_s29 + $0x24] ss:$8 sps:$4 sm:$0xff]  }
 0x113   : > { %v10178_v14 = vld [vmem:[%s14792_s29 + $0x20] ss:$8 sps:$4 sm:$0xff]  }
 0x114   : > { %1127 = vmatpush1.bf16.msra.mxu0 %v920_v13  ;;  %8920 = vmatpush1.bf16.msra.mxu1 %v920_v13  ;;  %v10167_v13 = vld [vmem:[%s14792_s29 + $0x54] ss:$8 sps:$4 sm:$0xff]  }
 0x115   : > { %1128 = vmatprep.subr.bf16.mxu0 %v14778_v40  ;;  %8906 = vmatprep.subr.bf16.mxu1 %v14778_v40 }
 0x117   : > { %v837_v15 = vpop.f32.mrb[20].mxu0 }
 0x118   : > { %v8289_v16 = vpop.f32.mrb[21].mxu0 }
 0x119   : > { %v840_v17 = vpop.f32.mrb[22].mxu0  ;;  %v10188_v16 = vld [vmem:[%s14792_s29 + $0x64] ss:$8 sps:$4 sm:$0xff]  }
 0x11a   : > { %v921_v18 = vpack.c.bf16 %v840_v17, %v837_v15  ;;  %v8290_v19 = vpop.f32.mrb[23].mxu0  ;;  %v10183_v15 = vld [vmem:[%s14792_s29 + $0x50] ss:$8 sps:$4 sm:$0xff]   ;;  %v10199_v17 = vld [vmem:[%s14792_s29 + $0x60] ss:$8 sps:$4 sm:$0xff]  }
 0x11b   : > { %v10212_v19 = vld [vmem:[%s14792_s29 + $0x70] ss:$8 sps:$4 sm:$0xff]  }
 0x11c   : > { %1129 = vmatpush1.bf16.msra.mxu0 %v921_v18  ;;  %8921 = vmatpush1.bf16.msra.mxu1 %v921_v18  ;;  %v10204_v18 = vld [vmem:[%s14792_s29 + $0x74] ss:$8 sps:$4 sm:$0xff]  }
 0x11d   : > { %1130 = vmatprep.subr.bf16.mxu0 %v14778_v40  ;;  %8907 = vmatprep.subr.bf16.mxu1 %v14778_v40 }
 0x11f   : > { %v845_v20 = vpop.f32.mrb[24].mxu0 }
 0x120   : > { %v8293_v21 = vpop.f32.mrb[25].mxu0 }
 0x121   : > { %v848_v22 = vpop.f32.mrb[26].mxu0  ;;  %v10225_v21 = vld [vmem:[%s14792_s29 + $0x80] ss:$8 sps:$4 sm:$0xff]  }
 0x122   : > { %v922_v23 = vpack.c.bf16 %v848_v22, %v845_v20  ;;  %v8294_v24 = vpop.f32.mrb[27].mxu0  ;;  %v10217_v20 = vld [vmem:[%s14792_s29 + $0x84] ss:$8 sps:$4 sm:$0xff]   ;;  %v10230_v22 = vld [vmem:[%s14792_s29 + $0x94] ss:$8 sps:$4 sm:$0xff]  }
 0x123   : > { %v10243_v24 = vld [vmem:[%s14792_s29 + $0xa4] ss:$8 sps:$4 sm:$0xff]  }
 0x124   : > { %1131 = vmatpush1.bf16.msra.mxu0 %v922_v23  ;;  %8922 = vmatpush1.bf16.msra.mxu1 %v922_v23  ;;  %v10238_v23 = vld [vmem:[%s14792_s29 + $0x90] ss:$8 sps:$4 sm:$0xff]  }
 0x125   : > { %1132 = vmatprep.subr.bf16.mxu0 %v14778_v40  ;;  %8908 = vmatprep.subr.bf16.mxu1 %v14778_v40 }
 0x127   : > { %v853_v25 = vpop.f32.mrb[28].mxu0 }
 0x128   : > { %v8297_v26 = vpop.f32.mrb[29].mxu0 }
 0x129   : > { %v856_v27 = vpop.f32.mrb[30].mxu0  ;;  %v10256_v26 = vld [vmem:[%s14792_s29 + $0xb4] ss:$8 sps:$4 sm:$0xff]  }
 0x12a   : > { %v923_v28 = vpack.c.bf16 %v856_v27, %v853_v25  ;;  %v8298_v29 = vpop.f32.mrb[31].mxu0  ;;  %v10251_v25 = vld [vmem:[%s14792_s29 + $0xa0] ss:$8 sps:$4 sm:$0xff]   ;;  %v10264_v27 = vld [vmem:[%s14792_s29 + $0xb0] ss:$8 sps:$4 sm:$0xff]  }
 0x12b   : > { %v10277_v29 = vld [vmem:[%s14792_s29 + $0xc0] ss:$8 sps:$4 sm:$0xff]  }
 0x12c   : > { %1133 = vmatpush1.bf16.msra.mxu0 %v923_v28  ;;  %8923 = vmatpush1.bf16.msra.mxu1 %v923_v28  ;;  %v10269_v28 = vld [vmem:[%s14792_s29 + $0xc4] ss:$8 sps:$4 sm:$0xff]  }
 0x12d   : > { %1134 = vmatprep.subr.bf16.mxu0 %v14778_v40  ;;  %8909 = vmatprep.subr.bf16.mxu1 %v14778_v40 }
 0x12f   : > { %v861_v30 = vpop.f32.mrb[32].mxu0 }
 0x130   : > { %v8301_v31 = vpop.f32.mrb[33].mxu0 }
 0x131   : > { %v864_v32 = vpop.f32.mrb[34].mxu0  ;;  %v10290_v31 = vld [vmem:[%s14792_s29 + $0xd0] ss:$8 sps:$4 sm:$0xff]  }
 0x132   : > { %v924_v33 = vpack.c.bf16 %v864_v32, %v861_v30  ;;  %v8302_v34 = vpop.f32.mrb[35].mxu0  ;;  %v10282_v30 = vld [vmem:[%s14792_s29 + $0xd4] ss:$8 sps:$4 sm:$0xff]   ;;  %v10295_v32 = vld [vmem:[%s14792_s29 + $0xe4] ss:$8 sps:$4 sm:$0xff]  }
 0x133   : > { %v8991_v34 = vld [vmem:[%s14762_s6 + $0x8] sm:$0xff]  }
 0x134   : > { %1135 = vmatpush1.bf16.msra.mxu0 %v924_v33  ;;  %8924 = vmatpush1.bf16.msra.mxu1 %v924_v33  ;;  %v10303_v33 = vld [vmem:[%s14792_s29 + $0xe0] ss:$8 sps:$4 sm:$0xff]  }
 0x135   : > { %1136 = vmatprep.subr.bf16.mxu0 %v14778_v40  ;;  %8910 = vmatprep.subr.bf16.mxu1 %v14778_v40 }
 0x137   : > { %v869_v35 = vpop.f32.mrb[36].mxu0 }
 0x138   : > { %v8305_v36 = vpop.f32.mrb[37].mxu0 }
 0x139   : > { %v872_v37 = vpop.f32.mrb[38].mxu0 }
 0x13a   : > { %v925_v38 = vpack.c.bf16 %v872_v37, %v869_v35  ;;  %v8306_v39 = vpop.f32.mrb[39].mxu0  ;;  %v10315_v35 = vld [vmem:[%s14793_s27] ss:$0 sm:$0xff] }
 0x13c   : > { %1137 = vmatpush1.bf16.msra.mxu0 %v925_v38  ;;  %8925 = vmatpush1.bf16.msra.mxu1 %v925_v38 }
 0x13d   : > { %1138 = vmatprep.subr.bf16.mxu0 %v14778_v40  ;;  %8911 = vmatprep.subr.bf16.mxu1 %v14778_v40 }
 0x13f   : > { %v877_v41 = vpop.f32.mrb[40].mxu0 }
 0x140   : > { %v8309_v42 = vpop.f32.mrb[41].mxu0 }
 0x141   : > { %v880_v43 = vpop.f32.mrb[42].mxu0  ;;  %v10322_v42 = vld [vmem:[%s14760_s4] ss:$0 sm:$0xff] }
 0x142   : > { %v926_v44 = vpack.c.bf16 %v880_v43, %v877_v41  ;;  %v8310_v45 = vpop.f32.mrb[43].mxu0 }
 0x144   : > { %1139 = vmatpush1.bf16.msra.mxu0 %v926_v44  ;;  %8926 = vmatpush1.bf16.msra.mxu1 %v926_v44 }
 0x145   : > { %1140 = vmatprep.subr.bf16.mxu0 %v14778_v40  ;;  %8912 = vmatprep.subr.bf16.mxu1 %v14778_v40 }
 0x147   : > { %v885_v46 = vpop.f32.mrb[44].mxu0 }
 0x148   : > { %v8313_v47 = vpop.f32.mrb[45].mxu0 }
 0x149   : > { %v888_v48 = vpop.f32.mrb[46].mxu0 }
 0x14a   : > { %v927_v49 = vpack.c.bf16 %v888_v48, %v885_v46  ;;  %v8314_v51 = vpop.f32.mrb[47].mxu0 }
 0x14c   : > { %1141 = vmatpush1.bf16.msra.mxu0 %v927_v49  ;;  %8927 = vmatpush1.bf16.msra.mxu1 %v927_v49 }
 0x14d   : > { %1142 = vmatprep.subr.bf16.mxu0 %v14778_v40  ;;  %8913 = vmatprep.subr.bf16.mxu1 %v14778_v40 }
 0x14f   : > { %v893_v52 = vpop.f32.mrb[48].mxu0 }
 0x150   : > { %v8317_v53 = vpop.f32.mrb[49].mxu0 }
 0x151   : > { %v896_v54 = vpop.f32.mrb[50].mxu0 }
 0x152   : > { %v928_v55 = vpack.c.bf16 %v896_v54, %v893_v52  ;;  %v8318_v56 = vpop.f32.mrb[51].mxu0  ;;  %v10329_v52 = vld [vmem:[%s14761_s5] ss:$0 sm:$0xff] }
 0x154   : > { %1143 = vmatpush1.bf16.msra.mxu0 %v928_v55  ;;  %8928 = vmatpush1.bf16.msra.mxu1 %v928_v55 }
 0x155   : > { %1144 = vmatprep.subr.bf16.mxu0 %v14778_v40  ;;  %8914 = vmatprep.subr.bf16.mxu1 %v14778_v40 }
 0x157   : > { %v901_v57 = vpop.f32.mrb[52].mxu0 }
 0x158   : > { %v8321_v58 = vpop.f32.mrb[53].mxu0 }
 0x159   : > { %v904_v59 = vpop.f32.mrb[54].mxu0 }
 0x15a   : > { %v929_v60 = vpack.c.bf16 %v904_v59, %v901_v57  ;;  %v8322_v61 = vpop.f32.mrb[55].mxu0 }
 0x15c   : > { %1145 = vmatpush1.bf16.msra.mxu0 %v929_v60  ;;  %8929 = vmatpush1.bf16.msra.mxu1 %v929_v60 }
 0x15d   : > { %1146 = vmatprep.subr.bf16.mxu0 %v14778_v40  ;;  %8915 = vmatprep.subr.bf16.mxu1 %v14778_v40 }
 0x15f   : > { %v909_v62 = vpop.f32.mrb[56].mxu0 }
 0x160   : > { %v8325_v63 = vpop.f32.mrb[57].mxu0 }
 0x161   : > { %v912_v0 = vpop.f32.mrb[58].mxu0 }
 0x162   : > { %v930_v1 = vpack.c.bf16 %v912_v0, %v909_v62  ;;  %v8326_v4 = vpop.f32.mrb[59].mxu0 }
 0x164   : > { %1147 = vmatpush1.bf16.msra.mxu0 %v930_v1  ;;  %8930 = vmatpush1.bf16.msra.mxu1 %v930_v1 }
 0x165   : > { %8327 = vmatprep.subr.bf16.mxu0 %v14780_v2  ;;  %1620 = vmatprep.subr.bf16.mxu1 %v14778_v40 }
 0x167   : > { %1151 = vmatmul.mubr.bf16.vlgmr.msra.gmra.mrb[60].mxu0 %v10120_v5  ;;  %1175 = vmatmul.mubr.bf16.vlgmr.msra.gmra.mrb[0].mxu1 %v10125_v6 }
 0x168   : > { %7882 = vmatprep.mubr.msk.bf16.mxu0 %vm1072_vm3, %v10130_v7  ;;  %7885 = vmatprep.mubr.msk.bf16.mxu1 %vm1072_vm3, %v10135_v8 }
 0x169   : > { %8328 = vmatpush3.bf16.msra.mxu0 %v8990_v9 }
 0x16a   : > { %8329 = vmatprep.subr.bf16.mxu0 %v14780_v2 }
 0x16d   : > { %8330 = vmatpush3.bf16.msra.mxu0 %v8991_v34 }
 0x16e   : > { %8391 = vmatprep.subr.bf16.mxu0 %v14780_v2 }
 0x16f   : > { %1159 = vmatmul.mubr.bf16.gmra.mrb[64].mxu0 %v10152_v10  ;;  %1183 = vmatmul.mubr.bf16.gmra.mrb[4].mxu1 %v10157_v11 }
 0x170   : > { %7883 = vmatprep.mubr.msk.bf16.mxu0 %vm1072_vm3, %v10162_v12  ;;  %7886 = vmatprep.mubr.msk.bf16.mxu1 %vm1072_vm3, %v10167_v13 }
 0x177   : > { %1167 = vmatmul.mubr.bf16.gmra.mrb[68].mxu0 %v10178_v14  ;;  %1191 = vmatmul.mubr.bf16.gmra.mrb[8].mxu1 %v10183_v15 }
 0x178   : > { %7887 = vmatprep.mubr.msk.bf16.mxu1 %vm1072_vm3, %v10188_v16  ;;  %8331 = vmatprep.mubr.msk.bf16.mxu0 %vm9868_vm1, %v14780_v2 }
 0x17f   : > { %1199 = vmatmul.mubr.bf16.gmra.mrb[12].mxu1 %v10199_v17 }
 0x180   : > { %7888 = vmatprep.mubr.msk.bf16.mxu1 %vm1072_vm3, %v10204_v18 }
 0x187   : > { %1207 = vmatmul.mubr.bf16.gmra.mrb[16].mxu1 %v10212_v19 }
 0x188   : > { %7889 = vmatprep.mubr.msk.bf16.mxu1 %vm1072_vm3, %v10217_v20 }
 0x18f   : > { %1215 = vmatmul.mubr.bf16.gmra.mrb[20].mxu1 %v10225_v21 }
 0x190   : > { %7890 = vmatprep.mubr.msk.bf16.mxu1 %vm1072_vm3, %v10230_v22 }
 0x197   : > { %1223 = vmatmul.mubr.bf16.gmra.mrb[24].mxu1 %v10238_v23 }
 0x198   : > { %7891 = vmatprep.mubr.msk.bf16.mxu1 %vm1072_vm3, %v10243_v24 }
 0x19f   : > { %1231 = vmatmul.mubr.bf16.gmra.mrb[28].mxu1 %v10251_v25 }
 0x1a0   : > { %7892 = vmatprep.mubr.msk.bf16.mxu1 %vm1072_vm3, %v10256_v26 }
 0x1a7   : > { %1239 = vmatmul.mubr.bf16.gmra.mrb[32].mxu1 %v10264_v27 }
 0x1a8   : > { %7893 = vmatprep.mubr.msk.bf16.mxu1 %vm1072_vm3, %v10269_v28 }
 0x1af   : > { %1247 = vmatmul.mubr.bf16.gmra.mrb[36].mxu1 %v10277_v29 }
 0x1b0   : > { %7894 = vmatprep.mubr.msk.bf16.mxu1 %vm1072_vm3, %v10282_v30 }
 0x1b7   : > { %1255 = vmatmul.mubr.bf16.gmra.mrb[40].mxu1 %v10290_v31 }
 0x1b8   : > { %7895 = vmatprep.mubr.msk.bf16.mxu1 %vm1072_vm3, %v10295_v32 }
 0x1bf   : > { %1263 = vmatmul.mubr.bf16.gmra.mrb[44].mxu1 %v10303_v33 }
 0x1c0   : > { %7916 = vmatprep.mubr.msk.bf16.mxu1 %vm1072_vm3, %v10081_v50 }
 0x23a   : > { %v1152_v36 = vpop.f32.mrb[60].mxu0  ;;  %v1176_v37 = vpop.f32.mrb[0].mxu1 }
 0x23b   : > { %v1153_v38 = vadd.f32 %v10315_v35, %v1152_v36  ;;  %v1154_v39 = vpop.f32.mrb[61].mxu0  ;;  %v1177_v41 = vadd.f32 %v10315_v35, %v1176_v37  ;;  %v1178_v50 = vpop.f32.mrb[1].mxu1 }
 0x23c   : > { %v1155_v43 = vpop.f32.mrb[62].mxu0  ;;  %v1179_v44 = vpop.f32.mrb[2].mxu1 }
 0x23d   : > { %v1271_v45 = vmax.f32 %v1153_v38, 0.0  ;;  %v1156_v46 = vadd.f32 %v10315_v35, %v1155_v43  ;;  %v1157_v47 = vpop.f32.mrb[63].mxu0  ;;  %v1277_v48 = vmax.f32 %v1177_v41, 0.0  ;;  %v1180_v49 = vadd.f32 %v10315_v35, %v1179_v44  ;;  %v1181_v51 = vpop.f32.mrb[3].mxu1 }
 0x23f   : > { %v1307_v53 = vmul.f32 %v10322_v42, %v1271_v45  ;;  %v1272_v54 = vmax.f32 %v1156_v46, 0.0  ;;  %v1313_v55 = vmul.f32 %v10322_v42, %v1277_v48  ;;  %v1278_v56 = vmax.f32 %v1180_v49, 0.0 }
 0x241   : > { %v1308_v57 = vmul.f32 %v10322_v42, %v1272_v54  ;;  %v1314_v58 = vmul.f32 %v10322_v42, %v1278_v56  ;;  %v1343_v59 = vadd.f32 %v10329_v52, %v1307_v53  ;;  %v1349_v61 = vadd.f32 %v10329_v52, %v1313_v55 }
 0x242   : > { %v1160_v60 = vpop.f32.mrb[64].mxu0  ;;  %v1184_v62 = vpop.f32.mrb[4].mxu1 }
 0x243   : > { %v1344_v63 = vadd.f32 %v10329_v52, %v1308_v57  ;;  %v1161_v0 = vadd.f32 %v10315_v35, %v1160_v60  ;;  %v1162_v1 = vpop.f32.mrb[65].mxu0  ;;  %v1350_v4 = vadd.f32 %v10329_v52, %v1314_v58  ;;  %v1185_v9 = vadd.f32 %v10315_v35, %v1184_v62  ;;  %v1186_v34 = vpop.f32.mrb[5].mxu1 }
 0x244   : > { %v1163_v36 = vpop.f32.mrb[66].mxu0  ;;  %v1187_v37 = vpop.f32.mrb[6].mxu1 }
 0x245   : > { %v10341_v38 = vpack.c.bf16 %v1344_v63, %v1343_v59  ;;  %v1273_v39 = vmax.f32 %v1161_v0, 0.0  ;;  %v1164_v41 = vadd.f32 %v10315_v35, %v1163_v36  ;;  %v1165_v50 = vpop.f32.mrb[67].mxu0  ;;  %v1279_v43 = vmax.f32 %v1185_v9, 0.0  ;;  %v1189_v44 = vpop.f32.mrb[7].mxu1 }
 0x246   : > { %v1188_v45 = vadd.f32 %v10315_v35, %v1187_v37  ;;  %v10345_v46 = vpack.c.bf16 %v1350_v4, %v1349_v61 }
 0x247   : > { %v1309_v47 = vmul.f32 %v10322_v42, %v1273_v39  ;;  %v1274_v48 = vmax.f32 %v1164_v41, 0.0  ;;  %8332 = vmatmul.mubr.msk.bf16.vlgmr.msra.gmra.mrb[72].mxu0 %vm1400_vm4, %v10341_v38  ;;  %v1315_v49 = vmul.f32 %v10322_v42, %v1279_v43 }
 0x248   : > { %8335 = vmatprep.mubr.msk.bf16.mxu0 %vm9868_vm1, %v14780_v2  ;;  %v1280_v51 = vmax.f32 %v1188_v45, 0.0 }
 0x249   : > { %v1310_v53 = vmul.f32 %v10322_v42, %v1274_v48  ;;  %v1351_v55 = vadd.f32 %v10329_v52, %v1315_v49  ;;  %v1345_v58 = vadd.f32 %v10329_v52, %v1309_v47 }
 0x24a   : > { %v1168_v54 = vpop.f32.mrb[68].mxu0  ;;  %v1316_v56 = vmul.f32 %v10322_v42, %v1280_v51  ;;  %v1192_v57 = vpop.f32.mrb[8].mxu1 }
 0x24b   : > { %v1346_v59 = vadd.f32 %v10329_v52, %v1310_v53  ;;  %v1169_v60 = vadd.f32 %v10315_v35, %v1168_v54  ;;  %v1170_v61 = vpop.f32.mrb[69].mxu0  ;;  %v1193_v62 = vadd.f32 %v10315_v35, %v1192_v57  ;;  %v1194_v63 = vpop.f32.mrb[9].mxu1 }
 0x24c   : > { %v1171_v0 = vpop.f32.mrb[70].mxu0  ;;  %v1352_v1 = vadd.f32 %v10329_v52, %v1316_v56  ;;  %v1195_v4 = vpop.f32.mrb[10].mxu1 }
 0x24d   : > { %v1275_v9 = vmax.f32 %v1169_v60, 0.0  ;;  %v1172_v34 = vadd.f32 %v10315_v35, %v1171_v0  ;;  %v1173_v36 = vpop.f32.mrb[71].mxu0  ;;  %v10362_v37 = vpack.c.bf16 %v1346_v59, %v1345_v58  ;;  %v1281_v39 = vmax.f32 %v1193_v62, 0.0  ;;  %v1197_v41 = vpop.f32.mrb[11].mxu1 }
 0x24e   : > { %v1196_v50 = vadd.f32 %v10315_v35, %v1195_v4  ;;  %v10365_v43 = vpack.c.bf16 %v1352_v1, %v1351_v55 }
 0x24f   : > { %v1311_v44 = vmul.f32 %v10322_v42, %v1275_v9  ;;  %v1276_v45 = vmax.f32 %v1172_v34, 0.0  ;;  %8336 = vmatmul.mubr.msk.bf16.gmra.mrb[76].mxu0 %vm1400_vm4, %v10362_v37  ;;  %v1317_v47 = vmul.f32 %v10322_v42, %v1281_v39 }
 0x250   : > { %8339 = vmatprep.mubr.msk.bf16.mxu0 %vm9868_vm1, %v14780_v2  ;;  %v1282_v48 = vmax.f32 %v1196_v50, 0.0 }
 0x251   : > { %v1312_v49 = vmul.f32 %v10322_v42, %v1276_v45  ;;  %v1353_v51 = vadd.f32 %v10329_v52, %v1317_v47  ;;  %v1347_v55 = vadd.f32 %v10329_v52, %v1311_v44 }
 0x252   : > { %v1318_v53 = vmul.f32 %v10322_v42, %v1282_v48  ;;  %v1200_v54 = vpop.f32.mrb[12].mxu1 }
 0x253   : > { %v1348_v56 = vadd.f32 %v10329_v52, %v1312_v49  ;;  %v1201_v57 = vadd.f32 %v10315_v35, %v1200_v54  ;;  %v1202_v58 = vpop.f32.mrb[13].mxu1 }
 0x254   : > { %v1354_v59 = vadd.f32 %v10329_v52, %v1318_v53  ;;  %v1203_v60 = vpop.f32.mrb[14].mxu1 }
 0x255   : > { %v10380_v61 = vpack.c.bf16 %v1348_v56, %v1347_v55  ;;  %v1283_v62 = vmax.f32 %v1201_v57, 0.0  ;;  %v1204_v63 = vadd.f32 %v10315_v35, %v1203_v60  ;;  %v1205_v0 = vpop.f32.mrb[15].mxu1 }
 0x256   : > { %v10383_v1 = vpack.c.bf16 %v1354_v59, %v1353_v51 }
 0x257   : > { %8340 = vmatmul.mubr.msk.bf16.gmra.mrb[80].mxu0 %vm1400_vm4, %v10380_v61  ;;  %v1319_v4 = vmul.f32 %v10322_v42, %v1283_v62  ;;  %v1284_v9 = vmax.f32 %v1204_v63, 0.0 }
 0x258   : > { %8343 = vmatprep.mubr.msk.bf16.mxu0 %vm9868_vm1, %v14780_v2 }
 0x259   : > { %v1355_v34 = vadd.f32 %v10329_v52, %v1319_v4  ;;  %v1320_v36 = vmul.f32 %v10322_v42, %v1284_v9 }
 0x25a   : > { %v1208_v39 = vpop.f32.mrb[16].mxu1 }
 0x25b   : > { %v1356_v41 = vadd.f32 %v10329_v52, %v1320_v36  ;;  %v1209_v50 = vadd.f32 %v10315_v35, %v1208_v39  ;;  %v1210_v44 = vpop.f32.mrb[17].mxu1 }
 0x25c   : > { %v1211_v45 = vpop.f32.mrb[18].mxu1 }
 0x25d   : > { %v1285_v47 = vmax.f32 %v1209_v50, 0.0  ;;  %v1212_v48 = vadd.f32 %v10315_v35, %v1211_v45  ;;  %v1213_v49 = vpop.f32.mrb[19].mxu1  ;;  %v10395_v51 = vpack.c.bf16 %v1356_v41, %v1355_v34 }
 0x25f   : > { %8344 = vmatmul.mubr.msk.bf16.gmra.mrb[84].mxu0 %vm1400_vm4, %v10345_v46  ;;  %v1321_v53 = vmul.f32 %v10322_v42, %v1285_v47  ;;  %v1286_v54 = vmax.f32 %v1212_v48, 0.0 }
 0x260   : > { %8347 = vmatprep.mubr.msk.bf16.mxu0 %vm9868_vm1, %v14780_v2 }
 0x261   : > { %v1357_v55 = vadd.f32 %v10329_v52, %v1321_v53  ;;  %v1322_v56 = vmul.f32 %v10322_v42, %v1286_v54 }
 0x262   : > { %v1216_v57 = vpop.f32.mrb[20].mxu1 }
 0x263   : > { %v1358_v58 = vadd.f32 %v10329_v52, %v1322_v56  ;;  %v1217_v59 = vadd.f32 %v10315_v35, %v1216_v57  ;;  %v1218_v60 = vpop.f32.mrb[21].mxu1 }
 0x264   : > { %v1219_v62 = vpop.f32.mrb[22].mxu1 }
 0x265   : > { %v1287_v63 = vmax.f32 %v1217_v59, 0.0  ;;  %v1220_v0 = vadd.f32 %v10315_v35, %v1219_v62  ;;  %v1221_v4 = vpop.f32.mrb[23].mxu1  ;;  %v10407_v9 = vpack.c.bf16 %v1358_v58, %v1357_v55 }
 0x267   : > { %8348 = vmatmul.mubr.msk.bf16.gmra.mrb[88].mxu0 %vm1400_vm4, %v10365_v43  ;;  %v1323_v34 = vmul.f32 %v10322_v42, %v1287_v63  ;;  %v1288_v36 = vmax.f32 %v1220_v0, 0.0 }
 0x268   : > { %8351 = vmatprep.mubr.msk.bf16.mxu0 %vm9868_vm1, %v14780_v2 }
 0x269   : > { %v1359_v39 = vadd.f32 %v10329_v52, %v1323_v34  ;;  %v1324_v41 = vmul.f32 %v10322_v42, %v1288_v36 }
 0x26a   : > { %v1224_v50 = vpop.f32.mrb[24].mxu1 }
 0x26b   : > { %v1360_v44 = vadd.f32 %v10329_v52, %v1324_v41  ;;  %v1225_v45 = vadd.f32 %v10315_v35, %v1224_v50  ;;  %v1226_v47 = vpop.f32.mrb[25].mxu1 }
 0x26c   : > { %v1227_v48 = vpop.f32.mrb[26].mxu1 }
 0x26d   : > { %v1289_v49 = vmax.f32 %v1225_v45, 0.0  ;;  %v1228_v53 = vadd.f32 %v10315_v35, %v1227_v48  ;;  %v1229_v54 = vpop.f32.mrb[27].mxu1  ;;  %v10419_v55 = vpack.c.bf16 %v1360_v44, %v1359_v39 }
 0x26f   : > { %8352 = vmatmul.mubr.msk.bf16.gmra.mrb[92].mxu0 %vm1400_vm4, %v10383_v1  ;;  %v1325_v56 = vmul.f32 %v10322_v42, %v1289_v49  ;;  %v1290_v57 = vmax.f32 %v1228_v53, 0.0 }
 0x270   : > { %8355 = vmatprep.mubr.msk.bf16.mxu0 %vm9868_vm1, %v14780_v2 }
 0x271   : > { %v1361_v58 = vadd.f32 %v10329_v52, %v1325_v56  ;;  %v1326_v59 = vmul.f32 %v10322_v42, %v1290_v57 }
 0x272   : > { %v1232_v60 = vpop.f32.mrb[28].mxu1 }
 0x273   : > { %v1362_v62 = vadd.f32 %v10329_v52, %v1326_v59  ;;  %v1233_v63 = vadd.f32 %v10315_v35, %v1232_v60  ;;  %v1234_v0 = vpop.f32.mrb[29].mxu1 }
 0x274   : > { %v1235_v4 = vpop.f32.mrb[30].mxu1 }
 0x275   : > { %v1291_v34 = vmax.f32 %v1233_v63, 0.0  ;;  %v1236_v36 = vadd.f32 %v10315_v35, %v1235_v4  ;;  %v1237_v39 = vpop.f32.mrb[31].mxu1  ;;  %v10431_v41 = vpack.c.bf16 %v1362_v62, %v1361_v58 }
 0x277   : > { %8356 = vmatmul.mubr.msk.bf16.gmra.mrb[96].mxu0 %vm1400_vm4, %v10395_v51  ;;  %v1327_v50 = vmul.f32 %v10322_v42, %v1291_v34  ;;  %v1292_v44 = vmax.f32 %v1236_v36, 0.0 }
 0x278   : > { %8359 = vmatprep.mubr.msk.bf16.mxu0 %vm9868_vm1, %v14780_v2 }
 0x279   : > { %v1363_v45 = vadd.f32 %v10329_v52, %v1327_v50  ;;  %v1328_v47 = vmul.f32 %v10322_v42, %v1292_v44 }
 0x27a   : > { %v1240_v48 = vpop.f32.mrb[32].mxu1 }
 0x27b   : > { %v1364_v49 = vadd.f32 %v10329_v52, %v1328_v47  ;;  %v1241_v53 = vadd.f32 %v10315_v35, %v1240_v48  ;;  %v1242_v54 = vpop.f32.mrb[33].mxu1 }
 0x27c   : > { %v1243_v56 = vpop.f32.mrb[34].mxu1 }
 0x27d   : > { %v1293_v57 = vmax.f32 %v1241_v53, 0.0  ;;  %v1244_v58 = vadd.f32 %v10315_v35, %v1243_v56  ;;  %v1245_v59 = vpop.f32.mrb[35].mxu1  ;;  %v10443_v60 = vpack.c.bf16 %v1364_v49, %v1363_v45 }
 0x27f   : > { %8360 = vmatmul.mubr.msk.bf16.gmra.mrb[100].mxu0 %vm1400_vm4, %v10407_v9  ;;  %v1329_v62 = vmul.f32 %v10322_v42, %v1293_v57  ;;  %v1294_v63 = vmax.f32 %v1244_v58, 0.0 }
 0x280   : > { %8363 = vmatprep.mubr.msk.bf16.mxu0 %vm9868_vm1, %v14780_v2 }
 0x281   : > { %v1365_v0 = vadd.f32 %v10329_v52, %v1329_v62  ;;  %v1330_v4 = vmul.f32 %v10322_v42, %v1294_v63 }
 0x282   : > { %v1248_v34 = vpop.f32.mrb[36].mxu1 }
 0x283   : > { %v1366_v36 = vadd.f32 %v10329_v52, %v1330_v4  ;;  %v1249_v39 = vadd.f32 %v10315_v35, %v1248_v34  ;;  %v1250_v50 = vpop.f32.mrb[37].mxu1 }
 0x284   : > { %v1251_v44 = vpop.f32.mrb[38].mxu1 }
 0x285   : > { %v1295_v45 = vmax.f32 %v1249_v39, 0.0  ;;  %v1252_v47 = vadd.f32 %v10315_v35, %v1251_v44  ;;  %v1253_v48 = vpop.f32.mrb[39].mxu1  ;;  %v10455_v49 = vpack.c.bf16 %v1366_v36, %v1365_v0 }
 0x287   : > { %8364 = vmatmul.mubr.msk.bf16.gmra.mrb[104].mxu0 %vm1400_vm4, %v10419_v55  ;;  %v1331_v53 = vmul.f32 %v10322_v42, %v1295_v45  ;;  %v1296_v54 = vmax.f32 %v1252_v47, 0.0 }
 0x288   : > { %8367 = vmatprep.mubr.msk.bf16.mxu0 %vm9868_vm1, %v14780_v2 }
 0x289   : > { %v1367_v56 = vadd.f32 %v10329_v52, %v1331_v53  ;;  %v1332_v57 = vmul.f32 %v10322_v42, %v1296_v54 }
 0x28a   : > { %v1256_v58 = vpop.f32.mrb[40].mxu1 }
 0x28b   : > { %v1368_v59 = vadd.f32 %v10329_v52, %v1332_v57  ;;  %v1257_v62 = vadd.f32 %v10315_v35, %v1256_v58  ;;  %v1258_v63 = vpop.f32.mrb[41].mxu1 }
 0x28c   : > { %v1259_v0 = vpop.f32.mrb[42].mxu1 }
 0x28d   : > { %v1297_v4 = vmax.f32 %v1257_v62, 0.0  ;;  %v1260_v34 = vadd.f32 %v10315_v35, %v1259_v0  ;;  %v1261_v36 = vpop.f32.mrb[43].mxu1  ;;  %v10467_v39 = vpack.c.bf16 %v1368_v59, %v1367_v56 }
 0x28f   : > { %8368 = vmatmul.mubr.msk.bf16.gmra.mrb[108].mxu0 %vm1400_vm4, %v10431_v41  ;;  %v1333_v50 = vmul.f32 %v10322_v42, %v1297_v4  ;;  %v1298_v44 = vmax.f32 %v1260_v34, 0.0 }
 0x290   : > { %8371 = vmatprep.mubr.msk.bf16.mxu0 %vm9868_vm1, %v14780_v2 }
 0x291   : > { %v1369_v45 = vadd.f32 %v10329_v52, %v1333_v50  ;;  %v1334_v47 = vmul.f32 %v10322_v42, %v1298_v44 }
 0x292   : > { %v1264_v48 = vpop.f32.mrb[44].mxu1 }
 0x293   : > { %v1370_v53 = vadd.f32 %v10329_v52, %v1334_v47  ;;  %v1265_v54 = vadd.f32 %v10315_v35, %v1264_v48  ;;  %v1266_v56 = vpop.f32.mrb[45].mxu1 }
 0x294   : > { %v1267_v57 = vpop.f32.mrb[46].mxu1 }
 0x295   : > { %v1299_v58 = vmax.f32 %v1265_v54, 0.0  ;;  %v1268_v59 = vadd.f32 %v10315_v35, %v1267_v57  ;;  %v1269_v62 = vpop.f32.mrb[47].mxu1  ;;  %v10479_v63 = vpack.c.bf16 %v1370_v53, %v1369_v45 }
 0x297   : > { %8372 = vmatmul.mubr.msk.bf16.gmra.mrb[112].mxu0 %vm1400_vm4, %v10443_v60  ;;  %v1335_v0 = vmul.f32 %v10322_v42, %v1299_v58  ;;  %v1300_v4 = vmax.f32 %v1268_v59, 0.0 }
 0x298   : > { %8375 = vmatprep.mubr.msk.bf16.mxu0 %vm9868_vm1, %v14780_v2 }
 0x299   : > { %v1371_v34 = vadd.f32 %v10329_v52, %v1335_v0  ;;  %v1336_v36 = vmul.f32 %v10322_v42, %v1300_v4 }
 0x29b   : > { %v1372_v50 = vadd.f32 %v10329_v52, %v1336_v36 }
 0x29d   : > { %v10489_v44 = vpack.c.bf16 %v1372_v50, %v1371_v34 }
 0x29f   : > { %8376 = vmatmul.mubr.msk.bf16.gmra.mrb[116].mxu0 %vm1400_vm4, %v10455_v49 }
 0x2a0   : > { %8379 = vmatprep.mubr.msk.bf16.mxu0 %vm9868_vm1, %v14780_v2 }
 0x2a7   : > { %8380 = vmatmul.mubr.msk.bf16.gmra.mrb[120].mxu0 %vm1400_vm4, %v10467_v39 }
 0x2a8   : > { %8383 = vmatprep.mubr.msk.bf16.mxu0 %vm9868_vm1, %v14780_v2 }
 0x2af   : > { %8384 = vmatmul.mubr.msk.bf16.gmra.mrb[124].mxu0 %vm1400_vm4, %v10479_v63 }
 0x2b0   : > { %8387 = vmatprep.mubr.msk.bf16.mxu0 %vm9868_vm1, %v14780_v2 }
 0x2b7   : > { %8388 = vmatmul.mubr.msk.bf16.gmra.mrb[128].mxu0 %vm1400_vm4, %v10489_v44 }
 0x2b8   : > { %8395 = vmatprep.mubr.msk.bf16.mxu0 %vm9868_vm1, %v14780_v2 }
 0x31a   : > { %v1480_v35 = vpop.f32.mrb[72].mxu0 }
 0x31b   : > { %v8333_v42 = vpop.f32.mrb[73].mxu0 }
 0x31c   : > { %v1483_v52 = vpop.f32.mrb[74].mxu0 }
 0x31d   : > { %v1599_v45 = vpack.c.bf16 %v1483_v52, %v1480_v35  ;;  %v8334_v47 = vpop.f32.mrb[75].mxu0 }
 0x31f   : > { %1621 = vmatpush1.bf16.msra.mxu1 %v1599_v45 }
 0x320   : > { %1622 = vmatprep.subr.bf16.mxu1 %v14778_v40 }
 0x322   : > { %v1488_v48 = vpop.f32.mrb[76].mxu0 }
 0x323   : > { %v8337_v53 = vpop.f32.mrb[77].mxu0 }
 0x324   : > { %v1491_v54 = vpop.f32.mrb[78].mxu0 }
 0x325   : > { %v1600_v56 = vpack.c.bf16 %v1491_v54, %v1488_v48  ;;  %v8338_v57 = vpop.f32.mrb[79].mxu0 }
 0x327   : > { %1623 = vmatpush1.bf16.msra.mxu1 %v1600_v56 }
 0x328   : > { %1624 = vmatprep.subr.bf16.mxu1 %v14778_v40 }
 0x32a   : > { %v1496_v58 = vpop.f32.mrb[80].mxu0 }
 0x32b   : > { %v8341_v59 = vpop.f32.mrb[81].mxu0 }
 0x32c   : > { %v1499_v62 = vpop.f32.mrb[82].mxu0 }
 0x32d   : > { %v1601_v0 = vpack.c.bf16 %v1499_v62, %v1496_v58  ;;  %v8342_v4 = vpop.f32.mrb[83].mxu0 }
 0x32f   : > { %1625 = vmatpush1.bf16.msra.mxu1 %v1601_v0 }
 0x330   : > { %1626 = vmatprep.subr.bf16.mxu1 %v14778_v40 }
 0x332   : > { %v1504_v34 = vpop.f32.mrb[84].mxu0 }
 0x333   : > { %v8345_v36 = vpop.f32.mrb[85].mxu0 }
 0x334   : > { %v1507_v50 = vpop.f32.mrb[86].mxu0 }
 0x335   : > { %v1602_v35 = vpack.c.bf16 %v1507_v50, %v1504_v34  ;;  %v8346_v42 = vpop.f32.mrb[87].mxu0 }
 0x337   : > { %1627 = vmatpush1.bf16.msra.mxu1 %v1602_v35 }
 0x338   : > { %1628 = vmatprep.subr.bf16.mxu1 %v14778_v40 }
 0x33a   : > { %v1512_v52 = vpop.f32.mrb[88].mxu0 }
 0x33b   : > { %v8349_v45 = vpop.f32.mrb[89].mxu0 }
 0x33c   : > { %v1515_v47 = vpop.f32.mrb[90].mxu0 }
 0x33d   : > { %v1603_v48 = vpack.c.bf16 %v1515_v47, %v1512_v52  ;;  %v8350_v53 = vpop.f32.mrb[91].mxu0 }
 0x33f   : > { %1629 = vmatpush1.bf16.msra.mxu1 %v1603_v48 }
 0x340   : > { %1630 = vmatprep.subr.bf16.mxu1 %v14778_v40 }
 0x342   : > { %v1520_v54 = vpop.f32.mrb[92].mxu0 }
 0x343   : > { %v8353_v56 = vpop.f32.mrb[93].mxu0 }
 0x344   : > { %v1523_v57 = vpop.f32.mrb[94].mxu0 }
 0x345   : > { %v1604_v58 = vpack.c.bf16 %v1523_v57, %v1520_v54  ;;  %v8354_v59 = vpop.f32.mrb[95].mxu0 }
 0x347   : > { %1631 = vmatpush1.bf16.msra.mxu1 %v1604_v58 }
 0x348   : > { %1632 = vmatprep.subr.bf16.mxu1 %v14778_v40 }
 0x34a   : > { %v1528_v62 = vpop.f32.mrb[96].mxu0 }
 0x34b   : > { %v8357_v0 = vpop.f32.mrb[97].mxu0 }
 0x34c   : > { %v1531_v4 = vpop.f32.mrb[98].mxu0 }
 0x34d   : > { %v1605_v34 = vpack.c.bf16 %v1531_v4, %v1528_v62  ;;  %v8358_v36 = vpop.f32.mrb[99].mxu0 }
 0x34f   : > { %1633 = vmatpush1.bf16.msra.mxu1 %v1605_v34 }
 0x350   : > { %1634 = vmatprep.subr.bf16.mxu1 %v14778_v40 }
 0x352   : > { %v1536_v50 = vpop.f32.mrb[100].mxu0 }
 0x353   : > { %v8361_v35 = vpop.f32.mrb[101].mxu0 }
 0x354   : > { %v1539_v42 = vpop.f32.mrb[102].mxu0 }
 0x355   : > { %v1606_v52 = vpack.c.bf16 %v1539_v42, %v1536_v50  ;;  %v8362_v45 = vpop.f32.mrb[103].mxu0 }
 0x357   : > { %1635 = vmatpush1.bf16.msra.mxu1 %v1606_v52 }
 0x358   : > { %1636 = vmatprep.subr.bf16.mxu1 %v14778_v40 }
 0x35a   : > { %v1544_v47 = vpop.f32.mrb[104].mxu0 }
 0x35b   : > { %v8365_v48 = vpop.f32.mrb[105].mxu0 }
 0x35c   : > { %v1547_v53 = vpop.f32.mrb[106].mxu0 }
 0x35d   : > { %v1607_v54 = vpack.c.bf16 %v1547_v53, %v1544_v47  ;;  %v8366_v56 = vpop.f32.mrb[107].mxu0 }
 0x35f   : > { %1637 = vmatpush1.bf16.msra.mxu1 %v1607_v54  ;;  %v8992_v54 = vld [vmem:[%s14767_s11] sm:$0xff]  }
 0x360   : > { %1638 = vmatprep.subr.bf16.mxu1 %v14778_v40  ;;  %8392 = vmatpush3.bf16.msra.mxu0 %v8992_v54 }
 0x361   : > { %8393 = vmatprep.subr.bf16.mxu0 %v14780_v2 }
 0x362   : > { %v1552_v57 = vpop.f32.mrb[108].mxu0 }
 0x363   : > { %v8369_v58 = vpop.f32.mrb[109].mxu0 }
 0x364   : > { %v1555_v59 = vpop.f32.mrb[110].mxu0 }
 0x365   : > { %v1608_v62 = vpack.c.bf16 %v1555_v59, %v1552_v57  ;;  %v8370_v0 = vpop.f32.mrb[111].mxu0 }
 0x367   : > { %1639 = vmatpush1.bf16.msra.mxu1 %v1608_v62 }
 0x368   : > { %1640 = vmatprep.subr.bf16.mxu1 %v14778_v40 }
 0x36a   : > { %v1560_v4 = vpop.f32.mrb[112].mxu0 }
 0x36b   : > { %v8373_v34 = vpop.f32.mrb[113].mxu0 }
 0x36c   : > { %v1563_v36 = vpop.f32.mrb[114].mxu0 }
 0x36d   : > { %v1609_v50 = vpack.c.bf16 %v1563_v36, %v1560_v4  ;;  %v8374_v35 = vpop.f32.mrb[115].mxu0 }
 0x36f   : > { %1641 = vmatpush1.bf16.msra.mxu1 %v1609_v50 }
 0x370   : > { %1642 = vmatprep.subr.bf16.mxu1 %v14778_v40 }
 0x372   : > { %v1568_v42 = vpop.f32.mrb[116].mxu0 }
 0x373   : > { %v8377_v52 = vpop.f32.mrb[117].mxu0 }
 0x374   : > { %v1571_v45 = vpop.f32.mrb[118].mxu0 }
 0x375   : > { %v1610_v47 = vpack.c.bf16 %v1571_v45, %v1568_v42  ;;  %v8378_v48 = vpop.f32.mrb[119].mxu0 }
 0x376   : > { %v8994_v48 = vld [vmem:[%s14766_s10 + $0x8] sm:$0xff]  }
 0x377   : > { %1643 = vmatpush1.bf16.msra.mxu1 %v1610_v47  ;;  %v8993_v47 = vld [vmem:[%s14766_s10] sm:$0xff]  }
 0x378   : > { %1644 = vmatprep.subr.bf16.mxu1 %v14778_v40 }
 0x37a   : > { %v1576_v53 = vpop.f32.mrb[120].mxu0 }
 0x37b   : > { %v8381_v56 = vpop.f32.mrb[121].mxu0 }
 0x37c   : > { %v1579_v57 = vpop.f32.mrb[122].mxu0 }
 0x37d   : > { %v1611_v58 = vpack.c.bf16 %v1579_v57, %v1576_v53  ;;  %v8382_v59 = vpop.f32.mrb[123].mxu0 }
 0x37f   : > { %1645 = vmatpush1.bf16.msra.mxu1 %v1611_v58 }
 0x380   : > { %1646 = vmatprep.subr.bf16.mxu1 %v14778_v40 }
 0x382   : > { %v1584_v62 = vpop.f32.mrb[124].mxu0 }
 0x383   : > { %v8385_v0 = vpop.f32.mrb[125].mxu0 }
 0x384   : > { %v1587_v4 = vpop.f32.mrb[126].mxu0 }
 0x385   : > { %v1612_v34 = vpack.c.bf16 %v1587_v4, %v1584_v62  ;;  %v8386_v36 = vpop.f32.mrb[127].mxu0 }
 0x387   : > { %1647 = vmatpush1.bf16.msra.mxu1 %v1612_v34 }
 0x388   : > { %1648 = vmatprep.subr.bf16.mxu1 %v14778_v40 }
 0x38a   : > { %v1592_v50 = vpop.f32.mrb[128].mxu0 }
 0x38b   : > { %v8389_v35 = vpop.f32.mrb[129].mxu0 }
 0x38c   : > { %v1595_v42 = vpop.f32.mrb[130].mxu0 }
 0x38d   : > { %v1613_v52 = vpack.c.bf16 %v1595_v42, %v1592_v50  ;;  %v8390_v45 = vpop.f32.mrb[131].mxu0 }
 0x38f   : > { %1649 = vmatpush1.bf16.msra.mxu1 %v1613_v52 }
 0x390   : > { %8455 = vmatprep.subr.bf16.mxu1 %v14780_v2 }
 0x392   : > { %1653 = vmatmul.mubr.bf16.vlgmr.msra.gmra.mrb[48].mxu1 %v10120_v5  ;;  %v9718_v5 = vld [vmem:[%s14792_s29 + $0x34] ss:$8 sps:$4 sm:$0xff]  }
 0x393   : > { %7917 = vmatprep.mubr.msk.bf16.mxu1 %vm1072_vm3, %v10130_v7  ;;  %8456 = vmatpush3.bf16.msra.mxu1 %v8993_v47  ;;  %v8995_v7 = vld [vmem:[%s14767_s11 + $0x8] sm:$0xff]  }
 0x394   : > { %8457 = vmatprep.subr.bf16.mxu1 %v14780_v2  ;;  %8394 = vmatpush3.bf16.msra.mxu0 %v8995_v7 }
 0x395   : > { %8519 = vmatprep.subr.bf16.mxu0 %v14780_v2 }
 0x397   : > { %8458 = vmatpush3.bf16.msra.mxu1 %v8994_v48 }
 0x398   : > { %8583 = vmatprep.subr.bf16.mxu1 %v14780_v2 }
 0x39a   : > { %1661 = vmatmul.mubr.bf16.gmra.mrb[52].mxu1 %v10152_v10 }
 0x39b   : > { %7918 = vmatprep.mubr.msk.bf16.mxu1 %vm1072_vm3, %v10162_v12 }
 0x3a2   : > { %1669 = vmatmul.mubr.bf16.gmra.mrb[56].mxu1 %v10178_v14 }
 0x3a3   : > { %7919 = vmatprep.mubr.msk.bf16.mxu1 %vm1072_vm3, %v9718_v5 }
 0x3aa   : > { %1677 = vmatmul.mubr.bf16.gmra.mrb[60].mxu1 %v10125_v6 }
 0x3ab   : > { %7920 = vmatprep.mubr.msk.bf16.mxu1 %vm1072_vm3, %v10135_v8 }
 0x3b2   : > { %1685 = vmatmul.mubr.bf16.gmra.mrb[64].mxu1 %v10157_v11  ;;  %v10644_v11 = vld [vmem:[%s14764_s8] ss:$0 sm:$0xff] }
 0x3b3   : > { %7921 = vmatprep.mubr.msk.bf16.mxu1 %vm1072_vm3, %v10167_v13 }
 0x3ba   : > { %1693 = vmatmul.mubr.bf16.gmra.mrb[68].mxu1 %v10183_v15 }
 0x3bb   : > { %7922 = vmatprep.mubr.msk.bf16.mxu1 %vm1072_vm3, %v10188_v16 }
 0x3c2   : > { %1701 = vmatmul.mubr.bf16.gmra.mrb[72].mxu1 %v10199_v17 }
 0x3c3   : > { %7923 = vmatprep.mubr.msk.bf16.mxu1 %vm1072_vm3, %v10204_v18  ;;  %v10653_v18 = vld [vmem:[%s14765_s9] ss:$0 sm:$0xff] }
 0x3ca   : > { %1709 = vmatmul.mubr.bf16.gmra.mrb[76].mxu1 %v10212_v19 }
 0x3cb   : > { %7924 = vmatprep.mubr.msk.bf16.mxu1 %vm1072_vm3, %v10217_v20 }
 0x3d2   : > { %1717 = vmatmul.mubr.bf16.gmra.mrb[80].mxu1 %v10225_v21 }
 0x3d3   : > { %7925 = vmatprep.mubr.msk.bf16.mxu1 %vm1072_vm3, %v10230_v22 }
 0x3da   : > { %1725 = vmatmul.mubr.bf16.gmra.mrb[84].mxu1 %v10238_v23 }
 0x3db   : > { %7926 = vmatprep.mubr.msk.bf16.mxu1 %vm1072_vm3, %v10243_v24 }
 0x3e2   : > { %1733 = vmatmul.mubr.bf16.gmra.mrb[88].mxu1 %v10251_v25 }
 0x3e3   : > { %7927 = vmatprep.mubr.msk.bf16.mxu1 %vm1072_vm3, %v10256_v26 }
 0x3ea   : > { %1741 = vmatmul.mubr.bf16.gmra.mrb[92].mxu1 %v10264_v27 }
 0x3eb   : > { %7928 = vmatprep.mubr.msk.bf16.mxu1 %vm1072_vm3, %v10269_v28 }
 0x3f2   : > { %1749 = vmatmul.mubr.bf16.gmra.mrb[96].mxu1 %v10277_v29 }
 0x3f3   : > { %7929 = vmatprep.mubr.msk.bf16.mxu1 %vm1072_vm3, %v10282_v30 }
 0x3fa   : > { %1757 = vmatmul.mubr.bf16.gmra.mrb[100].mxu1 %v10290_v31 }
 0x3fb   : > { %7930 = vmatprep.mubr.msk.bf16.mxu1 %vm1072_vm3, %v10295_v32 }
 0x402   : > { %1765 = vmatmul.mubr.bf16.gmra.mrb[104].mxu1 %v10303_v33 }
 0x403   : > { %8459 = vmatprep.mubr.msk.bf16.mxu1 %vm9868_vm1, %v14780_v2 }
 0x40a   : > { %8460 = vmatmul.mubr.msk.bf16.vlgmr.msra.gmra.mrb[108].mxu1 %vm1400_vm4, %v10341_v38 }
 0x40b   : > { %8463 = vmatprep.mubr.msk.bf16.mxu1 %vm9868_vm1, %v14780_v2  ;;  %8584 = vmatpush3.bf16.msra.mxu1 %v9988_v3  ;;  %v10636_v3 = vld [vmem:[%s14763_s7] ss:$0 sm:$0xff] }
 0x40c   : > { %8645 = vmatprep.subr.bf16.mxu1 %v14780_v2 }
 0x412   : > { %8464 = vmatmul.mubr.msk.bf16.gmra.mrb[112].mxu1 %vm1400_vm4, %v10362_v37 }
 0x413   : > { %8467 = vmatprep.mubr.msk.bf16.mxu1 %vm9868_vm1, %v14780_v2 }
 0x41a   : > { %8468 = vmatmul.mubr.msk.bf16.gmra.mrb[116].mxu1 %vm1400_vm4, %v10380_v61 }
 0x41b   : > { %8471 = vmatprep.mubr.msk.bf16.mxu1 %vm9868_vm1, %v14780_v2 }
 0x422   : > { %8472 = vmatmul.mubr.msk.bf16.gmra.mrb[120].mxu1 %vm1400_vm4, %v10345_v46 }
 0x423   : > { %8475 = vmatprep.mubr.msk.bf16.mxu1 %vm9868_vm1, %v14780_v2 }
 0x42a   : > { %8476 = vmatmul.mubr.msk.bf16.gmra.mrb[124].mxu1 %vm1400_vm4, %v10365_v43 }
 0x42b   : > { %8479 = vmatprep.mubr.msk.bf16.mxu1 %vm9868_vm1, %v14780_v2 }
 0x432   : > { %8480 = vmatmul.mubr.msk.bf16.gmra.mrb[128].mxu1 %vm1400_vm4, %v10383_v1 }
 0x433   : > { %8483 = vmatprep.mubr.msk.bf16.mxu1 %vm9868_vm1, %v14780_v2 }
 0x43a   : > { %8484 = vmatmul.mubr.msk.bf16.gmra.mrb[132].mxu1 %vm1400_vm4, %v10395_v51 }
 0x43b   : > { %8487 = vmatprep.mubr.msk.bf16.mxu1 %vm9868_vm1, %v14780_v2 }
 0x442   : > { %8488 = vmatmul.mubr.msk.bf16.gmra.mrb[136].mxu1 %vm1400_vm4, %v10407_v9 }
 0x443   : > { %8491 = vmatprep.mubr.msk.bf16.mxu1 %vm9868_vm1, %v14780_v2 }
 0x44a   : > { %8492 = vmatmul.mubr.msk.bf16.gmra.mrb[140].mxu1 %vm1400_vm4, %v10419_v55 }
 0x44b   : > { %8495 = vmatprep.mubr.msk.bf16.mxu1 %vm9868_vm1, %v14780_v2 }
 0x452   : > { %8496 = vmatmul.mubr.msk.bf16.gmra.mrb[144].mxu1 %vm1400_vm4, %v10431_v41 }
 0x453   : > { %8499 = vmatprep.mubr.msk.bf16.mxu1 %vm9868_vm1, %v14780_v2 }
 0x45a   : > { %8500 = vmatmul.mubr.msk.bf16.gmra.mrb[148].mxu1 %vm1400_vm4, %v10443_v60 }
 0x45b   : > { %8503 = vmatprep.mubr.msk.bf16.mxu1 %vm9868_vm1, %v14780_v2 }
 0x462   : > { %8504 = vmatmul.mubr.msk.bf16.gmra.mrb[152].mxu1 %vm1400_vm4, %v10455_v49 }
 0x463   : > { %8507 = vmatprep.mubr.msk.bf16.mxu1 %vm9868_vm1, %v14780_v2 }
 0x465   : > { %v1654_v6 = vpop.f32.mrb[48].mxu1 }
 0x466   : > { %v1655_v8 = vadd.f32 %v10636_v3, %v1654_v6  ;;  %v1656_v10 = vpop.f32.mrb[49].mxu1 }
 0x467   : > { %v1657_v12 = vpop.f32.mrb[50].mxu1 }
 0x468   : > { %v1773_v13 = vmax.f32 %v1655_v8, 0.0  ;;  %v1658_v14 = vadd.f32 %v10636_v3, %v1657_v12  ;;  %v1659_v15 = vpop.f32.mrb[51].mxu1 }
 0x46a   : > { %v1809_v16 = vmul.f32 %v10644_v11, %v1773_v13  ;;  %v1774_v17 = vmax.f32 %v1658_v14, 0.0  ;;  %8508 = vmatmul.mubr.msk.bf16.gmra.mrb[156].mxu1 %vm1400_vm4, %v10467_v39 }
 0x46b   : > { %8511 = vmatprep.mubr.msk.bf16.mxu1 %vm9868_vm1, %v14780_v2 }
 0x46c   : > { %v1810_v19 = vmul.f32 %v10644_v11, %v1774_v17  ;;  %v1845_v21 = vadd.f32 %v10653_v18, %v1809_v16 }
 0x46d   : > { %v1662_v20 = vpop.f32.mrb[52].mxu1 }
 0x46e   : > { %v1846_v22 = vadd.f32 %v10653_v18, %v1810_v19  ;;  %v1663_v23 = vadd.f32 %v10636_v3, %v1662_v20  ;;  %v1664_v24 = vpop.f32.mrb[53].mxu1 }
 0x46f   : > { %v1665_v25 = vpop.f32.mrb[54].mxu1 }
 0x470   : > { %v1875_v26 = vpack.c.bf16 %v1846_v22, %v1845_v21  ;;  %v1775_v27 = vmax.f32 %v1663_v23, 0.0  ;;  %v1666_v28 = vadd.f32 %v10636_v3, %v1665_v25  ;;  %v1667_v29 = vpop.f32.mrb[55].mxu1 }
 0x472   : > { %v1811_v30 = vmul.f32 %v10644_v11, %v1775_v27  ;;  %v1776_v31 = vmax.f32 %v1666_v28, 0.0  ;;  %8396 = vmatmul.mubr.msk.bf16.vlgmr.msra.gmra.mrb[132].mxu0 %vm1400_vm4, %v1875_v26  ;;  %8512 = vmatmul.mubr.msk.bf16.gmra.mrb[160].mxu1 %vm1400_vm4, %v10479_v63 }
 0x473   : > { %8399 = vmatprep.mubr.msk.bf16.mxu0 %vm9868_vm1, %v14780_v2  ;;  %8515 = vmatprep.mubr.msk.bf16.mxu1 %vm9868_vm1, %v14780_v2 }
 0x474   : > { %v1812_v32 = vmul.f32 %v10644_v11, %v1776_v31  ;;  %v1847_v38 = vadd.f32 %v10653_v18, %v1811_v30 }
 0x475   : > { %v1670_v33 = vpop.f32.mrb[56].mxu1 }
 0x476   : > { %v1848_v46 = vadd.f32 %v10653_v18, %v1812_v32  ;;  %v1671_v37 = vadd.f32 %v10636_v3, %v1670_v33  ;;  %v1672_v43 = vpop.f32.mrb[57].mxu1 }
 0x477   : > { %v1673_v61 = vpop.f32.mrb[58].mxu1 }
 0x478   : > { %v1777_v1 = vmax.f32 %v1671_v37, 0.0  ;;  %v1674_v51 = vadd.f32 %v10636_v3, %v1673_v61  ;;  %v1675_v9 = vpop.f32.mrb[59].mxu1  ;;  %v1876_v55 = vpack.c.bf16 %v1848_v46, %v1847_v38 }
 0x47a   : > { %v1813_v41 = vmul.f32 %v10644_v11, %v1777_v1  ;;  %v1778_v60 = vmax.f32 %v1674_v51, 0.0  ;;  %8400 = vmatmul.mubr.msk.bf16.gmra.mrb[136].mxu0 %vm1400_vm4, %v1876_v55  ;;  %8516 = vmatmul.mubr.msk.bf16.gmra.mrb[164].mxu1 %vm1400_vm4, %v10489_v44 }
 0x47b   : > { %8403 = vmatprep.mubr.msk.bf16.mxu0 %vm9868_vm1, %v14780_v2  ;;  %8585 = vmatprep.mubr.msk.bf16.mxu1 %vm9868_vm1, %v14780_v2 }
 0x47c   : > { %v1849_v49 = vadd.f32 %v10653_v18, %v1813_v41  ;;  %v1814_v39 = vmul.f32 %v10644_v11, %v1778_v60 }
 0x47d   : > { %v1678_v63 = vpop.f32.mrb[60].mxu1 }
 0x47e   : > { %v1850_v53 = vadd.f32 %v10653_v18, %v1814_v39  ;;  %v1679_v54 = vadd.f32 %v10636_v3, %v1678_v63  ;;  %v1680_v56 = vpop.f32.mrb[61].mxu1 }
 0x47f   : > { %v1681_v57 = vpop.f32.mrb[62].mxu1 }
 0x480   : > { %v1779_v58 = vmax.f32 %v1679_v54, 0.0  ;;  %v1682_v44 = vadd.f32 %v10636_v3, %v1681_v57  ;;  %v1683_v59 = vpop.f32.mrb[63].mxu1  ;;  %v1877_v62 = vpack.c.bf16 %v1850_v53, %v1849_v49 }
 0x482   : > { %v1815_v0 = vmul.f32 %v10644_v11, %v1779_v58  ;;  %v1780_v4 = vmax.f32 %v1682_v44, 0.0  ;;  %8404 = vmatmul.mubr.msk.bf16.gmra.mrb[140].mxu0 %vm1400_vm4, %v1877_v62 }
 0x483   : > { %8407 = vmatprep.mubr.msk.bf16.mxu0 %vm9868_vm1, %v14780_v2 }
 0x484   : > { %v1851_v34 = vadd.f32 %v10653_v18, %v1815_v0  ;;  %v1816_v36 = vmul.f32 %v10644_v11, %v1780_v4 }
 0x485   : > { %v1686_v50 = vpop.f32.mrb[64].mxu1 }
 0x486   : > { %v1852_v35 = vadd.f32 %v10653_v18, %v1816_v36  ;;  %v1687_v42 = vadd.f32 %v10636_v3, %v1686_v50  ;;  %v1688_v52 = vpop.f32.mrb[65].mxu1 }
 0x487   : > { %v1689_v45 = vpop.f32.mrb[66].mxu1 }
 0x488   : > { %v1781_v47 = vmax.f32 %v1687_v42, 0.0  ;;  %v1690_v48 = vadd.f32 %v10636_v3, %v1689_v45  ;;  %v1691_v5 = vpop.f32.mrb[67].mxu1  ;;  %v1878_v7 = vpack.c.bf16 %v1852_v35, %v1851_v34 }
 0x48a   : > { %v1817_v6 = vmul.f32 %v10644_v11, %v1781_v47  ;;  %v1782_v8 = vmax.f32 %v1690_v48, 0.0  ;;  %8408 = vmatmul.mubr.msk.bf16.gmra.mrb[144].mxu0 %vm1400_vm4, %v1878_v7 }
 0x48b   : > { %8411 = vmatprep.mubr.msk.bf16.mxu0 %vm9868_vm1, %v14780_v2 }
 0x48c   : > { %v1853_v10 = vadd.f32 %v10653_v18, %v1817_v6  ;;  %v1818_v12 = vmul.f32 %v10644_v11, %v1782_v8 }
 0x48d   : > { %v1694_v13 = vpop.f32.mrb[68].mxu1 }
 0x48e   : > { %v1854_v14 = vadd.f32 %v10653_v18, %v1818_v12  ;;  %v1695_v15 = vadd.f32 %v10636_v3, %v1694_v13  ;;  %v1696_v16 = vpop.f32.mrb[69].mxu1 }
 0x48f   : > { %v1697_v17 = vpop.f32.mrb[70].mxu1 }
 0x490   : > { %v1783_v19 = vmax.f32 %v1695_v15, 0.0  ;;  %v1698_v20 = vadd.f32 %v10636_v3, %v1697_v17  ;;  %v1699_v21 = vpop.f32.mrb[71].mxu1  ;;  %v1879_v22 = vpack.c.bf16 %v1854_v14, %v1853_v10 }
 0x492   : > { %v1819_v23 = vmul.f32 %v10644_v11, %v1783_v19  ;;  %v1784_v24 = vmax.f32 %v1698_v20, 0.0  ;;  %8412 = vmatmul.mubr.msk.bf16.gmra.mrb[148].mxu0 %vm1400_vm4, %v1879_v22 }
 0x493   : > { %8415 = vmatprep.mubr.msk.bf16.mxu0 %vm9868_vm1, %v14780_v2 }
 0x494   : > { %v1855_v25 = vadd.f32 %v10653_v18, %v1819_v23  ;;  %v1820_v26 = vmul.f32 %v10644_v11, %v1784_v24 }
 0x495   : > { %v1702_v27 = vpop.f32.mrb[72].mxu1 }
 0x496   : > { %v1856_v28 = vadd.f32 %v10653_v18, %v1820_v26  ;;  %v1703_v29 = vadd.f32 %v10636_v3, %v1702_v27  ;;  %v1704_v30 = vpop.f32.mrb[73].mxu1 }
 0x497   : > { %v1705_v31 = vpop.f32.mrb[74].mxu1 }
 0x498   : > { %v1785_v32 = vmax.f32 %v1703_v29, 0.0  ;;  %v1706_v33 = vadd.f32 %v10636_v3, %v1705_v31  ;;  %v1707_v38 = vpop.f32.mrb[75].mxu1  ;;  %v1880_v46 = vpack.c.bf16 %v1856_v28, %v1855_v25 }
 0x49a   : > { %v1821_v37 = vmul.f32 %v10644_v11, %v1785_v32  ;;  %v1786_v43 = vmax.f32 %v1706_v33, 0.0  ;;  %8416 = vmatmul.mubr.msk.bf16.gmra.mrb[152].mxu0 %vm1400_vm4, %v1880_v46 }
 0x49b   : > { %8419 = vmatprep.mubr.msk.bf16.mxu0 %vm9868_vm1, %v14780_v2 }
 0x49c   : > { %v1857_v61 = vadd.f32 %v10653_v18, %v1821_v37  ;;  %v1822_v1 = vmul.f32 %v10644_v11, %v1786_v43 }
 0x49d   : > { %v1710_v51 = vpop.f32.mrb[76].mxu1 }
 0x49e   : > { %v1858_v9 = vadd.f32 %v10653_v18, %v1822_v1  ;;  %v1711_v55 = vadd.f32 %v10636_v3, %v1710_v51  ;;  %v1712_v41 = vpop.f32.mrb[77].mxu1 }
 0x49f   : > { %v1713_v60 = vpop.f32.mrb[78].mxu1 }
 0x4a0   : > { %v1787_v49 = vmax.f32 %v1711_v55, 0.0  ;;  %v1714_v39 = vadd.f32 %v10636_v3, %v1713_v60  ;;  %v1881_v63 = vpack.c.bf16 %v1858_v9, %v1857_v61  ;;  %v1715_v53 = vpop.f32.mrb[79].mxu1 }
 0x4a2   : > { %v1823_v54 = vmul.f32 %v10644_v11, %v1787_v49  ;;  %v1788_v56 = vmax.f32 %v1714_v39, 0.0  ;;  %8420 = vmatmul.mubr.msk.bf16.gmra.mrb[156].mxu0 %vm1400_vm4, %v1881_v63 }
 0x4a3   : > { %8423 = vmatprep.mubr.msk.bf16.mxu0 %vm9868_vm1, %v14780_v2 }
 0x4a4   : > { %v1859_v57 = vadd.f32 %v10653_v18, %v1823_v54  ;;  %v1824_v58 = vmul.f32 %v10644_v11, %v1788_v56 }
 0x4a5   : > { %v1718_v44 = vpop.f32.mrb[80].mxu1 }
 0x4a6   : > { %v1860_v59 = vadd.f32 %v10653_v18, %v1824_v58  ;;  %v1719_v62 = vadd.f32 %v10636_v3, %v1718_v44  ;;  %v1720_v0 = vpop.f32.mrb[81].mxu1 }
 0x4a7   : > { %v1721_v4 = vpop.f32.mrb[82].mxu1 }
 0x4a8   : > { %v1789_v34 = vmax.f32 %v1719_v62, 0.0  ;;  %v1722_v36 = vadd.f32 %v10636_v3, %v1721_v4  ;;  %v1882_v50 = vpack.c.bf16 %v1860_v59, %v1859_v57  ;;  %v1723_v35 = vpop.f32.mrb[83].mxu1 }
 0x4aa   : > { %v1825_v42 = vmul.f32 %v10644_v11, %v1789_v34  ;;  %v1790_v52 = vmax.f32 %v1722_v36, 0.0  ;;  %8424 = vmatmul.mubr.msk.bf16.gmra.mrb[160].mxu0 %vm1400_vm4, %v1882_v50 }
 0x4ab   : > { %8427 = vmatprep.mubr.msk.bf16.mxu0 %vm9868_vm1, %v14780_v2 }
 0x4ac   : > { %v1861_v45 = vadd.f32 %v10653_v18, %v1825_v42  ;;  %v1826_v47 = vmul.f32 %v10644_v11, %v1790_v52 }
 0x4ad   : > { %v1726_v48 = vpop.f32.mrb[84].mxu1 }
 0x4ae   : > { %v1862_v5 = vadd.f32 %v10653_v18, %v1826_v47  ;;  %v1727_v7 = vadd.f32 %v10636_v3, %v1726_v48  ;;  %v1728_v6 = vpop.f32.mrb[85].mxu1 }
 0x4af   : > { %v1729_v8 = vpop.f32.mrb[86].mxu1 }
 0x4b0   : > { %v1791_v10 = vmax.f32 %v1727_v7, 0.0  ;;  %v1730_v12 = vadd.f32 %v10636_v3, %v1729_v8  ;;  %v1883_v13 = vpack.c.bf16 %v1862_v5, %v1861_v45  ;;  %v1731_v14 = vpop.f32.mrb[87].mxu1 }
 0x4b2   : > { %v1827_v15 = vmul.f32 %v10644_v11, %v1791_v10  ;;  %v1792_v16 = vmax.f32 %v1730_v12, 0.0  ;;  %8428 = vmatmul.mubr.msk.bf16.gmra.mrb[164].mxu0 %vm1400_vm4, %v1883_v13 }
 0x4b3   : > { %8431 = vmatprep.mubr.msk.bf16.mxu0 %vm9868_vm1, %v14780_v2 }
 0x4b4   : > { %v1863_v17 = vadd.f32 %v10653_v18, %v1827_v15  ;;  %v1828_v19 = vmul.f32 %v10644_v11, %v1792_v16 }
 0x4b5   : > { %v1734_v20 = vpop.f32.mrb[88].mxu1 }
 0x4b6   : > { %v1864_v21 = vadd.f32 %v10653_v18, %v1828_v19  ;;  %v1735_v22 = vadd.f32 %v10636_v3, %v1734_v20  ;;  %v1736_v23 = vpop.f32.mrb[89].mxu1 }
 0x4b7   : > { %v1737_v24 = vpop.f32.mrb[90].mxu1 }
 0x4b8   : > { %v1793_v25 = vmax.f32 %v1735_v22, 0.0  ;;  %v1738_v26 = vadd.f32 %v10636_v3, %v1737_v24  ;;  %v1884_v27 = vpack.c.bf16 %v1864_v21, %v1863_v17  ;;  %v1739_v28 = vpop.f32.mrb[91].mxu1 }
 0x4ba   : > { %v1829_v29 = vmul.f32 %v10644_v11, %v1793_v25  ;;  %v1794_v30 = vmax.f32 %v1738_v26, 0.0  ;;  %8432 = vmatmul.mubr.msk.bf16.gmra.mrb[168].mxu0 %vm1400_vm4, %v1884_v27 }
 0x4bb   : > { %8435 = vmatprep.mubr.msk.bf16.mxu0 %vm9868_vm1, %v14780_v2 }
 0x4bc   : > { %v1865_v31 = vadd.f32 %v10653_v18, %v1829_v29  ;;  %v1830_v32 = vmul.f32 %v10644_v11, %v1794_v30 }
 0x4bd   : > { %v1742_v33 = vpop.f32.mrb[92].mxu1 }
 0x4be   : > { %v1866_v38 = vadd.f32 %v10653_v18, %v1830_v32  ;;  %v1743_v46 = vadd.f32 %v10636_v3, %v1742_v33  ;;  %v1744_v37 = vpop.f32.mrb[93].mxu1 }
 0x4bf   : > { %v1745_v43 = vpop.f32.mrb[94].mxu1 }
 0x4c0   : > { %v1795_v61 = vmax.f32 %v1743_v46, 0.0  ;;  %v1746_v1 = vadd.f32 %v10636_v3, %v1745_v43  ;;  %v1885_v51 = vpack.c.bf16 %v1866_v38, %v1865_v31  ;;  %v1747_v9 = vpop.f32.mrb[95].mxu1 }
 0x4c2   : > { %v1831_v55 = vmul.f32 %v10644_v11, %v1795_v61  ;;  %v1796_v41 = vmax.f32 %v1746_v1, 0.0  ;;  %8436 = vmatmul.mubr.msk.bf16.gmra.mrb[172].mxu0 %vm1400_vm4, %v1885_v51 }
 0x4c3   : > { %8439 = vmatprep.mubr.msk.bf16.mxu0 %vm9868_vm1, %v14780_v2 }
 0x4c4   : > { %v1867_v60 = vadd.f32 %v10653_v18, %v1831_v55  ;;  %v1832_v49 = vmul.f32 %v10644_v11, %v1796_v41 }
 0x4c5   : > { %v1750_v39 = vpop.f32.mrb[96].mxu1 }
 0x4c6   : > { %v1868_v63 = vadd.f32 %v10653_v18, %v1832_v49  ;;  %v1751_v53 = vadd.f32 %v10636_v3, %v1750_v39  ;;  %v1752_v54 = vpop.f32.mrb[97].mxu1 }
 0x4c7   : > { %v1753_v56 = vpop.f32.mrb[98].mxu1 }
 0x4c8   : > { %v1797_v57 = vmax.f32 %v1751_v53, 0.0  ;;  %v1754_v58 = vadd.f32 %v10636_v3, %v1753_v56  ;;  %v1886_v44 = vpack.c.bf16 %v1868_v63, %v1867_v60  ;;  %v1755_v59 = vpop.f32.mrb[99].mxu1 }
 0x4ca   : > { %v1833_v62 = vmul.f32 %v10644_v11, %v1797_v57  ;;  %v1798_v0 = vmax.f32 %v1754_v58, 0.0  ;;  %8440 = vmatmul.mubr.msk.bf16.gmra.mrb[176].mxu0 %vm1400_vm4, %v1886_v44 }
 0x4cb   : > { %8443 = vmatprep.mubr.msk.bf16.mxu0 %vm9868_vm1, %v14780_v2 }
 0x4cc   : > { %v1869_v4 = vadd.f32 %v10653_v18, %v1833_v62  ;;  %v1834_v34 = vmul.f32 %v10644_v11, %v1798_v0 }
 0x4cd   : > { %v1758_v36 = vpop.f32.mrb[100].mxu1 }
 0x4ce   : > { %v1870_v50 = vadd.f32 %v10653_v18, %v1834_v34  ;;  %v1759_v35 = vadd.f32 %v10636_v3, %v1758_v36  ;;  %v1760_v42 = vpop.f32.mrb[101].mxu1 }
 0x4cf   : > { %v1761_v52 = vpop.f32.mrb[102].mxu1 }
 0x4d0   : > { %v1799_v45 = vmax.f32 %v1759_v35, 0.0  ;;  %v1762_v47 = vadd.f32 %v10636_v3, %v1761_v52  ;;  %v1887_v48 = vpack.c.bf16 %v1870_v50, %v1869_v4  ;;  %v1763_v5 = vpop.f32.mrb[103].mxu1 }
 0x4d2   : > { %v1835_v7 = vmul.f32 %v10644_v11, %v1799_v45  ;;  %v1800_v6 = vmax.f32 %v1762_v47, 0.0  ;;  %8444 = vmatmul.mubr.msk.bf16.gmra.mrb[180].mxu0 %vm1400_vm4, %v1887_v48 }
 0x4d3   : > { %8447 = vmatprep.mubr.msk.bf16.mxu0 %vm9868_vm1, %v14780_v2 }
 0x4d4   : > { %v1871_v8 = vadd.f32 %v10653_v18, %v1835_v7  ;;  %v1836_v10 = vmul.f32 %v10644_v11, %v1800_v6 }
 0x4d5   : > { %v1766_v12 = vpop.f32.mrb[104].mxu1 }
 0x4d6   : > { %v1872_v13 = vadd.f32 %v10653_v18, %v1836_v10  ;;  %v1767_v14 = vadd.f32 %v10636_v3, %v1766_v12  ;;  %v1768_v15 = vpop.f32.mrb[105].mxu1 }
 0x4d7   : > { %v1769_v16 = vpop.f32.mrb[106].mxu1 }
 0x4d8   : > { %v1801_v17 = vmax.f32 %v1767_v14, 0.0  ;;  %v1770_v19 = vadd.f32 %v10636_v3, %v1769_v16  ;;  %v1888_v20 = vpack.c.bf16 %v1872_v13, %v1871_v8  ;;  %v1771_v21 = vpop.f32.mrb[107].mxu1 }
 0x4da   : > { %v1837_v22 = vmul.f32 %v10644_v11, %v1801_v17  ;;  %v1802_v23 = vmax.f32 %v1770_v19, 0.0  ;;  %8448 = vmatmul.mubr.msk.bf16.gmra.mrb[184].mxu0 %vm1400_vm4, %v1888_v20  ;;  %v10848_v17 = vld [vmem:[%s14768_s12] ss:$0 sm:$0xff] }
 0x4db   : > { %8451 = vmatprep.mubr.msk.bf16.mxu0 %vm9868_vm1, %v14780_v2 }
 0x4dc   : > { %v1873_v24 = vadd.f32 %v10653_v18, %v1837_v22  ;;  %v1838_v25 = vmul.f32 %v10644_v11, %v1802_v23 }
 0x4dd   : > { %v2146_v26 = vpop.f32.mrb[108].mxu1 }
 0x4de   : > { %v1874_v27 = vadd.f32 %v10653_v18, %v1838_v25  ;;  %v8461_v28 = vpop.f32.mrb[109].mxu1 }
 0x4df   : > { %v2149_v29 = vpop.f32.mrb[110].mxu1 }
 0x4e0   : > { %v8462_v3 = vpop.f32.mrb[111].mxu1  ;;  %v1889_v30 = vpack.c.bf16 %v1874_v27, %v1873_v24 }
 0x4e2   : > { %8452 = vmatmul.mubr.msk.bf16.gmra.mrb[188].mxu0 %vm1400_vm4, %v1889_v30 }
 0x4e3   : > { %8523 = vmatprep.mubr.msk.bf16.mxu0 %vm9868_vm1, %v14780_v2 }
 0x4e5   : > { %v10797_v31 = vpop.f32.mrb[112].mxu1 }
 0x4e6   : > { %v8465_v32 = vpop.f32.mrb[113].mxu1 }
 0x4e7   : > { %v10799_v33 = vpop.f32.mrb[114].mxu1 }
 0x4e8   : > { %v8466_v38 = vpop.f32.mrb[115].mxu1 }
 0x4ed   : > { %v10801_v46 = vpop.f32.mrb[116].mxu1 }
 0x4ee   : > { %v8469_v11 = vpop.f32.mrb[117].mxu1 }
 0x4ef   : > { %v10803_v37 = vpop.f32.mrb[118].mxu1 }
 0x4f0   : > { %v8470_v18 = vpop.f32.mrb[119].mxu1 }
 0x4f5   : > { %v10805_v43 = vpop.f32.mrb[120].mxu1 }
 0x4f6   : > { %v8473_v61 = vpop.f32.mrb[121].mxu1 }
 0x4f7   : > { %v10807_v1 = vpop.f32.mrb[122].mxu1 }
 0x4f8   : > { %v8474_v51 = vpop.f32.mrb[123].mxu1 }
 0x4fd   : > { %v10809_v9 = vpop.f32.mrb[124].mxu1 }
 0x4fe   : > { %v8477_v55 = vpop.f32.mrb[125].mxu1 }
 0x4ff   : > { %v10811_v41 = vpop.f32.mrb[126].mxu1 }
 0x500   : > { %v8478_v60 = vpop.f32.mrb[127].mxu1 }
 0x505   : > { %v10813_v49 = vpop.f32.mrb[128].mxu1 }
 0x506   : > { %v8481_v39 = vpop.f32.mrb[129].mxu1 }
 0x507   : > { %v10815_v63 = vpop.f32.mrb[130].mxu1 }
 0x508   : > { %v8482_v53 = vpop.f32.mrb[131].mxu1 }
 0x50d   : > { %v10817_v54 = vpop.f32.mrb[132].mxu1 }
 0x50e   : > { %v8485_v56 = vpop.f32.mrb[133].mxu1 }
 0x50f   : > { %v10819_v57 = vpop.f32.mrb[134].mxu1 }
 0x510   : > { %v8486_v58 = vpop.f32.mrb[135].mxu1 }
 0x515   : > { %v10821_v44 = vpop.f32.mrb[136].mxu1 }
 0x516   : > { %v8489_v59 = vpop.f32.mrb[137].mxu1 }
 0x517   : > { %v10823_v62 = vpop.f32.mrb[138].mxu1 }
 0x518   : > { %v8490_v0 = vpop.f32.mrb[139].mxu1 }
 0x51d   : > { %v10825_v4 = vpop.f32.mrb[140].mxu1 }
 0x51e   : > { %v8493_v34 = vpop.f32.mrb[141].mxu1 }
 0x51f   : > { %v10827_v36 = vpop.f32.mrb[142].mxu1 }
 0x520   : > { %v8494_v50 = vpop.f32.mrb[143].mxu1 }
 0x525   : > { %v10829_v35 = vpop.f32.mrb[144].mxu1 }
 0x526   : > { %v8497_v42 = vpop.f32.mrb[145].mxu1 }
 0x527   : > { %v10831_v52 = vpop.f32.mrb[146].mxu1 }
 0x528   : > { %v8498_v45 = vpop.f32.mrb[147].mxu1 }
 0x52d   : > { %v10833_v47 = vpop.f32.mrb[148].mxu1 }
 0x52e   : > { %v8501_v48 = vpop.f32.mrb[149].mxu1 }
 0x52f   : > { %v10835_v5 = vpop.f32.mrb[150].mxu1 }
 0x530   : > { %v8502_v7 = vpop.f32.mrb[151].mxu1 }
 0x535   : > { %v10837_v6 = vpop.f32.mrb[152].mxu1 }
 0x536   : > { %v8505_v8 = vpop.f32.mrb[153].mxu1 }
 0x537   : > { %v10839_v10 = vpop.f32.mrb[154].mxu1 }
 0x538   : > { %v8506_v12 = vpop.f32.mrb[155].mxu1 }
 0x53d   : > { %v10841_v13 = vpop.f32.mrb[156].mxu1 }
 0x53e   : > { %v8509_v14 = vpop.f32.mrb[157].mxu1 }
 0x53f   : > { %v10843_v15 = vpop.f32.mrb[158].mxu1 }
 0x540   : > { %v8510_v16 = vpop.f32.mrb[159].mxu1 }
 0x545   : > { %v1981_v19 = vpop.f32.mrb[132].mxu0  ;;  %v10850_v20 = vpop.f32.mrb[160].mxu1 }
 0x546   : > { %v2147_v21 = vadd.f32 %v2146_v26, %v1981_v19  ;;  %v8397_v22 = vpop.f32.mrb[133].mxu0  ;;  %v8513_v23 = vpop.f32.mrb[161].mxu1 }
 0x547   : > { %v1984_v24 = vpop.f32.mrb[134].mxu0  ;;  %v10852_v25 = vpop.f32.mrb[162].mxu1 }
 0x548   : > { %v10855_v27 = vadd.f32 %v10848_v17, %v2147_v21  ;;  %v2150_v28 = vadd.f32 %v2149_v29, %v1984_v24  ;;  %v8398_v3 = vpop.f32.mrb[135].mxu0  ;;  %v8514_v30 = vpop.f32.mrb[163].mxu1 }
 0x54a   : > { %8998 = vtanh.f32 %v10855_v27  ;;  %v10859_v32 = vadd.f32 %v10848_v17, %v2150_v28 }
 0x54c   : > { %9000 = vtanh.f32 %v10859_v32 }
 0x54d   : > { %v1989_v38 = vpop.f32.mrb[136].mxu0  ;;  %v10861_v11 = vpop.f32.mrb[164].mxu1 }
 0x54e   : > { %v2155_v26 = vadd.f32 %v10797_v31, %v1989_v38  ;;  %v8401_v18 = vpop.f32.mrb[137].mxu0  ;;  %v8517_v61 = vpop.f32.mrb[165].mxu1 }
 0x54f   : > { %v1992_v51 = vpop.f32.mrb[138].mxu0  ;;  %v10865_v55 = vpop.f32.mrb[166].mxu1 }
 0x550   : > { %v10868_v29 = vadd.f32 %v10848_v17, %v2155_v26  ;;  %v2158_v60 = vadd.f32 %v10799_v33, %v1992_v51  ;;  %v8402_v39 = vpop.f32.mrb[139].mxu0  ;;  %v8518_v53 = vpop.f32.mrb[167].mxu1 }
 0x552   : > { %9002 = vtanh.f32 %v10868_v29  ;;  %v10873_v56 = vadd.f32 %v10848_v17, %v2158_v60 }
 0x554   : > { %v8999_v58 = vpop.eup %8998  ;;  %9004 = vtanh.f32 %v10873_v56 }
 0x555   : > { %2481 = vrot.lane.b32.xlu0 %v8999_v58, %s9870_s30  ;;  %v1997_v31 = vpop.f32.mrb[140].mxu0 }
 0x556   : > { %v2163_v59 = vadd.f32 %v10801_v46, %v1997_v31  ;;  %v8405_v0 = vpop.f32.mrb[141].mxu0  ;;  %v9001_v50 = vpop.eup %9000 }
 0x557   : > { %v2000_v34 = vpop.f32.mrb[142].mxu0 }
 0x558   : > { %v10879_v33 = vadd.f32 %v10848_v17, %v2163_v59  ;;  %v2166_v42 = vadd.f32 %v10803_v37, %v2000_v34  ;;  %v8406_v45 = vpop.f32.mrb[143].mxu0 }
 0x559   : > { %2483 = vrot.lane.b32.xlu0 %v9001_v50, %s9870_s30 }
 0x55a   : > { %9006 = vtanh.f32 %v10879_v33  ;;  %v10885_v48 = vadd.f32 %v10848_v17, %v2166_v42 }
 0x55c   : > { %v9003_v7 = vpop.eup %9002  ;;  %9008 = vtanh.f32 %v10885_v48 }
 0x55d   : > { %2485 = vrot.lane.b32.xlu1 %v9003_v7, %s9870_s30  ;;  %v2005_v46 = vpop.f32.mrb[144].mxu0 }
 0x55e   : > { %v2171_v8 = vadd.f32 %v10805_v43, %v2005_v46  ;;  %v8409_v12 = vpop.f32.mrb[145].mxu0  ;;  %v9005_v16 = vpop.eup %9004 }
 0x55f   : > { %v2008_v14 = vpop.f32.mrb[146].mxu0 }
 0x560   : > { %v10891_v37 = vadd.f32 %v10848_v17, %v2171_v8  ;;  %v2174_v19 = vadd.f32 %v10807_v1, %v2008_v14  ;;  %v8410_v21 = vpop.f32.mrb[147].mxu0 }
 0x561   : > { %2487 = vrot.lane.b32.xlu1 %v9005_v16, %s9870_s30 }
 0x562   : > { %9010 = vtanh.f32 %v10891_v37  ;;  %v10897_v22 = vadd.f32 %v10848_v17, %v2174_v19 }
 0x564   : > { %v9007_v23 = vpop.eup %9006  ;;  %9012 = vtanh.f32 %v10897_v22 }
 0x565   : > { %2489 = vrot.lane.b32.xlu0 %v9007_v23, %s9870_s30  ;;  %v2013_v43 = vpop.f32.mrb[148].mxu0 }
 0x566   : > { %v9009_v24 = vpop.eup %9008  ;;  %v2179_v28 = vadd.f32 %v10809_v9, %v2013_v43  ;;  %v8413_v3 = vpop.f32.mrb[149].mxu0 }
 0x567   : > { %2491 = vrot.lane.b32.xlu1 %v9009_v24, %s9870_s30  ;;  %v2016_v1 = vpop.f32.mrb[150].mxu0 }
 0x568   : > { %v10904_v30 = vadd.f32 %v10848_v17, %v2179_v28  ;;  %v2182_v38 = vadd.f32 %v10811_v41, %v2016_v1  ;;  %v8414_v26 = vpop.f32.mrb[151].mxu0 }
 0x56a   : > { %9014 = vtanh.f32 %v10904_v30  ;;  %v10909_v18 = vadd.f32 %v10848_v17, %v2182_v38 }
 0x56c   : > { %v9011_v61 = vpop.eup %9010  ;;  %9016 = vtanh.f32 %v10909_v18 }
 0x56d   : > { %2493 = vrot.lane.b32.xlu0 %v9011_v61, %s9870_s30  ;;  %v2021_v9 = vpop.f32.mrb[152].mxu0 }
 0x56e   : > { %v9013_v51 = vpop.eup %9012  ;;  %v2187_v60 = vadd.f32 %v10813_v49, %v2021_v9  ;;  %v8417_v39 = vpop.f32.mrb[153].mxu0 }
 0x56f   : > { %2495 = vrot.lane.b32.xlu1 %v9013_v51, %s9870_s30  ;;  %v2024_v53 = vpop.f32.mrb[154].mxu0 }
 0x570   : > { %v10916_v41 = vadd.f32 %v10848_v17, %v2187_v60  ;;  %v2190_v58 = vadd.f32 %v10815_v63, %v2024_v53  ;;  %v8418_v31 = vpop.f32.mrb[155].mxu0 }
 0x572   : > { %9018 = vtanh.f32 %v10916_v41  ;;  %v10921_v59 = vadd.f32 %v10848_v17, %v2190_v58 }
 0x574   : > { %v9015_v0 = vpop.eup %9014  ;;  %9020 = vtanh.f32 %v10921_v59 }
 0x575   : > { %2497 = vrot.lane.b32.xlu0 %v9015_v0, %s9870_s30  ;;  %v2029_v49 = vpop.f32.mrb[156].mxu0 }
 0x576   : > { %v9017_v34 = vpop.eup %9016  ;;  %v2195_v50 = vadd.f32 %v10817_v54, %v2029_v49  ;;  %v8421_v42 = vpop.f32.mrb[157].mxu0 }
 0x577   : > { %2499 = vrot.lane.b32.xlu1 %v9017_v34, %s9870_s30  ;;  %v2032_v45 = vpop.f32.mrb[158].mxu0  ;;  %v4377_v42 = vld [vmem:[%s10001_s26 + $0xf8] sm:$0xff] }
 0x578   : > { %v10928_v63 = vadd.f32 %v10848_v17, %v2195_v50  ;;  %v2198_v7 = vadd.f32 %v10819_v57, %v2032_v45  ;;  %v8422_v46 = vpop.f32.mrb[159].mxu0  ;;  %v4376_v50 = vld [vmem:[%s10001_s26 + $0xf0] sm:$0xff] }
 0x579   : > { %v4406_v46 = vpack.c.bf16 %v4377_v42, %v4376_v50  ;;  %v2301_v42 = vmul.f32 0.5, %v10855_v27  ;;  %v2303_v27 = vmul.f32 0.5, %v10868_v29  ;;  %v4384_v29 = vld [vmem:[%s10001_s26 + $0x130] sm:$0xff] }
 0x57a   : > { %9022 = vtanh.f32 %v10928_v63  ;;  %v10933_v8 = vadd.f32 %v10848_v17, %v2198_v7 }
 0x57b   : > { %8586 = vmatmul.mubr.msk.bf16.vlgmr.msra.gmra.mrb[168].mxu1 %vm713_vm2, %v4406_v46 }
 0x57c   : > { %v9019_v12 = vpop.eup %9018  ;;  %9024 = vtanh.f32 %v10933_v8  ;;  %8589 = vmatprep.mubr.msk.bf16.mxu1 %vm9868_vm1, %v14780_v2 }
 0x57d   : > { %2501 = vrot.lane.b32.xlu0 %v9019_v12, %s9870_s30  ;;  %v2037_v54 = vpop.f32.mrb[160].mxu0 }
 0x57e   : > { %v9021_v14 = vpop.eup %9020  ;;  %v2203_v16 = vadd.f32 %v10821_v44, %v2037_v54  ;;  %v8425_v19 = vpop.f32.mrb[161].mxu0 }
 0x57f   : > { %2503 = vrot.lane.b32.xlu1 %v9021_v14, %s9870_s30  ;;  %v2040_v21 = vpop.f32.mrb[162].mxu0  ;;  %v4378_v14 = vld [vmem:[%s10001_s26 + $0x100] sm:$0xff] }
 0x580   : > { %v10940_v57 = vadd.f32 %v10848_v17, %v2203_v16  ;;  %v2206_v23 = vadd.f32 %v10823_v62, %v2040_v21  ;;  %v8426_v43 = vpop.f32.mrb[163].mxu0  ;;  %v4379_v16 = vld [vmem:[%s10001_s26 + $0x108] sm:$0xff] }
 0x581   : > { %v4407_v19 = vpack.c.bf16 %v4379_v16, %v4378_v14  ;;  %v9720_v21 = vld [vmem:[%s14762_s6 + $0x8] sm:$0xff]   ;;  %v2304_v14 = vmul.f32 0.5, %v10873_v56  ;;  %v2307_v56 = vmul.f32 0.5, %v10891_v37 }
 0x582   : > { %9026 = vtanh.f32 %v10940_v57  ;;  %v10945_v24 = vadd.f32 %v10848_v17, %v2206_v23 }
 0x583   : > { %8590 = vmatmul.mubr.msk.bf16.gmra.mrb[172].mxu1 %vm713_vm2, %v4407_v19  ;;  %v2306_v19 = vmul.f32 0.5, %v10885_v48 }
 0x584   : > { %v9023_v28 = vpop.eup %9022  ;;  %9028 = vtanh.f32 %v10945_v24  ;;  %8593 = vmatprep.mubr.msk.bf16.mxu1 %vm9868_vm1, %v14780_v2 }
 0x585   : > { %2505 = vrot.lane.b32.xlu0 %v9023_v28, %s9870_s30  ;;  %v2045_v44 = vpop.f32.mrb[164].mxu0 }
 0x586   : > { %v9025_v3 = vpop.eup %9024  ;;  %v2211_v1 = vadd.f32 %v10825_v4, %v2045_v44  ;;  %v8429_v38 = vpop.f32.mrb[165].mxu0 }
 0x587   : > { %2507 = vrot.lane.b32.xlu1 %v9025_v3, %s9870_s30  ;;  %v2048_v26 = vpop.f32.mrb[166].mxu0  ;;  %v4381_v38 = vld [vmem:[%s10001_s26 + $0x118] sm:$0xff] }
 0x588   : > { %v10952_v62 = vadd.f32 %v10848_v17, %v2211_v1  ;;  %v2214_v61 = vadd.f32 %v10827_v36, %v2048_v26  ;;  %v8430_v9 = vpop.f32.mrb[167].mxu0  ;;  %v4380_v1 = vld [vmem:[%s10001_s26 + $0x110] sm:$0xff] }
 0x589   : > { %v4408_v26 = vpack.c.bf16 %v4381_v38, %v4380_v1 }
 0x58a   : > { %9030 = vtanh.f32 %v10952_v62  ;;  %v10957_v51 = vadd.f32 %v10848_v17, %v2214_v61 }
 0x58b   : > { %8594 = vmatmul.mubr.msk.bf16.gmra.mrb[176].mxu1 %vm713_vm2, %v4408_v26 }
 0x58c   : > { %v9027_v60 = vpop.eup %9026  ;;  %9032 = vtanh.f32 %v10957_v51  ;;  %8597 = vmatprep.mubr.msk.bf16.mxu1 %vm9868_vm1, %v14780_v2 }
 0x58d   : > { %2509 = vrot.lane.b32.xlu0 %v9027_v60, %s9870_s30  ;;  %v2053_v4 = vpop.f32.mrb[168].mxu0  ;;  %9034 = vtanh.f32 %v2301_v42 }
 0x58e   : > { %v9029_v39 = vpop.eup %9028  ;;  %v10962_v53 = vadd.f32 %v10829_v35, %v2053_v4  ;;  %v8433_v58 = vpop.f32.mrb[169].mxu0 }
 0x58f   : > { %2511 = vrot.lane.b32.xlu1 %v9029_v39, %s9870_s30  ;;  %v2056_v36 = vpop.f32.mrb[170].mxu0  ;;  %v4382_v39 = vld [vmem:[%s10001_s26 + $0x120] sm:$0xff]  ;;  %v4383_v58 = vld [vmem:[%s10001_s26 + $0x128] sm:$0xff] }
 0x590   : > { %v10966_v31 = vadd.f32 %v10831_v52, %v2056_v36  ;;  %v8434_v0 = vpop.f32.mrb[171].mxu0  ;;  %v4409_v36 = vpack.c.bf16 %v4383_v58, %v4382_v39 }
 0x593   : > { %8598 = vmatmul.mubr.msk.bf16.gmra.mrb[180].mxu1 %vm713_vm2, %v4409_v36  ;;  %v4387_v36 = vld [vmem:[%s10001_s26 + $0x148] sm:$0xff] }
 0x594   : > { %v9031_v49 = vpop.eup %9030  ;;  %8601 = vmatprep.mubr.msk.bf16.mxu1 %vm9868_vm1, %v14780_v2 }
 0x595   : > { %2513 = vrot.lane.b32.xlu0 %v9031_v49, %s9870_s30  ;;  %v2061_v34 = vpop.f32.mrb[172].mxu0 }
 0x596   : > { %v9033_v45 = vpop.eup %9032  ;;  %v10972_v35 = vadd.f32 %v10833_v47, %v2061_v34  ;;  %v8437_v7 = vpop.f32.mrb[173].mxu0  ;;  %v9719_v47 = vld [vmem:[%s14762_s6] sm:$0xff]  }
 0x597   : > { %2515 = vrot.lane.b32.xlu1 %v9033_v45, %s9870_s30  ;;  %v2064_v12 = vpop.f32.mrb[174].mxu0  ;;  %8646 = vmatpush3.bf16.msra.mxu1 %v9719_v47  ;;  %v2302_v7 = vmul.f32 0.5, %v10859_v32  ;;  %v9035_v16 = vpop.eup %9034  ;;  %v2305_v32 = vmul.f32 0.5, %v10879_v33  ;;  %v11042_v33 = vadd.f32 %v10848_v17, %v10962_v53  ;;  %v11054_v53 = vadd.f32 %v10848_v17, %v10966_v31 }
 0x598   : > { %v10976_v52 = vadd.f32 %v10835_v5, %v2064_v12  ;;  %v8438_v54 = vpop.f32.mrb[175].mxu0  ;;  %8647 = vmatprep.subr.bf16.mxu1 %v14780_v2  ;;  %v11065_v31 = vadd.f32 %v10848_v17, %v10972_v35 }
 0x599   : > { %9036 = vtanh.f32 %v2302_v7 }
 0x59a   : > { %9038 = vtanh.f32 %v2303_v27  ;;  %v11077_v35 = vadd.f32 %v10848_v17, %v10976_v52  ;;  %v2311_v52 = vmul.f32 0.5, %v10916_v41 }
 0x59b   : > { %8648 = vmatpush3.bf16.msra.mxu1 %v9720_v21  ;;  %9040 = vtanh.f32 %v2304_v14 }
 0x59c   : > { %8709 = vmatprep.subr.bf16.mxu1 %v14780_v2  ;;  %9042 = vtanh.f32 %v2305_v32  ;;  %v4388_v32 = vld [vmem:[%s10001_s26 + $0x150] sm:$0xff] }
 0x59d   : > { %v2069_v5 = vpop.f32.mrb[176].mxu0  ;;  %9044 = vtanh.f32 %v2306_v19 }
 0x59e   : > { %v10991_v23 = vadd.f32 %v10837_v6, %v2069_v5  ;;  %v8441_v43 = vpop.f32.mrb[177].mxu0 }
 0x59f   : > { %v2072_v28 = vpop.f32.mrb[178].mxu0 }
 0x5a0   : > { %v10995_v44 = vadd.f32 %v10839_v10, %v2072_v28  ;;  %v8442_v3 = vpop.f32.mrb[179].mxu0  ;;  %v4385_v28 = vld [vmem:[%s10001_s26 + $0x138] sm:$0xff] }
 0x5a1   : > { %v4410_v1 = vpack.c.bf16 %v4385_v28, %v4384_v29  ;;  %v11091_v29 = vadd.f32 %v10848_v17, %v10991_v23 }
 0x5a3   : > { %v9037_v47 = vpop.eup %9036  ;;  %8602 = vmatmul.mubr.msk.bf16.gmra.mrb[184].mxu1 %vm713_vm2, %v4410_v1  ;;  %v2312_v1 = vmul.f32 0.5, %v10921_v59 }
 0x5a4   : > { %v2362_v5 = vmul.f32 0.5, %v9037_v47  ;;  %v9039_v21 = vpop.eup %9038  ;;  %8605 = vmatprep.mubr.msk.bf16.mxu1 %vm9868_vm1, %v14780_v2 }
 0x5a5   : > { %v2077_v6 = vpop.f32.mrb[180].mxu0  ;;  %v2363_v38 = vmul.f32 0.5, %v9039_v21  ;;  %v9041_v26 = vpop.eup %9040 }
 0x5a6   : > { %v11003_v61 = vadd.f32 %v10841_v13, %v2077_v6  ;;  %v8445_v9 = vpop.f32.mrb[181].mxu0  ;;  %v11044_v48 = vadd.f32 0.5, %v2362_v5  ;;  %v9043_v39 = vpop.eup %9042 }
 0x5a7   : > { %v2080_v60 = vpop.f32.mrb[182].mxu0  ;;  %v2308_v9 = vmul.f32 0.5, %v10897_v22  ;;  %v4386_v22 = vld [vmem:[%s10001_s26 + $0x140] sm:$0xff] }
 0x5a8   : > { %v11006_v4 = vadd.f32 %v10843_v15, %v2080_v60  ;;  %v8446_v10 = vpop.f32.mrb[183].mxu0  ;;  %v11056_v60 = vadd.f32 0.5, %v2363_v38 }
 0x5a9   : > { %v2364_v10 = vmul.f32 0.5, %v9041_v26  ;;  %v11103_v26 = vadd.f32 %v10848_v17, %v10995_v44  ;;  %v2313_v44 = vmul.f32 0.5, %v10928_v63 }
 0x5ab   : > { %v11067_v42 = vadd.f32 0.5, %v2364_v10  ;;  %v4390_v10 = vld [vmem:[%s10001_s26 + $0x160] sm:$0xff] }
 0x5ad   : > { %v2085_v0 = vpop.f32.mrb[184].mxu0 }
 0x5ae   : > { %v11014_v49 = vadd.f32 %v10850_v20, %v2085_v0  ;;  %v8449_v13 = vpop.f32.mrb[185].mxu0 }
 0x5af   : > { %v2088_v34 = vpop.f32.mrb[186].mxu0  ;;  %v2309_v13 = vmul.f32 0.5, %v10904_v30 }
 0x5b0   : > { %v11017_v50 = vadd.f32 %v10852_v25, %v2088_v34  ;;  %v8450_v15 = vpop.f32.mrb[187].mxu0  ;;  %v4411_v34 = vpack.c.bf16 %v4387_v36, %v4386_v22 }
 0x5b1   : > { %v9045_v15 = vpop.eup %9044 }
 0x5b2   : > { %8606 = vmatmul.mubr.msk.bf16.gmra.mrb[188].mxu1 %vm713_vm2, %v4411_v34  ;;  %v11118_v34 = vadd.f32 %v10848_v17, %v11003_v61 }
 0x5b3   : > { %8609 = vmatprep.mubr.msk.bf16.mxu1 %vm9868_vm1, %v14780_v2 }
 0x5b5   : > { %v2093_v45 = vpop.f32.mrb[188].mxu0 }
 0x5b6   : > { %v11025_v20 = vadd.f32 %v10861_v11, %v2093_v45  ;;  %v8453_v46 = vpop.f32.mrb[189].mxu0  ;;  %v2361_v11 = vmul.f32 0.5, %v9035_v16  ;;  %v2365_v45 = vmul.f32 0.5, %v9043_v39  ;;  %v4391_v39 = vld [vmem:[%s10001_s26 + $0x168] sm:$0xff] }
 0x5b7   : > { %v2096_v12 = vpop.f32.mrb[190].mxu0  ;;  %v2310_v46 = vmul.f32 0.5, %v10909_v18 }
 0x5b8   : > { %v11028_v25 = vadd.f32 %v10865_v55, %v2096_v12  ;;  %v8454_v54 = vpop.f32.mrb[191].mxu0  ;;  %v11034_v55 = vadd.f32 0.5, %v2361_v11  ;;  %v11080_v27 = vadd.f32 0.5, %v2365_v45  ;;  %v4389_v11 = vld [vmem:[%s10001_s26 + $0x158] sm:$0xff] }
 0x5b9   : > { %v2366_v54 = vmul.f32 0.5, %v9045_v15  ;;  %v4412_v21 = vpack.c.bf16 %v4389_v11, %v4388_v32  ;;  %v4393_v32 = vld [vmem:[%s10001_s26 + $0x178] sm:$0xff] }
 0x5bb   : > { %v11085_v5 = vadd.f32 0.5, %v2366_v54  ;;  %8610 = vmatmul.mubr.msk.bf16.gmra.mrb[192].mxu1 %vm713_vm2, %v4412_v21 }
 0x5bc   : > { %8613 = vmatprep.mubr.msk.bf16.mxu1 %vm9868_vm1, %v14780_v2 }
 0x5c7   : > { %v2482_v43 = vpop.permute.xlu0 %2481 }
 0x5c8   : > { %v2571_v3 = vmul.f32 %v2482_v43, %v11034_v55 }
 0x5ca   : > { %9046 = vtanh.f32 %v2571_v3 }
 0x5cb   : > { %v2484_v6 = vpop.permute.xlu0 %2483  ;;  %9048 = vtanh.f32 %v2307_v56 }
 0x5cc   : > { %v2572_v37 = vmul.f32 %v2484_v6, %v11044_v48  ;;  %9050 = vtanh.f32 %v11042_v33 }
 0x5ce   : > { %9052 = vtanh.f32 %v2572_v37 }
 0x5cf   : > { %v2486_v58 = vpop.permute.xlu1 %2485  ;;  %9054 = vtanh.f32 %v2308_v9 }
 0x5d0   : > { %v2573_v0 = vmul.f32 %v2486_v58, %v11056_v60  ;;  %9056 = vtanh.f32 %v11054_v53 }
 0x5d2   : > { %9058 = vtanh.f32 %v2573_v0  ;;  %v4413_v0 = vpack.c.bf16 %v4391_v39, %v4390_v10  ;;  %v4395_v10 = vld [vmem:[%s10001_s26 + $0x188] sm:$0xff] }
 0x5d3   : > { %v2488_v7 = vpop.permute.xlu1 %2487  ;;  %9060 = vtanh.f32 %v2309_v13 }
 0x5d4   : > { %v9047_v30 = vpop.eup %9046  ;;  %v2574_v12 = vmul.f32 %v2488_v7, %v11067_v42  ;;  %9062 = vtanh.f32 %v11065_v31  ;;  %8614 = vmatmul.mubr.msk.bf16.gmra.mrb[196].mxu1 %vm713_vm2, %v4413_v0 }
 0x5d5   : > { %2661 = vrot.lane.b32.xlu0 %v9047_v30, %s14784_s24  ;;  %v9049_v18 = vpop.eup %9048  ;;  %8617 = vmatprep.mubr.msk.bf16.mxu1 %vm9868_vm1, %v14780_v2 }
 0x5d6   : > { %9064 = vtanh.f32 %v2574_v12  ;;  %v9051_v14 = vpop.eup %9050  ;;  %v2367_v56 = vmul.f32 0.5, %v9049_v18  ;;  %v11130_v12 = vadd.f32 %v10848_v17, %v11006_v4  ;;  %v2315_v4 = vmul.f32 0.5, %v10940_v57 }
 0x5d7   : > { %v2490_v16 = vpop.permute.xlu0 %2489  ;;  %9066 = vtanh.f32 %v2310_v46  ;;  %v2314_v46 = vmul.f32 0.5, %v10933_v8 }
 0x5d8   : > { %v9053_v47 = vpop.eup %9052  ;;  %v2575_v19 = vmul.f32 %v2490_v16, %v11080_v27  ;;  %9068 = vtanh.f32 %v11077_v35  ;;  %v11107_v59 = vadd.f32 0.5, %v2367_v56  ;;  %v4392_v16 = vld [vmem:[%s10001_s26 + $0x170] sm:$0xff] }
 0x5d9   : > { %v9055_v43 = vpop.eup %9054  ;;  %v2492_v28 = vpop.permute.xlu1 %2491  ;;  %2663 = vrot.lane.b32.xlu1 %v9053_v47, %s14784_s24  ;;  %2517 = vrot.lane.b32.xlu0 %v9051_v14, %s9870_s30 }
 0x5da   : > { %9070 = vtanh.f32 %v2575_v19  ;;  %v2576_v3 = vmul.f32 %v2492_v28, %v11085_v5  ;;  %v9057_v41 = vpop.eup %9056  ;;  %v2368_v38 = vmul.f32 0.5, %v9055_v43  ;;  %v11145_v43 = vadd.f32 %v10848_v17, %v11014_v49 }
 0x5db   : > { %9072 = vtanh.f32 %v2311_v52  ;;  %v4414_v52 = vpack.c.bf16 %v4393_v32, %v4392_v16  ;;  %v4397_v16 = vld [vmem:[%s10001_s26 + $0x198] sm:$0xff] }
 0x5dc   : > { %v9059_v23 = vpop.eup %9058  ;;  %9074 = vtanh.f32 %v11091_v29  ;;  %v11112_v36 = vadd.f32 0.5, %v2368_v38 }
 0x5dd   : > { %2665 = vrot.lane.b32.xlu0 %v9059_v23, %s14784_s24  ;;  %2519 = vrot.lane.b32.xlu1 %v9057_v41, %s9870_s30  ;;  %v9061_v6 = vpop.eup %9060  ;;  %9076 = vtanh.f32 %v2576_v3  ;;  %v2316_v41 = vmul.f32 0.5, %v10945_v24  ;;  %v11157_v23 = vadd.f32 %v10848_v17, %v11017_v50  ;;  %v2317_v50 = vmul.f32 0.5, %v10952_v62 }
 0x5de   : > { %v9063_v9 = vpop.eup %9062  ;;  %9078 = vtanh.f32 %v2312_v1  ;;  %v2369_v7 = vmul.f32 0.5, %v9061_v6  ;;  %8618 = vmatmul.mubr.msk.bf16.gmra.mrb[200].mxu1 %vm713_vm2, %v4414_v52 }
 0x5df   : > { %v2494_v37 = vpop.permute.xlu0 %2493  ;;  %9080 = vtanh.f32 %v11103_v26  ;;  %8621 = vmatprep.mubr.msk.bf16.mxu1 %vm9868_vm1, %v14780_v2 }
 0x5e0   : > { %v9065_v58 = vpop.eup %9064  ;;  %v2577_v22 = vmul.f32 %v2494_v37, %v11107_v59  ;;  %v11134_v8 = vadd.f32 0.5, %v2369_v7  ;;  %v4394_v37 = vld [vmem:[%s10001_s26 + $0x180] sm:$0xff] }
 0x5e1   : > { %v9067_v13 = vpop.eup %9066  ;;  %v2496_v15 = vpop.permute.xlu1 %2495  ;;  %2667 = vrot.lane.b32.xlu1 %v9065_v58, %s14784_s24  ;;  %2521 = vrot.lane.b32.xlu0 %v9063_v9, %s9870_s30 }
 0x5e2   : > { %9082 = vtanh.f32 %v2577_v22  ;;  %v2578_v45 = vmul.f32 %v2496_v15, %v11112_v36  ;;  %v9069_v63 = vpop.eup %9068  ;;  %v2370_v30 = vmul.f32 0.5, %v9067_v13  ;;  %v11172_v13 = vadd.f32 %v10848_v17, %v11025_v20 }
 0x5e3   : > { %9084 = vtanh.f32 %v2313_v44  ;;  %v4415_v44 = vpack.c.bf16 %v4395_v10, %v4394_v37 }
 0x5e4   : > { %v9071_v61 = vpop.eup %9070  ;;  %9086 = vtanh.f32 %v11118_v34  ;;  %v11139_v19 = vadd.f32 0.5, %v2370_v30 }
 0x5e5   : > { %2669 = vrot.lane.b32.xlu0 %v9071_v61, %s14784_s24  ;;  %2523 = vrot.lane.b32.xlu1 %v9069_v63, %s9870_s30  ;;  %v9073_v54 = vpop.eup %9072  ;;  %9088 = vtanh.f32 %v2578_v45 }
 0x5e6   : > { %v9075_v18 = vpop.eup %9074  ;;  %9090 = vtanh.f32 %v2314_v46  ;;  %v2371_v56 = vmul.f32 0.5, %v9073_v54  ;;  %8622 = vmatmul.mubr.msk.bf16.gmra.mrb[204].mxu1 %vm713_vm2, %v4415_v44  ;;  %v11183_v46 = vadd.f32 %v10848_v17, %v11028_v25 }
 0x5e7   : > { %v2498_v14 = vpop.permute.xlu0 %2497  ;;  %v9077_v11 = vpop.eup %9076  ;;  %9092 = vtanh.f32 %v11130_v12  ;;  %8625 = vmatprep.mubr.msk.bf16.mxu1 %vm9868_vm1, %v14780_v2 }
 0x5e8   : > { %v2579_v47 = vmul.f32 %v2498_v14, %v11134_v8  ;;  %v9079_v21 = vpop.eup %9078  ;;  %v11161_v24 = vadd.f32 0.5, %v2371_v56  ;;  %v4396_v14 = vld [vmem:[%s10001_s26 + $0x190] sm:$0xff] }
 0x5e9   : > { %v2500_v28 = vpop.permute.xlu1 %2499  ;;  %2671 = vrot.lane.b32.xlu1 %v9077_v11, %s14784_s24  ;;  %2525 = vrot.lane.b32.xlu0 %v9075_v18, %s9870_s30  ;;  %v9081_v57 = vpop.eup %9080  ;;  %v2372_v1 = vmul.f32 0.5, %v9079_v21 }
 0x5ea   : > { %9094 = vtanh.f32 %v2579_v47  ;;  %v2580_v3 = vmul.f32 %v2500_v28, %v11139_v19 }
 0x5eb   : > { %9096 = vtanh.f32 %v2315_v4  ;;  %v11166_v22 = vadd.f32 0.5, %v2372_v1  ;;  %v4416_v4 = vpack.c.bf16 %v4397_v16, %v4396_v14  ;;  %v4402_v14 = vld [vmem:[%s10001_s26 + $0x1c0] sm:$0xff]  ;;  %v4403_v16 = vld [vmem:[%s10001_s26 + $0x1c8] sm:$0xff] }
 0x5ec   : > { %v9083_v49 = vpop.eup %9082  ;;  %9098 = vtanh.f32 %v11145_v43 }
 0x5ed   : > { %2673 = vrot.lane.b32.xlu0 %v9083_v49, %s14784_s24  ;;  %2527 = vrot.lane.b32.xlu1 %v9081_v57, %s9870_s30  ;;  %v9085_v38 = vpop.eup %9084  ;;  %9100 = vtanh.f32 %v2580_v3 }
 0x5ee   : > { %v9087_v6 = vpop.eup %9086  ;;  %9102 = vtanh.f32 %v2316_v41  ;;  %v2373_v7 = vmul.f32 0.5, %v9085_v38  ;;  %8626 = vmatmul.mubr.msk.bf16.gmra.mrb[208].mxu1 %vm713_vm2, %v4416_v4  ;;  %v4398_v38 = vld [vmem:[%s10001_s26 + $0x1a0] sm:$0xff] }
 0x5ef   : > { %v2502_v9 = vpop.permute.xlu0 %2501  ;;  %v9089_v39 = vpop.eup %9088  ;;  %9104 = vtanh.f32 %v11157_v23  ;;  %8629 = vmatprep.mubr.msk.bf16.mxu1 %vm9868_vm1, %v14780_v2 }
 0x5f0   : > { %v2581_v58 = vmul.f32 %v2502_v9, %v11161_v24  ;;  %v9091_v0 = vpop.eup %9090  ;;  %v11187_v30 = vadd.f32 0.5, %v2373_v7 }
 0x5f1   : > { %v2504_v15 = vpop.permute.xlu1 %2503  ;;  %2675 = vrot.lane.b32.xlu1 %v9089_v39, %s14784_s24  ;;  %2529 = vrot.lane.b32.xlu0 %v9087_v6, %s9870_s30  ;;  %v9093_v62 = vpop.eup %9092  ;;  %v2374_v20 = vmul.f32 0.5, %v9091_v0  ;;  %v4399_v6 = vld [vmem:[%s10001_s26 + $0x1a8] sm:$0xff] }
 0x5f2   : > { %9106 = vtanh.f32 %v2581_v58  ;;  %v2582_v45 = vmul.f32 %v2504_v15, %v11166_v22  ;;  %v4417_v39 = vpack.c.bf16 %v4399_v6, %v4398_v38  ;;  %v2322_v6 = vmul.f32 0.5, %v11077_v35 }
 0x5f3   : > { %9108 = vtanh.f32 %v2317_v50  ;;  %v11192_v47 = vadd.f32 0.5, %v2374_v20 }
 0x5f4   : > { %v9095_v63 = vpop.eup %9094  ;;  %9110 = vtanh.f32 %v11172_v13 }
 0x5f5   : > { %2677 = vrot.lane.b32.xlu0 %v9095_v63, %s14784_s24  ;;  %2531 = vrot.lane.b32.xlu1 %v9093_v62, %s9870_s30  ;;  %v9097_v61 = vpop.eup %9096  ;;  %9112 = vtanh.f32 %v2582_v45  ;;  %v4400_v62 = vld [vmem:[%s10001_s26 + $0x1b0] sm:$0xff]  ;;  %v4401_v63 = vld [vmem:[%s10001_s26 + $0x1b8] sm:$0xff] }
 0x5f6   : > { %v9099_v54 = vpop.eup %9098  ;;  %9114 = vtanh.f32 %v11183_v46  ;;  %v2375_v21 = vmul.f32 0.5, %v9097_v61  ;;  %8630 = vmatmul.mubr.msk.bf16.gmra.mrb[212].mxu1 %vm713_vm2, %v4417_v39 }
 0x5f7   : > { %v2506_v18 = vpop.permute.xlu0 %2505  ;;  %v9101_v32 = vpop.eup %9100  ;;  %8633 = vmatprep.mubr.msk.bf16.mxu1 %vm9868_vm1, %v14780_v2 }
 0x5f8   : > { %v2583_v11 = vmul.f32 %v2506_v18, %v11187_v30  ;;  %v9103_v17 = vpop.eup %9102  ;;  %v11203_v41 = vadd.f32 0.5, %v2375_v21  ;;  %v8996_v18 = vld [vmem:[%s14769_s13] sm:$0xff]  }
 0x5f9   : > { %v2508_v25 = vpop.permute.xlu1 %2507  ;;  %2679 = vrot.lane.b32.xlu1 %v9101_v32, %s14784_s24  ;;  %2533 = vrot.lane.b32.xlu0 %v9099_v54, %s9870_s30  ;;  %v9105_v28 = vpop.eup %9104  ;;  %v2376_v56 = vmul.f32 0.5, %v9103_v17  ;;  %v4418_v54 = vpack.c.bf16 %v4401_v63, %v4400_v62  ;;  %v4419_v17 = vpack.c.bf16 %v4403_v16, %v4402_v14 }
 0x5fa   : > { %9116 = vtanh.f32 %v2583_v11  ;;  %v2584_v52 = vmul.f32 %v2508_v25, %v11192_v47  ;;  %8520 = vmatpush3.bf16.msra.mxu0 %v8996_v18  ;;  %v8997_v11 = vld [vmem:[%s14769_s13 + $0x8] sm:$0xff]   ;;  %v4404_v25 = vld [vmem:[%s10001_s26 + $0x1d0] sm:$0xff] }
 0x5fb   : > { %v11208_v10 = vadd.f32 0.5, %v2376_v56  ;;  %8521 = vmatprep.subr.bf16.mxu0 %v14780_v2  ;;  %v2319_v56 = vmul.f32 0.5, %v11042_v33 }
 0x5fc   : > { %v9107_v3 = vpop.eup %9106  ;;  %9118 = vtanh.f32 %v2584_v52  ;;  %v4405_v52 = vld [vmem:[%s10001_s26 + $0x1d8] sm:$0xff] }
 0x5fd   : > { %2681 = vrot.lane.b32.xlu0 %v9107_v3, %s14784_s24  ;;  %2535 = vrot.lane.b32.xlu1 %v9105_v28, %s9870_s30  ;;  %v9109_v57 = vpop.eup %9108  ;;  %v4420_v28 = vpack.c.bf16 %v4405_v52, %v4404_v25  ;;  %v2318_v3 = vmul.f32 0.5, %v10957_v51  ;;  %v2323_v51 = vmul.f32 0.5, %v11091_v29 }
 0x5fe   : > { %v9111_v49 = vpop.eup %9110  ;;  %v2377_v44 = vmul.f32 0.5, %v9109_v57  ;;  %8634 = vmatmul.mubr.msk.bf16.gmra.mrb[216].mxu1 %vm713_vm2, %v4418_v54  ;;  %8522 = vmatpush3.bf16.msra.mxu0 %v8997_v11  ;;  %v2320_v57 = vmul.f32 0.5, %v11054_v53 }
 0x5ff   : > { %v2510_v1 = vpop.permute.xlu0 %2509  ;;  %v9113_v9 = vpop.eup %9112  ;;  %8637 = vmatprep.mubr.msk.bf16.mxu1 %vm9868_vm1, %v14780_v2  ;;  %4634 = vmatprep.subr.bf16.mxu0 %v14778_v40 }
 0x600   : > { %v2585_v37 = vmul.f32 %v2510_v1, %v11203_v41  ;;  %v9115_v0 = vpop.eup %9114  ;;  %v11218_v45 = vadd.f32 0.5, %v2377_v44  ;;  %v2321_v1 = vmul.f32 0.5, %v11065_v31  ;;  %v2324_v44 = vmul.f32 0.5, %v11103_v26 }
 0x601   : > { %v2512_v58 = vpop.permute.xlu1 %2511  ;;  %2683 = vrot.lane.b32.xlu1 %v9113_v9, %s14784_s24  ;;  %2537 = vrot.lane.b32.xlu0 %v9111_v49, %s9870_s30 }
 0x602   : > { %9120 = vtanh.f32 %v2585_v37  ;;  %v2586_v50 = vmul.f32 %v2512_v58, %v11208_v10 }
 0x604   : > { %v9117_v15 = vpop.eup %9116  ;;  %9122 = vtanh.f32 %v2586_v50 }
 0x605   : > { %2685 = vrot.lane.b32.xlu0 %v9117_v15, %s14784_s24  ;;  %2539 = vrot.lane.b32.xlu1 %v9115_v0, %s9870_s30 }
 0x606   : > { %v9119_v20 = vpop.eup %9118  ;;  %8638 = vmatmul.mubr.msk.bf16.gmra.mrb[220].mxu1 %vm713_vm2, %v4419_v17 }
 0x607   : > { %v2514_v7 = vpop.permute.xlu0 %2513  ;;  %8641 = vmatprep.mubr.msk.bf16.mxu1 %vm9868_vm1, %v14780_v2 }
 0x608   : > { %v2587_v61 = vmul.f32 %v2514_v7, %v11218_v45 }
 0x609   : > { %2687 = vrot.lane.b32.xlu1 %v9119_v20, %s14784_s24  ;;  %v2516_v9 = vpop.permute.xlu1 %2515  ;;  %v2325_v20 = vmul.f32 0.5, %v11118_v34 }
 0x60a   : > { %9124 = vtanh.f32 %v2587_v61 }
 0x60b   : > { %9126 = vtanh.f32 %v2318_v3 }
 0x60c   : > { %v9121_v32 = vpop.eup %9120  ;;  %9128 = vtanh.f32 %v2319_v56 }
 0x60d   : > { %2689 = vrot.lane.b32.xlu0 %v9121_v32, %s14784_s24  ;;  %9130 = vtanh.f32 %v2320_v57 }
 0x60e   : > { %v9123_v4 = vpop.eup %9122  ;;  %8642 = vmatmul.mubr.msk.bf16.gmra.mrb[224].mxu1 %vm713_vm2, %v4420_v28  ;;  %9132 = vtanh.f32 %v2321_v1 }
 0x60f   : > { %2691 = vrot.lane.b32.xlu1 %v9123_v4, %s14784_s24  ;;  %8649 = vmatprep.mubr.msk.bf16.mxu1 %vm9868_vm1, %v14780_v2  ;;  %9134 = vtanh.f32 %v2322_v6  ;;  %v2328_v6 = vmul.f32 0.5, %v11157_v23  ;;  %v2329_v23 = vmul.f32 0.5, %v11172_v13  ;;  %v2330_v13 = vmul.f32 0.5, %v11183_v46 }
 0x610   : > { %9136 = vtanh.f32 %v2323_v51 }
 0x614   : > { %v9125_v21 = vpop.eup %9124 }
 0x615   : > { %2693 = vrot.lane.b32.xlu1 %v9125_v21, %s14784_s24  ;;  %v9127_v49 = vpop.eup %9126 }
 0x616   : > { %v2378_v38 = vmul.f32 0.5, %v9127_v49  ;;  %v9129_v37 = vpop.eup %9128 }
 0x617   : > { %v2379_v33 = vmul.f32 0.5, %v9129_v37  ;;  %v9131_v50 = vpop.eup %9130 }
 0x618   : > { %v11253_v39 = vadd.f32 0.5, %v2378_v38  ;;  %v2380_v0 = vmul.f32 0.5, %v9131_v50  ;;  %v9133_v35 = vpop.eup %9132 }
 0x619   : > { %v11258_v31 = vadd.f32 0.5, %v2379_v33  ;;  %v2381_v54 = vmul.f32 0.5, %v9133_v35  ;;  %v9135_v18 = vpop.eup %9134 }
 0x61a   : > { %v2588_v58 = vmul.f32 %v2516_v9, %v11253_v39  ;;  %v11270_v61 = vadd.f32 0.5, %v2380_v0  ;;  %v9137_v32 = vpop.eup %9136  ;;  %v2382_v11 = vmul.f32 0.5, %v9135_v18 }
 0x61b   : > { %v11275_v34 = vadd.f32 0.5, %v2381_v54  ;;  %v2383_v57 = vmul.f32 0.5, %v9137_v32 }
 0x61c   : > { %9138 = vtanh.f32 %v2588_v58  ;;  %v11288_v56 = vadd.f32 0.5, %v2382_v11 }
 0x61d   : > { %9140 = vtanh.f32 %v2324_v44 }
 0x626   : > { %v9139_v4 = vpop.eup %9138 }
 0x627   : > { %v9141_v49 = vpop.eup %9140 }
 0x628   : > { %v2384_v9 = vmul.f32 0.5, %v9141_v49 }
 0x62a   : > { %v11307_v35 = vadd.f32 0.5, %v2384_v9 }
 0x647   : > { %v2662_v53 = vpop.permute.xlu0 %2661 }
 0x648   : > { %v11261_v62 = vmul.f32 %v2662_v53, %v11034_v55 }
 0x64b   : > { %v2664_v15 = vpop.permute.xlu1 %2663  ;;  %v2518_v7 = vpop.permute.xlu0 %2517 }
 0x64c   : > { %v11264_v29 = vmul.f32 %v2664_v15, %v11044_v48  ;;  %v2589_v63 = vmul.f32 %v2518_v7, %v11258_v31  ;;  %v2326_v48 = vmul.f32 0.5, %v11130_v12  ;;  %v2327_v12 = vmul.f32 0.5, %v11145_v43 }
 0x64d   : > { %v11294_v43 = vadd.f32 0.5, %v2383_v57 }
 0x64e   : > { %v2781_v26 = vpack.c.bf16 %v11264_v29, %v11261_v62  ;;  %9142 = vtanh.f32 %v2589_v63 }
 0x64f   : > { %v2666_v14 = vpop.permute.xlu0 %2665  ;;  %v2520_v16 = vpop.permute.xlu1 %2519  ;;  %9144 = vtanh.f32 %v2325_v20 }
 0x650   : > { %v2590_v55 = vmul.f32 %v2520_v16, %v11270_v61  ;;  %2817 = vrot.lane.b32.xlu0 %v2781_v26, %s9872_s21  ;;  %v11278_v52 = vmul.f32 %v2666_v14, %v11056_v60 }
 0x652   : > { %9146 = vtanh.f32 %v2590_v55 }
 0x653   : > { %v2668_v17 = vpop.permute.xlu1 %2667  ;;  %v2522_v25 = vpop.permute.xlu0 %2521  ;;  %9148 = vtanh.f32 %v2326_v48 }
 0x654   : > { %v11281_v21 = vmul.f32 %v2668_v17, %v11067_v42  ;;  %v2591_v28 = vmul.f32 %v2522_v25, %v11275_v34  ;;  %2695 = vrot.lane.b32.xlu0 %v9139_v4, %s14784_s24 }
 0x656   : > { %v2782_v3 = vpack.c.bf16 %v11281_v21, %v11278_v52  ;;  %9150 = vtanh.f32 %v2591_v28 }
 0x657   : > { %v2670_v60 = vpop.permute.xlu0 %2669  ;;  %v2524_v1 = vpop.permute.xlu1 %2523  ;;  %9152 = vtanh.f32 %v2327_v12 }
 0x658   : > { %v9143_v38 = vpop.eup %9142  ;;  %v2592_v42 = vmul.f32 %v2524_v1, %v11288_v56  ;;  %2819 = vrot.lane.b32.xlu1 %v2782_v3, %s9872_s21  ;;  %v11297_v50 = vmul.f32 %v2670_v60, %v11080_v27 }
 0x659   : > { %2697 = vrot.lane.b32.xlu0 %v9143_v38, %s14784_s24  ;;  %v9145_v37 = vpop.eup %9144 }
 0x65a   : > { %9154 = vtanh.f32 %v2592_v42  ;;  %v2385_v15 = vmul.f32 0.5, %v9145_v37 }
 0x65b   : > { %v2672_v51 = vpop.permute.xlu1 %2671  ;;  %v2526_v58 = vpop.permute.xlu0 %2525  ;;  %9156 = vtanh.f32 %v2328_v6 }
 0x65c   : > { %v9147_v33 = vpop.eup %9146  ;;  %v11300_v53 = vmul.f32 %v2672_v51, %v11085_v5  ;;  %v2593_v44 = vmul.f32 %v2526_v58, %v11294_v43  ;;  %v11313_v26 = vadd.f32 0.5, %v2385_v15 }
 0x65d   : > { %2699 = vrot.lane.b32.xlu1 %v9147_v33, %s14784_s24  ;;  %v9149_v7 = vpop.eup %9148 }
 0x65e   : > { %v2783_v0 = vpack.c.bf16 %v11300_v53, %v11297_v50  ;;  %9158 = vtanh.f32 %v2593_v44  ;;  %v2386_v54 = vmul.f32 0.5, %v9149_v7 }
 0x65f   : > { %v2674_v27 = vpop.permute.xlu0 %2673  ;;  %v2528_v63 = vpop.permute.xlu1 %2527  ;;  %9160 = vtanh.f32 %v2329_v23 }
 0x660   : > { %v9151_v20 = vpop.eup %9150  ;;  %v2594_v5 = vmul.f32 %v2528_v63, %v11307_v35  ;;  %2821 = vrot.lane.b32.xlu0 %v2783_v0, %s9872_s21  ;;  %v11316_v48 = vmul.f32 %v2674_v27, %v11107_v59  ;;  %v11325_v4 = vadd.f32 0.5, %v2386_v54 }
 0x661   : > { %2701 = vrot.lane.b32.xlu1 %v9151_v20, %s14784_s24  ;;  %v9153_v18 = vpop.eup %9152 }
 0x662   : > { %9162 = vtanh.f32 %v2594_v5  ;;  %v2387_v17 = vmul.f32 0.5, %v9153_v18 }
 0x663   : > { %v2676_v14 = vpop.permute.xlu1 %2675  ;;  %v2530_v16 = vpop.permute.xlu0 %2529  ;;  %9164 = vtanh.f32 %v2330_v13 }
 0x664   : > { %v9155_v55 = vpop.eup %9154  ;;  %v11319_v32 = vmul.f32 %v2676_v14, %v11112_v36  ;;  %v2595_v11 = vmul.f32 %v2530_v16, %v11313_v26  ;;  %v11330_v36 = vadd.f32 0.5, %v2387_v17 }
 0x665   : > { %2703 = vrot.lane.b32.xlu0 %v9155_v55, %s14784_s24  ;;  %v9157_v25 = vpop.eup %9156 }
 0x666   : > { %v2784_v46 = vpack.c.bf16 %v11319_v32, %v11316_v48  ;;  %9166 = vtanh.f32 %v2595_v11  ;;  %v2388_v57 = vmul.f32 0.5, %v9157_v25  ;;  %v11364_v11 = vpop.f32.mrb[168].mxu1 }
 0x667   : > { %v2678_v28 = vpop.permute.xlu0 %2677  ;;  %v2532_v12 = vpop.permute.xlu1 %2531 }
 0x668   : > { %v9159_v59 = vpop.eup %9158  ;;  %v2596_v3 = vmul.f32 %v2532_v12, %v11325_v4  ;;  %2823 = vrot.lane.b32.xlu1 %v2784_v46, %s9872_s21  ;;  %v11333_v42 = vmul.f32 %v2678_v28, %v11134_v8  ;;  %v11342_v51 = vadd.f32 0.5, %v2388_v57  ;;  %v8587_v28 = vpop.f32.mrb[169].mxu1 }
 0x669   : > { %2705 = vrot.lane.b32.xlu0 %v9159_v59, %s14784_s24  ;;  %v9161_v49 = vpop.eup %9160  ;;  %v4503_v12 = vpop.f32.mrb[170].mxu1 }
 0x66a   : > { %9168 = vtanh.f32 %v2596_v3  ;;  %v2389_v58 = vmul.f32 0.5, %v9161_v49  ;;  %v4619_v3 = vpack.c.bf16 %v4503_v12, %v11364_v11  ;;  %v8588_v57 = vpop.f32.mrb[171].mxu1 }
 0x66b   : > { %v2680_v60 = vpop.permute.xlu1 %2679  ;;  %v2534_v1 = vpop.permute.xlu0 %2533 }
 0x66c   : > { %v9163_v38 = vpop.eup %9162  ;;  %v11336_v6 = vmul.f32 %v2680_v60, %v11139_v19  ;;  %v2597_v9 = vmul.f32 %v2534_v1, %v11330_v36  ;;  %v11347_v19 = vadd.f32 0.5, %v2389_v58  ;;  %v4508_v60 = vpop.f32.mrb[172].mxu1 }
 0x66d   : > { %2707 = vrot.lane.b32.xlu1 %v9163_v38, %s14784_s24  ;;  %v9165_v33 = vpop.eup %9164 }
 0x66e   : > { %v2785_v37 = vpack.c.bf16 %v11336_v6, %v11333_v42  ;;  %9170 = vtanh.f32 %v2597_v9  ;;  %v2390_v15 = vmul.f32 0.5, %v9165_v33 }
 0x66f   : > { %v2682_v44 = vpop.permute.xlu0 %2681  ;;  %v2536_v23 = vpop.permute.xlu1 %2535 }
 0x670   : > { %v9167_v0 = vpop.eup %9166  ;;  %v2598_v8 = vmul.f32 %v2536_v23, %v11342_v51  ;;  %2825 = vrot.lane.b32.xlu0 %v2785_v37, %s9872_s21  ;;  %v11350_v20 = vmul.f32 %v2682_v44, %v11161_v24  ;;  %v11359_v18 = vadd.f32 0.5, %v2390_v15 }
 0x671   : > { %2709 = vrot.lane.b32.xlu1 %v9167_v0, %s14784_s24 }
 0x672   : > { %9172 = vtanh.f32 %v2598_v8 }
 0x673   : > { %v2684_v7 = vpop.permute.xlu1 %2683  ;;  %v2538_v27 = vpop.permute.xlu0 %2537 }
 0x674   : > { %v9169_v63 = vpop.eup %9168  ;;  %v11353_v5 = vmul.f32 %v2684_v7, %v11166_v22  ;;  %v2599_v13 = vmul.f32 %v2538_v27, %v11347_v19 }
 0x675   : > { %2711 = vrot.lane.b32.xlu0 %v9169_v63, %s14784_s24 }
 0x676   : > { %v2786_v54 = vpack.c.bf16 %v11353_v5, %v11350_v20  ;;  %9174 = vtanh.f32 %v2599_v13 }
 0x677   : > { %v2540_v14 = vpop.permute.xlu1 %2539  ;;  %v2686_v24 = vpop.permute.xlu0 %2685 }
 0x678   : > { %v9171_v16 = vpop.eup %9170  ;;  %v2600_v55 = vmul.f32 %v2540_v14, %v11359_v18  ;;  %2827 = vrot.lane.b32.xlu1 %v2786_v54, %s9872_s21  ;;  %v11367_v17 = vmul.f32 %v2686_v24, %v11187_v30  ;;  %v8591_v30 = vpop.f32.mrb[173].mxu1 }
 0x679   : > { %2713 = vrot.lane.b32.xlu0 %v9171_v16, %s14784_s24  ;;  %v4511_v38 = vpop.f32.mrb[174].mxu1 }
 0x67a   : > { %9176 = vtanh.f32 %v2600_v55  ;;  %v4620_v58 = vpack.c.bf16 %v4511_v38, %v4508_v60  ;;  %v8592_v33 = vpop.f32.mrb[175].mxu1 }
 0x67b   : > { %v2688_v22 = vpop.permute.xlu1 %2687  ;;  %v4516_v44 = vpop.f32.mrb[176].mxu1 }
 0x67c   : > { %v9173_v46 = vpop.eup %9172  ;;  %v11370_v25 = vmul.f32 %v2688_v22, %v11192_v47  ;;  %v8595_v8 = vpop.f32.mrb[177].mxu1 }
 0x67d   : > { %2715 = vrot.lane.b32.xlu1 %v9173_v46, %s14784_s24  ;;  %v4519_v15 = vpop.f32.mrb[178].mxu1 }
 0x67e   : > { %v2787_v59 = vpack.c.bf16 %v11370_v25, %v11367_v17  ;;  %v4621_v7 = vpack.c.bf16 %v4519_v15, %v4516_v44  ;;  %v8596_v27 = vpop.f32.mrb[179].mxu1 }
 0x67f   : > { %v2690_v49 = vpop.permute.xlu0 %2689 }
 0x680   : > { %v9175_v1 = vpop.eup %9174  ;;  %2829 = vrot.lane.b32.xlu0 %v2787_v59, %s9872_s21  ;;  %v11379_v9 = vmul.f32 %v2690_v49, %v11203_v41  ;;  %v4524_v41 = vpop.f32.mrb[180].mxu1 }
 0x681   : > { %2717 = vrot.lane.b32.xlu1 %v9175_v1, %s14784_s24  ;;  %v2692_v47 = vpop.permute.xlu1 %2691  ;;  %v8599_v63 = vpop.f32.mrb[181].mxu1 }
 0x682   : > { %v11382_v37 = vmul.f32 %v2692_v47, %v11208_v10  ;;  %v4527_v13 = vpop.f32.mrb[182].mxu1 }
 0x683   : > { %v4622_v10 = vpack.c.bf16 %v4527_v13, %v4524_v41  ;;  %v8600_v54 = vpop.f32.mrb[183].mxu1 }
 0x684   : > { %v9177_v23 = vpop.eup %9176  ;;  %v2788_v0 = vpack.c.bf16 %v11382_v37, %v11379_v9  ;;  %v11388_v14 = vpop.f32.mrb[184].mxu1 }
 0x685   : > { %2719 = vrot.lane.b32.xlu0 %v9177_v23, %s14784_s24  ;;  %v8603_v16 = vpop.f32.mrb[185].mxu1 }
 0x686   : > { %2831 = vrot.lane.b32.xlu1 %v2788_v0, %s9872_s21  ;;  %v11390_v55 = vpop.f32.mrb[186].mxu1 }
 0x687   : > { %v4623_v24 = vpack.c.bf16 %v11390_v55, %v11388_v14  ;;  %v8604_v22 = vpop.f32.mrb[187].mxu1  ;;  %v2694_v13 = vpop.permute.xlu1 %2693 }
 0x688   : > { %v11394_v11 = vpop.f32.mrb[188].mxu1  ;;  %v11425_v55 = vmul.f32 %v2694_v13, %v11218_v45 }
 0x689   : > { %v8607_v46 = vpop.f32.mrb[189].mxu1 }
 0x68a   : > { %v11396_v28 = vpop.f32.mrb[190].mxu1 }
 0x68b   : > { %v4624_v12 = vpack.c.bf16 %v11396_v28, %v11394_v11  ;;  %v8608_v59 = vpop.f32.mrb[191].mxu1 }
 0x68e   : > { %v11400_v57 = vpop.f32.mrb[192].mxu1 }
 0x68f   : > { %v8611_v49 = vpop.f32.mrb[193].mxu1 }
 0x690   : > { %v11402_v60 = vpop.f32.mrb[194].mxu1 }
 0x691   : > { %v4625_v1 = vpack.c.bf16 %v11402_v60, %v11400_v57  ;;  %v8612_v30 = vpop.f32.mrb[195].mxu1 }
 0x6a7   : > { %v11406_v47 = vpop.f32.mrb[196].mxu1 }
 0x6a8   : > { %v8615_v38 = vpop.f32.mrb[197].mxu1 }
 0x6a9   : > { %v11408_v33 = vpop.f32.mrb[198].mxu1 }
 0x6aa   : > { %v4626_v44 = vpack.c.bf16 %v11408_v33, %v11406_v47  ;;  %v8616_v23 = vpop.f32.mrb[199].mxu1 }
 0x6b1   : > { %v11412_v0 = vpop.f32.mrb[200].mxu1 }
 0x6b2   : > { %v8619_v8 = vpop.f32.mrb[201].mxu1 }
 0x6b3   : > { %v11414_v15 = vpop.f32.mrb[202].mxu1 }
 0x6b4   : > { %v4627_v27 = vpack.c.bf16 %v11414_v15, %v11412_v0  ;;  %v8620_v41 = vpop.f32.mrb[203].mxu1 }
 0x6b9   : > { %v11422_v54 = vpop.f32.mrb[204].mxu1 }
 0x6ba   : > { %v8623_v16 = vpop.f32.mrb[205].mxu1 }
 0x6bb   : > { %v11430_v46 = vpop.f32.mrb[206].mxu1 }
 0x6bc   : > { %v4628_v59 = vpack.c.bf16 %v11430_v46, %v11422_v54  ;;  %v8624_v49 = vpop.f32.mrb[207].mxu1 }
 0x6c2   : > { %v2818_v63 = vpop.permute.xlu0 %2817 }
 0x6c3   : > { %8524 = vmatmul.mubr.msk.bf16.vlgmr.msra.gmra.mrb[192].mxu0 %vm1400_vm4, %v2818_v63 }
 0x6c4   : > { %8527 = vmatprep.mubr.msk.bf16.mxu0 %vm9868_vm1, %v14780_v2  ;;  %4635 = vmatpush1.bf16.msra.mxu0 %v4619_v3 }
 0x6c5   : > { %4636 = vmatprep.subr.bf16.mxu0 %v14778_v40 }
 0x6c6   : > { %v2696_v14 = vpop.permute.xlu0 %2695 }
 0x6c7   : > { %v11428_v22 = vmul.f32 %v2696_v14, %v11253_v39  ;;  %v11442_v39 = vpop.f32.mrb[208].mxu1 }
 0x6c8   : > { %4637 = vmatpush1.bf16.msra.mxu0 %v4620_v58  ;;  %v8627_v58 = vpop.f32.mrb[209].mxu1 }
 0x6c9   : > { %v2789_v3 = vpack.c.bf16 %v11428_v22, %v11425_v55  ;;  %4638 = vmatprep.subr.bf16.mxu0 %v14778_v40  ;;  %v11444_v23 = vpop.f32.mrb[210].mxu1 }
 0x6ca   : > { %v2820_v30 = vpop.permute.xlu1 %2819  ;;  %v4629_v63 = vpack.c.bf16 %v11444_v23, %v11442_v39 }
 0x6cb   : > { %8528 = vmatmul.mubr.msk.bf16.gmra.mrb[196].mxu0 %vm1400_vm4, %v2820_v30  ;;  %2833 = vrot.lane.b32.xlu0 %v2789_v3, %s9872_s21  ;;  %v2698_v45 = vpop.permute.xlu0 %2697 }
 0x6cc   : > { %8531 = vmatprep.mubr.msk.bf16.mxu0 %vm9868_vm1, %v14780_v2  ;;  %4639 = vmatpush1.bf16.msra.mxu0 %v4621_v7  ;;  %v11447_v8 = vmul.f32 %v2698_v45, %v11258_v31  ;;  %v8628_v7 = vpop.f32.mrb[211].mxu1 }
 0x6cd   : > { %4640 = vmatprep.subr.bf16.mxu0 %v14778_v40 }
 0x6cf   : > { %v2700_v38 = vpop.permute.xlu1 %2699 }
 0x6d0   : > { %v11450_v41 = vmul.f32 %v2700_v38, %v11270_v61  ;;  %4641 = vmatpush1.bf16.msra.mxu0 %v4622_v10  ;;  %v11461_v61 = vpop.f32.mrb[212].mxu1 }
 0x6d1   : > { %4642 = vmatprep.subr.bf16.mxu0 %v14778_v40  ;;  %v8631_v10 = vpop.f32.mrb[213].mxu1 }
 0x6d2   : > { %v2790_v13 = vpack.c.bf16 %v11450_v41, %v11447_v8  ;;  %v2822_v14 = vpop.permute.xlu0 %2821  ;;  %v4591_v49 = vpop.f32.mrb[214].mxu1 }
 0x6d3   : > { %8532 = vmatmul.mubr.msk.bf16.gmra.mrb[200].mxu0 %vm1400_vm4, %v2822_v14  ;;  %v2702_v31 = vpop.permute.xlu1 %2701  ;;  %v4630_v45 = vpack.c.bf16 %v4591_v49, %v11461_v61  ;;  %v8632_v39 = vpop.f32.mrb[215].mxu1 }
 0x6d4   : > { %2835 = vrot.lane.b32.xlu1 %v2790_v13, %s9872_s21  ;;  %8535 = vmatprep.mubr.msk.bf16.mxu0 %vm9868_vm1, %v14780_v2  ;;  %v11465_v3 = vmul.f32 %v2702_v31, %v11275_v34 }
 0x6d5   : > { %4643 = vmatpush1.bf16.msra.mxu0 %v4623_v24 }
 0x6d6   : > { %4644 = vmatprep.subr.bf16.mxu0 %v14778_v40 }
 0x6d7   : > { %v2704_v16 = vpop.permute.xlu0 %2703 }
 0x6d8   : > { %v11468_v30 = vmul.f32 %v2704_v16, %v11288_v56  ;;  %v4596_v56 = vpop.f32.mrb[216].mxu1 }
 0x6d9   : > { %4645 = vmatpush1.bf16.msra.mxu0 %v4624_v12  ;;  %v8635_v11 = vpop.f32.mrb[217].mxu1 }
 0x6da   : > { %v2791_v24 = vpack.c.bf16 %v11468_v30, %v11465_v3  ;;  %v2824_v58 = vpop.permute.xlu1 %2823  ;;  %4646 = vmatprep.subr.bf16.mxu0 %v14778_v40  ;;  %v4599_v12 = vpop.f32.mrb[218].mxu1 }
 0x6db   : > { %8536 = vmatmul.mubr.msk.bf16.gmra.mrb[204].mxu0 %vm1400_vm4, %v2824_v58  ;;  %v2706_v34 = vpop.permute.xlu0 %2705  ;;  %v4631_v7 = vpack.c.bf16 %v4599_v12, %v4596_v56  ;;  %v8636_v13 = vpop.f32.mrb[219].mxu1 }
 0x6dc   : > { %2837 = vrot.lane.b32.xlu0 %v2791_v24, %s9872_s21  ;;  %8539 = vmatprep.mubr.msk.bf16.mxu0 %vm9868_vm1, %v14780_v2  ;;  %v11486_v38 = vmul.f32 %v2706_v34, %v11294_v43  ;;  %v3537_v13 = vmax.f32 %v11261_v62, 0.0 }
 0x6dd   : > { %4647 = vmatpush1.bf16.msra.mxu0 %v4625_v1 }
 0x6de   : > { %4648 = vmatprep.subr.bf16.mxu0 %v14778_v40 }
 0x6df   : > { %v2708_v28 = vpop.permute.xlu1 %2707 }
 0x6e0   : > { %v11489_v23 = vmul.f32 %v2708_v28, %v11307_v35  ;;  %v4604_v35 = vpop.f32.mrb[220].mxu1 }
 0x6e1   : > { %4649 = vmatpush1.bf16.msra.mxu0 %v4626_v44  ;;  %v8639_v1 = vpop.f32.mrb[221].mxu1 }
 0x6e2   : > { %v2792_v57 = vpack.c.bf16 %v11489_v23, %v11486_v38  ;;  %v2826_v60 = vpop.permute.xlu0 %2825  ;;  %4650 = vmatprep.subr.bf16.mxu0 %v14778_v40  ;;  %v4607_v33 = vpop.f32.mrb[222].mxu1  ;;  %v3539_v1 = vmax.f32 %v11278_v52, 0.0  ;;  %v3541_v52 = vmax.f32 %v11297_v50, 0.0  ;;  %v9722_v50 = vld [vmem:[%s14792_s29] ss:$8 sps:$4 sm:$0xff]  }
 0x6e3   : > { %8540 = vmatmul.mubr.msk.bf16.gmra.mrb[208].mxu0 %vm1400_vm4, %v2826_v60  ;;  %v2710_v43 = vpop.permute.xlu1 %2709  ;;  %v4632_v31 = vpack.c.bf16 %v4607_v33, %v4604_v35  ;;  %v8640_v61 = vpop.f32.mrb[223].mxu1 }
 0x6e4   : > { %2839 = vrot.lane.b32.xlu1 %v2792_v57, %s9872_s21  ;;  %8543 = vmatprep.mubr.msk.bf16.mxu0 %vm9868_vm1, %v14780_v2  ;;  %v11506_v44 = vmul.f32 %v2710_v43, %v11313_v26  ;;  %v3538_v57 = vmax.f32 %v11264_v29, 0.0 }
 0x6e5   : > { %4651 = vmatpush1.bf16.msra.mxu0 %v4627_v27 }
 0x6e6   : > { %4652 = vmatprep.subr.bf16.mxu0 %v14778_v40 }
 0x6e7   : > { %v2712_v47 = vpop.permute.xlu0 %2711 }
 0x6e8   : > { %v11509_v14 = vmul.f32 %v2712_v47, %v11325_v4  ;;  %v4612_v4 = vpop.f32.mrb[224].mxu1  ;;  %v3540_v47 = vmax.f32 %v11281_v21, 0.0  ;;  %v3542_v21 = vmax.f32 %v11300_v53, 0.0 }
 0x6e9   : > { %4653 = vmatpush1.bf16.msra.mxu0 %v4628_v59  ;;  %v8643_v27 = vpop.f32.mrb[225].mxu1 }
 0x6ea   : > { %v2793_v0 = vpack.c.bf16 %v11509_v14, %v11506_v44  ;;  %v2828_v15 = vpop.permute.xlu1 %2827  ;;  %4654 = vmatprep.subr.bf16.mxu0 %v14778_v40  ;;  %v4615_v46 = vpop.f32.mrb[226].mxu1  ;;  %v9723_v27 = vld [vmem:[%s14792_s29 + $0x14] ss:$8 sps:$4 sm:$0xff]  }
 0x6eb   : > { %8544 = vmatmul.mubr.msk.bf16.gmra.mrb[212].mxu0 %vm1400_vm4, %v2828_v15  ;;  %v2714_v26 = vpop.permute.xlu0 %2713  ;;  %v4633_v16 = vpack.c.bf16 %v4615_v46, %v4612_v4  ;;  %v8644_v49 = vpop.f32.mrb[227].mxu1  ;;  %v3543_v15 = vmax.f32 %v11316_v48, 0.0  ;;  %v3545_v48 = vmax.f32 %v11333_v42, 0.0  ;;  %v9724_v42 = vld [vmem:[%s14792_s29 + $0x10] ss:$8 sps:$4 sm:$0xff]  }
 0x6ec   : > { %2841 = vrot.lane.b32.xlu0 %v2793_v0, %s9872_s21  ;;  %8547 = vmatprep.mubr.msk.bf16.mxu0 %vm9868_vm1, %v14780_v2  ;;  %v11523_v59 = vmul.f32 %v2714_v26, %v11330_v36  ;;  %v7986_v36 = vld [vmem:[%s14771_s15] ss:$0 sm:$0xff]  ;;  %v3544_v26 = vmax.f32 %v11319_v32, 0.0  ;;  %v3546_v32 = vmax.f32 %v11336_v6, 0.0  ;;  %v3548_v49 = vmax.f32 %v11353_v5, 0.0 }
 0x6ed   : > { %4655 = vmatpush1.bf16.msra.mxu0 %v4629_v63  ;;  %v3550_v5 = vmax.f32 %v11370_v25, 0.0 }
 0x6ee   : > { %4656 = vmatprep.subr.bf16.mxu0 %v14778_v40 }
 0x6ef   : > { %v2716_v54 = vpop.permute.xlu1 %2715 }
 0x6f0   : > { %v11526_v10 = vmul.f32 %v2716_v54, %v11342_v51 }
 0x6f1   : > { %4657 = vmatpush1.bf16.msra.mxu0 %v4630_v45 }
 0x6f2   : > { %v2794_v39 = vpack.c.bf16 %v11526_v10, %v11523_v59  ;;  %v2830_v24 = vpop.permute.xlu0 %2829  ;;  %4658 = vmatprep.subr.bf16.mxu0 %v14778_v40 }
 0x6f3   : > { %8548 = vmatmul.mubr.msk.bf16.gmra.mrb[216].mxu0 %vm1400_vm4, %v2830_v24  ;;  %v2718_v63 = vpop.permute.xlu1 %2717  ;;  %v9725_v24 = vld [vmem:[%s14792_s29 + $0x24] ss:$8 sps:$4 sm:$0xff]  }
 0x6f4   : > { %2843 = vrot.lane.b32.xlu1 %v2794_v39, %s9872_s21  ;;  %8551 = vmatprep.mubr.msk.bf16.mxu0 %vm9868_vm1, %v14780_v2  ;;  %v11540_v45 = vmul.f32 %v2718_v63, %v11347_v19 }
 0x6f5   : > { %4659 = vmatpush1.bf16.msra.mxu0 %v4631_v7 }
 0x6f6   : > { %4660 = vmatprep.subr.bf16.mxu0 %v14778_v40 }
 0x6f7   : > { %v2720_v51 = vpop.permute.xlu0 %2719 }
 0x6f8   : > { %v11543_v58 = vmul.f32 %v2720_v51, %v11359_v18  ;;  %3572 = vrot.lane.b32.xlu1 %v7986_v36, %s14784_s24  ;;  %v2832_v56 = vpop.permute.xlu1 %2831  ;;  %v3551_v51 = vmax.f32 %v11379_v9, 0.0  ;;  %v3553_v9 = vmax.f32 %v11425_v55, 0.0  ;;  %v9728_v55 = vld [vmem:[%s14792_s29 + $0x30] ss:$8 sps:$4 sm:$0xff]  }
 0x6f9   : > { %4661 = vmatpush1.bf16.msra.mxu0 %v4632_v31  ;;  %v11588_v31 = vld [vmem:[%s14792_s29 + $0x4] ss:$8 sps:$4 sm:$0xff]  }
 0x6fa   : > { %v2795_v34 = vpack.c.bf16 %v11543_v58, %v11540_v45  ;;  %4662 = vmatprep.subr.bf16.mxu0 %v14778_v40 }
 0x6fb   : > { %8552 = vmatmul.mubr.msk.bf16.gmra.mrb[220].mxu0 %vm1400_vm4, %v2832_v56 }
 0x6fc   : > { %2845 = vrot.lane.b32.xlu0 %v2795_v34, %s9872_s21  ;;  %8555 = vmatprep.mubr.msk.bf16.mxu0 %vm9868_vm1, %v14780_v2  ;;  %v3552_v34 = vmax.f32 %v11382_v37, 0.0  ;;  %v3554_v37 = vmax.f32 %v11428_v22, 0.0 }
 0x6fd   : > { %4663 = vmatpush1.bf16.msra.mxu0 %v4633_v16  ;;  %v3547_v16 = vmax.f32 %v11350_v20, 0.0  ;;  %v3549_v20 = vmax.f32 %v11367_v17, 0.0  ;;  %v9726_v17 = vld [vmem:[%s14792_s29 + $0x20] ss:$8 sps:$4 sm:$0xff]  }
 0x6fe   : > { %5105 = vmatprep.subr.bf16.mxu0 %v14778_v40 }
 0x73d   : > { %v2834_v19 = vpop.permute.xlu0 %2833 }
 0x73e   : > { %8556 = vmatmul.mubr.msk.bf16.gmra.mrb[224].mxu0 %vm1400_vm4, %v2834_v19  ;;  %v9727_v19 = vld [vmem:[%s14792_s29 + $0x34] ss:$8 sps:$4 sm:$0xff]  }
 0x73f   : > { %8559 = vmatprep.mubr.msk.bf16.mxu0 %vm9868_vm1, %v14780_v2 }
 0x746   : > { %v2836_v18 = vpop.permute.xlu1 %2835 }
 0x747   : > { %8560 = vmatmul.mubr.msk.bf16.gmra.mrb[228].mxu0 %vm1400_vm4, %v2836_v18 }
 0x748   : > { %8563 = vmatprep.mubr.msk.bf16.mxu0 %vm9868_vm1, %v14780_v2 }
 0x74e   : > { %v2838_v11 = vpop.permute.xlu0 %2837 }
 0x74f   : > { %8564 = vmatmul.mubr.msk.bf16.gmra.mrb[232].mxu0 %vm1400_vm4, %v2838_v11 }
 0x750   : > { %8567 = vmatprep.mubr.msk.bf16.mxu0 %vm9868_vm1, %v14780_v2 }
 0x756   : > { %v2840_v28 = vpop.permute.xlu1 %2839 }
 0x757   : > { %8568 = vmatmul.mubr.msk.bf16.gmra.mrb[236].mxu0 %vm1400_vm4, %v2840_v28  ;;  %v3555_v28 = vmax.f32 %v11447_v8, 0.0  ;;  %v3557_v8 = vmax.f32 %v11465_v3, 0.0 }
 0x758   : > { %8571 = vmatprep.mubr.msk.bf16.mxu0 %vm9868_vm1, %v14780_v2 }
 0x75e   : > { %v2842_v12 = vpop.permute.xlu0 %2841 }
 0x75f   : > { %8572 = vmatmul.mubr.msk.bf16.gmra.mrb[240].mxu0 %vm1400_vm4, %v2842_v12  ;;  %v3556_v12 = vmax.f32 %v11450_v41, 0.0  ;;  %v3558_v41 = vmax.f32 %v11468_v30, 0.0  ;;  %v9730_v30 = vld [vmem:[%s14792_s29 + $0x40] ss:$8 sps:$4 sm:$0xff]  }
 0x760   : > { %8575 = vmatprep.mubr.msk.bf16.mxu0 %vm9868_vm1, %v14780_v2 }
 0x766   : > { %v2844_v7 = vpop.permute.xlu1 %2843 }
 0x767   : > { %8576 = vmatmul.mubr.msk.bf16.gmra.mrb[244].mxu0 %vm1400_vm4, %v2844_v7 }
 0x768   : > { %8579 = vmatprep.mubr.msk.bf16.mxu0 %vm9868_vm1, %v14780_v2 }
 0x76a   : > { %v11574_v60 = vpop.permute.xlu1 %3572 }
 0x76b   : > { %14794 = vst [vmem:[#allocation3_spill] sm:$0xff] %v11574_v60  ;;  %v3576_v43 = vmul.f32 %v11574_v60, %v3538_v57  ;;  %v3575_v35 = vmul.f32 %v11574_v60, %v3537_v13  ;;  %v3578_v62 = vmul.f32 %v11574_v60, %v3540_v47  ;;  %v3577_v29 = vmul.f32 %v11574_v60, %v3539_v1  ;;  %v9729_v13 = vld [vmem:[%s14792_s29 + $0x44] ss:$8 sps:$4 sm:$0xff]  }
 0x76c   : > { %v3580_v61 = vmul.f32 %v11574_v60, %v3542_v21  ;;  %v3579_v0 = vmul.f32 %v11574_v60, %v3541_v52  ;;  %v3582_v53 = vmul.f32 %v11574_v60, %v3544_v26  ;;  %v3581_v4 = vmul.f32 %v11574_v60, %v3543_v15 }
 0x76d   : > { %3637 = vrot.lane.b32.xlu1 %v3576_v43, %s9872_s21  ;;  %3635 = vrot.lane.b32.xlu0 %v3575_v35, %s9872_s21  ;;  %v3584_v54 = vmul.f32 %v11574_v60, %v3546_v32  ;;  %v3583_v46 = vmul.f32 %v11574_v60, %v3545_v48  ;;  %v3586_v6 = vmul.f32 %v11574_v60, %v3548_v49  ;;  %v3559_v35 = vmax.f32 %v11486_v38, 0.0  ;;  %v9731_v38 = vld [vmem:[%s14792_s29 + $0x54] ss:$8 sps:$4 sm:$0xff]   ;;  %v7987_v48 = vld [vmem:[%s14772_s16] ss:$0 sm:$0xff] }
 0x76e   : > { %v2846_v33 = vpop.permute.xlu0 %2845  ;;  %v3585_v39 = vmul.f32 %v11574_v60, %v3547_v16  ;;  %v3588_v63 = vmul.f32 %v11574_v60, %v3550_v5  ;;  %v3587_v36 = vmul.f32 %v11574_v60, %v3549_v20  ;;  %v3590_v25 = vmul.f32 %v11574_v60, %v3552_v34  ;;  %v9735_v49 = vld [vmem:[%s14792_s29 + $0x74] ss:$8 sps:$4 sm:$0xff]   ;;  %v9737_v5 = vld [vmem:[%s14792_s29 + $0x84] ss:$8 sps:$4 sm:$0xff]  }
 0x76f   : > { %8580 = vmatmul.mubr.msk.bf16.gmra.mrb[248].mxu0 %vm1400_vm4, %v2846_v33  ;;  %v3589_v56 = vmul.f32 %v11574_v60, %v3551_v51  ;;  %v3592_v18 = vmul.f32 %v11574_v60, %v3554_v37  ;;  %v3591_v11 = vmul.f32 %v11574_v60, %v3553_v9  ;;  %v3594_v22 = vmul.f32 %v11574_v60, %v3556_v12  ;;  %v9740_v9 = vld [vmem:[%s14792_s29 + $0x94] ss:$8 sps:$4 sm:$0xff]  }
 0x770   : > { %8005 = vmatprep.mubr.msk.bf16.mxu0 %vm1072_vm3, %v11588_v31  ;;  %v3593_v7 = vmul.f32 %v11574_v60, %v3555_v28  ;;  %v3596_v57 = vmul.f32 %v11574_v60, %v3558_v41  ;;  %v3595_v43 = vmul.f32 %v11574_v60, %v3557_v8  ;;  %v3560_v1 = vmax.f32 %v11489_v23, 0.0  ;;  %v9743_v8 = vld [vmem:[%s10001_s26 + $0x8] sm:$0xff] }
 0x771   : > { %3641 = vrot.lane.b32.xlu1 %v3578_v62, %s9872_s21  ;;  %3639 = vrot.lane.b32.xlu0 %v3577_v29, %s9872_s21  ;;  %v3597_v62 = vmul.f32 %v11574_v60, %v3559_v35  ;;  %v3561_v23 = vmax.f32 %v11506_v44, 0.0  ;;  %v3562_v52 = vmax.f32 %v11509_v14, 0.0  ;;  %v3563_v15 = vmax.f32 %v11523_v59, 0.0  ;;  %v9733_v59 = vld [vmem:[%s14792_s29 + $0x64] ss:$8 sps:$4 sm:$0xff]  }
 0x772   : > { %v3598_v33 = vmul.f32 %v11574_v60, %v3560_v1  ;;  %v3564_v26 = vmax.f32 %v11526_v10, 0.0  ;;  %v4124_v41 = vmax.f32 %v9743_v8, 0.0  ;;  %v9745_v1 = vld [vmem:[%s14792_s29 + $0xa4] ss:$8 sps:$4 sm:$0xff]   ;;  %v9756_v8 = vld [vmem:[%s14792_s29 + $0xb0] ss:$8 sps:$4 sm:$0xff]  }
 0x775   : > { %3645 = vrot.lane.b32.xlu1 %v3580_v61, %s9872_s21  ;;  %3643 = vrot.lane.b32.xlu0 %v3579_v0, %s9872_s21  ;;  %v3600_v61 = vmul.f32 %v11574_v60, %v3562_v52  ;;  %v3599_v0 = vmul.f32 %v11574_v60, %v3561_v23  ;;  %v9747_v52 = vld [vmem:[%s10001_s26 + $0x18] sm:$0xff] }
 0x777   : > { %4667 = vmatmul.mubr.bf16.vlgmr.msra.gmra.mrb[252].mxu0 %v9722_v50  ;;  %v9732_v50 = vld [vmem:[%s14792_s29 + $0x50] ss:$8 sps:$4 sm:$0xff]  }
 0x778   : > { %8006 = vmatprep.mubr.msk.bf16.mxu0 %vm1072_vm3, %v9723_v27 }
 0x779   : > { %3649 = vrot.lane.b32.xlu1 %v3582_v53, %s9872_s21  ;;  %3647 = vrot.lane.b32.xlu0 %v3581_v4, %s9872_s21  ;;  %v3602_v53 = vmul.f32 %v11574_v60, %v3564_v26  ;;  %v3601_v4 = vmul.f32 %v11574_v60, %v3563_v15  ;;  %v9748_v15 = vld [vmem:[%s10001_s26 + $0x40] sm:$0xff] }
 0x77a   : > { %v4131_v26 = vmax.f32 %v9748_v15, 0.0 }
 0x77d   : > { %3653 = vrot.lane.b32.xlu1 %v3584_v54, %s9872_s21  ;;  %3651 = vrot.lane.b32.xlu0 %v3583_v46, %s9872_s21  ;;  %v9734_v46 = vld [vmem:[%s14792_s29 + $0x60] ss:$8 sps:$4 sm:$0xff]  }
 0x77f   : > { %4675 = vmatmul.mubr.bf16.gmra.mrb[0].mxu0 %v9724_v42 }
 0x780   : > { %8007 = vmatprep.mubr.msk.bf16.mxu0 %vm1072_vm3, %v9725_v24  ;;  %v9736_v24 = vld [vmem:[%s14792_s29 + $0x70] ss:$8 sps:$4 sm:$0xff]  }
 0x781   : > { %3657 = vrot.lane.b32.xlu1 %v3586_v6, %s9872_s21  ;;  %3655 = vrot.lane.b32.xlu0 %v3585_v39, %s9872_s21 }
 0x785   : > { %3661 = vrot.lane.b32.xlu1 %v3588_v63, %s9872_s21  ;;  %3659 = vrot.lane.b32.xlu0 %v3587_v36, %s9872_s21  ;;  %v9738_v36 = vld [vmem:[%s10001_s26] sm:$0xff] }
 0x786   : > { %v4123_v51 = vmax.f32 %v9738_v36, 0.0 }
 0x787   : > { %4683 = vmatmul.mubr.bf16.gmra.mrb[4].mxu0 %v9726_v17  ;;  %v11748_v17 = vld [vmem:[%s14773_s17] ss:$0 sm:$0xff] }
 0x788   : > { %8008 = vmatprep.mubr.msk.bf16.mxu0 %vm1072_vm3, %v9727_v19  ;;  %v4160_v23 = vmul.f32 %v11748_v17, %v4124_v41 }
 0x789   : > { %3665 = vrot.lane.b32.xlu1 %v3590_v25, %s9872_s21  ;;  %3663 = vrot.lane.b32.xlu0 %v3589_v56, %s9872_s21  ;;  %v9739_v56 = vld [vmem:[%s14792_s29 + $0x80] ss:$8 sps:$4 sm:$0xff]  }
 0x78d   : > { %3669 = vrot.lane.b32.xlu1 %v3592_v18, %s9872_s21  ;;  %3667 = vrot.lane.b32.xlu0 %v3591_v11, %s9872_s21  ;;  %v4159_v18 = vmul.f32 %v11748_v17, %v4123_v51  ;;  %v9741_v11 = vld [vmem:[%s10001_s26 + $0x10] sm:$0xff]  ;;  %v9753_v51 = vld [vmem:[%s10001_s26 + $0x38] sm:$0xff] }
 0x78e   : > { %v4125_v28 = vmax.f32 %v9741_v11, 0.0 }
 0x78f   : > { %4691 = vmatmul.mubr.bf16.gmra.mrb[8].mxu0 %v9728_v55  ;;  %v4189_v12 = vsel %vm713_vm2, %v4159_v18, 0.0 }
 0x790   : > { %8009 = vmatprep.mubr.msk.bf16.mxu0 %vm1072_vm3, %v9729_v13  ;;  %v4161_v55 = vmul.f32 %v11748_v17, %v4125_v28 }
 0x791   : > { %3673 = vrot.lane.b32.xlu1 %v3594_v22, %s9872_s21  ;;  %3671 = vrot.lane.b32.xlu0 %v3593_v7, %s9872_s21  ;;  %v9742_v22 = vld [vmem:[%s10001_s26 + $0x20] sm:$0xff] }
 0x792   : > { %v4127_v7 = vmax.f32 %v9742_v22, 0.0 }
 0x795   : > { %3677 = vrot.lane.b32.xlu1 %v3596_v57, %s9872_s21  ;;  %3675 = vrot.lane.b32.xlu0 %v3595_v43, %s9872_s21  ;;  %v9744_v43 = vld [vmem:[%s14792_s29 + $0x90] ss:$8 sps:$4 sm:$0xff]  }
 0x796   : > { %v11678_v47 = vpop.f32.mrb[192].mxu0 }
 0x797   : > { %v8525_v3 = vpop.f32.mrb[193].mxu0  ;;  %4699 = vmatmul.mubr.bf16.gmra.mrb[12].mxu0 %v9730_v30  ;;  %v4195_v30 = vsel %vm713_vm2, %v4161_v55, 0.0  ;;  %v9755_v55 = vld [vmem:[%s10001_s26 + $0x48] sm:$0xff] }
 0x798   : > { %v11685_v29 = vpop.f32.mrb[194].mxu0  ;;  %8010 = vmatprep.mubr.msk.bf16.mxu0 %vm1072_vm3, %v9731_v38  ;;  %v4132_v22 = vmax.f32 %v9755_v55, 0.0  ;;  %v9769_v55 = vld [vmem:[%s14792_s29 + $0xe4] ss:$8 sps:$4 sm:$0xff]  }
 0x799   : > { %3681 = vrot.lane.b32.xlu1 %v3598_v33, %s9872_s21  ;;  %3679 = vrot.lane.b32.xlu0 %v3597_v62, %s9872_s21  ;;  %v8526_v21 = vpop.f32.mrb[195].mxu0  ;;  %v4163_v33 = vmul.f32 %v11748_v17, %v4127_v7  ;;  %v9746_v62 = vld [vmem:[%s10001_s26 + $0x30] sm:$0xff] }
 0x79a   : > { %v4129_v38 = vmax.f32 %v9746_v62, 0.0  ;;  %v4126_v21 = vmax.f32 %v9747_v52, 0.0 }
 0x79d   : > { %3685 = vrot.lane.b32.xlu1 %v3600_v61, %s9872_s21  ;;  %3683 = vrot.lane.b32.xlu0 %v3599_v0, %s9872_s21  ;;  %v4201_v61 = vsel %vm713_vm2, %v4163_v33, 0.0  ;;  %v4165_v0 = vmul.f32 %v11748_v17, %v4129_v38  ;;  %v4168_v38 = vmul.f32 %v11748_v17, %v4132_v22 }
 0x79e   : > { %v11701_v44 = vpop.f32.mrb[196].mxu0 }
 0x79f   : > { %v8529_v14 = vpop.f32.mrb[197].mxu0  ;;  %4707 = vmatmul.mubr.bf16.gmra.mrb[16].mxu0 %v9732_v50  ;;  %v4192_v50 = vsel %vm713_vm2, %v4160_v23, 0.0  ;;  %v9759_v23 = vld [vmem:[%s10001_s26 + $0x58] sm:$0xff] }
 0x7a0   : > { %v11708_v27 = vpop.f32.mrb[198].mxu0  ;;  %8011 = vmatprep.mubr.msk.bf16.mxu0 %vm1072_vm3, %v9733_v59  ;;  %v4134_v52 = vmax.f32 %v9759_v23, 0.0 }
 0x7a1   : > { %3689 = vrot.lane.b32.xlu1 %v3602_v53, %s9872_s21  ;;  %3687 = vrot.lane.b32.xlu0 %v3601_v4, %s9872_s21  ;;  %v8530_v10 = vpop.f32.mrb[199].mxu0  ;;  %v4162_v53 = vmul.f32 %v11748_v17, %v4126_v21  ;;  %v9749_v4 = vld [vmem:[%s10001_s26 + $0x28] sm:$0xff] }
 0x7a2   : > { %v4128_v59 = vmax.f32 %v9749_v4, 0.0 }
 0x7a4   : > { %v4164_v36 = vmul.f32 %v11748_v17, %v4128_v59  ;;  %v9762_v59 = vld [vmem:[%s14792_s29 + $0xc0] ss:$8 sps:$4 sm:$0xff]  }
 0x7a5   : > { %3850 = vrot.lane.b32.xlu1 %v7987_v48, %s14784_s24  ;;  %v9750_v48 = vld [vmem:[%s14792_s29 + $0xa0] ss:$8 sps:$4 sm:$0xff]  }
 0x7a6   : > { %v11720_v32 = vpop.f32.mrb[200].mxu0  ;;  %v4204_v28 = vsel %vm713_vm2, %v4164_v36, 0.0 }
 0x7a7   : > { %v8533_v54 = vpop.f32.mrb[201].mxu0  ;;  %4715 = vmatmul.mubr.bf16.gmra.mrb[20].mxu0 %v9734_v46  ;;  %v9751_v46 = vld [vmem:[%s14792_s29 + $0xb4] ss:$8 sps:$4 sm:$0xff]  }
 0x7a8   : > { %v11725_v16 = vpop.f32.mrb[202].mxu0  ;;  %8012 = vmatprep.mubr.msk.bf16.mxu0 %vm1072_vm3, %v9735_v49 }
 0x7a9   : > { %v8534_v42 = vpop.f32.mrb[203].mxu0 }
 0x7aa   : > { %v4207_v42 = vsel %vm713_vm2, %v4165_v0, 0.0  ;;  %v9760_v0 = vld [vmem:[%s10001_s26 + $0x80] sm:$0xff] }
 0x7ab   : > { %v4139_v15 = vmax.f32 %v9760_v0, 0.0 }
 0x7ae   : > { %v11731_v6 = vpop.f32.mrb[204].mxu0 }
 0x7af   : > { %v8537_v39 = vpop.f32.mrb[205].mxu0  ;;  %4723 = vmatmul.mubr.bf16.gmra.mrb[24].mxu0 %v9736_v24  ;;  %v9752_v24 = vld [vmem:[%s10001_s26 + $0x50] sm:$0xff] }
 0x7b0   : > { %v11736_v20 = vpop.f32.mrb[206].mxu0  ;;  %8013 = vmatprep.mubr.msk.bf16.mxu0 %vm1072_vm3, %v9737_v5  ;;  %v4167_v39 = vmul.f32 %v11748_v17, %v4131_v26  ;;  %v4133_v5 = vmax.f32 %v9752_v24, 0.0  ;;  %v4216_v26 = vsel %vm713_vm2, %v4168_v38, 0.0  ;;  %v9772_v38 = vld [vmem:[%s10001_s26 + $0xc0] sm:$0xff] }
 0x7b1   : > { %v8538_v63 = vpop.f32.mrb[207].mxu0  ;;  %v4147_v23 = vmax.f32 %v9772_v38, 0.0 }
 0x7b2   : > { %v4198_v63 = vsel %vm713_vm2, %v4162_v53, 0.0  ;;  %v9761_v53 = vld [vmem:[%s10001_s26 + $0x68] sm:$0xff] }
 0x7b3   : > { %v4136_v4 = vmax.f32 %v9761_v53, 0.0  ;;  %v9775_v53 = vld [vmem:[%s10001_s26 + $0xd0] sm:$0xff] }
 0x7b5   : > { %v4172_v24 = vmul.f32 %v11748_v17, %v4136_v4  ;;  %v4149_v4 = vmax.f32 %v9775_v53, 0.0 }
 0x7b6   : > { %v11743_v34 = vpop.f32.mrb[208].mxu0 }
 0x7b7   : > { %v8541_v25 = vpop.f32.mrb[209].mxu0  ;;  %4731 = vmatmul.mubr.bf16.gmra.mrb[28].mxu0 %v9739_v56  ;;  %v4213_v56 = vsel %vm713_vm2, %v4167_v39, 0.0 }
 0x7b8   : > { %v11753_v19 = vpop.f32.mrb[210].mxu0  ;;  %8014 = vmatprep.mubr.msk.bf16.mxu0 %vm1072_vm3, %v9740_v9  ;;  %v4130_v25 = vmax.f32 %v9753_v51, 0.0  ;;  %v4169_v9 = vmul.f32 %v11748_v17, %v4133_v5  ;;  %v9765_v5 = vld [vmem:[%s10001_s26 + $0x78] sm:$0xff] }
 0x7b9   : > { %v8542_v37 = vpop.f32.mrb[211].mxu0 }
 0x7ba   : > { %v9754_v37 = vld [vmem:[%s10001_s26 + $0x60] sm:$0xff] }
 0x7bb   : > { %v4135_v18 = vmax.f32 %v9754_v37, 0.0 }
 0x7be   : > { %v11764_v13 = vpop.f32.mrb[212].mxu0 }
 0x7bf   : > { %v8545_v57 = vpop.f32.mrb[213].mxu0  ;;  %4739 = vmatmul.mubr.bf16.gmra.mrb[32].mxu0 %v9744_v43 }
 0x7c0   : > { %4190 = vadd.xlane.f32.xlu0 %v4189_v12  ;;  %v11770_v35 = vpop.f32.mrb[214].mxu0  ;;  %8015 = vmatprep.mubr.msk.bf16.mxu0 %vm1072_vm3, %v9745_v1  ;;  %v4166_v12 = vmul.f32 %v11748_v17, %v4130_v25  ;;  %v9757_v57 = vld [vmem:[%s14792_s29 + $0xc4] ss:$8 sps:$4 sm:$0xff]   ;;  %v4219_v1 = vsel %vm713_vm2, %v4169_v9, 0.0  ;;  %v4228_v9 = vsel %vm713_vm2, %v4172_v24, 0.0 }
 0x7c1   : > { %v8546_v3 = vpop.f32.mrb[215].mxu0  ;;  %v9766_v25 = vld [vmem:[%s10001_s26 + $0xa0] sm:$0xff]  ;;  %v9777_v24 = vld [vmem:[%s10001_s26 + $0xc8] sm:$0xff] }
 0x7c2   : > { %v4171_v3 = vmul.f32 %v11748_v17, %v4135_v18  ;;  %v4210_v62 = vsel %vm713_vm2, %v4166_v12, 0.0  ;;  %v9767_v18 = vld [vmem:[%s10001_s26 + $0x88] sm:$0xff]  ;;  %v9768_v12 = vld [vmem:[%s14792_s29 + $0xd0] ss:$8 sps:$4 sm:$0xff]  }
 0x7c4   : > { %4196 = vadd.xlane.f32.xlu0 %v4195_v30  ;;  %v9758_v30 = vld [vmem:[%s10001_s26 + $0x70] sm:$0xff]  ;;  %v4225_v21 = vsel %vm713_vm2, %v4171_v3, 0.0  ;;  %v9771_v3 = vld [vmem:[%s10001_s26 + $0x98] sm:$0xff] }
 0x7c5   : > { %v4137_v33 = vmax.f32 %v9758_v30, 0.0  ;;  %v4142_v30 = vmax.f32 %v9771_v3, 0.0 }
 0x7c6   : > { %v11784_v14 = vpop.f32.mrb[216].mxu0 }
 0x7c7   : > { %v8549_v10 = vpop.f32.mrb[217].mxu0  ;;  %4747 = vmatmul.mubr.bf16.gmra.mrb[36].mxu0 %v9750_v48 }
 0x7c8   : > { %4202 = vadd.xlane.f32.xlu0 %v4201_v61  ;;  %v11792_v54 = vpop.f32.mrb[218].mxu0  ;;  %8016 = vmatprep.mubr.msk.bf16.mxu0 %vm1072_vm3, %v9751_v46  ;;  %v4173_v61 = vmul.f32 %v11748_v17, %v4137_v33  ;;  %v9763_v10 = vld [vmem:[%s14792_s29 + $0xd4] ss:$8 sps:$4 sm:$0xff]   ;;  %v4175_v46 = vmul.f32 %v11748_v17, %v4139_v15  ;;  %v9774_v15 = vld [vmem:[%s14792_s29 + $0xe0] ss:$8 sps:$4 sm:$0xff]  }
 0x7c9   : > { %4193 = vadd.xlane.f32.xlu1 %v4192_v50  ;;  %v8550_v49 = vpop.f32.mrb[219].mxu0  ;;  %v4170_v50 = vmul.f32 %v11748_v17, %v4134_v52 }
 0x7ca   : > { %v4231_v48 = vsel %vm713_vm2, %v4173_v61, 0.0  ;;  %v9764_v49 = vld [vmem:[%s10001_s26 + $0x90] sm:$0xff]  ;;  %v4237_v36 = vsel %vm713_vm2, %v4175_v46, 0.0  ;;  %v9773_v61 = vld [vmem:[%s10001_s26 + $0xa8] sm:$0xff] }
 0x7cb   : > { %v4222_v39 = vsel %vm713_vm2, %v4170_v50, 0.0  ;;  %v4144_v0 = vmax.f32 %v9773_v61, 0.0  ;;  %v4183_v50 = vmul.f32 %v11748_v17, %v4147_v23 }
 0x7cc   : > { %4208 = vadd.xlane.f32.xlu0 %v4207_v42  ;;  %v4141_v42 = vmax.f32 %v9764_v49, 0.0 }
 0x7cd   : > { %4199 = vadd.xlane.f32.xlu1 %v4198_v63  ;;  %v4138_v63 = vmax.f32 %v9765_v5, 0.0  ;;  %v4261_v49 = vsel %vm713_vm2, %v4183_v50, 0.0  ;;  %v4148_v5 = vmax.f32 %v9777_v24, 0.0 }
 0x7ce   : > { %v11807_v11 = vpop.f32.mrb[220].mxu0  ;;  %v4177_v51 = vmul.f32 %v11748_v17, %v4141_v42 }
 0x7cf   : > { %v8553_v7 = vpop.f32.mrb[221].mxu0  ;;  %4755 = vmatmul.mubr.bf16.gmra.mrb[40].mxu0 %v9756_v8  ;;  %v4174_v37 = vmul.f32 %v11748_v17, %v4138_v63  ;;  %v9770_v8 = vld [vmem:[%s10001_s26 + $0xb0] sm:$0xff] }
 0x7d0   : > { %4214 = vadd.xlane.f32.xlu0 %v4213_v56  ;;  %v11815_v41 = vpop.f32.mrb[222].mxu0  ;;  %8017 = vmatprep.mubr.msk.bf16.mxu0 %vm1072_vm3, %v9757_v57  ;;  %v4143_v56 = vmax.f32 %v9766_v25, 0.0  ;;  %v4243_v22 = vsel %vm713_vm2, %v4177_v51, 0.0  ;;  %v4145_v57 = vmax.f32 %v9770_v8, 0.0  ;;  %v4184_v51 = vmul.f32 %v11748_v17, %v4148_v5 }
 0x7d1   : > { %4205 = vadd.xlane.f32.xlu1 %v4204_v28  ;;  %v8554_v43 = vpop.f32.mrb[223].mxu0  ;;  %v4140_v28 = vmax.f32 %v9767_v18, 0.0 }
 0x7d2   : > { %v4179_v7 = vmul.f32 %v11748_v17, %v4143_v56  ;;  %v4234_v43 = vsel %vm713_vm2, %v4174_v37, 0.0  ;;  %v4264_v25 = vsel %vm713_vm2, %v4184_v51, 0.0 }
 0x7d4   : > { %4220 = vadd.xlane.f32.xlu0 %v4219_v1  ;;  %v4176_v1 = vmul.f32 %v11748_v17, %v4140_v28  ;;  %v4249_v33 = vsel %vm713_vm2, %v4179_v7, 0.0  ;;  %v3565_v28 = vmax.f32 %v11540_v45, 0.0 }
 0x7d5   : > { %4211 = vadd.xlane.f32.xlu1 %v4210_v62  ;;  %v4181_v62 = vmul.f32 %v11748_v17, %v4145_v57 }
 0x7d6   : > { %v4240_v52 = vsel %vm713_vm2, %v4176_v1, 0.0  ;;  %v3603_v7 = vmul.f32 %v11574_v60, %v3565_v28 }
 0x7d7   : > { %4763 = vmatmul.mubr.bf16.gmra.mrb[44].mxu0 %v9762_v59 }
 0x7d8   : > { %4226 = vadd.xlane.f32.xlu0 %v4225_v21  ;;  %8018 = vmatprep.mubr.msk.bf16.mxu0 %vm1072_vm3, %v9763_v10  ;;  %v4178_v21 = vmul.f32 %v11748_v17, %v4142_v30  ;;  %v4180_v10 = vmul.f32 %v11748_v17, %v4144_v0 }
 0x7d9   : > { %4217 = vadd.xlane.f32.xlu1 %v4216_v26  ;;  %v4255_v26 = vsel %vm713_vm2, %v4181_v62, 0.0 }
 0x7da   : > { %v4246_v59 = vsel %vm713_vm2, %v4178_v21, 0.0  ;;  %v4252_v42 = vsel %vm713_vm2, %v4180_v10, 0.0 }
 0x7dc   : > { %4232 = vadd.xlane.f32.xlu0 %v4231_v48  ;;  %v9776_v48 = vld [vmem:[%s10001_s26 + $0xb8] sm:$0xff] }
 0x7dd   : > { %4223 = vadd.xlane.f32.xlu1 %v4222_v39  ;;  %v4146_v46 = vmax.f32 %v9776_v48, 0.0 }
 0x7df   : > { %4771 = vmatmul.mubr.bf16.gmra.mrb[48].mxu0 %v9768_v12  ;;  %v4182_v39 = vmul.f32 %v11748_v17, %v4146_v46  ;;  %v3636_v56 = vpop.permute.xlu0 %3635  ;;  %v3566_v12 = vmax.f32 %v11543_v58, 0.0 }
 0x7e0   : > { %4238 = vadd.xlane.f32.xlu0 %v4237_v36  ;;  %8019 = vmatprep.mubr.msk.bf16.mxu0 %vm1072_vm3, %v9769_v55  ;;  %v3725_v10 = vsel %vm1400_vm4, %v3636_v56, 0.0 }
 0x7e1   : > { %4229 = vadd.xlane.f32.xlu1 %v4228_v9  ;;  %v4258_v36 = vsel %vm713_vm2, %v4182_v39, 0.0  ;;  %v3638_v9 = vpop.permute.xlu1 %3637 }
 0x7e2   : > { %v3728_v24 = vsel %vm1400_vm4, %v3638_v9, 0.0 }
 0x7e3   : > { %v3640_v37 = vpop.permute.xlu0 %3639 }
 0x7e4   : > { %4244 = vadd.xlane.f32.xlu0 %v4243_v22  ;;  %v3604_v22 = vmul.f32 %v11574_v60, %v3566_v12 }
 0x7e5   : > { %4235 = vadd.xlane.f32.xlu1 %v4234_v43  ;;  %v3642_v18 = vpop.permute.xlu1 %3641 }
 0x7e7   : > { %4779 = vmatmul.mubr.bf16.gmra.mrb[52].mxu0 %v9774_v15  ;;  %v3644_v55 = vpop.permute.xlu0 %3643 }
 0x7e8   : > { %4250 = vadd.xlane.f32.xlu0 %v4249_v33  ;;  %8035 = vmatprep.mubr.msk.bf16.mxu0 %vm1072_vm3, %v11588_v31  ;;  %v4185_v31 = vmul.f32 %v11748_v17, %v4149_v4  ;;  %v3737_v51 = vsel %vm1400_vm4, %v3644_v55, 0.0 }
 0x7e9   : > { %4241 = vadd.xlane.f32.xlu1 %v4240_v52  ;;  %v3646_v8 = vpop.permute.xlu1 %3645 }
 0x7ea   : > { %v4267_v63 = vsel %vm713_vm2, %v4185_v31, 0.0 }
 0x7eb   : > { %v3648_v17 = vpop.permute.xlu0 %3647 }
 0x7ec   : > { %4256 = vadd.xlane.f32.xlu0 %v4255_v26  ;;  %v3743_v9 = vsel %vm1400_vm4, %v3648_v17, 0.0 }
 0x7ed   : > { %4247 = vadd.xlane.f32.xlu1 %v4246_v59  ;;  %v3650_v57 = vpop.permute.xlu1 %3649 }
 0x7ef   : > { %v3652_v3 = vpop.permute.xlu0 %3651 }
 0x7f0   : > { %4262 = vadd.xlane.f32.xlu0 %v4261_v49  ;;  %v3749_v55 = vsel %vm1400_vm4, %v3652_v3, 0.0 }
 0x7f1   : > { %4253 = vadd.xlane.f32.xlu1 %v4252_v42  ;;  %v3654_v58 = vpop.permute.xlu1 %3653  ;;  %v3731_v42 = vsel %vm1400_vm4, %v3640_v37, 0.0  ;;  %v3740_v37 = vsel %vm1400_vm4, %v3646_v8, 0.0 }
 0x7f2   : > { %v3752_v8 = vsel %vm1400_vm4, %v3654_v58, 0.0 }
 0x7f3   : > { %v3656_v33 = vpop.permute.xlu0 %3655 }
 0x7f4   : > { %4268 = vadd.xlane.f32.xlu0 %v4267_v63  ;;  %v3734_v63 = vsel %vm1400_vm4, %v3642_v18, 0.0  ;;  %v3746_v18 = vsel %vm1400_vm4, %v3650_v57, 0.0 }
 0x7f5   : > { %4259 = vadd.xlane.f32.xlu1 %v4258_v36  ;;  %v3658_v23 = vpop.permute.xlu1 %3657 }
 0x7f6   : > { %v3758_v3 = vsel %vm1400_vm4, %v3658_v23, 0.0 }
 0x7f7   : > { %v3660_v61 = vpop.permute.xlu0 %3659 }
 0x7f9   : > { %4265 = vadd.xlane.f32.xlu1 %v4264_v25  ;;  %v3662_v0 = vpop.permute.xlu1 %3661 }
 0x7fb   : > { %v3664_v53 = vpop.permute.xlu0 %3663 }
 0x7fd   : > { %v3666_v59 = vpop.permute.xlu1 %3665 }
 0x7fe   : > { %v3770_v23 = vsel %vm1400_vm4, %v3666_v59, 0.0 }
 0x7ff   : > { %v3668_v46 = vpop.permute.xlu0 %3667 }
 0x801   : > { %v3670_v5 = vpop.permute.xlu1 %3669 }
 0x802   : > { %v3776_v59 = vsel %vm1400_vm4, %v3670_v5, 0.0 }
 0x803   : > { %v3672_v36 = vpop.permute.xlu0 %3671 }
 0x805   : > { %v3674_v28 = vpop.permute.xlu1 %3673 }
 0x806   : > { %v3782_v5 = vsel %vm1400_vm4, %v3674_v28, 0.0 }
 0x80a   : > { %3693 = vrot.lane.b32.xlu1 %v3604_v22, %s9872_s21  ;;  %3691 = vrot.lane.b32.xlu0 %v3603_v7, %s9872_s21  ;;  %v3676_v7 = vpop.permute.xlu0 %3675 }
 0x811   : > { %v11897_v43 = vpop.f32.mrb[224].mxu0 }
 0x812   : > { %v8557_v1 = vpop.f32.mrb[225].mxu0 }
 0x813   : > { %v11899_v30 = vpop.f32.mrb[226].mxu0  ;;  %v3678_v1 = vpop.permute.xlu1 %3677 }
 0x814   : > { %v8558_v45 = vpop.f32.mrb[227].mxu0 }
 0x817   : > { %v11934_v57 = vpop.permute.xlu1 %3681 }
 0x81a   : > { %v11901_v62 = vpop.f32.mrb[228].mxu0 }
 0x81b   : > { %v8561_v38 = vpop.f32.mrb[229].mxu0 }
 0x81c   : > { %v11903_v52 = vpop.f32.mrb[230].mxu0 }
 0x81d   : > { %v8562_v21 = vpop.f32.mrb[231].mxu0 }
 0x822   : > { %v11905_v15 = vpop.f32.mrb[232].mxu0 }
 0x823   : > { %v8565_v26 = vpop.f32.mrb[233].mxu0 }
 0x824   : > { %v11907_v50 = vpop.f32.mrb[234].mxu0  ;;  %v11931_v26 = vpop.permute.xlu0 %3679 }
 0x825   : > { %v8566_v4 = vpop.f32.mrb[235].mxu0 }
 0x826   : > { %v3755_v4 = vsel %vm1400_vm4, %v3656_v33, 0.0 }
 0x829   : > { %3726 = vadd.xlane.f32.xlu0 %v3725_v10  ;;  %v3761_v10 = vsel %vm1400_vm4, %v3660_v61, 0.0 }
 0x82a   : > { %v11910_v48 = vpop.f32.mrb[236].mxu0 }
 0x82b   : > { %v8569_v49 = vpop.f32.mrb[237].mxu0 }
 0x82c   : > { %v11912_v31 = vpop.f32.mrb[238].mxu0 }
 0x82d   : > { %3732 = vadd.xlane.f32.xlu0 %v3731_v42  ;;  %v8570_v39 = vpop.f32.mrb[239].mxu0  ;;  %v11940_v42 = vpop.permute.xlu0 %3683 }
 0x82e   : > { %3729 = vadd.xlane.f32.xlu1 %v3728_v24  ;;  %v3764_v24 = vsel %vm1400_vm4, %v3662_v0, 0.0  ;;  %v11955_v0 = vld [vmem:[%s14793_s27] ss:$0 sm:$0xff] }
 0x831   : > { %3735 = vadd.xlane.f32.xlu0 %v3734_v63  ;;  %v3767_v63 = vsel %vm1400_vm4, %v3664_v53, 0.0  ;;  %v11949_v61 = vpop.permute.xlu0 %3687 }
 0x832   : > { %3738 = vadd.xlane.f32.xlu1 %v3737_v51  ;;  %v11918_v25 = vpop.f32.mrb[240].mxu0  ;;  %v11946_v51 = vpop.permute.xlu1 %3685 }
 0x833   : > { %v8573_v56 = vpop.f32.mrb[241].mxu0 }
 0x834   : > { %v11920_v12 = vpop.f32.mrb[242].mxu0  ;;  %v3773_v56 = vsel %vm1400_vm4, %v3668_v46, 0.0 }
 0x835   : > { %3741 = vadd.xlane.f32.xlu0 %v3740_v37  ;;  %v8574_v22 = vpop.f32.mrb[243].mxu0 }
 0x836   : > { %3744 = vadd.xlane.f32.xlu1 %v3743_v9  ;;  %v11958_v9 = vpop.permute.xlu1 %3689 }
 0x839   : > { %3747 = vadd.xlane.f32.xlu0 %v3746_v18 }
 0x83a   : > { %3750 = vadd.xlane.f32.xlu1 %v3749_v55  ;;  %v11926_v45 = vpop.f32.mrb[244].mxu0 }
 0x83b   : > { %v8577_v38 = vpop.f32.mrb[245].mxu0 }
 0x83c   : > { %v11928_v21 = vpop.f32.mrb[246].mxu0 }
 0x83d   : > { %3753 = vadd.xlane.f32.xlu0 %v3752_v8  ;;  %v8578_v17 = vpop.f32.mrb[247].mxu0 }
 0x83e   : > { %3756 = vadd.xlane.f32.xlu1 %v3755_v4  ;;  %v3779_v17 = vsel %vm1400_vm4, %v3672_v36, 0.0  ;;  %v11968_v4 = vld [vmem:[%s14760_s4] ss:$0 sm:$0xff]  ;;  %v3785_v36 = vsel %vm1400_vm4, %v3676_v7, 0.0 }
 0x841   : > { %3759 = vadd.xlane.f32.xlu0 %v3758_v3 }
 0x842   : > { %3762 = vadd.xlane.f32.xlu1 %v3761_v10  ;;  %v11938_v49 = vpop.f32.mrb[248].mxu0 }
 0x843   : > { %v8581_v58 = vpop.f32.mrb[249].mxu0 }
 0x844   : > { %v11942_v39 = vpop.f32.mrb[250].mxu0  ;;  %v11972_v58 = vpop.permute.xlu1 %3850 }
 0x845   : > { %3765 = vadd.xlane.f32.xlu0 %v3764_v24  ;;  %v8582_v33 = vpop.f32.mrb[251].mxu0 }
 0x846   : > { %3768 = vadd.xlane.f32.xlu1 %v3767_v63 }
 0x849   : > { %3771 = vadd.xlane.f32.xlu0 %v3770_v23  ;;  %v11981_v23 = vld [vmem:[%s14761_s5] ss:$0 sm:$0xff] }
 0x84a   : > { %3774 = vadd.xlane.f32.xlu1 %v3773_v56  ;;  %v4668_v37 = vpop.f32.mrb[252].mxu0 }
 0x84b   : > { %v4669_v22 = vadd.f32 %v11955_v0, %v4668_v37  ;;  %v4670_v53 = vpop.f32.mrb[253].mxu0 }
 0x84c   : > { %v4671_v18 = vpop.f32.mrb[254].mxu0 }
 0x84d   : > { %v4787_v55 = vmax.f32 %v4669_v22, 0.0  ;;  %v4672_v38 = vadd.f32 %v11955_v0, %v4671_v18  ;;  %3777 = vadd.xlane.f32.xlu0 %v3776_v59  ;;  %v11962_v46 = vpop.xlane.xlu0 %4190  ;;  %v4673_v8 = vpop.f32.mrb[255].mxu0  ;;  %v3788_v18 = vsel %vm1400_vm4, %v3678_v1, 0.0  ;;  %v3794_v1 = vsel %vm1400_vm4, %v11934_v57, 0.0 }
 0x84e   : > { %14795 = vst [vmem:[#allocation4_spill] sm:$0xff] %v11962_v46  ;;  %3780 = vadd.xlane.f32.xlu1 %v3779_v17  ;;  %v3791_v17 = vsel %vm1400_vm4, %v11931_v26, 0.0 }
 0x84f   : > { %v4817_v3 = vmul.f32 %v11968_v4, %v4787_v55  ;;  %v4788_v10 = vmax.f32 %v4672_v38, 0.0 }
 0x851   : > { %v4818_v24 = vmul.f32 %v11968_v4, %v4788_v10  ;;  %3783 = vadd.xlane.f32.xlu0 %v3782_v5  ;;  %v11975_v33 = vpop.xlane.xlu0 %4196  ;;  %v4847_v56 = vadd.f32 %v11981_v23, %v4817_v3 }
 0x852   : > { %14796 = vst [vmem:[#allocation5_spill] sm:$0xff] %v11975_v33  ;;  %3786 = vadd.xlane.f32.xlu1 %v3785_v36  ;;  %v4676_v63 = vpop.f32.mrb[0].mxu0 }
 0x853   : > { %v4848_v28 = vadd.f32 %v11981_v23, %v4818_v24  ;;  %v4677_v37 = vadd.f32 %v11955_v0, %v4676_v63  ;;  %v4678_v22 = vpop.f32.mrb[1].mxu0  ;;  %v9781_v24 = vld [vmem:[%s14767_s11] sm:$0xff]   ;;  %v3797_v63 = vsel %vm1400_vm4, %v11940_v42, 0.0  ;;  %v9782_v42 = vld [vmem:[%s14767_s11 + $0x8] sm:$0xff]  }
 0x854   : > { %v4679_v53 = vpop.f32.mrb[2].mxu0 }
 0x855   : > { %v11987_v59 = vpack.c.bf16 %v4848_v28, %v4847_v56  ;;  %v4789_v7 = vmax.f32 %v4677_v37, 0.0  ;;  %v4680_v55 = vadd.f32 %v11955_v0, %v4679_v53  ;;  %3789 = vadd.xlane.f32.xlu0 %v3788_v18  ;;  %v11990_v38 = vpop.xlane.xlu0 %4202  ;;  %v4681_v8 = vpop.f32.mrb[3].mxu0 }
 0x856   : > { %14797 = vst [vmem:[#allocation6_spill] sm:$0xff] %v11990_v38  ;;  %v11994_v3 = vpop.xlane.xlu1 %4193  ;;  %3792 = vadd.xlane.f32.xlu1 %v3791_v17 }
 0x857   : > { %14798 = vst [vmem:[#allocation7_spill] sm:$0xff] %v11994_v3  ;;  %v4819_v10 = vmul.f32 %v11968_v4, %v4789_v7  ;;  %v4790_v5 = vmax.f32 %v4680_v55, 0.0  ;;  %8650 = vmatmul.mubr.msk.bf16.vlgmr.msra.gmra.mrb[228].mxu1 %vm1400_vm4, %v11987_v59  ;;  %v3800_v7 = vsel %vm1400_vm4, %v11946_v51, 0.0 }
 0x858   : > { %8653 = vmatprep.mubr.msk.bf16.mxu1 %vm9868_vm1, %v14780_v2  ;;  %8710 = vmatpush3.bf16.msra.mxu1 %v9781_v24 }
 0x859   : > { %v4820_v26 = vmul.f32 %v11968_v4, %v4790_v5  ;;  %3795 = vadd.xlane.f32.xlu0 %v3794_v1  ;;  %v12007_v36 = vpop.xlane.xlu0 %4208  ;;  %8711 = vmatprep.subr.bf16.mxu1 %v14780_v2  ;;  %v4849_v28 = vadd.f32 %v11981_v23, %v4819_v10  ;;  %v3803_v1 = vsel %vm1400_vm4, %v11949_v61, 0.0 }
 0x85a   : > { %14799 = vst [vmem:[#allocation8_spill] sm:$0xff] %v12007_v36  ;;  %v12012_v56 = vpop.xlane.xlu1 %4199  ;;  %3798 = vadd.xlane.f32.xlu1 %v3797_v63  ;;  %v4684_v57 = vpop.f32.mrb[4].mxu0  ;;  %v3806_v63 = vsel %vm1400_vm4, %v11958_v9, 0.0 }
 0x85b   : > { %14800 = vst [vmem:[#allocation9_spill] sm:$0xff] %v12012_v56  ;;  %v4850_v37 = vadd.f32 %v11981_v23, %v4820_v26  ;;  %v4685_v22 = vadd.f32 %v11955_v0, %v4684_v57  ;;  %v4686_v53 = vpop.f32.mrb[5].mxu0 }
 0x85c   : > { %v4687_v18 = vpop.f32.mrb[6].mxu0  ;;  %8712 = vmatpush3.bf16.msra.mxu1 %v9782_v42 }
 0x85d   : > { %v12022_v55 = vpack.c.bf16 %v4850_v37, %v4849_v28  ;;  %v4791_v8 = vmax.f32 %v4685_v22, 0.0  ;;  %v4688_v17 = vadd.f32 %v11955_v0, %v4687_v18  ;;  %3801 = vadd.xlane.f32.xlu0 %v3800_v7  ;;  %v12025_v10 = vpop.xlane.xlu0 %4214  ;;  %v4689_v5 = vpop.f32.mrb[7].mxu0  ;;  %8837 = vmatprep.subr.bf16.mxu1 %v14780_v2 }
 0x85e   : > { %14801 = vst [vmem:[#allocation10_spill] sm:$0xff] %v12025_v10  ;;  %v12030_v51 = vpop.xlane.xlu1 %4205  ;;  %3804 = vadd.xlane.f32.xlu1 %v3803_v1 }
 0x85f   : > { %14802 = vst [vmem:[#allocation11_spill] sm:$0xff] %v12030_v51  ;;  %v4821_v24 = vmul.f32 %v11968_v4, %v4791_v8  ;;  %v4792_v26 = vmax.f32 %v4688_v17, 0.0  ;;  %8654 = vmatmul.mubr.msk.bf16.gmra.mrb[232].mxu1 %vm1400_vm4, %v12022_v55 }
 0x860   : > { %8657 = vmatprep.mubr.msk.bf16.mxu1 %vm9868_vm1, %v14780_v2 }
 0x861   : > { %v4822_v57 = vmul.f32 %v11968_v4, %v4792_v26  ;;  %3807 = vadd.xlane.f32.xlu0 %v3806_v63  ;;  %v12040_v61 = vpop.xlane.xlu0 %4220  ;;  %v4851_v22 = vadd.f32 %v11981_v23, %v4821_v24 }
 0x862   : > { %14803 = vst [vmem:[#allocation12_spill] sm:$0xff] %v12040_v61  ;;  %v12042_v28 = vpop.xlane.xlu1 %4211  ;;  %v4692_v37 = vpop.f32.mrb[8].mxu0 }
 0x863   : > { %14804 = vst [vmem:[#allocation13_spill] sm:$0xff] %v12042_v28  ;;  %v4852_v53 = vadd.f32 %v11981_v23, %v4822_v57  ;;  %v4693_v18 = vadd.f32 %v11955_v0, %v4692_v37  ;;  %v4694_v7 = vpop.f32.mrb[9].mxu0 }
 0x864   : > { %v4695_v42 = vpop.f32.mrb[10].mxu0 }
 0x865   : > { %v12047_v9 = vpack.c.bf16 %v4852_v53, %v4851_v22  ;;  %v4793_v8 = vmax.f32 %v4693_v18, 0.0  ;;  %v4696_v17 = vadd.f32 %v11955_v0, %v4695_v42  ;;  %v12050_v5 = vpop.xlane.xlu0 %4226  ;;  %v4697_v1 = vpop.f32.mrb[11].mxu0 }
 0x866   : > { %14805 = vst [vmem:[#allocation14_spill] sm:$0xff] %v12050_v5  ;;  %v12052_v26 = vpop.xlane.xlu1 %4217 }
 0x867   : > { %14806 = vst [vmem:[#allocation15_spill] sm:$0xff] %v12052_v26  ;;  %v4823_v63 = vmul.f32 %v11968_v4, %v4793_v8  ;;  %v4794_v40 = vmax.f32 %v4696_v17, 0.0  ;;  %8658 = vmatmul.mubr.msk.bf16.gmra.mrb[236].mxu1 %vm1400_vm4, %v12047_v9 }
 0x868   : > { %8661 = vmatprep.mubr.msk.bf16.mxu1 %vm9868_vm1, %v14780_v2 }
 0x869   : > { %v4824_v24 = vmul.f32 %v11968_v4, %v4794_v40  ;;  %v12060_v57 = vpop.xlane.xlu0 %4232  ;;  %v4853_v53 = vadd.f32 %v11981_v23, %v4823_v63  ;;  %v14811_v63 = vmov 0.0  }
 0x86a   : > { %14807 = vst [vmem:[#allocation16_spill] sm:$0xff] %v12060_v57  ;;  %v12062_v37 = vpop.xlane.xlu1 %4223  ;;  %v4700_v22 = vpop.f32.mrb[12].mxu0 }
 0x86b   : > { %14808 = vst [vmem:[#allocation17_spill] sm:$0xff] %v12062_v37  ;;  %v4854_v18 = vadd.f32 %v11981_v23, %v4824_v24  ;;  %v4701_v7 = vadd.f32 %v11955_v0, %v4700_v22  ;;  %v4702_v42 = vpop.f32.mrb[13].mxu0 }
 0x86c   : > { %v4703_v8 = vpop.f32.mrb[14].mxu0 }
 0x86d   : > { %v12067_v17 = vpack.c.bf16 %v4854_v18, %v4853_v53  ;;  %v4795_v1 = vmax.f32 %v4701_v7, 0.0  ;;  %v4704_v2 = vadd.f32 %v11955_v0, %v4703_v8  ;;  %v12070_v60 = vpop.xlane.xlu0 %4238  ;;  %v4705_v40 = vpop.f32.mrb[15].mxu0 }
 0x86e   : > { %14809 = vst [vmem:[#allocation18_spill] sm:$0xff] %v12070_v60  ;;  %v12072_v57 = vpop.xlane.xlu1 %4229 }
 0x86f   : > { %14810 = vst [vmem:[#allocation19_spill] sm:$0xff] %v12072_v57  ;;  %v4825_v5 = vmul.f32 %v11968_v4, %v4795_v1  ;;  %v4796_v37 = vmax.f32 %v4704_v2, 0.0  ;;  %8662 = vmatmul.mubr.msk.bf16.gmra.mrb[240].mxu1 %vm1400_vm4, %v12067_v17 }
 0x870   : > { %8665 = vmatprep.mubr.msk.bf16.mxu1 %vm9868_vm1, %v14811_v63 }
 0x871   : > { %v4826_v24 = vmul.f32 %v11968_v4, %v4796_v37  ;;  %v12080_v22 = vpop.xlane.xlu0 %4244  ;;  %v4855_v7 = vadd.f32 %v11981_v23, %v4825_v5 }
 0x872   : > { %14812 = vst [vmem:[#allocation20_spill] sm:$0xff] %v12080_v22  ;;  %v12082_v53 = vpop.xlane.xlu1 %4235  ;;  %v4708_v18 = vpop.f32.mrb[16].mxu0 }
 0x873   : > { %14813 = vst [vmem:[#allocation21_spill] sm:$0xff] %v12082_v53  ;;  %v4856_v42 = vadd.f32 %v11981_v23, %v4826_v24  ;;  %v4709_v8 = vadd.f32 %v11955_v0, %v4708_v18  ;;  %v4710_v2 = vpop.f32.mrb[17].mxu0 }
 0x874   : > { %v4711_v1 = vpop.f32.mrb[18].mxu0 }
 0x875   : > { %v12087_v40 = vpack.c.bf16 %v4856_v42, %v4855_v7  ;;  %v4797_v60 = vmax.f32 %v4709_v8, 0.0  ;;  %v4712_v61 = vadd.f32 %v11955_v0, %v4711_v1  ;;  %v12090_v26 = vpop.xlane.xlu0 %4250  ;;  %v4713_v37 = vpop.f32.mrb[19].mxu0 }
 0x876   : > { %14814 = vst [vmem:[#allocation22_spill] sm:$0xff] %v12090_v26  ;;  %v12092_v22 = vpop.xlane.xlu1 %4241 }
 0x877   : > { %14815 = vst [vmem:[#allocation23_spill] sm:$0xff] %v12092_v22  ;;  %v4827_v53 = vmul.f32 %v11968_v4, %v4797_v60  ;;  %v4798_v10 = vmax.f32 %v4712_v61, 0.0  ;;  %8666 = vmatmul.mubr.msk.bf16.gmra.mrb[244].mxu1 %vm1400_vm4, %v12087_v40 }
 0x878   : > { %8669 = vmatprep.mubr.msk.bf16.mxu1 %vm9868_vm1, %v14811_v63 }
 0x879   : > { %v4828_v5 = vmul.f32 %v11968_v4, %v4798_v10  ;;  %v12100_v24 = vpop.xlane.xlu0 %4256  ;;  %v4857_v42 = vadd.f32 %v11981_v23, %v4827_v53 }
 0x87a   : > { %14816 = vst [vmem:[#allocation24_spill] sm:$0xff] %v12100_v24  ;;  %v12102_v18 = vpop.xlane.xlu1 %4247  ;;  %v4716_v7 = vpop.f32.mrb[20].mxu0 }
 0x87b   : > { %14817 = vst [vmem:[#allocation25_spill] sm:$0xff] %v12102_v18  ;;  %v4858_v8 = vadd.f32 %v11981_v23, %v4828_v5  ;;  %v4717_v60 = vadd.f32 %v11955_v0, %v4716_v7  ;;  %v4718_v61 = vpop.f32.mrb[21].mxu0 }
 0x87c   : > { %v4719_v2 = vpop.f32.mrb[22].mxu0 }
 0x87d   : > { %v12107_v1 = vpack.c.bf16 %v4858_v8, %v4857_v42  ;;  %v4799_v37 = vmax.f32 %v4717_v60, 0.0  ;;  %v4720_v26 = vadd.f32 %v11955_v0, %v4719_v2  ;;  %v12110_v22 = vpop.xlane.xlu0 %4262  ;;  %v4721_v10 = vpop.f32.mrb[23].mxu0 }
 0x87e   : > { %14818 = vst [vmem:[#allocation26_spill] sm:$0xff] %v12110_v22  ;;  %v12112_v24 = vpop.xlane.xlu1 %4253 }
 0x87f   : > { %14819 = vst [vmem:[#allocation27_spill] sm:$0xff] %v12112_v24  ;;  %v4829_v18 = vmul.f32 %v11968_v4, %v4799_v37  ;;  %v4800_v57 = vmax.f32 %v4720_v26, 0.0  ;;  %8670 = vmatmul.mubr.msk.bf16.gmra.mrb[248].mxu1 %vm1400_vm4, %v12107_v1  ;;  %v12130_v37 = vld [vmem:[%s14770_s14] ss:$0 sm:$0xff] }
 0x880   : > { %8673 = vmatprep.mubr.msk.bf16.mxu1 %vm9868_vm1, %v14811_v63 }
 0x881   : > { %v4830_v53 = vmul.f32 %v11968_v4, %v4800_v57  ;;  %v12120_v5 = vpop.xlane.xlu0 %4268  ;;  %v4859_v8 = vadd.f32 %v11981_v23, %v4829_v18 }
 0x882   : > { %14820 = vst [vmem:[#allocation28_spill] sm:$0xff] %v12120_v5  ;;  %v12122_v7 = vpop.xlane.xlu1 %4259  ;;  %v4724_v42 = vpop.f32.mrb[24].mxu0 }
 0x883   : > { %14821 = vst [vmem:[#allocation29_spill] sm:$0xff] %v12122_v7  ;;  %v4860_v60 = vadd.f32 %v11981_v23, %v4830_v53  ;;  %v4725_v61 = vadd.f32 %v11955_v0, %v4724_v42  ;;  %v4726_v26 = vpop.f32.mrb[25].mxu0 }
 0x884   : > { %v4727_v2 = vpop.f32.mrb[26].mxu0 }
 0x885   : > { %v12132_v10 = vpack.c.bf16 %v4860_v60, %v4859_v8  ;;  %v4801_v57 = vmax.f32 %v4725_v61, 0.0  ;;  %v4728_v5 = vadd.f32 %v11955_v0, %v4727_v2  ;;  %v3692_v22 = vpop.permute.xlu0 %3691  ;;  %v4729_v7 = vpop.f32.mrb[27].mxu0  ;;  %v12143_v8 = vadd.f32 %v12130_v37, %v11678_v47 }
 0x886   : > { %v12135_v24 = vpop.xlane.xlu1 %4265  ;;  %v3809_v18 = vsel %vm1400_vm4, %v3692_v22, 0.0 }
 0x887   : > { %14822 = vst [vmem:[#allocation30_spill] sm:$0xff] %v12135_v24  ;;  %v4831_v53 = vmul.f32 %v11968_v4, %v4801_v57  ;;  %v4802_v42 = vmax.f32 %v4728_v5, 0.0  ;;  %3810 = vadd.xlane.f32.xlu1 %v3809_v18  ;;  %8674 = vmatmul.mubr.msk.bf16.gmra.mrb[252].mxu1 %vm1400_vm4, %v12132_v10  ;;  %9178 = vtanh.f32 %v12143_v8  ;;  %v12155_v18 = vadd.f32 %v12130_v37, %v11701_v44 }
 0x888   : > { %8677 = vmatprep.mubr.msk.bf16.mxu1 %vm9868_vm1, %v14811_v63 }
 0x889   : > { %v4832_v7 = vmul.f32 %v11968_v4, %v4802_v42  ;;  %v4861_v22 = vadd.f32 %v11981_v23, %v4831_v53  ;;  %9180 = vtanh.f32 %v12155_v18 }
 0x88a   : > { %v3694_v60 = vpop.permute.xlu1 %3693  ;;  %v4732_v61 = vpop.f32.mrb[28].mxu0 }
 0x88b   : > { %v4862_v26 = vadd.f32 %v11981_v23, %v4832_v7  ;;  %v4733_v5 = vadd.f32 %v11955_v0, %v4732_v61  ;;  %v4734_v2 = vpop.f32.mrb[29].mxu0  ;;  %v3812_v57 = vsel %vm1400_vm4, %v3694_v60, 0.0  ;;  %v12165_v60 = vadd.f32 %v12130_v37, %v11720_v32 }
 0x88c   : > { %3813 = vadd.xlane.f32.xlu0 %v3812_v57  ;;  %v4735_v47 = vpop.f32.mrb[30].mxu0  ;;  %v12181_v57 = vadd.f32 %v12130_v37, %v11731_v6  ;;  %v12196_v6 = vadd.f32 %v12130_v37, %v11743_v34 }
 0x88d   : > { %v12157_v42 = vpack.c.bf16 %v4862_v26, %v4861_v22  ;;  %v4803_v24 = vmax.f32 %v4733_v5, 0.0  ;;  %v4736_v53 = vadd.f32 %v11955_v0, %v4735_v47  ;;  %v4737_v28 = vpop.f32.mrb[31].mxu0  ;;  %9182 = vtanh.f32 %v12165_v60 }
 0x88e   : > { %v12173_v28 = vadd.f32 %v12130_v37, %v11685_v29 }
 0x88f   : > { %v4833_v7 = vmul.f32 %v11968_v4, %v4803_v24  ;;  %v4804_v61 = vmax.f32 %v4736_v53, 0.0  ;;  %8678 = vmatmul.mubr.msk.bf16.gmra.mrb[0].mxu1 %vm1400_vm4, %v12157_v42 }
 0x890   : > { %8681 = vmatprep.mubr.msk.bf16.mxu1 %vm9868_vm1, %v14811_v63  ;;  %9184 = vtanh.f32 %v12173_v28 }
 0x891   : > { %v4834_v44 = vmul.f32 %v11968_v4, %v4804_v61  ;;  %v4863_v24 = vadd.f32 %v11981_v23, %v4833_v7  ;;  %v9179_v36 = vpop.eup %9178  ;;  %v12188_v7 = vadd.f32 %v12130_v37, %v11708_v27  ;;  %9186 = vtanh.f32 %v12181_v57 }
 0x892   : > { %v4740_v22 = vpop.f32.mrb[32].mxu0 }
 0x893   : > { %v4864_v26 = vadd.f32 %v11981_v23, %v4834_v44  ;;  %v4741_v5 = vadd.f32 %v11955_v0, %v4740_v22  ;;  %v4742_v32 = vpop.f32.mrb[33].mxu0  ;;  %9188 = vtanh.f32 %v12188_v7 }
 0x894   : > { %v4743_v2 = vpop.f32.mrb[34].mxu0  ;;  %9190 = vtanh.f32 %v12196_v6 }
 0x895   : > { %v12183_v47 = vpack.c.bf16 %v4864_v26, %v4863_v24  ;;  %v4805_v53 = vmax.f32 %v4741_v5, 0.0  ;;  %v4744_v29 = vadd.f32 %v11955_v0, %v4743_v2  ;;  %v4745_v61 = vpop.f32.mrb[35].mxu0  ;;  %v9181_v26 = vpop.eup %9180  ;;  %v12206_v5 = vadd.f32 %v12130_v37, %v11725_v16 }
 0x897   : > { %v4835_v44 = vmul.f32 %v11968_v4, %v4805_v53  ;;  %v4806_v22 = vmax.f32 %v4744_v29, 0.0  ;;  %8682 = vmatmul.mubr.msk.bf16.gmra.mrb[4].mxu1 %vm1400_vm4, %v12183_v47  ;;  %v12215_v29 = vadd.f32 %v12130_v37, %v11764_v13  ;;  %v9183_v51 = vpop.eup %9182  ;;  %9192 = vtanh.f32 %v12206_v5 }
 0x898   : > { %3237 = vrot.lane.b32.xlu1 %v9179_v36, %s9870_s30  ;;  %8685 = vmatprep.mubr.msk.bf16.mxu1 %vm9868_vm1, %v14811_v63  ;;  %v12230_v13 = vadd.f32 %v12130_v37, %v11784_v14  ;;  %v12241_v14 = vadd.f32 %v12130_v37, %v11753_v19 }
 0x899   : > { %v4836_v27 = vmul.f32 %v11968_v4, %v4806_v22  ;;  %v4865_v34 = vadd.f32 %v11981_v23, %v4835_v44  ;;  %9194 = vtanh.f32 %v12215_v29 }
 0x89a   : > { %v4748_v24 = vpop.f32.mrb[36].mxu0 }
 0x89b   : > { %v4866_v32 = vadd.f32 %v11981_v23, %v4836_v27  ;;  %v4749_v36 = vadd.f32 %v11955_v0, %v4748_v24  ;;  %v4750_v2 = vpop.f32.mrb[37].mxu0  ;;  %v12222_v27 = vadd.f32 %v12130_v37, %v11736_v20 }
 0x89c   : > { %3241 = vrot.lane.b32.xlu1 %v9181_v26, %s9870_s30  ;;  %v4751_v53 = vpop.f32.mrb[38].mxu0 }
 0x89d   : > { %v12217_v61 = vpack.c.bf16 %v4866_v32, %v4865_v34  ;;  %v4807_v16 = vmax.f32 %v4749_v36, 0.0  ;;  %v4752_v22 = vadd.f32 %v11955_v0, %v4751_v53  ;;  %v4753_v44 = vpop.f32.mrb[39].mxu0  ;;  %v9185_v34 = vpop.eup %9184  ;;  %9196 = vtanh.f32 %v12222_v27 }
 0x89e   : > { %v9187_v36 = vpop.eup %9186  ;;  %9198 = vtanh.f32 %v12230_v13 }
 0x89f   : > { %v4837_v24 = vmul.f32 %v11968_v4, %v4807_v16  ;;  %v4808_v26 = vmax.f32 %v4752_v22, 0.0  ;;  %8686 = vmatmul.mubr.msk.bf16.gmra.mrb[8].mxu1 %vm1400_vm4, %v12217_v61  ;;  %v9189_v22 = vpop.eup %9188  ;;  %9200 = vtanh.f32 %v12241_v14 }
 0x8a0   : > { %3245 = vrot.lane.b32.xlu1 %v9183_v51, %s9870_s30  ;;  %8689 = vmatprep.mubr.msk.bf16.mxu1 %vm9868_vm1, %v14811_v63 }
 0x8a1   : > { %v4838_v20 = vmul.f32 %v11968_v4, %v4808_v26  ;;  %v4867_v51 = vadd.f32 %v11981_v23, %v4837_v24  ;;  %v12250_v26 = vadd.f32 %v12130_v37, %v11807_v11  ;;  %v12266_v11 = vadd.f32 %v12130_v37, %v11897_v43 }
 0x8a2   : > { %3239 = vrot.lane.b32.xlu0 %v9185_v34, %s9870_s30  ;;  %v4756_v32 = vpop.f32.mrb[40].mxu0  ;;  %v12277_v43 = vadd.f32 %v12130_v37, %v11792_v54 }
 0x8a3   : > { %v4868_v2 = vadd.f32 %v11981_v23, %v4838_v20  ;;  %v4757_v53 = vadd.f32 %v11955_v0, %v4756_v32  ;;  %v4758_v16 = vpop.f32.mrb[41].mxu0  ;;  %v9191_v20 = vpop.eup %9190  ;;  %v12257_v32 = vadd.f32 %v12130_v37, %v11770_v35  ;;  %9202 = vtanh.f32 %v12250_v26 }
 0x8a4   : > { %3249 = vrot.lane.b32.xlu1 %v9187_v36, %s9870_s30  ;;  %v4759_v44 = vpop.f32.mrb[42].mxu0  ;;  %v9193_v35 = vpop.eup %9192 }
 0x8a5   : > { %v12252_v34 = vpack.c.bf16 %v4868_v2, %v4867_v51  ;;  %v4809_v19 = vmax.f32 %v4757_v53, 0.0  ;;  %v4760_v24 = vadd.f32 %v11955_v0, %v4759_v44  ;;  %v4761_v38 = vpop.f32.mrb[43].mxu0  ;;  %9204 = vtanh.f32 %v12257_v32  ;;  %v9195_v2 = vpop.eup %9194 }
 0x8a6   : > { %3243 = vrot.lane.b32.xlu0 %v9189_v22, %s9870_s30  ;;  %9206 = vtanh.f32 %v12266_v11 }
 0x8a7   : > { %v4839_v36 = vmul.f32 %v11968_v4, %v4809_v19  ;;  %v4810_v16 = vmax.f32 %v4760_v24, 0.0  ;;  %8690 = vmatmul.mubr.msk.bf16.gmra.mrb[12].mxu1 %vm1400_vm4, %v12252_v34  ;;  %v9197_v24 = vpop.eup %9196  ;;  %9208 = vtanh.f32 %v12277_v43 }
 0x8a8   : > { %3253 = vrot.lane.b32.xlu1 %v9191_v20, %s9870_s30  ;;  %8693 = vmatprep.mubr.msk.bf16.mxu1 %vm9868_vm1, %v14811_v63 }
 0x8a9   : > { %v4840_v38 = vmul.f32 %v11968_v4, %v4810_v16  ;;  %v4869_v53 = vadd.f32 %v11981_v23, %v4839_v36  ;;  %v12286_v16 = vadd.f32 %v12130_v37, %v11901_v62  ;;  %v12302_v62 = vadd.f32 %v12130_v37, %v11905_v15 }
 0x8aa   : > { %3247 = vrot.lane.b32.xlu0 %v9193_v35, %s9870_s30  ;;  %v4764_v51 = vpop.f32.mrb[44].mxu0  ;;  %v12313_v15 = vadd.f32 %v12130_v37, %v11899_v30 }
 0x8ab   : > { %v4870_v22 = vadd.f32 %v11981_v23, %v4840_v38  ;;  %v4765_v44 = vadd.f32 %v11955_v0, %v4764_v51  ;;  %v4766_v19 = vpop.f32.mrb[45].mxu0  ;;  %v9199_v38 = vpop.eup %9198  ;;  %v12293_v51 = vadd.f32 %v12130_v37, %v11815_v41  ;;  %9210 = vtanh.f32 %v12286_v16 }
 0x8ac   : > { %3257 = vrot.lane.b32.xlu1 %v9195_v2, %s9870_s30  ;;  %v4767_v20 = vpop.f32.mrb[46].mxu0  ;;  %v9201_v41 = vpop.eup %9200 }
 0x8ad   : > { %v12288_v35 = vpack.c.bf16 %v4870_v22, %v4869_v53  ;;  %v4811_v54 = vmax.f32 %v4765_v44, 0.0  ;;  %v4768_v36 = vadd.f32 %v11955_v0, %v4767_v20  ;;  %v4769_v33 = vpop.f32.mrb[47].mxu0  ;;  %9212 = vtanh.f32 %v12293_v51  ;;  %v9203_v22 = vpop.eup %9202 }
 0x8ae   : > { %3251 = vrot.lane.b32.xlu0 %v9197_v24, %s9870_s30  ;;  %9214 = vtanh.f32 %v12302_v62 }
 0x8af   : > { %v4841_v2 = vmul.f32 %v11968_v4, %v4811_v54  ;;  %v4812_v19 = vmax.f32 %v4768_v36, 0.0  ;;  %8694 = vmatmul.mubr.msk.bf16.gmra.mrb[16].mxu1 %vm1400_vm4, %v12288_v35  ;;  %v9205_v36 = vpop.eup %9204  ;;  %9216 = vtanh.f32 %v12313_v15 }
 0x8b0   : > { %3261 = vrot.lane.b32.xlu1 %v9199_v38, %s9870_s30  ;;  %8697 = vmatprep.mubr.msk.bf16.mxu1 %vm9868_vm1, %v14811_v63 }
 0x8b1   : > { %v4842_v33 = vmul.f32 %v11968_v4, %v4812_v19  ;;  %v4871_v44 = vadd.f32 %v11981_v23, %v4841_v2  ;;  %v12322_v19 = vadd.f32 %v12130_v37, %v11910_v48  ;;  %v12338_v48 = vadd.f32 %v12130_v37, %v11918_v25 }
 0x8b2   : > { %3255 = vrot.lane.b32.xlu0 %v9201_v41, %s9870_s30  ;;  %v4772_v53 = vpop.f32.mrb[48].mxu0  ;;  %v12349_v25 = vadd.f32 %v12130_v37, %v11907_v50 }
 0x8b3   : > { %v4872_v24 = vadd.f32 %v11981_v23, %v4842_v33  ;;  %v4773_v20 = vadd.f32 %v11955_v0, %v4772_v53  ;;  %v4774_v54 = vpop.f32.mrb[49].mxu0  ;;  %v9207_v33 = vpop.eup %9206  ;;  %v12329_v53 = vadd.f32 %v12130_v37, %v11903_v52  ;;  %9218 = vtanh.f32 %v12322_v19 }
 0x8b4   : > { %3265 = vrot.lane.b32.xlu1 %v9203_v22, %s9870_s30  ;;  %v4775_v38 = vpop.f32.mrb[50].mxu0  ;;  %v9209_v52 = vpop.eup %9208 }
 0x8b5   : > { %v12324_v41 = vpack.c.bf16 %v4872_v24, %v4871_v44  ;;  %v4813_v30 = vmax.f32 %v4773_v20, 0.0  ;;  %v4776_v2 = vadd.f32 %v11955_v0, %v4775_v38  ;;  %v4777_v56 = vpop.f32.mrb[51].mxu0  ;;  %9220 = vtanh.f32 %v12329_v53  ;;  %v9211_v24 = vpop.eup %9210 }
 0x8b6   : > { %3259 = vrot.lane.b32.xlu0 %v9205_v36, %s9870_s30  ;;  %9222 = vtanh.f32 %v12338_v48 }
 0x8b7   : > { %v4843_v22 = vmul.f32 %v11968_v4, %v4813_v30  ;;  %v4814_v54 = vmax.f32 %v4776_v2, 0.0  ;;  %8698 = vmatmul.mubr.msk.bf16.gmra.mrb[20].mxu1 %vm1400_vm4, %v12324_v41  ;;  %v9213_v2 = vpop.eup %9212  ;;  %9224 = vtanh.f32 %v12349_v25 }
 0x8b8   : > { %3269 = vrot.lane.b32.xlu1 %v9207_v33, %s9870_s30  ;;  %8701 = vmatprep.mubr.msk.bf16.mxu1 %vm9868_vm1, %v14811_v63 }
 0x8b9   : > { %v4844_v56 = vmul.f32 %v11968_v4, %v4814_v54  ;;  %v4873_v20 = vadd.f32 %v11981_v23, %v4843_v22  ;;  %v12358_v54 = vadd.f32 %v12130_v37, %v11926_v45 }
 0x8ba   : > { %3263 = vrot.lane.b32.xlu0 %v9209_v52, %s9870_s30  ;;  %v4780_v44 = vpop.f32.mrb[52].mxu0 }
 0x8bb   : > { %v4874_v36 = vadd.f32 %v11981_v23, %v4844_v56  ;;  %v4781_v38 = vadd.f32 %v11955_v0, %v4780_v44  ;;  %v4782_v30 = vpop.f32.mrb[53].mxu0  ;;  %v9215_v56 = vpop.eup %9214  ;;  %v12367_v44 = vadd.f32 %v12130_v37, %v11912_v31  ;;  %9226 = vtanh.f32 %v12358_v54 }
 0x8bc   : > { %3273 = vrot.lane.b32.xlu1 %v9211_v24, %s9870_s30  ;;  %v4783_v33 = vpop.f32.mrb[54].mxu0  ;;  %v9217_v45 = vpop.eup %9216 }
 0x8bd   : > { %v12360_v52 = vpack.c.bf16 %v4874_v36, %v4873_v20  ;;  %v4815_v50 = vmax.f32 %v4781_v38, 0.0  ;;  %v4784_v22 = vadd.f32 %v11955_v0, %v4783_v33  ;;  %v4785_v3 = vpop.f32.mrb[55].mxu0  ;;  %v12378_v0 = vadd.f32 %v12130_v37, %v11938_v49  ;;  %v12380_v31 = vpop.xlane.xlu0 %3726 }
 0x8be   : > { %3267 = vrot.lane.b32.xlu0 %v9213_v2, %s9870_s30  ;;  %14823 = vst [vmem:[#allocation31_spill] sm:$0xff] %v12380_v31  ;;  %v9219_v20 = vpop.eup %9218  ;;  %9228 = vtanh.f32 %v12367_v44  ;;  %v12387_v36 = vadd.f32 %v12130_v37, %v11920_v12  ;;  %v12399_v12 = vadd.f32 %v12130_v37, %v11928_v21  ;;  %v12414_v21 = vadd.f32 %v12130_v37, %v11942_v39 }
 0x8bf   : > { %v4845_v24 = vmul.f32 %v11968_v4, %v4815_v50  ;;  %v4816_v30 = vmax.f32 %v4784_v22, 0.0  ;;  %8702 = vmatmul.mubr.msk.bf16.gmra.mrb[24].mxu1 %vm1400_vm4, %v12360_v52  ;;  %v9221_v33 = vpop.eup %9220  ;;  %9230 = vtanh.f32 %v12378_v0 }
 0x8c0   : > { %3277 = vrot.lane.b32.xlu1 %v9215_v56, %s9870_s30  ;;  %8705 = vmatprep.mubr.msk.bf16.mxu1 %vm9868_vm1, %v14811_v63  ;;  %9232 = vtanh.f32 %v12387_v36 }
 0x8c1   : > { %v4846_v3 = vmul.f32 %v11968_v4, %v4816_v30  ;;  %v4875_v38 = vadd.f32 %v11981_v23, %v4845_v24  ;;  %v9223_v4 = vpop.eup %9222  ;;  %v12401_v50 = vpop.xlane.xlu0 %3732  ;;  %9234 = vtanh.f32 %v12399_v12 }
 0x8c2   : > { %3271 = vrot.lane.b32.xlu0 %v9217_v45, %s9870_s30  ;;  %14824 = vst [vmem:[#allocation32_spill] sm:$0xff] %v12401_v50  ;;  %v9225_v22 = vpop.eup %9224  ;;  %9236 = vtanh.f32 %v12414_v21 }
 0x8c3   : > { %v4876_v2 = vadd.f32 %v11981_v23, %v4846_v3  ;;  %v12405_v23 = vpop.xlane.xlu1 %3729 }
 0x8c4   : > { %3281 = vrot.lane.b32.xlu1 %v9219_v20, %s9870_s30  ;;  %14825 = vst [vmem:[#allocation33_spill] sm:$0xff] %v12405_v23 }
 0x8c5   : > { %v12393_v49 = vpack.c.bf16 %v4876_v2, %v4875_v38  ;;  %v9227_v56 = vpop.eup %9226  ;;  %v12417_v30 = vpop.xlane.xlu0 %3735 }
 0x8c6   : > { %3275 = vrot.lane.b32.xlu0 %v9221_v33, %s9870_s30  ;;  %14826 = vst [vmem:[#allocation34_spill] sm:$0xff] %v12417_v30 }
 0x8c7   : > { %8706 = vmatmul.mubr.msk.bf16.gmra.mrb[28].mxu1 %vm1400_vm4, %v12393_v49  ;;  %v12419_v45 = vpop.xlane.xlu1 %3738 }
 0x8c8   : > { %3285 = vrot.lane.b32.xlu1 %v9223_v4, %s9870_s30  ;;  %8713 = vmatprep.mubr.msk.bf16.mxu1 %vm9868_vm1, %v14811_v63  ;;  %v9229_v24 = vpop.eup %9228  ;;  %14827 = vst [vmem:[#allocation35_spill] sm:$0xff] %v12419_v45 }
 0x8c9   : > { %v9231_v3 = vpop.eup %9230  ;;  %v12425_v38 = vpop.xlane.xlu0 %3741 }
 0x8ca   : > { %3279 = vrot.lane.b32.xlu0 %v9225_v22, %s9870_s30  ;;  %v9233_v20 = vpop.eup %9232  ;;  %14828 = vst [vmem:[#allocation36_spill] sm:$0xff] %v12425_v38 }
 0x8cb   : > { %v12427_v39 = vpop.xlane.xlu1 %3744  ;;  %v9235_v37 = vpop.eup %9234 }
 0x8cc   : > { %3289 = vrot.lane.b32.xlu1 %v9227_v56, %s9870_s30  ;;  %14829 = vst [vmem:[#allocation37_spill] sm:$0xff] %v12427_v39  ;;  %v9237_v2 = vpop.eup %9236 }
 0x8cd   : > { %v12430_v33 = vpop.xlane.xlu0 %3747 }
 0x8ce   : > { %3283 = vrot.lane.b32.xlu0 %v9229_v24, %s9870_s30  ;;  %14830 = vst [vmem:[#allocation38_spill] sm:$0xff] %v12430_v33 }
 0x8cf   : > { %v12432_v4 = vpop.xlane.xlu1 %3750 }
 0x8d0   : > { %3293 = vrot.lane.b32.xlu1 %v9231_v3, %s9870_s30  ;;  %14831 = vst [vmem:[#allocation39_spill] sm:$0xff] %v12432_v4 }
 0x8d1   : > { %v12435_v22 = vpop.xlane.xlu0 %3753 }
 0x8d2   : > { %3287 = vrot.lane.b32.xlu0 %v9233_v20, %s9870_s30  ;;  %14832 = vst [vmem:[#allocation40_spill] sm:$0xff] %v12435_v22 }
 0x8d3   : > { %v12437_v56 = vpop.xlane.xlu1 %3756 }
 0x8d4   : > { %14833 = vst [vmem:[#allocation41_spill] sm:$0xff] %v12437_v56 }
 0x8d5   : > { %v12439_v24 = vpop.xlane.xlu0 %3759 }
 0x8d6   : > { %3291 = vrot.lane.b32.xlu0 %v9235_v37, %s9870_s30  ;;  %14834 = vst [vmem:[#allocation42_spill] sm:$0xff] %v12439_v24  ;;  %v3057_v24 = vmul.f32 0.5, %v12143_v8  ;;  %v3063_v8 = vmul.f32 0.5, %v12181_v57  ;;  %v3066_v57 = vmul.f32 0.5, %v12241_v14  ;;  %v3069_v14 = vmul.f32 0.5, %v12230_v13 }
 0x8d7   : > { %v12441_v3 = vpop.xlane.xlu1 %3762 }
 0x8d8   : > { %14835 = vst [vmem:[#allocation43_spill] sm:$0xff] %v12441_v3  ;;  %9238 = vtanh.f32 %v3057_v24  ;;  %v3062_v24 = vmul.f32 0.5, %v12206_v5  ;;  %v3067_v5 = vmul.f32 0.5, %v12215_v29 }
 0x8d9   : > { %v12443_v20 = vpop.xlane.xlu0 %3765 }
 0x8da   : > { %3295 = vrot.lane.b32.xlu0 %v9237_v2, %s9870_s30  ;;  %14836 = vst [vmem:[#allocation44_spill] sm:$0xff] %v12443_v20 }
 0x8db   : > { %v12445_v39 = vpop.xlane.xlu1 %3768 }
 0x8dc   : > { %14837 = vst [vmem:[#allocation45_spill] sm:$0xff] %v12445_v39  ;;  %v3059_v39 = vmul.f32 0.5, %v12155_v18 }
 0x8dd   : > { %v12447_v37 = vpop.xlane.xlu0 %3771 }
 0x8de   : > { %14838 = vst [vmem:[#allocation46_spill] sm:$0xff] %v12447_v37  ;;  %v3058_v37 = vmul.f32 0.5, %v12173_v28  ;;  %9240 = vtanh.f32 %v3059_v39  ;;  %v3065_v39 = vmul.f32 0.5, %v12196_v6 }
 0x8df   : > { %v12449_v38 = vpop.xlane.xlu1 %3774 }
 0x8e0   : > { %14839 = vst [vmem:[#allocation47_spill] sm:$0xff] %v12449_v38  ;;  %9242 = vtanh.f32 %v3058_v37 }
 0x8e1   : > { %v12451_v33 = vpop.xlane.xlu0 %3777 }
 0x8e2   : > { %14840 = vst [vmem:[#allocation48_spill] sm:$0xff] %v12451_v33  ;;  %v9239_v18 = vpop.eup %9238 }
 0x8e3   : > { %v12453_v4 = vpop.xlane.xlu1 %3780  ;;  %v3117_v37 = vmul.f32 0.5, %v9239_v18  ;;  %v3068_v18 = vmul.f32 0.5, %v12257_v32  ;;  %v3070_v32 = vmul.f32 0.5, %v12277_v43  ;;  %v3072_v43 = vmul.f32 0.5, %v12293_v51 }
 0x8e4   : > { %14841 = vst [vmem:[#allocation49_spill] sm:$0xff] %v12453_v4  ;;  %v3061_v4 = vmul.f32 0.5, %v12165_v60  ;;  %v3064_v60 = vmul.f32 0.5, %v12222_v27 }
 0x8e5   : > { %v12455_v2 = vpop.xlane.xlu0 %3783 }
 0x8e6   : > { %14842 = vst [vmem:[#allocation50_spill] sm:$0xff] %v12455_v2  ;;  %9244 = vtanh.f32 %v3061_v4 }
 0x8e7   : > { %v12457_v22 = vpop.xlane.xlu1 %3786 }
 0x8e8   : > { %14843 = vst [vmem:[#allocation51_spill] sm:$0xff] %v12457_v22  ;;  %v3060_v22 = vmul.f32 0.5, %v12188_v7 }
 0x8e9   : > { %v12460_v56 = vpop.xlane.xlu0 %3789 }
 0x8ea   : > { %14844 = vst [vmem:[#allocation52_spill] sm:$0xff] %v12460_v56  ;;  %9246 = vtanh.f32 %v3060_v22 }
 0x8eb   : > { %v12462_v3 = vpop.xlane.xlu1 %3792  ;;  %9248 = vtanh.f32 %v3063_v8 }
 0x8ec   : > { %14845 = vst [vmem:[#allocation53_spill] sm:$0xff] %v12462_v3  ;;  %9250 = vtanh.f32 %v3062_v24 }
 0x8ed   : > { %v12466_v38 = vpop.xlane.xlu0 %3795  ;;  %9252 = vtanh.f32 %v3065_v39 }
 0x8ee   : > { %14846 = vst [vmem:[#allocation54_spill] sm:$0xff] %v12466_v38  ;;  %9254 = vtanh.f32 %v3064_v60 }
 0x8ef   : > { %v12469_v33 = vpop.xlane.xlu1 %3798  ;;  %9256 = vtanh.f32 %v3066_v57 }
 0x8f0   : > { %14847 = vst [vmem:[#allocation55_spill] sm:$0xff] %v12469_v33  ;;  %v9241_v33 = vpop.eup %9240  ;;  %9258 = vtanh.f32 %v3067_v5  ;;  %v3071_v5 = vmul.f32 0.5, %v12250_v26  ;;  %v3073_v26 = vmul.f32 0.5, %v12266_v11 }
 0x8f1   : > { %v12474_v3 = vpop.xlane.xlu0 %3801  ;;  %v9243_v4 = vpop.eup %9242  ;;  %v3119_v8 = vmul.f32 0.5, %v9241_v33 }
 0x8f2   : > { %14848 = vst [vmem:[#allocation56_spill] sm:$0xff] %v12474_v3  ;;  %v9245_v6 = vpop.eup %9244  ;;  %v3118_v3 = vmul.f32 0.5, %v9243_v4 }
 0x8f3   : > { %v12476_v28 = vpop.xlane.xlu1 %3804  ;;  %v12493_v29 = vadd.f32 0.5, %v3119_v8  ;;  %v3121_v39 = vmul.f32 0.5, %v9245_v6 }
 0x8f4   : > { %14849 = vst [vmem:[#allocation57_spill] sm:$0xff] %v12476_v28  ;;  %v12486_v28 = vadd.f32 0.5, %v3117_v37  ;;  %v9247_v27 = vpop.eup %9246  ;;  %v12495_v37 = vadd.f32 0.5, %v3118_v3 }
 0x8f5   : > { %v12483_v22 = vpop.xlane.xlu0 %3807  ;;  %v9249_v60 = vpop.eup %9248  ;;  %v3120_v4 = vmul.f32 0.5, %v9247_v27 }
 0x8f6   : > { %14851 = vst [vmem:[#allocation59_spill] sm:$0xff] %v12483_v22  ;;  %v9251_v22 = vpop.eup %9250  ;;  %v3123_v8 = vmul.f32 0.5, %v9249_v60 }
 0x8f7   : > { %v9253_v6 = vpop.eup %9252  ;;  %v12503_v27 = vadd.f32 0.5, %v3120_v4 }
 0x8f8   : > { %v12509_v60 = vadd.f32 0.5, %v3123_v8 }
 0x914   : > { %v12480_v7 = vpop.xlane.xlu1 %3810 }
 0x915   : > { %14850 = vst [vmem:[#allocation58_spill] sm:$0xff] %v12480_v7 }
 0x918   : > { %v3238_v24 = vpop.permute.xlu1 %3237 }
 0x919   : > { %v3327_v7 = vmul.f32 %v3238_v24, %v12486_v28  ;;  %v12490_v38 = vpop.xlane.xlu0 %3813 }
 0x91a   : > { %14852 = vst [vmem:[#allocation60_spill] sm:$0xff] %v12490_v38  ;;  %v9255_v38 = vpop.eup %9254 }
 0x91b   : > { %9260 = vtanh.f32 %v3327_v7  ;;  %v12501_v7 = vadd.f32 0.5, %v3121_v39 }
 0x91c   : > { %v3242_v33 = vpop.permute.xlu1 %3241  ;;  %9262 = vtanh.f32 %v3068_v18  ;;  %v3122_v18 = vmul.f32 0.5, %v9251_v22 }
 0x91d   : > { %v3329_v57 = vmul.f32 %v3242_v33, %v12493_v29  ;;  %v3240_v24 = vpop.permute.xlu0 %3239  ;;  %9264 = vtanh.f32 %v3069_v14 }
 0x91e   : > { %v3328_v13 = vmul.f32 %v3240_v24, %v12495_v37  ;;  %v3125_v24 = vmul.f32 0.5, %v9253_v6 }
 0x91f   : > { %9266 = vtanh.f32 %v3329_v57  ;;  %v9257_v57 = vpop.eup %9256 }
 0x920   : > { %9268 = vtanh.f32 %v3328_v13  ;;  %v3246_v3 = vpop.permute.xlu1 %3245  ;;  %v9259_v4 = vpop.eup %9258  ;;  %v12511_v13 = vadd.f32 0.5, %v3122_v18 }
 0x921   : > { %9270 = vtanh.f32 %v3070_v32  ;;  %v3331_v14 = vmul.f32 %v3246_v3, %v12501_v7  ;;  %v3244_v33 = vpop.permute.xlu0 %3243  ;;  %v3124_v32 = vmul.f32 0.5, %v9255_v38  ;;  %v3074_v3 = vmul.f32 0.5, %v12313_v15 }
 0x922   : > { %9272 = vtanh.f32 %v3071_v5  ;;  %v3330_v39 = vmul.f32 %v3244_v33, %v12503_v27  ;;  %v3075_v33 = vmul.f32 0.5, %v12286_v16  ;;  %v3127_v18 = vmul.f32 0.5, %v9259_v4 }
 0x923   : > { %9274 = vtanh.f32 %v3331_v14  ;;  %v12518_v14 = vadd.f32 0.5, %v3125_v24  ;;  %v3126_v15 = vmul.f32 0.5, %v9257_v57 }
 0x924   : > { %9276 = vtanh.f32 %v3330_v39  ;;  %v3250_v22 = vpop.permute.xlu1 %3249  ;;  %v12520_v39 = vadd.f32 0.5, %v3124_v32  ;;  %v12528_v32 = vadd.f32 0.5, %v3127_v18  ;;  %v3079_v18 = vmul.f32 0.5, %v12322_v19 }
 0x925   : > { %v9261_v51 = vpop.eup %9260  ;;  %9278 = vtanh.f32 %v3072_v43  ;;  %v3333_v5 = vmul.f32 %v3250_v22, %v12509_v60  ;;  %v3248_v11 = vpop.permute.xlu0 %3247 }
 0x926   : > { %9280 = vtanh.f32 %v3073_v26  ;;  %v3332_v8 = vmul.f32 %v3248_v11, %v12511_v13  ;;  %3417 = vrot.lane.b32.xlu1 %v9261_v51, %s14784_s24  ;;  %v9263_v6 = vpop.eup %9262  ;;  %v3076_v26 = vmul.f32 0.5, %v12329_v53  ;;  %v3077_v51 = vmul.f32 0.5, %v12302_v62 }
 0x927   : > { %9282 = vtanh.f32 %v3333_v5  ;;  %v9265_v38 = vpop.eup %9264  ;;  %v3128_v62 = vmul.f32 0.5, %v9263_v6 }
 0x928   : > { %9284 = vtanh.f32 %v3332_v8  ;;  %v3254_v43 = vpop.permute.xlu1 %3253  ;;  %v3129_v53 = vmul.f32 0.5, %v9265_v38 }
 0x929   : > { %v9267_v22 = vpop.eup %9266  ;;  %9286 = vtanh.f32 %v3074_v3  ;;  %v3335_v16 = vmul.f32 %v3254_v43, %v12518_v14  ;;  %v3252_v11 = vpop.permute.xlu0 %3251 }
 0x92a   : > { %v9269_v56 = vpop.eup %9268  ;;  %9288 = vtanh.f32 %v3075_v33  ;;  %v3334_v24 = vmul.f32 %v3252_v11, %v12520_v39  ;;  %3421 = vrot.lane.b32.xlu1 %v9267_v22, %s14784_s24  ;;  %v4971_v4 = vpop.f32.mrb[228].mxu1  ;;  %v12530_v33 = vadd.f32 0.5, %v3126_v15  ;;  %v3078_v22 = vmul.f32 0.5, %v12349_v25 }
 0x92b   : > { %v9271_v5 = vpop.eup %9270  ;;  %9290 = vtanh.f32 %v3335_v16  ;;  %3419 = vrot.lane.b32.xlu0 %v9269_v56, %s14784_s24  ;;  %v8651_v57 = vpop.f32.mrb[229].mxu1  ;;  %v12538_v6 = vadd.f32 0.5, %v3129_v53  ;;  %v3081_v53 = vmul.f32 0.5, %v12338_v48 }
 0x92c   : > { %v9273_v3 = vpop.eup %9272  ;;  %9292 = vtanh.f32 %v3334_v24  ;;  %v3258_v8 = vpop.permute.xlu1 %3257 }
 0x92d   : > { %v4974_v43 = vpop.f32.mrb[230].mxu1  ;;  %v9275_v2 = vpop.eup %9274  ;;  %9294 = vtanh.f32 %v3076_v26  ;;  %v3337_v11 = vmul.f32 %v3258_v8, %v12528_v32  ;;  %v3131_v25 = vmul.f32 0.5, %v9273_v3  ;;  %v14853_v8 = vmov 0  }
 0x92e   : > { %v5090_v16 = vpack.c.bf16 %v4974_v43, %v4971_v4  ;;  %v3256_v20 = vpop.permute.xlu0 %3255  ;;  %v8652_v56 = vpop.f32.mrb[231].mxu1  ;;  %9296 = vtanh.f32 %v3077_v51  ;;  %3425 = vrot.lane.b32.xlu1 %v9275_v2, %s14784_s24  ;;  %v12540_v4 = vadd.f32 0.5, %v3128_v62  ;;  %v3130_v51 = vmul.f32 0.5, %v9271_v5 }
 0x92f   : > { %v9277_v57 = vpop.eup %9276  ;;  %v3336_v38 = vmul.f32 %v3256_v20, %v12530_v33  ;;  %9298 = vtanh.f32 %v3337_v11  ;;  %v3080_v20 = vmul.f32 0.5, %v12367_v44 }
 0x930   : > { %v9279_v15 = vpop.eup %9278  ;;  %3423 = vrot.lane.b32.xlu0 %v9277_v57, %s14784_s24  ;;  %5106 = vmatpush1.bf16.msra.mxu0 %v5090_v16  ;;  %v3262_v24 = vpop.permute.xlu1 %3261 }
 0x931   : > { %v9281_v26 = vpop.eup %9280  ;;  %9300 = vtanh.f32 %v3336_v38  ;;  %5107 = vmatprep.subr.bf16.mxu0 %v14853_v8  ;;  %v3339_v2 = vmul.f32 %v3262_v24, %v12538_v6  ;;  %v3132_v48 = vmul.f32 0.5, %v9279_v15 }
 0x932   : > { %v9283_v19 = vpop.eup %9282  ;;  %9302 = vtanh.f32 %v3078_v22  ;;  %v3260_v43 = vpop.permute.xlu0 %3259  ;;  %v12549_v22 = vadd.f32 0.5, %v3131_v25  ;;  %v3133_v44 = vmul.f32 0.5, %v9281_v26  ;;  %v3083_v25 = vmul.f32 0.5, %v12358_v54 }
 0x933   : > { %v9285_v11 = vpop.eup %9284  ;;  %9304 = vtanh.f32 %v3079_v18  ;;  %v3338_v3 = vmul.f32 %v3260_v43, %v12540_v4  ;;  %3429 = vrot.lane.b32.xlu1 %v9283_v19, %s14784_s24  ;;  %v4979_v62 = vpop.f32.mrb[232].mxu1  ;;  %v12551_v18 = vadd.f32 0.5, %v3130_v51  ;;  %v3082_v19 = vmul.f32 0.5, %v12387_v36 }
 0x934   : > { %v9287_v16 = vpop.eup %9286  ;;  %9306 = vtanh.f32 %v3339_v2  ;;  %3427 = vrot.lane.b32.xlu0 %v9285_v11, %s14784_s24  ;;  %v8655_v5 = vpop.f32.mrb[233].mxu1  ;;  %v12559_v15 = vadd.f32 0.5, %v3133_v44  ;;  %v3085_v44 = vmul.f32 0.5, %v12378_v0 }
 0x935   : > { %v9289_v56 = vpop.eup %9288  ;;  %9308 = vtanh.f32 %v3338_v3  ;;  %v3266_v57 = vpop.permute.xlu1 %3265 }
 0x936   : > { %v4982_v38 = vpop.f32.mrb[234].mxu1  ;;  %v9291_v24 = vpop.eup %9290  ;;  %9310 = vtanh.f32 %v3080_v20  ;;  %v3341_v43 = vmul.f32 %v3266_v57, %v12549_v22  ;;  %v3135_v36 = vmul.f32 0.5, %v9289_v56 }
 0x937   : > { %v5091_v2 = vpack.c.bf16 %v4982_v38, %v4979_v62  ;;  %v3264_v45 = vpop.permute.xlu0 %3263  ;;  %v8656_v11 = vpop.f32.mrb[235].mxu1  ;;  %9312 = vtanh.f32 %v3081_v53  ;;  %3433 = vrot.lane.b32.xlu1 %v9291_v24, %s14784_s24  ;;  %v12561_v62 = vadd.f32 0.5, %v3132_v48  ;;  %v3134_v53 = vmul.f32 0.5, %v9287_v16 }
 0x938   : > { %v9293_v5 = vpop.eup %9292  ;;  %v3340_v26 = vmul.f32 %v3264_v45, %v12551_v18  ;;  %9314 = vtanh.f32 %v3341_v43  ;;  %v3084_v45 = vmul.f32 0.5, %v12399_v12 }
 0x939   : > { %v9295_v51 = vpop.eup %9294  ;;  %3431 = vrot.lane.b32.xlu0 %v9293_v5, %s14784_s24  ;;  %5108 = vmatpush1.bf16.msra.mxu0 %v5091_v2  ;;  %v3270_v3 = vpop.permute.xlu1 %3269 }
 0x93a   : > { %v9297_v20 = vpop.eup %9296  ;;  %9316 = vtanh.f32 %v3340_v26  ;;  %5109 = vmatprep.subr.bf16.mxu0 %v14853_v8  ;;  %v3343_v57 = vmul.f32 %v3270_v3, %v12559_v15  ;;  %v4987_v48 = vpop.f32.mrb[236].mxu1  ;;  %v3136_v0 = vmul.f32 0.5, %v9295_v51 }
 0x93b   : > { %v9299_v54 = vpop.eup %9298  ;;  %9318 = vtanh.f32 %v3082_v19  ;;  %v3268_v38 = vpop.permute.xlu0 %3267  ;;  %v12570_v19 = vadd.f32 0.5, %v3135_v36  ;;  %v3137_v12 = vmul.f32 0.5, %v9297_v20  ;;  %v3086_v36 = vmul.f32 0.5, %v12414_v21 }
 0x93c   : > { %v9301_v24 = vpop.eup %9300  ;;  %9320 = vtanh.f32 %v3083_v25  ;;  %v3342_v56 = vmul.f32 %v3268_v38, %v12561_v62  ;;  %3437 = vrot.lane.b32.xlu1 %v9299_v54, %s14784_s24  ;;  %v8659_v16 = vpop.f32.mrb[237].mxu1  ;;  %v12572_v25 = vadd.f32 0.5, %v3134_v53 }
 0x93d   : > { %v9303_v43 = vpop.eup %9302  ;;  %9322 = vtanh.f32 %v3343_v57  ;;  %3435 = vrot.lane.b32.xlu0 %v9301_v24, %s14784_s24  ;;  %v3274_v11 = vpop.permute.xlu1 %3273  ;;  %v12579_v51 = vadd.f32 0.5, %v3137_v12 }
 0x93e   : > { %v9305_v2 = vpop.eup %9304  ;;  %9324 = vtanh.f32 %v3342_v56  ;;  %v4990_v5 = vpop.f32.mrb[238].mxu1  ;;  %v3345_v3 = vmul.f32 %v3274_v11, %v12570_v19 }
 0x93f   : > { %v9307_v26 = vpop.eup %9306  ;;  %9326 = vtanh.f32 %v3084_v45  ;;  %v5092_v54 = vpack.c.bf16 %v4990_v5, %v4987_v48  ;;  %v3272_v38 = vpop.permute.xlu0 %3271  ;;  %v3139_v53 = vmul.f32 0.5, %v9305_v2  ;;  %v12581_v48 = vadd.f32 0.5, %v3136_v0 }
 0x940   : > { %v8660_v57 = vpop.f32.mrb[239].mxu1  ;;  %v9309_v50 = vpop.eup %9308  ;;  %9328 = vtanh.f32 %v3085_v44  ;;  %v3344_v20 = vmul.f32 %v3272_v38, %v12572_v25  ;;  %3441 = vrot.lane.b32.xlu1 %v9307_v26, %s14784_s24  ;;  %v3138_v44 = vmul.f32 0.5, %v9303_v43 }
 0x941   : > { %v9311_v24 = vpop.eup %9310  ;;  %9330 = vtanh.f32 %v3345_v3  ;;  %3439 = vrot.lane.b32.xlu0 %v9309_v50, %s14784_s24  ;;  %5110 = vmatpush1.bf16.msra.mxu0 %v5092_v54  ;;  %v3278_v56 = vpop.permute.xlu1 %3277  ;;  %v12588_v26 = vadd.f32 0.5, %v3139_v53 }
 0x942   : > { %v9313_v45 = vpop.eup %9312  ;;  %9332 = vtanh.f32 %v3344_v20  ;;  %5111 = vmatprep.subr.bf16.mxu0 %v14853_v8  ;;  %v3347_v16 = vmul.f32 %v3278_v56, %v12579_v51  ;;  %v4995_v12 = vpop.f32.mrb[240].mxu1  ;;  %v12590_v57 = vadd.f32 0.5, %v3138_v44 }
 0x943   : > { %v9315_v21 = vpop.eup %9314  ;;  %v3276_v11 = vpop.permute.xlu0 %3275  ;;  %9334 = vtanh.f32 %v3086_v36  ;;  %v3141_v43 = vmul.f32 0.5, %v9313_v45  ;;  %v3140_v36 = vmul.f32 0.5, %v9311_v24 }
 0x944   : > { %v9317_v5 = vpop.eup %9316  ;;  %v3346_v50 = vmul.f32 %v3276_v11, %v12581_v48  ;;  %3445 = vrot.lane.b32.xlu1 %v9315_v21, %s14784_s24  ;;  %9336 = vtanh.f32 %v3347_v16  ;;  %v8663_v0 = vpop.f32.mrb[241].mxu1 }
 0x945   : > { %v9319_v2 = vpop.eup %9318  ;;  %3443 = vrot.lane.b32.xlu0 %v9317_v5, %s14784_s24  ;;  %v3282_v54 = vpop.permute.xlu1 %3281  ;;  %v12596_v45 = vadd.f32 0.5, %v3141_v43  ;;  %v12598_v0 = vadd.f32 0.5, %v3140_v36 }
 0x946   : > { %v9321_v3 = vpop.eup %9320  ;;  %9338 = vtanh.f32 %v3346_v50  ;;  %v4998_v38 = vpop.f32.mrb[242].mxu1  ;;  %v3349_v56 = vmul.f32 %v3282_v54, %v12588_v26 }
 0x947   : > { %v9323_v20 = vpop.eup %9322  ;;  %v5093_v21 = vpack.c.bf16 %v4998_v38, %v4995_v12  ;;  %v3280_v11 = vpop.permute.xlu0 %3279  ;;  %v3143_v44 = vmul.f32 0.5, %v9321_v3  ;;  %v3142_v12 = vmul.f32 0.5, %v9319_v2 }
 0x948   : > { %v8664_v30 = vpop.f32.mrb[243].mxu1  ;;  %v9325_v16 = vpop.eup %9324  ;;  %v3348_v5 = vmul.f32 %v3280_v11, %v12590_v57  ;;  %3449 = vrot.lane.b32.xlu1 %v9323_v20, %s14784_s24  ;;  %9340 = vtanh.f32 %v3349_v56 }
 0x949   : > { %v9327_v53 = vpop.eup %9326  ;;  %3447 = vrot.lane.b32.xlu0 %v9325_v16, %s14784_s24  ;;  %5112 = vmatpush1.bf16.msra.mxu0 %v5093_v21  ;;  %v3286_v50 = vpop.permute.xlu1 %3285  ;;  %v12605_v21 = vadd.f32 0.5, %v3143_v44 }
 0x94a   : > { %v9329_v24 = vpop.eup %9328  ;;  %9342 = vtanh.f32 %v3348_v5  ;;  %5113 = vmatprep.subr.bf16.mxu0 %v14853_v8  ;;  %v3351_v54 = vmul.f32 %v3286_v50, %v12596_v45  ;;  %v5003_v43 = vpop.f32.mrb[244].mxu1  ;;  %v12607_v5 = vadd.f32 0.5, %v3142_v12  ;;  %v3144_v50 = vmul.f32 0.5, %v9327_v53 }
 0x94b   : > { %v9331_v30 = vpop.eup %9330  ;;  %v3284_v38 = vpop.permute.xlu0 %3283  ;;  %v3145_v36 = vmul.f32 0.5, %v9329_v24 }
 0x94c   : > { %v9333_v20 = vpop.eup %9332  ;;  %v3350_v56 = vmul.f32 %v3284_v38, %v12598_v0  ;;  %3453 = vrot.lane.b32.xlu1 %v9331_v30, %s14784_s24  ;;  %9344 = vtanh.f32 %v3351_v54  ;;  %v8667_v3 = vpop.f32.mrb[245].mxu1  ;;  %v12615_v53 = vadd.f32 0.5, %v3144_v50 }
 0x94d   : > { %3451 = vrot.lane.b32.xlu0 %v9333_v20, %s14784_s24  ;;  %v9335_v2 = vpop.eup %9334  ;;  %v3290_v11 = vpop.permute.xlu1 %3289  ;;  %v12613_v44 = vadd.f32 0.5, %v3145_v36 }
 0x94e   : > { %9346 = vtanh.f32 %v3350_v56  ;;  %v5006_v16 = vpop.f32.mrb[246].mxu1  ;;  %v9337_v23 = vpop.eup %9336  ;;  %v3353_v38 = vmul.f32 %v3290_v11, %v12605_v21  ;;  %v3146_v12 = vmul.f32 0.5, %v9335_v2 }
 0x94f   : > { %v5094_v46 = vpack.c.bf16 %v5006_v16, %v5003_v43  ;;  %v3288_v30 = vpop.permute.xlu0 %3287  ;;  %v8668_v31 = vpop.f32.mrb[247].mxu1 }
 0x950   : > { %v9339_v54 = vpop.eup %9338  ;;  %v3352_v20 = vmul.f32 %v3288_v30, %v12607_v5  ;;  %3457 = vrot.lane.b32.xlu1 %v9337_v23, %s14784_s24  ;;  %9348 = vtanh.f32 %v3353_v38  ;;  %v12622_v16 = vadd.f32 0.5, %v3146_v12 }
 0x951   : > { %3455 = vrot.lane.b32.xlu0 %v9339_v54, %s14784_s24  ;;  %5114 = vmatpush1.bf16.msra.mxu0 %v5094_v46  ;;  %v3294_v24 = vpop.permute.xlu1 %3293 }
 0x952   : > { %9350 = vtanh.f32 %v3352_v20  ;;  %5115 = vmatprep.subr.bf16.mxu0 %v14853_v8  ;;  %v9341_v56 = vpop.eup %9340  ;;  %v3355_v31 = vmul.f32 %v3294_v24, %v12613_v44  ;;  %v5011_v11 = vpop.f32.mrb[248].mxu1 }
 0x953   : > { %v3292_v43 = vpop.permute.xlu0 %3291  ;;  %v8671_v46 = vpop.f32.mrb[249].mxu1 }
 0x954   : > { %v9343_v3 = vpop.eup %9342  ;;  %v3354_v23 = vmul.f32 %v3292_v43, %v12615_v53  ;;  %3461 = vrot.lane.b32.xlu1 %v9341_v56, %s14784_s24  ;;  %9352 = vtanh.f32 %v3355_v31  ;;  %v5014_v36 = vpop.f32.mrb[250].mxu1 }
 0x955   : > { %3459 = vrot.lane.b32.xlu0 %v9343_v3, %s14784_s24  ;;  %v5095_v50 = vpack.c.bf16 %v5014_v36, %v5011_v11  ;;  %v8672_v30 = vpop.f32.mrb[251].mxu1 }
 0x956   : > { %9354 = vtanh.f32 %v3354_v23  ;;  %v9345_v2 = vpop.eup %9344 }
 0x957   : > { %v3296_v38 = vpop.permute.xlu0 %3295  ;;  %5116 = vmatpush1.bf16.msra.mxu0 %v5095_v50 }
 0x958   : > { %v9347_v54 = vpop.eup %9346  ;;  %v3356_v20 = vmul.f32 %v3296_v38, %v12622_v16  ;;  %3465 = vrot.lane.b32.xlu1 %v9345_v2, %s14784_s24  ;;  %5117 = vmatprep.subr.bf16.mxu0 %v14853_v8 }
 0x959   : > { %3463 = vrot.lane.b32.xlu0 %v9347_v54, %s14784_s24 }
 0x95a   : > { %9356 = vtanh.f32 %v3356_v20  ;;  %v9349_v24 = vpop.eup %9348  ;;  %v5019_v12 = vpop.f32.mrb[252].mxu1 }
 0x95b   : > { %v8675_v31 = vpop.f32.mrb[253].mxu1 }
 0x95c   : > { %v9351_v56 = vpop.eup %9350  ;;  %3469 = vrot.lane.b32.xlu1 %v9349_v24, %s14784_s24  ;;  %v5022_v43 = vpop.f32.mrb[254].mxu1 }
 0x95d   : > { %3467 = vrot.lane.b32.xlu0 %v9351_v56, %s14784_s24  ;;  %v5096_v23 = vpack.c.bf16 %v5022_v43, %v5019_v12  ;;  %v8676_v11 = vpop.f32.mrb[255].mxu1 }
 0x95e   : > { %v9353_v3 = vpop.eup %9352 }
 0x95f   : > { %5118 = vmatpush1.bf16.msra.mxu0 %v5096_v23 }
 0x960   : > { %v9355_v46 = vpop.eup %9354  ;;  %3473 = vrot.lane.b32.xlu1 %v9353_v3, %s14784_s24  ;;  %5119 = vmatprep.subr.bf16.mxu0 %v14853_v8 }
 0x961   : > { %3471 = vrot.lane.b32.xlu0 %v9355_v46, %s14784_s24 }
 0x962   : > { %v5027_v2 = vpop.f32.mrb[0].mxu1 }
 0x963   : > { %v8679_v50 = vpop.f32.mrb[1].mxu1 }
 0x964   : > { %v9357_v36 = vpop.eup %9356  ;;  %v5030_v38 = vpop.f32.mrb[2].mxu1 }
 0x965   : > { %3475 = vrot.lane.b32.xlu0 %v9357_v36, %s14784_s24  ;;  %v5097_v30 = vpack.c.bf16 %v5030_v38, %v5027_v2  ;;  %v8680_v54 = vpop.f32.mrb[3].mxu1 }
 0x967   : > { %5120 = vmatpush1.bf16.msra.mxu0 %v5097_v30 }
 0x968   : > { %5121 = vmatprep.subr.bf16.mxu0 %v14853_v8 }
 0x96a   : > { %v5035_v20 = vpop.f32.mrb[4].mxu1 }
 0x96b   : > { %v8683_v24 = vpop.f32.mrb[5].mxu1 }
 0x96c   : > { %v5038_v56 = vpop.f32.mrb[6].mxu1 }
 0x96d   : > { %v5098_v12 = vpack.c.bf16 %v5038_v56, %v5035_v20  ;;  %v8684_v31 = vpop.f32.mrb[7].mxu1 }
 0x96f   : > { %5122 = vmatpush1.bf16.msra.mxu0 %v5098_v12 }
 0x970   : > { %5123 = vmatprep.subr.bf16.mxu0 %v14853_v8 }
 0x972   : > { %v5043_v43 = vpop.f32.mrb[8].mxu1 }
 0x973   : > { %v8687_v3 = vpop.f32.mrb[9].mxu1 }
 0x974   : > { %v5046_v23 = vpop.f32.mrb[10].mxu1 }
 0x975   : > { %v5099_v11 = vpack.c.bf16 %v5046_v23, %v5043_v43  ;;  %v8688_v46 = vpop.f32.mrb[11].mxu1 }
 0x977   : > { %5124 = vmatpush1.bf16.msra.mxu0 %v5099_v11 }
 0x978   : > { %5125 = vmatprep.subr.bf16.mxu0 %v14853_v8 }
 0x97a   : > { %v5051_v36 = vpop.f32.mrb[12].mxu1 }
 0x97b   : > { %v8691_v2 = vpop.f32.mrb[13].mxu1 }
 0x97c   : > { %v5054_v50 = vpop.f32.mrb[14].mxu1 }
 0x97d   : > { %v5100_v38 = vpack.c.bf16 %v5054_v50, %v5051_v36  ;;  %v8692_v30 = vpop.f32.mrb[15].mxu1 }
 0x97f   : > { %5126 = vmatpush1.bf16.msra.mxu0 %v5100_v38 }
 0x980   : > { %5127 = vmatprep.subr.bf16.mxu0 %v14853_v8 }
 0x982   : > { %v5059_v54 = vpop.f32.mrb[16].mxu1 }
 0x983   : > { %v8695_v20 = vpop.f32.mrb[17].mxu1 }
 0x984   : > { %v5062_v24 = vpop.f32.mrb[18].mxu1 }
 0x985   : > { %v5101_v56 = vpack.c.bf16 %v5062_v24, %v5059_v54  ;;  %v8696_v12 = vpop.f32.mrb[19].mxu1 }
 0x987   : > { %5128 = vmatpush1.bf16.msra.mxu0 %v5101_v56 }
 0x988   : > { %5129 = vmatprep.subr.bf16.mxu0 %v14853_v8 }
 0x98a   : > { %v5067_v31 = vpop.f32.mrb[20].mxu1 }
 0x98b   : > { %v8699_v43 = vpop.f32.mrb[21].mxu1 }
 0x98c   : > { %v5070_v3 = vpop.f32.mrb[22].mxu1 }
 0x98d   : > { %v5102_v23 = vpack.c.bf16 %v5070_v3, %v5067_v31  ;;  %v8700_v11 = vpop.f32.mrb[23].mxu1 }
 0x98f   : > { %5130 = vmatpush1.bf16.msra.mxu0 %v5102_v23 }
 0x990   : > { %5131 = vmatprep.subr.bf16.mxu0 %v14853_v8 }
 0x992   : > { %v5075_v46 = vpop.f32.mrb[24].mxu1 }
 0x993   : > { %v8703_v36 = vpop.f32.mrb[25].mxu1 }
 0x994   : > { %v5078_v2 = vpop.f32.mrb[26].mxu1 }
 0x995   : > { %v5103_v50 = vpack.c.bf16 %v5078_v2, %v5075_v46  ;;  %v8704_v38 = vpop.f32.mrb[27].mxu1 }
 0x997   : > { %5132 = vmatpush1.bf16.msra.mxu0 %v5103_v50 }
 0x998   : > { %v3418_v30 = vpop.permute.xlu1 %3417  ;;  %5133 = vmatprep.subr.bf16.mxu0 %v14853_v8 }
 0x999   : > { %v3507_v54 = vmul.f32 %v3418_v30, %v12486_v28 }
 0x99a   : > { %v5083_v20 = vpop.f32.mrb[28].mxu1 }
 0x99b   : > { %v3815_v24 = vmax.f32 %v3507_v54, 0.0  ;;  %v8707_v56 = vpop.f32.mrb[29].mxu1  ;;  %v9783_v54 = vld [vmem:[%s14792_s29] ss:$8 sps:$4 sm:$0xff]  }
 0x99c   : > { %v3422_v12 = vpop.permute.xlu1 %3421  ;;  %v5086_v31 = vpop.f32.mrb[30].mxu1 }
 0x99d   : > { %v3853_v43 = vmul.f32 %v11972_v58, %v3815_v24  ;;  %v3509_v3 = vmul.f32 %v3422_v12, %v12493_v29  ;;  %v5104_v23 = vpack.c.bf16 %v5086_v31, %v5083_v20  ;;  %v3420_v11 = vpop.permute.xlu0 %3419  ;;  %v8708_v36 = vpop.f32.mrb[31].mxu1  ;;  %v9785_v20 = vld [vmem:[%s14766_s10] sm:$0xff]  }
 0x99e   : > { %v3508_v46 = vmul.f32 %v3420_v11, %v12495_v37  ;;  %v9784_v37 = vld [vmem:[%s14792_s29 + $0x14] ss:$8 sps:$4 sm:$0xff]  }
 0x99f   : > { %3913 = vrot.lane.b32.xlu0 %v3853_v43, %s9872_s21  ;;  %5134 = vmatpush1.bf16.msra.mxu0 %v5104_v23  ;;  %v3817_v28 = vmax.f32 %v3509_v3, 0.0  ;;  %v9786_v23 = vld [vmem:[%s14766_s10 + $0x8] sm:$0xff]  }
 0x9a0   : > { %v3816_v8 = vmax.f32 %v3508_v46, 0.0  ;;  %v3426_v2 = vpop.permute.xlu1 %3425  ;;  %8773 = vmatprep.subr.bf16.mxu0 %v14811_v63 }
 0x9a1   : > { %v3511_v30 = vmul.f32 %v3426_v2, %v12501_v7 }
 0x9a2   : > { %v3424_v50 = vpop.permute.xlu0 %3423  ;;  %v3854_v38 = vmul.f32 %v11972_v58, %v3816_v8  ;;  %5138 = vmatmul.mubr.bf16.vlgmr.msra.gmra.mrb[56].mxu0 %v9783_v54 }
 0x9a3   : > { %v3510_v29 = vmul.f32 %v3424_v50, %v12503_v27  ;;  %8036 = vmatprep.mubr.msk.bf16.mxu0 %vm1072_vm3, %v9784_v37  ;;  %8774 = vmatpush3.bf16.msra.mxu0 %v9785_v20  ;;  %v3855_v27 = vmul.f32 %v11972_v58, %v3817_v28  ;;  %v3819_v12 = vmax.f32 %v3511_v30, 0.0  ;;  %v9787_v50 = vld [vmem:[%s14792_s29 + $0x10] ss:$8 sps:$4 sm:$0xff]  }
 0x9a4   : > { %3915 = vrot.lane.b32.xlu1 %v3854_v38, %s9872_s21  ;;  %8775 = vmatprep.subr.bf16.mxu0 %v14811_v63  ;;  %v9788_v38 = vld [vmem:[%s14792_s29 + $0x24] ss:$8 sps:$4 sm:$0xff]  }
 0x9a5   : > { %v3818_v24 = vmax.f32 %v3510_v29, 0.0  ;;  %v3430_v7 = vpop.permute.xlu1 %3429  ;;  %v3857_v2 = vmul.f32 %v11972_v58, %v3819_v12 }
 0x9a6   : > { %v3428_v56 = vpop.permute.xlu0 %3427  ;;  %v3513_v43 = vmul.f32 %v3430_v7, %v12509_v60 }
 0x9a7   : > { %v3856_v31 = vmul.f32 %v11972_v58, %v3818_v24  ;;  %v3512_v3 = vmul.f32 %v3428_v56, %v12511_v13  ;;  %8776 = vmatpush3.bf16.msra.mxu0 %v9786_v23 }
 0x9a8   : > { %3917 = vrot.lane.b32.xlu1 %v3855_v27, %s9872_s21  ;;  %v3821_v28 = vmax.f32 %v3513_v43, 0.0 }
 0x9a9   : > { %v3820_v11 = vmax.f32 %v3512_v3, 0.0  ;;  %v3434_v36 = vpop.permute.xlu1 %3433  ;;  %3919 = vrot.lane.b32.xlu0 %v3856_v31, %s9872_s21 }
 0x9aa   : > { %v3515_v46 = vmul.f32 %v3434_v36, %v12518_v14  ;;  %5146 = vmatmul.mubr.bf16.gmra.mrb[60].mxu0 %v9787_v50 }
 0x9ab   : > { %v3432_v8 = vpop.permute.xlu0 %3431  ;;  %v3858_v60 = vmul.f32 %v11972_v58, %v3820_v11  ;;  %8037 = vmatprep.mubr.msk.bf16.mxu0 %vm1072_vm3, %v9788_v38 }
 0x9ac   : > { %v3514_v13 = vmul.f32 %v3432_v8, %v12520_v39  ;;  %3921 = vrot.lane.b32.xlu1 %v3857_v2, %s9872_s21  ;;  %v3823_v29 = vmax.f32 %v3515_v46, 0.0  ;;  %v3859_v39 = vmul.f32 %v11972_v58, %v3821_v28 }
 0x9ad   : > { %3923 = vrot.lane.b32.xlu0 %v3858_v60, %s9872_s21 }
 0x9ae   : > { %v3822_v14 = vmax.f32 %v3514_v13, 0.0  ;;  %v3438_v30 = vpop.permute.xlu1 %3437  ;;  %v3861_v56 = vmul.f32 %v11972_v58, %v3823_v29 }
 0x9af   : > { %v3436_v54 = vpop.permute.xlu0 %3435  ;;  %v3517_v20 = vmul.f32 %v3438_v30, %v12528_v32  ;;  %v9789_v32 = vld [vmem:[%s14792_s29 + $0x20] ss:$8 sps:$4 sm:$0xff]  }
 0x9b0   : > { %v3860_v37 = vmul.f32 %v11972_v58, %v3822_v14  ;;  %v3516_v24 = vmul.f32 %v3436_v54, %v12530_v33  ;;  %3925 = vrot.lane.b32.xlu1 %v3859_v39, %s9872_s21  ;;  %v9790_v33 = vld [vmem:[%s14792_s29 + $0x34] ss:$8 sps:$4 sm:$0xff]   ;;  %v9792_v54 = vld [vmem:[%s14792_s29 + $0x44] ss:$8 sps:$4 sm:$0xff]  }
 0x9b1   : > { %v3825_v31 = vmax.f32 %v3517_v20, 0.0 }
 0x9b2   : > { %v3824_v7 = vmax.f32 %v3516_v24, 0.0  ;;  %v3442_v27 = vpop.permute.xlu1 %3441  ;;  %3927 = vrot.lane.b32.xlu0 %v3860_v37, %s9872_s21  ;;  %5154 = vmatmul.mubr.bf16.gmra.mrb[64].mxu0 %v9789_v32 }
 0x9b3   : > { %v3440_v12 = vpop.permute.xlu0 %3439  ;;  %v3519_v3 = vmul.f32 %v3442_v27, %v12538_v6  ;;  %8038 = vmatprep.mubr.msk.bf16.mxu0 %vm1072_vm3, %v9790_v33  ;;  %v3863_v46 = vmul.f32 %v11972_v58, %v3825_v31 }
 0x9b4   : > { %v3862_v43 = vmul.f32 %v11972_v58, %v3824_v7  ;;  %v3518_v23 = vmul.f32 %v3440_v12, %v12540_v4  ;;  %3929 = vrot.lane.b32.xlu1 %v3861_v56, %s9872_s21 }
 0x9b5   : > { %v3827_v8 = vmax.f32 %v3519_v3, 0.0 }
 0x9b6   : > { %v3826_v11 = vmax.f32 %v3518_v23, 0.0  ;;  %v3446_v36 = vpop.permute.xlu1 %3445  ;;  %3931 = vrot.lane.b32.xlu0 %v3862_v43, %s9872_s21 }
 0x9b7   : > { %v3521_v6 = vmul.f32 %v3446_v36, %v12549_v22  ;;  %v3444_v4 = vpop.permute.xlu0 %3443  ;;  %v3865_v14 = vmul.f32 %v11972_v58, %v3827_v8 }
 0x9b8   : > { %v3864_v2 = vmul.f32 %v11972_v58, %v3826_v11  ;;  %v3520_v28 = vmul.f32 %v3444_v4, %v12551_v18  ;;  %3933 = vrot.lane.b32.xlu1 %v3863_v46, %s9872_s21  ;;  %v9791_v18 = vld [vmem:[%s14792_s29 + $0x30] ss:$8 sps:$4 sm:$0xff]  }
 0x9b9   : > { %v3829_v50 = vmax.f32 %v3521_v6, 0.0 }
 0x9ba   : > { %v3828_v60 = vmax.f32 %v3520_v28, 0.0  ;;  %v3450_v13 = vpop.permute.xlu1 %3449  ;;  %3935 = vrot.lane.b32.xlu0 %v3864_v2, %s9872_s21  ;;  %5162 = vmatmul.mubr.bf16.gmra.mrb[68].mxu0 %v9791_v18 }
 0x9bb   : > { %v3448_v38 = vpop.permute.xlu0 %3447  ;;  %v3523_v30 = vmul.f32 %v3450_v13, %v12559_v15  ;;  %8039 = vmatprep.mubr.msk.bf16.mxu0 %vm1072_vm3, %v9792_v54  ;;  %v3867_v15 = vmul.f32 %v11972_v58, %v3829_v50 }
 0x9bc   : > { %v3866_v22 = vmul.f32 %v11972_v58, %v3828_v60  ;;  %v3522_v29 = vmul.f32 %v3448_v38, %v12561_v62  ;;  %3937 = vrot.lane.b32.xlu1 %v3865_v14, %s9872_s21 }
 0x9bd   : > { %v3831_v20 = vmax.f32 %v3523_v30, 0.0 }
 0x9be   : > { %v3830_v39 = vmax.f32 %v3522_v29, 0.0  ;;  %v3454_v37 = vpop.permute.xlu1 %3453  ;;  %3939 = vrot.lane.b32.xlu0 %v3866_v22, %s9872_s21 }
 0x9bf   : > { %v3452_v62 = vpop.permute.xlu0 %3451  ;;  %v3525_v7 = vmul.f32 %v3454_v37, %v12570_v19  ;;  %v3869_v3 = vmul.f32 %v11972_v58, %v3831_v20  ;;  %v9793_v19 = vld [vmem:[%s14792_s29 + $0x40] ss:$8 sps:$4 sm:$0xff]  }
 0x9c0   : > { %v3868_v24 = vmul.f32 %v11972_v58, %v3830_v39  ;;  %v3524_v27 = vmul.f32 %v3452_v62, %v12572_v25  ;;  %3941 = vrot.lane.b32.xlu1 %v3867_v15, %s9872_s21  ;;  %v9794_v25 = vld [vmem:[%s14792_s29 + $0x54] ss:$8 sps:$4 sm:$0xff]   ;;  %v9797_v20 = vld [vmem:[%s14792_s29 + $0x60] ss:$8 sps:$4 sm:$0xff]  }
 0x9c1   : > { %v3833_v23 = vmax.f32 %v3525_v7, 0.0 }
 0x9c2   : > { %v3832_v56 = vmax.f32 %v3524_v27, 0.0  ;;  %v3458_v12 = vpop.permute.xlu1 %3457  ;;  %3943 = vrot.lane.b32.xlu0 %v3868_v24, %s9872_s21  ;;  %5170 = vmatmul.mubr.bf16.gmra.mrb[72].mxu0 %v9793_v19 }
 0x9c3   : > { %v3527_v31 = vmul.f32 %v3458_v12, %v12579_v51  ;;  %v3456_v43 = vpop.permute.xlu0 %3455  ;;  %8040 = vmatprep.mubr.msk.bf16.mxu0 %vm1072_vm3, %v9794_v25 }
 0x9c4   : > { %v3870_v32 = vmul.f32 %v11972_v58, %v3832_v56  ;;  %v3526_v33 = vmul.f32 %v3456_v43, %v12581_v48  ;;  %3945 = vrot.lane.b32.xlu1 %v3869_v3, %s9872_s21  ;;  %v3871_v48 = vmul.f32 %v11972_v58, %v3833_v23  ;;  %v9799_v3 = vld [vmem:[%s14792_s29 + $0x70] ss:$8 sps:$4 sm:$0xff]  }
 0x9c5   : > { %v3835_v36 = vmax.f32 %v3527_v31, 0.0 }
 0x9c6   : > { %v3834_v51 = vmax.f32 %v3526_v33, 0.0  ;;  %v3462_v11 = vpop.permute.xlu1 %3461  ;;  %3947 = vrot.lane.b32.xlu0 %v3870_v32, %s9872_s21  ;;  %v9800_v32 = vld [vmem:[%s14792_s29 + $0x84] ss:$8 sps:$4 sm:$0xff]  }
 0x9c7   : > { %v3460_v6 = vpop.permute.xlu0 %3459  ;;  %v3529_v46 = vmul.f32 %v3462_v11, %v12588_v26  ;;  %v3873_v60 = vmul.f32 %v11972_v58, %v3835_v36  ;;  %v9795_v26 = vld [vmem:[%s14792_s29 + $0x50] ss:$8 sps:$4 sm:$0xff]   ;;  %v9802_v11 = vld [vmem:[%s14792_s29 + $0x94] ss:$8 sps:$4 sm:$0xff]  }
 0x9c8   : > { %v3872_v4 = vmul.f32 %v11972_v58, %v3834_v51  ;;  %v3528_v8 = vmul.f32 %v3460_v6, %v12590_v57  ;;  %3949 = vrot.lane.b32.xlu1 %v3871_v48, %s9872_s21  ;;  %v9796_v57 = vld [vmem:[%s14792_s29 + $0x64] ss:$8 sps:$4 sm:$0xff]   ;;  %v9801_v51 = vld [vmem:[%s14792_s29 + $0x80] ss:$8 sps:$4 sm:$0xff]   ;;  %v9803_v36 = vld [vmem:[%s14792_s29 + $0x90] ss:$8 sps:$4 sm:$0xff]  }
 0x9c9   : > { %v3837_v50 = vmax.f32 %v3529_v46, 0.0  ;;  %v9804_v6 = vld [vmem:[%s14792_s29 + $0xa4] ss:$8 sps:$4 sm:$0xff]   ;;  %v9805_v48 = vld [vmem:[%s14792_s29 + $0xa0] ss:$8 sps:$4 sm:$0xff]  }
 0x9ca   : > { %v3836_v2 = vmax.f32 %v3528_v8, 0.0  ;;  %v3466_v28 = vpop.permute.xlu1 %3465  ;;  %3951 = vrot.lane.b32.xlu0 %v3872_v4, %s9872_s21  ;;  %5178 = vmatmul.mubr.bf16.gmra.mrb[76].mxu0 %v9795_v26  ;;  %v9806_v4 = vld [vmem:[%s14792_s29 + $0xb4] ss:$8 sps:$4 sm:$0xff]   ;;  %v9807_v46 = vld [vmem:[%s14792_s29 + $0xb0] ss:$8 sps:$4 sm:$0xff]  }
 0x9cb   : > { %v3464_v13 = vpop.permute.xlu0 %3463  ;;  %v3531_v14 = vmul.f32 %v3466_v28, %v12596_v45  ;;  %8041 = vmatprep.mubr.msk.bf16.mxu0 %vm1072_vm3, %v9796_v57  ;;  %v3875_v45 = vmul.f32 %v11972_v58, %v3837_v50  ;;  %v9808_v8 = vld [vmem:[%s14792_s29 + $0xc4] ss:$8 sps:$4 sm:$0xff]   ;;  %v9810_v28 = vld [vmem:[%s14792_s29 + $0xd4] ss:$8 sps:$4 sm:$0xff]  }
 0x9cc   : > { %v3874_v38 = vmul.f32 %v11972_v58, %v3836_v2  ;;  %v3530_v22 = vmul.f32 %v3464_v13, %v12598_v0  ;;  %3953 = vrot.lane.b32.xlu1 %v3873_v60, %s9872_s21  ;;  %v9809_v2 = vld [vmem:[%s14792_s29 + $0xc0] ss:$8 sps:$4 sm:$0xff]   ;;  %v9811_v60 = vld [vmem:[%s14792_s29 + $0xd0] ss:$8 sps:$4 sm:$0xff]   ;;  %v9812_v13 = vld [vmem:[%s14792_s29 + $0xe4] ss:$8 sps:$4 sm:$0xff]  }
 0x9cd   : > { %v3839_v0 = vmax.f32 %v3531_v14, 0.0 }
 0x9ce   : > { %v3838_v30 = vmax.f32 %v3530_v22, 0.0  ;;  %3955 = vrot.lane.b32.xlu0 %v3874_v38, %s9872_s21  ;;  %v3470_v39 = vpop.permute.xlu1 %3469  ;;  %v9813_v38 = vld [vmem:[%s14792_s29 + $0xe0] ss:$8 sps:$4 sm:$0xff]  }
 0x9cf   : > { %v3468_v29 = vpop.permute.xlu0 %3467  ;;  %v3877_v37 = vmul.f32 %v11972_v58, %v3839_v0  ;;  %v3533_v15 = vmul.f32 %v3470_v39, %v12605_v21 }
 0x9d0   : > { %v3876_v18 = vmul.f32 %v11972_v58, %v3838_v30  ;;  %v3532_v54 = vmul.f32 %v3468_v29, %v12607_v5  ;;  %3957 = vrot.lane.b32.xlu1 %v3875_v45, %s9872_s21  ;;  %v9798_v5 = vld [vmem:[%s14792_s29 + $0x74] ss:$8 sps:$4 sm:$0xff]  }
 0x9d1   : > { %v3841_v7 = vmax.f32 %v3533_v15, 0.0 }
 0x9d2   : > { %3959 = vrot.lane.b32.xlu0 %v3876_v18, %s9872_s21  ;;  %v3840_v62 = vmax.f32 %v3532_v54, 0.0  ;;  %5186 = vmatmul.mubr.bf16.gmra.mrb[80].mxu0 %v9797_v20  ;;  %v3474_v56 = vpop.permute.xlu1 %3473 }
 0x9d3   : > { %v3472_v24 = vpop.permute.xlu0 %3471  ;;  %8042 = vmatprep.mubr.msk.bf16.mxu0 %vm1072_vm3, %v9798_v5  ;;  %v3879_v12 = vmul.f32 %v11972_v58, %v3841_v7  ;;  %v3535_v31 = vmul.f32 %v3474_v56, %v12613_v44 }
 0x9d4   : > { %3961 = vrot.lane.b32.xlu1 %v3877_v37, %s9872_s21  ;;  %v3878_v27 = vmul.f32 %v11972_v58, %v3840_v62  ;;  %v3534_v21 = vmul.f32 %v3472_v24, %v12615_v53 }
 0x9d5   : > { %v3843_v53 = vmax.f32 %v3535_v31, 0.0 }
 0x9d6   : > { %v3842_v43 = vmax.f32 %v3534_v21, 0.0 }
 0x9d7   : > { %v3476_v23 = vpop.permute.xlu0 %3475  ;;  %v3881_v19 = vmul.f32 %v11972_v58, %v3843_v53 }
 0x9d8   : > { %3963 = vrot.lane.b32.xlu1 %v3878_v27, %s9872_s21  ;;  %v3880_v33 = vmul.f32 %v11972_v58, %v3842_v43  ;;  %v3536_v44 = vmul.f32 %v3476_v23, %v12622_v16 }
 0x9da   : > { %5194 = vmatmul.mubr.bf16.gmra.mrb[84].mxu0 %v9799_v3  ;;  %v3844_v25 = vmax.f32 %v3536_v44, 0.0 }
 0x9db   : > { %8043 = vmatprep.mubr.msk.bf16.mxu0 %vm1072_vm3, %v9800_v32 }
 0x9dc   : > { %3965 = vrot.lane.b32.xlu1 %v3879_v12, %s9872_s21  ;;  %v3882_v16 = vmul.f32 %v11972_v58, %v3844_v25 }
 0x9e0   : > { %3967 = vrot.lane.b32.xlu1 %v3880_v33, %s9872_s21 }
 0x9e2   : > { %5202 = vmatmul.mubr.bf16.gmra.mrb[88].mxu0 %v9801_v51 }
 0x9e3   : > { %8044 = vmatprep.mubr.msk.bf16.mxu0 %vm1072_vm3, %v9802_v11 }
 0x9e4   : > { %3969 = vrot.lane.b32.xlu1 %v3881_v19, %s9872_s21 }
 0x9e8   : > { %3971 = vrot.lane.b32.xlu1 %v3882_v16, %s9872_s21 }
 0x9ea   : > { %5210 = vmatmul.mubr.bf16.gmra.mrb[92].mxu0 %v9803_v36 }
 0x9eb   : > { %8045 = vmatprep.mubr.msk.bf16.mxu0 %vm1072_vm3, %v9804_v6 }
 0x9f2   : > { %5218 = vmatmul.mubr.bf16.gmra.mrb[96].mxu0 %v9805_v48 }
 0x9f3   : > { %8046 = vmatprep.mubr.msk.bf16.mxu0 %vm1072_vm3, %v9806_v4 }
 0x9fa   : > { %5226 = vmatmul.mubr.bf16.gmra.mrb[100].mxu0 %v9807_v46 }
 0x9fb   : > { %8047 = vmatprep.mubr.msk.bf16.mxu0 %vm1072_vm3, %v9808_v8 }
 0xa02   : > { %5234 = vmatmul.mubr.bf16.gmra.mrb[104].mxu0 %v9809_v2 }
 0xa03   : > { %8048 = vmatprep.mubr.msk.bf16.mxu0 %vm1072_vm3, %v9810_v28 }
 0xa0a   : > { %5242 = vmatmul.mubr.bf16.gmra.mrb[108].mxu0 %v9811_v60 }
 0xa0b   : > { %8049 = vmatprep.mubr.msk.bf16.mxu0 %vm1072_vm3, %v9812_v13 }
 0xa11   : > { %v3914_v50 = vpop.permute.xlu0 %3913 }
 0xa12   : > { %5250 = vmatmul.mubr.bf16.gmra.mrb[112].mxu0 %v9813_v38  ;;  %v4003_v14 = vsel %vm1400_vm4, %v3914_v50, 0.0 }
 0xa13   : > { %4004 = vadd.xlane.f32.xlu1 %v4003_v14  ;;  %8777 = vmatprep.mubr.msk.bf16.mxu0 %vm9868_vm1, %v14811_v63 }
 0xa16   : > { %v3916_v22 = vpop.permute.xlu1 %3915 }
 0xa17   : > { %v4006_v26 = vsel %vm1400_vm4, %v3916_v22, 0.0 }
 0xa18   : > { %4007 = vadd.xlane.f32.xlu0 %v4006_v26 }
 0xa1a   : > { %v3918_v57 = vpop.permute.xlu1 %3917  ;;  %8778 = vmatmul.mubr.msk.bf16.vlgmr.msra.gmra.mrb[116].mxu0 %vm1400_vm4, %v11987_v59 }
 0xa1b   : > { %v3920_v30 = vpop.permute.xlu0 %3919  ;;  %v4009_v29 = vsel %vm1400_vm4, %v3918_v57, 0.0  ;;  %8781 = vmatprep.mubr.msk.bf16.mxu0 %vm9868_vm1, %v14811_v63 }
 0xa1c   : > { %v4012_v45 = vsel %vm1400_vm4, %v3920_v30, 0.0  ;;  %4010 = vadd.xlane.f32.xlu0 %v4009_v29 }
 0xa1d   : > { %4013 = vadd.xlane.f32.xlu1 %v4012_v45 }
 0xa1e   : > { %v3922_v0 = vpop.permute.xlu1 %3921 }
 0xa1f   : > { %v3924_v18 = vpop.permute.xlu0 %3923  ;;  %v4015_v54 = vsel %vm1400_vm4, %v3922_v0, 0.0 }
 0xa20   : > { %4016 = vadd.xlane.f32.xlu0 %v4015_v54  ;;  %v4018_v59 = vsel %vm1400_vm4, %v3924_v18, 0.0 }
 0xa22   : > { %v3926_v39 = vpop.permute.xlu1 %3925  ;;  %8782 = vmatmul.mubr.msk.bf16.gmra.mrb[120].mxu0 %vm1400_vm4, %v12022_v55 }
 0xa23   : > { %8785 = vmatprep.mubr.msk.bf16.mxu0 %vm9868_vm1, %v14811_v63  ;;  %v4021_v20 = vsel %vm1400_vm4, %v3926_v39, 0.0 }
 0xa24   : > { %v3928_v37 = vpop.permute.xlu0 %3927  ;;  %4019 = vadd.xlane.f32.xlu0 %v4018_v59 }
 0xa25   : > { %v4024_v7 = vsel %vm1400_vm4, %v3928_v37, 0.0 }
 0xa26   : > { %v3930_v15 = vpop.permute.xlu1 %3929 }
 0xa27   : > { %v4027_v21 = vsel %vm1400_vm4, %v3930_v15, 0.0  ;;  %v12941_v15 = vld [vmem:[%s14765_s9] ss:$0 sm:$0xff] }
 0xa28   : > { %v3932_v62 = vpop.permute.xlu0 %3931  ;;  %4022 = vadd.xlane.f32.xlu0 %v4021_v20 }
 0xa2a   : > { %v3934_v24 = vpop.permute.xlu1 %3933  ;;  %8786 = vmatmul.mubr.msk.bf16.gmra.mrb[124].mxu0 %vm1400_vm4, %v12047_v9  ;;  %v4030_v9 = vsel %vm1400_vm4, %v3932_v62, 0.0 }
 0xa2b   : > { %8789 = vmatprep.mubr.msk.bf16.mxu0 %vm9868_vm1, %v14811_v63  ;;  %v4033_v32 = vsel %vm1400_vm4, %v3934_v24, 0.0 }
 0xa2c   : > { %v3936_v5 = vpop.permute.xlu0 %3935  ;;  %4025 = vadd.xlane.f32.xlu0 %v4024_v7 }
 0xa2e   : > { %v3938_v55 = vpop.permute.xlu1 %3937 }
 0xa2f   : > { %v4039_v11 = vsel %vm1400_vm4, %v3938_v55, 0.0 }
 0xa30   : > { %v3940_v27 = vpop.permute.xlu0 %3939  ;;  %4028 = vadd.xlane.f32.xlu0 %v4027_v21 }
 0xa31   : > { %v4042_v56 = vsel %vm1400_vm4, %v3940_v27, 0.0 }
 0xa32   : > { %4043 = vadd.xlane.f32.xlu1 %v4042_v56  ;;  %v3942_v12 = vpop.permute.xlu1 %3941  ;;  %8790 = vmatmul.mubr.msk.bf16.gmra.mrb[128].mxu0 %vm1400_vm4, %v12067_v17  ;;  %v4036_v17 = vsel %vm1400_vm4, %v3936_v5, 0.0 }
 0xa33   : > { %8793 = vmatprep.mubr.msk.bf16.mxu0 %vm9868_vm1, %v14811_v63 }
 0xa34   : > { %v3944_v31 = vpop.permute.xlu0 %3943  ;;  %4031 = vadd.xlane.f32.xlu0 %v4030_v9  ;;  %v9817_v9 = vld [vmem:[%s14769_s13] sm:$0xff]  }
 0xa35   : > { %v4048_v43 = vsel %vm1400_vm4, %v3944_v31, 0.0 }
 0xa36   : > { %4049 = vadd.xlane.f32.xlu1 %v4048_v43  ;;  %v3946_v3 = vpop.permute.xlu1 %3945 }
 0xa37   : > { %v4051_v46 = vsel %vm1400_vm4, %v3946_v3, 0.0 }
 0xa38   : > { %v3948_v23 = vpop.permute.xlu0 %3947  ;;  %4034 = vadd.xlane.f32.xlu0 %v4033_v32 }
 0xa39   : > { %v4054_v53 = vsel %vm1400_vm4, %v3948_v23, 0.0 }
 0xa3a   : > { %4055 = vadd.xlane.f32.xlu1 %v4054_v53  ;;  %v3950_v33 = vpop.permute.xlu1 %3949  ;;  %8794 = vmatmul.mubr.msk.bf16.gmra.mrb[132].mxu0 %vm1400_vm4, %v12087_v40  ;;  %v4045_v40 = vsel %vm1400_vm4, %v3942_v12, 0.0 }
 0xa3b   : > { %8797 = vmatprep.mubr.msk.bf16.mxu0 %vm9868_vm1, %v14811_v63  ;;  %v4057_v2 = vsel %vm1400_vm4, %v3950_v33, 0.0 }
 0xa3c   : > { %v3952_v44 = vpop.permute.xlu0 %3951  ;;  %4037 = vadd.xlane.f32.xlu0 %v4036_v17 }
 0xa3d   : > { %v4060_v19 = vsel %vm1400_vm4, %v3952_v44, 0.0 }
 0xa3e   : > { %4061 = vadd.xlane.f32.xlu1 %v4060_v19  ;;  %v3954_v25 = vpop.permute.xlu1 %3953 }
 0xa3f   : > { %v4063_v60 = vsel %vm1400_vm4, %v3954_v25, 0.0  ;;  %v9818_v25 = vld [vmem:[%s14769_s13 + $0x8] sm:$0xff]  }
 0xa40   : > { %v3956_v51 = vpop.permute.xlu0 %3955  ;;  %4040 = vadd.xlane.f32.xlu0 %v4039_v11 }
 0xa41   : > { %v4066_v16 = vsel %vm1400_vm4, %v3956_v51, 0.0 }
 0xa42   : > { %4067 = vadd.xlane.f32.xlu1 %v4066_v16  ;;  %v3958_v36 = vpop.permute.xlu1 %3957  ;;  %8798 = vmatmul.mubr.msk.bf16.gmra.mrb[136].mxu0 %vm1400_vm4, %v12107_v1 }
 0xa43   : > { %8801 = vmatprep.mubr.msk.bf16.mxu0 %vm9868_vm1, %v14811_v63  ;;  %v4069_v50 = vsel %vm1400_vm4, %v3958_v36, 0.0 }
 0xa44   : > { %v3960_v6 = vpop.permute.xlu0 %3959  ;;  %4046 = vadd.xlane.f32.xlu0 %v4045_v40 }
 0xa45   : > { %v4072_v48 = vsel %vm1400_vm4, %v3960_v6, 0.0 }
 0xa46   : > { %4073 = vadd.xlane.f32.xlu1 %v4072_v48  ;;  %v3962_v4 = vpop.permute.xlu1 %3961 }
 0xa47   : > { %v4075_v14 = vsel %vm1400_vm4, %v3962_v4, 0.0 }
 0xa48   : > { %4052 = vadd.xlane.f32.xlu0 %v4051_v46 }
 0xa4a   : > { %v3964_v8 = vpop.permute.xlu1 %3963  ;;  %8802 = vmatmul.mubr.msk.bf16.gmra.mrb[140].mxu0 %vm1400_vm4, %v12132_v10 }
 0xa4b   : > { %v4078_v1 = vsel %vm1400_vm4, %v3964_v8, 0.0  ;;  %8805 = vmatprep.mubr.msk.bf16.mxu0 %vm9868_vm1, %v14811_v63 }
 0xa4c   : > { %4058 = vadd.xlane.f32.xlu0 %v4057_v2  ;;  %4079 = vadd.xlane.f32.xlu1 %v4078_v1 }
 0xa4e   : > { %v3966_v28 = vpop.permute.xlu1 %3965 }
 0xa4f   : > { %v4081_v26 = vsel %vm1400_vm4, %v3966_v28, 0.0 }
 0xa50   : > { %4064 = vadd.xlane.f32.xlu0 %v4063_v60 }
 0xa52   : > { %v3968_v13 = vpop.permute.xlu1 %3967  ;;  %8806 = vmatmul.mubr.msk.bf16.gmra.mrb[144].mxu0 %vm1400_vm4, %v12157_v42 }
 0xa53   : > { %v4084_v10 = vsel %vm1400_vm4, %v3968_v13, 0.0  ;;  %8809 = vmatprep.mubr.msk.bf16.mxu0 %vm9868_vm1, %v14811_v63 }
 0xa54   : > { %4070 = vadd.xlane.f32.xlu0 %v4069_v50  ;;  %4085 = vadd.xlane.f32.xlu1 %v4084_v10 }
 0xa56   : > { %v3970_v38 = vpop.permute.xlu1 %3969 }
 0xa57   : > { %v4087_v57 = vsel %vm1400_vm4, %v3970_v38, 0.0 }
 0xa58   : > { %4076 = vadd.xlane.f32.xlu0 %v4075_v14 }
 0xa5a   : > { %v3972_v22 = vpop.permute.xlu1 %3971  ;;  %8810 = vmatmul.mubr.msk.bf16.gmra.mrb[148].mxu0 %vm1400_vm4, %v12183_v47 }
 0xa5b   : > { %v4090_v42 = vsel %vm1400_vm4, %v3972_v22, 0.0  ;;  %8813 = vmatprep.mubr.msk.bf16.mxu0 %vm9868_vm1, %v14811_v63 }
 0xa5c   : > { %4082 = vadd.xlane.f32.xlu0 %v4081_v26  ;;  %4091 = vadd.xlane.f32.xlu1 %v4090_v42 }
 0xa60   : > { %4088 = vadd.xlane.f32.xlu0 %v4087_v57 }
 0xa62   : > { %8814 = vmatmul.mubr.msk.bf16.gmra.mrb[152].mxu0 %vm1400_vm4, %v12217_v61  ;;  %v12923_v61 = vld [vmem:[%s14763_s7] ss:$0 sm:$0xff] }
 0xa63   : > { %8817 = vmatprep.mubr.msk.bf16.mxu0 %vm9868_vm1, %v14811_v63 }
 0xa6a   : > { %8818 = vmatmul.mubr.msk.bf16.gmra.mrb[156].mxu0 %vm1400_vm4, %v12252_v34 }
 0xa6b   : > { %8821 = vmatprep.mubr.msk.bf16.mxu0 %vm9868_vm1, %v14811_v63 }
 0xa72   : > { %8822 = vmatmul.mubr.msk.bf16.gmra.mrb[160].mxu0 %vm1400_vm4, %v12288_v35  ;;  %v12930_v35 = vld [vmem:[%s14764_s8] ss:$0 sm:$0xff] }
 0xa73   : > { %8825 = vmatprep.mubr.msk.bf16.mxu0 %vm9868_vm1, %v14811_v63 }
 0xa75   : > { %v5139_v47 = vpop.f32.mrb[56].mxu0 }
 0xa76   : > { %v5140_v30 = vadd.f32 %v12923_v61, %v5139_v47  ;;  %v5141_v29 = vpop.f32.mrb[57].mxu0 }
 0xa77   : > { %v5142_v45 = vpop.f32.mrb[58].mxu0 }
 0xa78   : > { %v5258_v34 = vmax.f32 %v5140_v30, 0.0  ;;  %v5143_v0 = vadd.f32 %v12923_v61, %v5142_v45  ;;  %v5144_v18 = vpop.f32.mrb[59].mxu0 }
 0xa7a   : > { %v5288_v54 = vmul.f32 %v12930_v35, %v5258_v34  ;;  %v5259_v39 = vmax.f32 %v5143_v0, 0.0  ;;  %8826 = vmatmul.mubr.msk.bf16.gmra.mrb[164].mxu0 %vm1400_vm4, %v12324_v41 }
 0xa7b   : > { %8829 = vmatprep.mubr.msk.bf16.mxu0 %vm9868_vm1, %v14811_v63 }
 0xa7c   : > { %v5289_v37 = vmul.f32 %v12930_v35, %v5259_v39  ;;  %v5318_v62 = vadd.f32 %v12941_v15, %v5288_v54 }
 0xa7d   : > { %v5147_v59 = vpop.f32.mrb[60].mxu0 }
 0xa7e   : > { %v5319_v20 = vadd.f32 %v12941_v15, %v5289_v37  ;;  %v5148_v24 = vadd.f32 %v12923_v61, %v5147_v59  ;;  %v5149_v5 = vpop.f32.mrb[61].mxu0 }
 0xa7f   : > { %v5150_v7 = vpop.f32.mrb[62].mxu0 }
 0xa80   : > { %v5348_v41 = vpack.c.bf16 %v5319_v20, %v5318_v62  ;;  %v5260_v55 = vmax.f32 %v5148_v24, 0.0  ;;  %v5151_v27 = vadd.f32 %v12923_v61, %v5150_v7  ;;  %v5152_v21 = vpop.f32.mrb[63].mxu0 }
 0xa82   : > { %v5290_v56 = vmul.f32 %v12930_v35, %v5260_v55  ;;  %v5261_v12 = vmax.f32 %v5151_v27, 0.0  ;;  %8714 = vmatmul.mubr.msk.bf16.vlgmr.msra.gmra.mrb[32].mxu1 %vm1400_vm4, %v5348_v41  ;;  %8830 = vmatmul.mubr.msk.bf16.gmra.mrb[168].mxu0 %vm1400_vm4, %v12360_v52  ;;  %v14854_v41 = vld [vmem:[#allocation31_spill] sm:$0xff] }
 0xa83   : > { %8717 = vmatprep.mubr.msk.bf16.mxu1 %vm9868_vm1, %v14811_v63  ;;  %8833 = vmatprep.mubr.msk.bf16.mxu0 %vm9868_vm1, %v14811_v63 }
 0xa84   : > { %v5291_v31 = vmul.f32 %v12930_v35, %v5261_v12  ;;  %8838 = vmatpush3.bf16.msra.mxu1 %v9817_v9  ;;  %v5320_v3 = vadd.f32 %v12941_v15, %v5290_v56  ;;  %v12998_v56 = vld [vmem:[#allocation2] ss:$0 sm:$0xff]  ;;  %v14855_v12 = vld [vmem:[#allocation4_spill] sm:$0xff] }
 0xa85   : > { %v5155_v43 = vpop.f32.mrb[64].mxu0  ;;  %8839 = vmatprep.subr.bf16.mxu1 %v14811_v63 }
 0xa86   : > { %v5321_v52 = vadd.f32 %v12941_v15, %v5291_v31  ;;  %v5156_v23 = vadd.f32 %v12923_v61, %v5155_v43  ;;  %v5157_v32 = vpop.f32.mrb[65].mxu0 }
 0xa87   : > { %v5158_v53 = vpop.f32.mrb[66].mxu0 }
 0xa88   : > { %v5349_v33 = vpack.c.bf16 %v5321_v52, %v5320_v3  ;;  %v5262_v44 = vmax.f32 %v5156_v23, 0.0  ;;  %v5159_v17 = vadd.f32 %v12923_v61, %v5158_v53  ;;  %v5160_v19 = vpop.f32.mrb[67].mxu0  ;;  %8840 = vmatpush3.bf16.msra.mxu1 %v9818_v25  ;;  %v14856_v53 = vld [vmem:[#allocation33_spill] sm:$0xff] }
 0xa8a   : > { %v5292_v51 = vmul.f32 %v12930_v35, %v5262_v44  ;;  %v5263_v11 = vmax.f32 %v5159_v17, 0.0  ;;  %8718 = vmatmul.mubr.msk.bf16.gmra.mrb[36].mxu1 %vm1400_vm4, %v5349_v33  ;;  %8834 = vmatmul.mubr.msk.bf16.gmra.mrb[172].mxu0 %vm1400_vm4, %v12393_v49 }
 0xa8b   : > { %8721 = vmatprep.mubr.msk.bf16.mxu1 %vm9868_vm1, %v14811_v63 }
 0xa8c   : > { %v5293_v16 = vmul.f32 %v12930_v35, %v5263_v11  ;;  %v5322_v6 = vadd.f32 %v12941_v15, %v5292_v51  ;;  %v14857_v51 = vld [vmem:[#allocation7_spill] sm:$0xff] }
 0xa8d   : > { %v5163_v36 = vpop.f32.mrb[68].mxu0 }
 0xa8e   : > { %v5323_v40 = vadd.f32 %v12941_v15, %v5293_v16  ;;  %v5164_v48 = vadd.f32 %v12923_v61, %v5163_v36  ;;  %v5165_v4 = vpop.f32.mrb[69].mxu0 }
 0xa8f   : > { %v5166_v46 = vpop.f32.mrb[70].mxu0 }
 0xa90   : > { %v5350_v8 = vpack.c.bf16 %v5323_v40, %v5322_v6  ;;  %v5264_v2 = vmax.f32 %v5164_v48, 0.0  ;;  %v5167_v1 = vadd.f32 %v12923_v61, %v5166_v46  ;;  %v5168_v28 = vpop.f32.mrb[71].mxu0 }
 0xa91   : > { %v14859_v28 = vld [vmem:[#allocation32_spill] sm:$0xff] }
 0xa92   : > { %v5294_v49 = vmul.f32 %v12930_v35, %v5264_v2  ;;  %v5265_v60 = vmax.f32 %v5167_v1, 0.0  ;;  %8722 = vmatmul.mubr.msk.bf16.gmra.mrb[40].mxu1 %vm1400_vm4, %v5350_v8  ;;  %v14858_v2 = vld [vmem:[#allocation34_spill] sm:$0xff] }
 0xa93   : > { %8725 = vmatprep.mubr.msk.bf16.mxu1 %vm9868_vm1, %v14811_v63 }
 0xa94   : > { %v5295_v13 = vmul.f32 %v12930_v35, %v5265_v60  ;;  %v5324_v10 = vadd.f32 %v12941_v15, %v5294_v49 }
 0xa95   : > { %v5171_v50 = vpop.f32.mrb[72].mxu0 }
 0xa96   : > { %v5325_v38 = vadd.f32 %v12941_v15, %v5295_v13  ;;  %v5172_v14 = vadd.f32 %v12923_v61, %v5171_v50  ;;  %v5173_v22 = vpop.f32.mrb[73].mxu0  ;;  %v14860_v50 = vld [vmem:[#allocation9_spill] sm:$0xff] }
 0xa97   : > { %v5174_v26 = vpop.f32.mrb[74].mxu0 }
 0xa98   : > { %v5351_v42 = vpack.c.bf16 %v5325_v38, %v5324_v10  ;;  %v5266_v57 = vmax.f32 %v5172_v14, 0.0  ;;  %v5175_v47 = vadd.f32 %v12923_v61, %v5174_v26  ;;  %v5176_v30 = vpop.f32.mrb[75].mxu0  ;;  %v14861_v38 = vld [vmem:[#allocation5_spill] sm:$0xff] }
 0xa9a   : > { %v5296_v29 = vmul.f32 %v12930_v35, %v5266_v57  ;;  %v5267_v45 = vmax.f32 %v5175_v47, 0.0  ;;  %8726 = vmatmul.mubr.msk.bf16.gmra.mrb[44].mxu1 %vm1400_vm4, %v5351_v42  ;;  %v14862_v47 = vld [vmem:[#allocation35_spill] sm:$0xff] }
 0xa9b   : > { %8729 = vmatprep.mubr.msk.bf16.mxu1 %vm9868_vm1, %v14811_v63 }
 0xa9c   : > { %v5326_v34 = vadd.f32 %v12941_v15, %v5296_v29  ;;  %v5297_v0 = vmul.f32 %v12930_v35, %v5267_v45 }
 0xa9d   : > { %v5179_v18 = vpop.f32.mrb[76].mxu0 }
 0xa9e   : > { %v5327_v54 = vadd.f32 %v12941_v15, %v5297_v0  ;;  %v5180_v39 = vadd.f32 %v12923_v61, %v5179_v18  ;;  %v5181_v37 = vpop.f32.mrb[77].mxu0 }
 0xa9f   : > { %v5182_v59 = vpop.f32.mrb[78].mxu0 }
 0xaa0   : > { %v5352_v62 = vpack.c.bf16 %v5327_v54, %v5326_v34  ;;  %v5268_v20 = vmax.f32 %v5180_v39, 0.0  ;;  %v5183_v24 = vadd.f32 %v12923_v61, %v5182_v59  ;;  %v4005_v5 = vpop.xlane.xlu1 %4004  ;;  %v5184_v7 = vpop.f32.mrb[79].mxu0  ;;  %v14863_v54 = vld [vmem:[#allocation6_spill] sm:$0xff] }
 0xaa1   : > { %v4093_v55 = vadd.f32 %v4005_v5, %v14854_v41  ;;  %v14864_v41 = vld [vmem:[#allocation36_spill] sm:$0xff] }
 0xaa2   : > { %v5298_v27 = vmul.f32 %v12930_v35, %v5268_v20  ;;  %v5269_v21 = vmax.f32 %v5183_v24, 0.0  ;;  %8730 = vmatmul.mubr.msk.bf16.gmra.mrb[48].mxu1 %vm1400_vm4, %v5352_v62 }
 0xaa3   : > { %v4279_v31 = vadd.f32 %v14855_v12, %v4093_v55  ;;  %8733 = vmatprep.mubr.msk.bf16.mxu1 %vm9868_vm1, %v14811_v63  ;;  %v14865_v12 = vld [vmem:[#allocation11_spill] sm:$0xff] }
 0xaa4   : > { %v5328_v9 = vadd.f32 %v12941_v15, %v5298_v27  ;;  %v5299_v43 = vmul.f32 %v12930_v35, %v5269_v21 }
 0xaa5   : > { %v4315_v3 = vadd.f32 %v12998_v56, %v4279_v31  ;;  %v4008_v52 = vpop.xlane.xlu0 %4007  ;;  %v5187_v23 = vpop.f32.mrb[80].mxu0 }
 0xaa6   : > { %v5329_v32 = vadd.f32 %v12941_v15, %v5299_v43  ;;  %v4094_v33 = vadd.f32 %v4008_v52, %v14856_v53  ;;  %v5188_v44 = vadd.f32 %v12923_v61, %v5187_v23  ;;  %v5189_v17 = vpop.f32.mrb[81].mxu0  ;;  %v14866_v23 = vld [vmem:[#allocation37_spill] sm:$0xff] }
 0xaa7   : > { %4346 = vst.msk [vmem:[%s13011_s22] sm:$0xff] %vm4345_vm5, %v4315_v3  ;;  %v5190_v19 = vpop.f32.mrb[82].mxu0 }
 0xaa8   : > { %v5353_v25 = vpack.c.bf16 %v5329_v32, %v5328_v9  ;;  %v4280_v11 = vadd.f32 %v14857_v51, %v4094_v33  ;;  %v5270_v16 = vmax.f32 %v5188_v44, 0.0  ;;  %v5191_v36 = vadd.f32 %v12923_v61, %v5190_v19  ;;  %v5192_v6 = vpop.f32.mrb[83].mxu0  ;;  %v14867_v19 = vld [vmem:[#allocation8_spill] sm:$0xff] }
 0xaa9   : > { %v4011_v48 = vpop.xlane.xlu0 %4010 }
 0xaaa   : > { %v4014_v40 = vpop.xlane.xlu1 %4013  ;;  %v4316_v4 = vadd.f32 %v12998_v56, %v4280_v11  ;;  %v5300_v46 = vmul.f32 %v12930_v35, %v5270_v16  ;;  %v5271_v8 = vmax.f32 %v5191_v36, 0.0  ;;  %8734 = vmatmul.mubr.msk.bf16.gmra.mrb[52].mxu1 %vm1400_vm4, %v5353_v25  ;;  %v4095_v49 = vadd.f32 %v4011_v48, %v14859_v28 }
 0xaab   : > { %v4096_v1 = vadd.f32 %v4014_v40, %v14858_v2  ;;  %8737 = vmatprep.mubr.msk.bf16.mxu1 %vm9868_vm1, %v14811_v63 }
 0xaac   : > { %4347 = vst.msk [vmem:[%s13011_s22 + $0x8] sm:$0xff] %vm4345_vm5, %v4316_v4  ;;  %v5330_v60 = vadd.f32 %v12941_v15, %v5300_v46  ;;  %v5301_v13 = vmul.f32 %v12930_v35, %v5271_v8  ;;  %v4281_v14 = vadd.f32 %v14861_v38, %v4095_v49  ;;  %v14868_v4 = vld [vmem:[#allocation38_spill] sm:$0xff] }
 0xaad   : > { %v4282_v10 = vadd.f32 %v14860_v50, %v4096_v1  ;;  %v4017_v22 = vpop.xlane.xlu0 %4016  ;;  %v5195_v26 = vpop.f32.mrb[84].mxu0  ;;  %v14869_v1 = vld [vmem:[#allocation13_spill] sm:$0xff] }
 0xaae   : > { %v5331_v42 = vadd.f32 %v12941_v15, %v5301_v13  ;;  %v4097_v30 = vadd.f32 %v4017_v22, %v14862_v47  ;;  %v5196_v29 = vadd.f32 %v12923_v61, %v5195_v26  ;;  %v5197_v45 = vpop.f32.mrb[85].mxu0  ;;  %v4317_v34 = vadd.f32 %v12998_v56, %v4281_v14  ;;  %v14871_v14 = vld [vmem:[#allocation39_spill] sm:$0xff] }
 0xaaf   : > { %v4318_v57 = vadd.f32 %v12998_v56, %v4282_v10  ;;  %v5198_v0 = vpop.f32.mrb[86].mxu0  ;;  %v14870_v10 = vld [vmem:[#allocation44_spill] sm:$0xff]  ;;  %v14873_v45 = vld [vmem:[#allocation10_spill] sm:$0xff] }
 0xab0   : > { %v5354_v18 = vpack.c.bf16 %v5331_v42, %v5330_v60  ;;  %v4283_v39 = vadd.f32 %v14863_v54, %v4097_v30  ;;  %v5272_v37 = vmax.f32 %v5196_v29, 0.0  ;;  %v5199_v59 = vadd.f32 %v12923_v61, %v5198_v0  ;;  %v5200_v62 = vpop.f32.mrb[87].mxu0  ;;  %4348 = vst.msk [vmem:[%s13011_s22 + $0x10] sm:$0xff] %vm4345_vm5, %v4317_v34  ;;  %v14872_v30 = vld [vmem:[#allocation19_spill] sm:$0xff] }
 0xab1   : > { %4349 = vst.msk [vmem:[%s13011_s22 + $0x18] sm:$0xff] %vm4345_vm5, %v4318_v57  ;;  %v4020_v20 = vpop.xlane.xlu0 %4019 }
 0xab2   : > { %v4319_v24 = vadd.f32 %v12998_v56, %v4283_v39  ;;  %v5302_v5 = vmul.f32 %v12930_v35, %v5272_v37  ;;  %v5273_v7 = vmax.f32 %v5199_v59, 0.0  ;;  %v4098_v55 = vadd.f32 %v4020_v20, %v14864_v41  ;;  %8738 = vmatmul.mubr.msk.bf16.gmra.mrb[56].mxu1 %vm1400_vm4, %v5354_v18  ;;  %v14874_v20 = vld [vmem:[#allocation46_spill] sm:$0xff] }
 0xab3   : > { %8741 = vmatprep.mubr.msk.bf16.mxu1 %vm9868_vm1, %v14811_v63 }
 0xab4   : > { %4350 = vst.msk [vmem:[%s13011_s22 + $0x20] sm:$0xff] %vm4345_vm5, %v4319_v24  ;;  %v5332_v27 = vadd.f32 %v12941_v15, %v5302_v5  ;;  %v5303_v21 = vmul.f32 %v12930_v35, %v5273_v7  ;;  %v4284_v31 = vadd.f32 %v14865_v12, %v4098_v55  ;;  %v14875_v5 = vld [vmem:[#allocation40_spill] sm:$0xff] }
 0xab5   : > { %v4023_v9 = vpop.xlane.xlu0 %4022  ;;  %v5203_v43 = vpop.f32.mrb[88].mxu0 }
 0xab6   : > { %v5333_v3 = vadd.f32 %v12941_v15, %v5303_v21  ;;  %v4320_v52 = vadd.f32 %v12998_v56, %v4284_v31  ;;  %v4099_v32 = vadd.f32 %v4023_v9, %v14866_v23  ;;  %v5204_v53 = vadd.f32 %v12923_v61, %v5203_v43  ;;  %v5205_v33 = vpop.f32.mrb[89].mxu0  ;;  %v14876_v21 = vld [vmem:[#allocation21_spill] sm:$0xff]  ;;  %v14877_v31 = vld [vmem:[#allocation15_spill] sm:$0xff] }
 0xab7   : > { %v5206_v44 = vpop.f32.mrb[90].mxu0  ;;  %v14878_v33 = vld [vmem:[#allocation48_spill] sm:$0xff] }
 0xab8   : > { %v5355_v17 = vpack.c.bf16 %v5333_v3, %v5332_v27  ;;  %4351 = vst.msk [vmem:[%s13011_s22 + $0x28] sm:$0xff] %vm4345_vm5, %v4320_v52  ;;  %v4285_v25 = vadd.f32 %v14867_v19, %v4099_v32  ;;  %v5274_v51 = vmax.f32 %v5204_v53, 0.0  ;;  %v5207_v11 = vadd.f32 %v12923_v61, %v5206_v44  ;;  %v5208_v16 = vpop.f32.mrb[91].mxu0 }
 0xab9   : > { %v4026_v36 = vpop.xlane.xlu0 %4025 }
 0xaba   : > { %v4321_v6 = vadd.f32 %v12998_v56, %v4285_v25  ;;  %v5304_v40 = vmul.f32 %v12930_v35, %v5274_v51  ;;  %v5275_v48 = vmax.f32 %v5207_v11, 0.0  ;;  %v4100_v46 = vadd.f32 %v4026_v36, %v14868_v4  ;;  %8742 = vmatmul.mubr.msk.bf16.gmra.mrb[60].mxu1 %vm1400_vm4, %v5355_v17  ;;  %v14879_v17 = vld [vmem:[#allocation41_spill] sm:$0xff]  ;;  %v14880_v36 = vld [vmem:[#allocation23_spill] sm:$0xff] }
 0xabb   : > { %8745 = vmatprep.mubr.msk.bf16.mxu1 %vm9868_vm1, %v14811_v63 }
 0xabc   : > { %4352 = vst.msk [vmem:[%s13011_s22 + $0x30] sm:$0xff] %vm4345_vm5, %v4321_v6  ;;  %v5334_v8 = vadd.f32 %v12941_v15, %v5304_v40  ;;  %v5305_v2 = vmul.f32 %v12930_v35, %v5275_v48  ;;  %v4286_v28 = vadd.f32 %v14869_v1, %v4100_v46  ;;  %v14881_v40 = vld [vmem:[#allocation12_spill] sm:$0xff] }
 0xabd   : > { %v4029_v60 = vpop.xlane.xlu0 %4028  ;;  %v5211_v26 = vpop.f32.mrb[92].mxu0 }
 0xabe   : > { %v5335_v13 = vadd.f32 %v12941_v15, %v5305_v2  ;;  %v4322_v50 = vadd.f32 %v12998_v56, %v4286_v28  ;;  %v4101_v22 = vadd.f32 %v4029_v60, %v14871_v14  ;;  %v5212_v42 = vadd.f32 %v12923_v61, %v5211_v26  ;;  %v5213_v57 = vpop.f32.mrb[93].mxu0 }
 0xabf   : > { %v4044_v49 = vpop.xlane.xlu1 %4043  ;;  %v5214_v0 = vpop.f32.mrb[94].mxu0 }
 0xac0   : > { %v4106_v38 = vadd.f32 %v4044_v49, %v14870_v10  ;;  %v5356_v47 = vpack.c.bf16 %v5335_v13, %v5334_v8  ;;  %4353 = vst.msk [vmem:[%s13011_s22 + $0x38] sm:$0xff] %vm4345_vm5, %v4322_v50  ;;  %v4287_v34 = vadd.f32 %v14873_v45, %v4101_v22  ;;  %v5276_v18 = vmax.f32 %v5212_v42, 0.0  ;;  %v5216_v41 = vpop.f32.mrb[95].mxu0  ;;  %v14882_v13 = vld [vmem:[#allocation50_spill] sm:$0xff]  ;;  %v14884_v42 = vld [vmem:[#allocation25_spill] sm:$0xff] }
 0xac1   : > { %v5215_v54 = vadd.f32 %v12923_v61, %v5214_v0  ;;  %v4032_v37 = vpop.xlane.xlu0 %4031  ;;  %v14883_v10 = vld [vmem:[#allocation42_spill] sm:$0xff]  ;;  %v14888_v41 = vld [vmem:[#allocation27_spill] sm:$0xff] }
 0xac2   : > { %v4292_v29 = vadd.f32 %v14872_v30, %v4106_v38  ;;  %v4323_v62 = vadd.f32 %v12998_v56, %v4287_v34  ;;  %v4102_v7 = vadd.f32 %v4032_v37, %v14875_v5  ;;  %8746 = vmatmul.mubr.msk.bf16.gmra.mrb[64].mxu1 %vm1400_vm4, %v5356_v47  ;;  %v5306_v55 = vmul.f32 %v12930_v35, %v5276_v18  ;;  %v14885_v47 = vld [vmem:[#allocation17_spill] sm:$0xff] }
 0xac3   : > { %v4050_v39 = vpop.xlane.xlu1 %4049  ;;  %v5277_v27 = vmax.f32 %v5215_v54, 0.0  ;;  %8749 = vmatprep.mubr.msk.bf16.mxu1 %vm9868_vm1, %v14811_v63 }
 0xac4   : > { %v4328_v59 = vadd.f32 %v12998_v56, %v4292_v29  ;;  %v4108_v24 = vadd.f32 %v4050_v39, %v14874_v20  ;;  %4354 = vst.msk [vmem:[%s13011_s22 + $0x40] sm:$0xff] %vm4345_vm5, %v4323_v62  ;;  %v4288_v9 = vadd.f32 %v14877_v31, %v4102_v7  ;;  %v5336_v43 = vadd.f32 %v12941_v15, %v5306_v55  ;;  %v14886_v39 = vld [vmem:[#allocation52_spill] sm:$0xff] }
 0xac5   : > { %v5307_v3 = vmul.f32 %v12930_v35, %v5277_v27  ;;  %v4035_v23 = vpop.xlane.xlu0 %4034  ;;  %v5219_v25 = vpop.f32.mrb[96].mxu0  ;;  %v14889_v27 = vld [vmem:[#allocation14_spill] sm:$0xff] }
 0xac6   : > { %4359 = vst.msk [vmem:[%s13011_s22 + $0x68] sm:$0xff] %vm4345_vm5, %v4328_v59  ;;  %v4294_v12 = vadd.f32 %v14876_v21, %v4108_v24  ;;  %v4324_v53 = vadd.f32 %v12998_v56, %v4288_v9  ;;  %v4103_v19 = vadd.f32 %v4035_v23, %v14879_v17  ;;  %v5220_v11 = vadd.f32 %v12923_v61, %v5219_v25  ;;  %v5221_v16 = vpop.f32.mrb[97].mxu0  ;;  %v14887_v59 = vld [vmem:[#allocation43_spill] sm:$0xff] }
 0xac7   : > { %v4056_v52 = vpop.xlane.xlu1 %4055  ;;  %v5337_v51 = vadd.f32 %v12941_v15, %v5307_v3  ;;  %v5222_v4 = vpop.f32.mrb[98].mxu0 }
 0xac8   : > { %v4330_v32 = vadd.f32 %v12998_v56, %v4294_v12  ;;  %v4110_v44 = vadd.f32 %v4056_v52, %v14878_v33  ;;  %4355 = vst.msk [vmem:[%s13011_s22 + $0x48] sm:$0xff] %vm4345_vm5, %v4324_v53  ;;  %v4289_v48 = vadd.f32 %v14881_v40, %v4103_v19  ;;  %v5278_v8 = vmax.f32 %v5220_v11, 0.0  ;;  %v5224_v14 = vpop.f32.mrb[99].mxu0  ;;  %v14890_v53 = vld [vmem:[#allocation54_spill] sm:$0xff]  ;;  %v14892_v11 = vld [vmem:[#allocation29_spill] sm:$0xff] }
 0xac9   : > { %v5357_v46 = vpack.c.bf16 %v5337_v51, %v5336_v43  ;;  %v5223_v2 = vadd.f32 %v12923_v61, %v5222_v4  ;;  %v4038_v28 = vpop.xlane.xlu0 %4037 }
 0xaca   : > { %4361 = vst.msk [vmem:[%s13011_s22 + $0x78] sm:$0xff] %vm4345_vm5, %v4330_v32  ;;  %v4296_v6 = vadd.f32 %v14880_v36, %v4110_v44  ;;  %v4325_v60 = vadd.f32 %v12998_v56, %v4289_v48  ;;  %v4104_v38 = vadd.f32 %v4038_v28, %v14883_v10  ;;  %v5308_v22 = vmul.f32 %v12930_v35, %v5278_v8  ;;  %v14891_v44 = vld [vmem:[#allocation45_spill] sm:$0xff]  ;;  %v14893_v36 = vld [vmem:[#allocation16_spill] sm:$0xff]  ;;  %v14895_v10 = vld [vmem:[#allocation18_spill] sm:$0xff] }
 0xacb   : > { %v4062_v1 = vpop.xlane.xlu1 %4061  ;;  %v5279_v26 = vmax.f32 %v5223_v2, 0.0  ;;  %8750 = vmatmul.mubr.msk.bf16.gmra.mrb[68].mxu1 %vm1400_vm4, %v5357_v46 }
 0xacc   : > { %v4332_v49 = vadd.f32 %v12998_v56, %v4296_v6  ;;  %v4112_v50 = vadd.f32 %v4062_v1, %v14882_v13  ;;  %4356 = vst.msk [vmem:[%s13011_s22 + $0x50] sm:$0xff] %vm4345_vm5, %v4325_v60  ;;  %v4290_v30 = vadd.f32 %v14885_v47, %v4104_v38  ;;  %8753 = vmatprep.mubr.msk.bf16.mxu1 %vm9868_vm1, %v14811_v63  ;;  %v14894_v1 = vld [vmem:[#allocation47_spill] sm:$0xff] }
 0xacd   : > { %v5338_v29 = vadd.f32 %v12941_v15, %v5308_v22  ;;  %v5309_v45 = vmul.f32 %v12930_v35, %v5279_v26  ;;  %v4041_v0 = vpop.xlane.xlu0 %4040  ;;  %v5227_v20 = vpop.f32.mrb[100].mxu0 }
 0xace   : > { %4363 = vst.msk [vmem:[%s13011_s22 + $0x88] sm:$0xff] %vm4345_vm5, %v4332_v49  ;;  %v4298_v57 = vadd.f32 %v14884_v42, %v4112_v50  ;;  %v4326_v54 = vadd.f32 %v12998_v56, %v4290_v30  ;;  %v4105_v62 = vadd.f32 %v4041_v0, %v14887_v59  ;;  %v5228_v5 = vadd.f32 %v12923_v61, %v5227_v20  ;;  %v5229_v7 = vpop.f32.mrb[101].mxu0  ;;  %v14898_v59 = vld [vmem:[#allocation30_spill] sm:$0xff]  ;;  %v14899_v20 = vld [vmem:[#allocation20_spill] sm:$0xff] }
 0xacf   : > { %v4068_v34 = vpop.xlane.xlu1 %4067  ;;  %v5339_v24 = vadd.f32 %v12941_v15, %v5309_v45  ;;  %v5230_v12 = vpop.f32.mrb[102].mxu0 }
 0xad0   : > { %v4334_v18 = vadd.f32 %v12998_v56, %v4298_v57  ;;  %v4114_v37 = vadd.f32 %v4068_v34, %v14886_v39  ;;  %4357 = vst.msk [vmem:[%s13011_s22 + $0x58] sm:$0xff] %vm4345_vm5, %v4326_v54  ;;  %v4291_v21 = vadd.f32 %v14889_v27, %v4105_v62  ;;  %v5280_v9 = vmax.f32 %v5228_v5, 0.0  ;;  %v5232_v19 = vpop.f32.mrb[103].mxu0  ;;  %v14896_v34 = vld [vmem:[#allocation56_spill] sm:$0xff]  ;;  %v14900_v27 = vld [vmem:[#allocation51_spill] sm:$0xff] }
 0xad1   : > { %v5358_v31 = vpack.c.bf16 %v5339_v24, %v5338_v29  ;;  %v5231_v43 = vadd.f32 %v12923_v61, %v5230_v12  ;;  %v4047_v52 = vpop.xlane.xlu0 %4046 }
 0xad2   : > { %4365 = vst.msk [vmem:[%s13011_s22 + $0x98] sm:$0xff] %vm4345_vm5, %v4334_v18  ;;  %v4300_v55 = vadd.f32 %v14888_v41, %v4114_v37  ;;  %v4327_v32 = vadd.f32 %v12998_v56, %v4291_v21  ;;  %v4107_v17 = vadd.f32 %v4047_v52, %v14891_v44  ;;  %v5310_v25 = vmul.f32 %v12930_v35, %v5280_v9  ;;  %v14897_v18 = vld [vmem:[#allocation49_spill] sm:$0xff]  ;;  %v14901_v52 = vld [vmem:[#allocation22_spill] sm:$0xff] }
 0xad3   : > { %v4074_v3 = vpop.xlane.xlu1 %4073  ;;  %v5281_v51 = vmax.f32 %v5231_v43, 0.0  ;;  %8754 = vmatmul.mubr.msk.bf16.gmra.mrb[72].mxu1 %vm1400_vm4, %v5358_v31 }
 0xad4   : > { %v4336_v23 = vadd.f32 %v12998_v56, %v4300_v55  ;;  %v4116_v33 = vadd.f32 %v4074_v3, %v14890_v53  ;;  %4358 = vst.msk [vmem:[%s13011_s22 + $0x60] sm:$0xff] %vm4345_vm5, %v4327_v32  ;;  %v4293_v6 = vadd.f32 %v14893_v36, %v4107_v17  ;;  %8757 = vmatprep.mubr.msk.bf16.mxu1 %vm9868_vm1, %v14811_v63 }
 0xad5   : > { %v5340_v40 = vadd.f32 %v12941_v15, %v5310_v25  ;;  %v5311_v48 = vmul.f32 %v12930_v35, %v5281_v51  ;;  %v4053_v4 = vpop.xlane.xlu0 %4052  ;;  %v5235_v46 = vpop.f32.mrb[104].mxu0  ;;  %v14902_v51 = vld [vmem:[#allocation53_spill] sm:$0xff] }
 0xad6   : > { %4367 = vst.msk [vmem:[%s13011_s22 + $0xa8] sm:$0xff] %vm4345_vm5, %v4336_v23  ;;  %v4302_v16 = vadd.f32 %v14892_v11, %v4116_v33  ;;  %v4329_v2 = vadd.f32 %v12998_v56, %v4293_v6  ;;  %v4109_v28 = vadd.f32 %v4053_v4, %v14894_v1  ;;  %v5236_v49 = vadd.f32 %v12923_v61, %v5235_v46  ;;  %v5237_v60 = vpop.f32.mrb[105].mxu0  ;;  %v14903_v6 = vld [vmem:[#allocation24_spill] sm:$0xff] }
 0xad7   : > { %v5341_v13 = vadd.f32 %v12941_v15, %v5311_v48  ;;  %v5238_v50 = vpop.f32.mrb[106].mxu0 }
 0xad8   : > { %v4338_v8 = vadd.f32 %v12998_v56, %v4302_v16  ;;  %4360 = vst.msk [vmem:[%s13011_s22 + $0x70] sm:$0xff] %vm4345_vm5, %v4329_v2  ;;  %v4295_v38 = vadd.f32 %v14895_v10, %v4109_v28  ;;  %v5282_v14 = vmax.f32 %v5236_v49, 0.0  ;;  %v5239_v22 = vadd.f32 %v12923_v61, %v5238_v50  ;;  %v5240_v26 = vpop.f32.mrb[107].mxu0  ;;  %v14905_v50 = vld [vmem:[#allocation26_spill] sm:$0xff] }
 0xad9   : > { %v5359_v42 = vpack.c.bf16 %v5341_v13, %v5340_v40  ;;  %v4080_v57 = vpop.xlane.xlu1 %4079  ;;  %v4059_v47 = vpop.xlane.xlu0 %4058 }
 0xada   : > { %4369 = vst.msk [vmem:[%s13011_s22 + $0xb8] sm:$0xff] %vm4345_vm5, %v4338_v8  ;;  %v4331_v30 = vadd.f32 %v12998_v56, %v4295_v38  ;;  %v5312_v29 = vmul.f32 %v12930_v35, %v5282_v14  ;;  %v5283_v45 = vmax.f32 %v5239_v22, 0.0  ;;  %v4118_v0 = vadd.f32 %v4080_v57, %v14896_v34  ;;  %v14904_v8 = vld [vmem:[#allocation55_spill] sm:$0xff]  ;;  %v14907_v34 = vld [vmem:[#allocation28_spill] sm:$0xff] }
 0xadb   : > { %v4111_v54 = vadd.f32 %v4059_v47, %v14897_v18  ;;  %8758 = vmatmul.mubr.msk.bf16.gmra.mrb[76].mxu1 %vm1400_vm4, %v5359_v42 }
 0xadc   : > { %4362 = vst.msk [vmem:[%s13011_s22 + $0x80] sm:$0xff] %vm4345_vm5, %v4331_v30  ;;  %v5342_v39 = vadd.f32 %v12941_v15, %v5312_v29  ;;  %v5313_v37 = vmul.f32 %v12930_v35, %v5283_v45  ;;  %v4304_v62 = vadd.f32 %v14898_v59, %v4118_v0  ;;  %8761 = vmatprep.mubr.msk.bf16.mxu1 %vm9868_vm1, %v14811_v63  ;;  %v14906_v30 = vld [vmem:[#allocation57_spill] sm:$0xff] }
 0xadd   : > { %v4297_v24 = vadd.f32 %v14899_v20, %v4111_v54  ;;  %v4065_v5 = vpop.xlane.xlu0 %4064  ;;  %v5243_v7 = vpop.f32.mrb[108].mxu0 }
 0xade   : > { %v5343_v41 = vadd.f32 %v12941_v15, %v5313_v37  ;;  %v4340_v55 = vadd.f32 %v12998_v56, %v4304_v62  ;;  %v4113_v21 = vadd.f32 %v4065_v5, %v14900_v27  ;;  %v5244_v12 = vadd.f32 %v12923_v61, %v5243_v7  ;;  %v5245_v31 = vpop.f32.mrb[109].mxu0 }
 0xadf   : > { %v4333_v9 = vadd.f32 %v12998_v56, %v4297_v24  ;;  %v5246_v43 = vpop.f32.mrb[110].mxu0 }
 0xae0   : > { %v5360_v3 = vpack.c.bf16 %v5343_v41, %v5342_v39  ;;  %4371 = vst.msk [vmem:[%s13011_s22 + $0xc8] sm:$0xff] %vm4345_vm5, %v4340_v55  ;;  %v4299_v23 = vadd.f32 %v14901_v52, %v4113_v21  ;;  %v5284_v32 = vmax.f32 %v5244_v12, 0.0  ;;  %v5247_v53 = vadd.f32 %v12923_v61, %v5246_v43  ;;  %v5248_v33 = vpop.f32.mrb[111].mxu0 }
 0xae1   : > { %4364 = vst.msk [vmem:[%s13011_s22 + $0x90] sm:$0xff] %vm4345_vm5, %v4333_v9  ;;  %v4071_v44 = vpop.xlane.xlu0 %4070 }
 0xae2   : > { %v4335_v17 = vadd.f32 %v12998_v56, %v4299_v23  ;;  %v5314_v19 = vmul.f32 %v12930_v35, %v5284_v32  ;;  %v5285_v25 = vmax.f32 %v5247_v53, 0.0  ;;  %v4115_v11 = vadd.f32 %v4071_v44, %v14902_v51 }
 0xae3   : > { %8762 = vmatmul.mubr.msk.bf16.gmra.mrb[80].mxu1 %vm1400_vm4, %v5360_v3 }
 0xae4   : > { %4366 = vst.msk [vmem:[%s13011_s22 + $0xa0] sm:$0xff] %vm4345_vm5, %v4335_v17  ;;  %v5344_v16 = vadd.f32 %v12941_v15, %v5314_v19  ;;  %v5315_v36 = vmul.f32 %v12930_v35, %v5285_v25  ;;  %8765 = vmatprep.mubr.msk.bf16.mxu1 %vm9868_vm1, %v14811_v63  ;;  %v4301_v40 = vadd.f32 %v14903_v6, %v4115_v11 }
 0xae5   : > { %v4077_v48 = vpop.xlane.xlu0 %4076  ;;  %v5251_v4 = vpop.f32.mrb[112].mxu0 }
 0xae6   : > { %v5345_v46 = vadd.f32 %v12941_v15, %v5315_v36  ;;  %v4117_v2 = vadd.f32 %v4077_v48, %v14904_v8  ;;  %v5252_v1 = vadd.f32 %v12923_v61, %v5251_v4  ;;  %v5253_v28 = vpop.f32.mrb[113].mxu0  ;;  %v4337_v49 = vadd.f32 %v12998_v56, %v4301_v40 }
 0xae7   : > { %v5254_v60 = vpop.f32.mrb[114].mxu0 }
 0xae8   : > { %v5361_v13 = vpack.c.bf16 %v5345_v46, %v5344_v16  ;;  %v4303_v10 = vadd.f32 %v14905_v50, %v4117_v2  ;;  %v5286_v38 = vmax.f32 %v5252_v1, 0.0  ;;  %v5255_v14 = vadd.f32 %v12923_v61, %v5254_v60  ;;  %v5256_v22 = vpop.f32.mrb[115].mxu0  ;;  %4368 = vst.msk [vmem:[%s13011_s22 + $0xb0] sm:$0xff] %vm4345_vm5, %v4337_v49 }
 0xae9   : > { %v4083_v26 = vpop.xlane.xlu0 %4082 }
 0xaea   : > { %v4339_v42 = vadd.f32 %v12998_v56, %v4303_v10  ;;  %v5316_v57 = vmul.f32 %v12930_v35, %v5286_v38  ;;  %v5287_v47 = vmax.f32 %v5255_v14, 0.0  ;;  %v4119_v29 = vadd.f32 %v4083_v26, %v14906_v30 }
 0xaeb   : > { %8766 = vmatmul.mubr.msk.bf16.gmra.mrb[84].mxu1 %vm1400_vm4, %v5361_v13 }
 0xaec   : > { %4370 = vst.msk [vmem:[%s13011_s22 + $0xc0] sm:$0xff] %vm4345_vm5, %v4339_v42  ;;  %v5346_v45 = vadd.f32 %v12941_v15, %v5316_v57  ;;  %v5317_v61 = vmul.f32 %v12930_v35, %v5287_v47  ;;  %8769 = vmatprep.mubr.msk.bf16.mxu1 %vm9868_vm1, %v14811_v63  ;;  %v4305_v0 = vadd.f32 %v14907_v34, %v4119_v29 }
 0xaed   : > { %v5595_v18 = vpop.f32.mrb[116].mxu0 }
 0xaee   : > { %v5347_v54 = vadd.f32 %v12941_v15, %v5317_v61  ;;  %v8779_v39 = vpop.f32.mrb[117].mxu0  ;;  %v4341_v37 = vadd.f32 %v12998_v56, %v4305_v0 }
 0xaef   : > { %v13226_v59 = vpop.f32.mrb[118].mxu0 }
 0xaf0   : > { %v5362_v62 = vpack.c.bf16 %v5347_v54, %v5346_v45  ;;  %v8780_v20 = vpop.f32.mrb[119].mxu0  ;;  %4372 = vst.msk [vmem:[%s13011_s22 + $0xd0] sm:$0xff] %vm4345_vm5, %v4341_v37  ;;  %v13288_v54 = vld [vmem:[%s14768_s12] ss:$0 sm:$0xff] }
 0xaf3   : > { %8770 = vmatmul.mubr.msk.bf16.gmra.mrb[88].mxu1 %vm1400_vm4, %v5362_v62 }
 0xaf4   : > { %8841 = vmatprep.mubr.msk.bf16.mxu1 %vm9868_vm1, %v14811_v63 }
 0xaf5   : > { %v13233_v35 = vpop.f32.mrb[120].mxu0 }
 0xaf6   : > { %v8783_v24 = vpop.f32.mrb[121].mxu0 }
 0xaf7   : > { %v13235_v5 = vpop.f32.mrb[122].mxu0 }
 0xaf8   : > { %v8784_v15 = vpop.f32.mrb[123].mxu0 }
 0xafd   : > { %v13237_v7 = vpop.f32.mrb[124].mxu0 }
 0xafe   : > { %v8787_v56 = vpop.f32.mrb[125].mxu0 }
 0xaff   : > { %v13239_v41 = vpop.f32.mrb[126].mxu0 }
 0xb00   : > { %v8788_v55 = vpop.f32.mrb[127].mxu0 }
 0xb05   : > { %v13241_v27 = vpop.f32.mrb[128].mxu0 }
 0xb06   : > { %v8791_v21 = vpop.f32.mrb[129].mxu0 }
 0xb07   : > { %v13243_v12 = vpop.f32.mrb[130].mxu0 }
 0xb08   : > { %v8792_v31 = vpop.f32.mrb[131].mxu0 }
 0xb0d   : > { %v13245_v9 = vpop.f32.mrb[132].mxu0 }
 0xb0e   : > { %v8795_v43 = vpop.f32.mrb[133].mxu0 }
 0xb0f   : > { %v13247_v3 = vpop.f32.mrb[134].mxu0 }
 0xb10   : > { %v8796_v52 = vpop.f32.mrb[135].mxu0 }
 0xb15   : > { %v13249_v23 = vpop.f32.mrb[136].mxu0 }
 0xb16   : > { %v8799_v32 = vpop.f32.mrb[137].mxu0 }
 0xb17   : > { %v13251_v53 = vpop.f32.mrb[138].mxu0 }
 0xb18   : > { %v8800_v33 = vpop.f32.mrb[139].mxu0 }
 0xb1d   : > { %v13253_v44 = vpop.f32.mrb[140].mxu0 }
 0xb1e   : > { %v8803_v17 = vpop.f32.mrb[141].mxu0 }
 0xb1f   : > { %v13255_v19 = vpop.f32.mrb[142].mxu0 }
 0xb20   : > { %v8804_v25 = vpop.f32.mrb[143].mxu0 }
 0xb25   : > { %v13257_v51 = vpop.f32.mrb[144].mxu0 }
 0xb26   : > { %v8807_v11 = vpop.f32.mrb[145].mxu0 }
 0xb27   : > { %v13259_v16 = vpop.f32.mrb[146].mxu0 }
 0xb28   : > { %v8808_v36 = vpop.f32.mrb[147].mxu0 }
 0xb2d   : > { %v13261_v6 = vpop.f32.mrb[148].mxu0 }
 0xb2e   : > { %v8811_v40 = vpop.f32.mrb[149].mxu0 }
 0xb2f   : > { %v13263_v48 = vpop.f32.mrb[150].mxu0 }
 0xb30   : > { %v8812_v4 = vpop.f32.mrb[151].mxu0 }
 0xb35   : > { %v13265_v46 = vpop.f32.mrb[152].mxu0 }
 0xb36   : > { %v8815_v8 = vpop.f32.mrb[153].mxu0 }
 0xb37   : > { %v13267_v2 = vpop.f32.mrb[154].mxu0 }
 0xb38   : > { %v8816_v1 = vpop.f32.mrb[155].mxu0 }
 0xb3d   : > { %v13269_v28 = vpop.f32.mrb[156].mxu0 }
 0xb3e   : > { %v8819_v49 = vpop.f32.mrb[157].mxu0 }
 0xb3f   : > { %v13271_v60 = vpop.f32.mrb[158].mxu0 }
 0xb40   : > { %v8820_v13 = vpop.f32.mrb[159].mxu0 }
 0xb45   : > { %v13273_v50 = vpop.f32.mrb[160].mxu0 }
 0xb46   : > { %v8823_v10 = vpop.f32.mrb[161].mxu0 }
 0xb47   : > { %v13275_v38 = vpop.f32.mrb[162].mxu0 }
 0xb48   : > { %v8824_v14 = vpop.f32.mrb[163].mxu0 }
 0xb4d   : > { %v13277_v22 = vpop.f32.mrb[164].mxu0 }
 0xb4e   : > { %v8827_v26 = vpop.f32.mrb[165].mxu0 }
 0xb4f   : > { %v13279_v42 = vpop.f32.mrb[166].mxu0 }
 0xb50   : > { %v8828_v57 = vpop.f32.mrb[167].mxu0 }
 0xb55   : > { %v5442_v47 = vpop.f32.mrb[32].mxu1  ;;  %v13281_v30 = vpop.f32.mrb[168].mxu0 }
 0xb56   : > { %v5596_v29 = vadd.f32 %v5595_v18, %v5442_v47  ;;  %v8715_v45 = vpop.f32.mrb[33].mxu1  ;;  %v8831_v61 = vpop.f32.mrb[169].mxu0 }
 0xb57   : > { %v5445_v34 = vpop.f32.mrb[34].mxu1  ;;  %v13283_v0 = vpop.f32.mrb[170].mxu0 }
 0xb58   : > { %v13291_v39 = vadd.f32 %v13288_v54, %v5596_v29  ;;  %v5599_v37 = vadd.f32 %v13226_v59, %v5445_v34  ;;  %v8716_v62 = vpop.f32.mrb[35].mxu1  ;;  %v8832_v20 = vpop.f32.mrb[171].mxu0 }
 0xb5a   : > { %9358 = vtanh.f32 %v13291_v39  ;;  %v13296_v18 = vadd.f32 %v13288_v54, %v5599_v37 }
 0xb5c   : > { %9360 = vtanh.f32 %v13296_v18 }
 0xb5d   : > { %v5450_v24 = vpop.f32.mrb[36].mxu1  ;;  %v13299_v15 = vpop.f32.mrb[172].mxu0 }
 0xb5e   : > { %v5604_v56 = vadd.f32 %v13233_v35, %v5450_v24  ;;  %v8719_v55 = vpop.f32.mrb[37].mxu1  ;;  %v8835_v21 = vpop.f32.mrb[173].mxu0 }
 0xb5f   : > { %v5453_v31 = vpop.f32.mrb[38].mxu1  ;;  %v13302_v43 = vpop.f32.mrb[174].mxu0 }
 0xb60   : > { %v13305_v59 = vadd.f32 %v13288_v54, %v5604_v56  ;;  %v5607_v52 = vadd.f32 %v13235_v5, %v5453_v31  ;;  %v8720_v32 = vpop.f32.mrb[39].mxu1  ;;  %v8836_v33 = vpop.f32.mrb[175].mxu0 }
 0xb62   : > { %9362 = vtanh.f32 %v13305_v59  ;;  %v13310_v17 = vadd.f32 %v13288_v54, %v5607_v52 }
 0xb64   : > { %v9359_v25 = vpop.eup %9358  ;;  %9364 = vtanh.f32 %v13310_v17 }
 0xb65   : > { %5924 = vrot.lane.b32.xlu1 %v9359_v25, %s9870_s30  ;;  %v5458_v35 = vpop.f32.mrb[40].mxu1 }
 0xb66   : > { %v5612_v11 = vadd.f32 %v13237_v7, %v5458_v35  ;;  %v8723_v36 = vpop.f32.mrb[41].mxu1  ;;  %v9361_v40 = vpop.eup %9360 }
 0xb67   : > { %v5461_v4 = vpop.f32.mrb[42].mxu1  ;;  %5926 = vrot.lane.b32.xlu0 %v9361_v40, %s9870_s30 }
 0xb68   : > { %v13316_v5 = vadd.f32 %v13288_v54, %v5612_v11  ;;  %v5615_v8 = vadd.f32 %v13239_v41, %v5461_v4  ;;  %v8724_v1 = vpop.f32.mrb[43].mxu1 }
 0xb6a   : > { %9366 = vtanh.f32 %v13316_v5  ;;  %v13322_v49 = vadd.f32 %v13288_v54, %v5615_v8 }
 0xb6c   : > { %v9363_v13 = vpop.eup %9362  ;;  %9368 = vtanh.f32 %v13322_v49 }
 0xb6d   : > { %5928 = vrot.lane.b32.xlu1 %v9363_v13, %s9870_s30  ;;  %v5466_v7 = vpop.f32.mrb[44].mxu1 }
 0xb6e   : > { %v5620_v10 = vadd.f32 %v13241_v27, %v5466_v7  ;;  %v8727_v14 = vpop.f32.mrb[45].mxu1  ;;  %v9365_v26 = vpop.eup %9364 }
 0xb6f   : > { %v5469_v57 = vpop.f32.mrb[46].mxu1  ;;  %5930 = vrot.lane.b32.xlu0 %v9365_v26, %s9870_s30 }
 0xb70   : > { %v13328_v47 = vadd.f32 %v13288_v54, %v5620_v10  ;;  %v5623_v41 = vadd.f32 %v13243_v12, %v5469_v57  ;;  %v8728_v29 = vpop.f32.mrb[47].mxu1 }
 0xb72   : > { %9370 = vtanh.f32 %v13328_v47  ;;  %v13334_v45 = vadd.f32 %v13288_v54, %v5623_v41 }
 0xb74   : > { %v9367_v61 = vpop.eup %9366  ;;  %9372 = vtanh.f32 %v13334_v45 }
 0xb75   : > { %5932 = vrot.lane.b32.xlu1 %v9367_v61, %s9870_s30  ;;  %v5474_v27 = vpop.f32.mrb[48].mxu1 }
 0xb76   : > { %v5628_v34 = vadd.f32 %v13245_v9, %v5474_v27  ;;  %v8731_v37 = vpop.f32.mrb[49].mxu1  ;;  %v9369_v62 = vpop.eup %9368 }
 0xb77   : > { %v5477_v20 = vpop.f32.mrb[50].mxu1  ;;  %5934 = vrot.lane.b32.xlu0 %v9369_v62, %s9870_s30 }
 0xb78   : > { %v13340_v24 = vadd.f32 %v13288_v54, %v5628_v34  ;;  %v5631_v12 = vadd.f32 %v13247_v3, %v5477_v20  ;;  %v8732_v56 = vpop.f32.mrb[51].mxu1 }
 0xb7a   : > { %9374 = vtanh.f32 %v13340_v24  ;;  %v13346_v55 = vadd.f32 %v13288_v54, %v5631_v12 }
 0xb7c   : > { %v9371_v21 = vpop.eup %9370  ;;  %9376 = vtanh.f32 %v13346_v55 }
 0xb7d   : > { %5936 = vrot.lane.b32.xlu1 %v9371_v21, %s9870_s30  ;;  %v5482_v9 = vpop.f32.mrb[52].mxu1 }
 0xb7e   : > { %v5636_v31 = vadd.f32 %v13249_v23, %v5482_v9  ;;  %v8735_v52 = vpop.f32.mrb[53].mxu1  ;;  %v9373_v32 = vpop.eup %9372 }
 0xb7f   : > { %v5485_v33 = vpop.f32.mrb[54].mxu1  ;;  %5938 = vrot.lane.b32.xlu0 %v9373_v32, %s9870_s30 }
 0xb80   : > { %v13352_v25 = vadd.f32 %v13288_v54, %v5636_v31  ;;  %v5639_v3 = vadd.f32 %v13251_v53, %v5485_v33  ;;  %v8736_v35 = vpop.f32.mrb[55].mxu1 }
 0xb82   : > { %9378 = vtanh.f32 %v13352_v25  ;;  %v13358_v11 = vadd.f32 %v13288_v54, %v5639_v3 }
 0xb84   : > { %v9375_v36 = vpop.eup %9374  ;;  %9380 = vtanh.f32 %v13358_v11 }
 0xb85   : > { %5940 = vrot.lane.b32.xlu1 %v9375_v36, %s9870_s30  ;;  %v5490_v23 = vpop.f32.mrb[56].mxu1 }
 0xb86   : > { %v5644_v40 = vadd.f32 %v13253_v44, %v5490_v23  ;;  %v8739_v4 = vpop.f32.mrb[57].mxu1  ;;  %v9377_v8 = vpop.eup %9376 }
 0xb87   : > { %v5493_v1 = vpop.f32.mrb[58].mxu1  ;;  %5942 = vrot.lane.b32.xlu0 %v9377_v8, %s9870_s30 }
 0xb88   : > { %v13364_v13 = vadd.f32 %v13288_v54, %v5644_v40  ;;  %v5647_v53 = vadd.f32 %v13255_v19, %v5493_v1  ;;  %v8740_v7 = vpop.f32.mrb[59].mxu1 }
 0xb8a   : > { %9382 = vtanh.f32 %v13364_v13  ;;  %v13370_v10 = vadd.f32 %v13288_v54, %v5647_v53 }
 0xb8c   : > { %v9379_v14 = vpop.eup %9378  ;;  %9384 = vtanh.f32 %v13370_v10 }
 0xb8d   : > { %5944 = vrot.lane.b32.xlu1 %v9379_v14, %s9870_s30  ;;  %v5498_v44 = vpop.f32.mrb[60].mxu1 }
 0xb8e   : > { %v5652_v26 = vadd.f32 %v13257_v51, %v5498_v44  ;;  %v8743_v57 = vpop.f32.mrb[61].mxu1  ;;  %v9381_v41 = vpop.eup %9380 }
 0xb8f   : > { %v5501_v29 = vpop.f32.mrb[62].mxu1  ;;  %5946 = vrot.lane.b32.xlu0 %v9381_v41, %s9870_s30 }
 0xb90   : > { %v13376_v61 = vadd.f32 %v13288_v54, %v5652_v26  ;;  %v5655_v19 = vadd.f32 %v13259_v16, %v5501_v29  ;;  %v8744_v27 = vpop.f32.mrb[63].mxu1 }
 0xb92   : > { %9386 = vtanh.f32 %v13376_v61  ;;  %v13382_v34 = vadd.f32 %v13288_v54, %v5655_v19 }
 0xb94   : > { %v9383_v37 = vpop.eup %9382  ;;  %9388 = vtanh.f32 %v13382_v34 }
 0xb95   : > { %5948 = vrot.lane.b32.xlu1 %v9383_v37, %s9870_s30  ;;  %v5506_v51 = vpop.f32.mrb[64].mxu1 }
 0xb96   : > { %v5660_v62 = vadd.f32 %v13261_v6, %v5506_v51  ;;  %v8747_v20 = vpop.f32.mrb[65].mxu1  ;;  %v9385_v12 = vpop.eup %9384 }
 0xb97   : > { %v5509_v56 = vpop.f32.mrb[66].mxu1  ;;  %5950 = vrot.lane.b32.xlu0 %v9385_v12, %s9870_s30 }
 0xb98   : > { %v13388_v21 = vadd.f32 %v13288_v54, %v5660_v62  ;;  %v5663_v16 = vadd.f32 %v13263_v48, %v5509_v56  ;;  %v8748_v9 = vpop.f32.mrb[67].mxu1 }
 0xb9a   : > { %9390 = vtanh.f32 %v13388_v21  ;;  %v13394_v31 = vadd.f32 %v13288_v54, %v5663_v16 }
 0xb9c   : > { %v9387_v52 = vpop.eup %9386  ;;  %9392 = vtanh.f32 %v13394_v31 }
 0xb9d   : > { %5952 = vrot.lane.b32.xlu1 %v9387_v52, %s9870_s30 }
 0xb9e   : > { %v5514_v6 = vpop.f32.mrb[68].mxu1  ;;  %v9389_v32 = vpop.eup %9388 }
 0xb9f   : > { %v5668_v33 = vadd.f32 %v13265_v46, %v5514_v6  ;;  %v8751_v3 = vpop.f32.mrb[69].mxu1  ;;  %5954 = vrot.lane.b32.xlu0 %v9389_v32, %s9870_s30 }
 0xba0   : > { %v5517_v35 = vpop.f32.mrb[70].mxu1 }
 0xba1   : > { %v13401_v48 = vadd.f32 %v13288_v54, %v5668_v33  ;;  %v5671_v36 = vadd.f32 %v13267_v2, %v5517_v35  ;;  %v8752_v23 = vpop.f32.mrb[71].mxu1 }
 0xba3   : > { %9394 = vtanh.f32 %v13401_v48  ;;  %v13406_v40 = vadd.f32 %v13288_v54, %v5671_v36 }
 0xba4   : > { %v9391_v4 = vpop.eup %9390 }
 0xba5   : > { %5956 = vrot.lane.b32.xlu1 %v9391_v4, %s9870_s30  ;;  %9396 = vtanh.f32 %v13406_v40  ;;  %v5744_v4 = vmul.f32 0.5, %v13291_v39 }
 0xba6   : > { %v5522_v46 = vpop.f32.mrb[72].mxu1  ;;  %v9393_v8 = vpop.eup %9392 }
 0xba7   : > { %v5676_v1 = vadd.f32 %v13269_v28, %v5522_v46  ;;  %v8755_v53 = vpop.f32.mrb[73].mxu1  ;;  %5958 = vrot.lane.b32.xlu0 %v9393_v8, %s9870_s30 }
 0xba8   : > { %v5525_v7 = vpop.f32.mrb[74].mxu1 }
 0xba9   : > { %v13413_v2 = vadd.f32 %v13288_v54, %v5676_v1  ;;  %v5679_v14 = vadd.f32 %v13271_v60, %v5525_v7  ;;  %v8756_v44 = vpop.f32.mrb[75].mxu1 }
 0xbab   : > { %9398 = vtanh.f32 %v13413_v2  ;;  %v13418_v26 = vadd.f32 %v13288_v54, %v5679_v14 }
 0xbad   : > { %v9395_v57 = vpop.eup %9394  ;;  %9400 = vtanh.f32 %v13418_v26 }
 0xbae   : > { %5960 = vrot.lane.b32.xlu1 %v9395_v57, %s9870_s30  ;;  %v5530_v28 = vpop.f32.mrb[76].mxu1  ;;  %v5746_v57 = vmul.f32 0.5, %v13305_v59 }
 0xbaf   : > { %v5684_v41 = vadd.f32 %v13273_v50, %v5530_v28  ;;  %v8759_v29 = vpop.f32.mrb[77].mxu1  ;;  %v9397_v19 = vpop.eup %9396 }
 0xbb0   : > { %v5533_v27 = vpop.f32.mrb[78].mxu1  ;;  %5962 = vrot.lane.b32.xlu0 %v9397_v19, %s9870_s30 }
 0xbb1   : > { %v13424_v37 = vadd.f32 %v13288_v54, %v5684_v41  ;;  %v5687_v60 = vadd.f32 %v13275_v38, %v5533_v27  ;;  %v8760_v51 = vpop.f32.mrb[79].mxu1  ;;  %v13474_v27 = vpop.xlane.xlu1 %4085 }
 0xbb3   : > { %9402 = vtanh.f32 %v13424_v37  ;;  %v13430_v62 = vadd.f32 %v13288_v54, %v5687_v60 }
 0xbb5   : > { %v9399_v20 = vpop.eup %9398  ;;  %9404 = vtanh.f32 %v13430_v62 }
 0xbb6   : > { %5964 = vrot.lane.b32.xlu1 %v9399_v20, %s9870_s30  ;;  %v5538_v50 = vpop.f32.mrb[80].mxu1  ;;  %v13478_v20 = vpop.xlane.xlu1 %4091 }
 0xbb7   : > { %v5692_v12 = vadd.f32 %v13277_v22, %v5538_v50  ;;  %v8763_v56 = vpop.f32.mrb[81].mxu1  ;;  %v9401_v16 = vpop.eup %9400 }
 0xbb8   : > { %v5541_v9 = vpop.f32.mrb[82].mxu1  ;;  %5966 = vrot.lane.b32.xlu0 %v9401_v16, %s9870_s30  ;;  %v13481_v56 = vpop.xlane.xlu0 %4088 }
 0xbb9   : > { %v13436_v52 = vadd.f32 %v13288_v54, %v5692_v12  ;;  %v5695_v38 = vadd.f32 %v13279_v42, %v5541_v9  ;;  %v8764_v6 = vpop.f32.mrb[83].mxu1 }
 0xbba   : > { %v5750_v6 = vmul.f32 0.5, %v13328_v47 }
 0xbbb   : > { %9406 = vtanh.f32 %v13436_v52  ;;  %v13442_v32 = vadd.f32 %v13288_v54, %v5695_v38 }
 0xbbd   : > { %v9403_v33 = vpop.eup %9402  ;;  %9408 = vtanh.f32 %v13442_v32 }
 0xbbe   : > { %5968 = vrot.lane.b32.xlu1 %v9403_v33, %s9870_s30  ;;  %v5546_v22 = vpop.f32.mrb[84].mxu1 }
 0xbbf   : > { %v5700_v3 = vadd.f32 %v13281_v30, %v5546_v22  ;;  %v8767_v35 = vpop.f32.mrb[85].mxu1  ;;  %v9405_v36 = vpop.eup %9404  ;;  %v5745_v30 = vmul.f32 0.5, %v13296_v18 }
 0xbc0   : > { %v5549_v23 = vpop.f32.mrb[86].mxu1  ;;  %5970 = vrot.lane.b32.xlu0 %v9405_v36, %s9870_s30 }
 0xbc1   : > { %v13449_v42 = vadd.f32 %v13288_v54, %v5700_v3  ;;  %v5703_v46 = vadd.f32 %v13283_v0, %v5549_v23  ;;  %v8768_v8 = vpop.f32.mrb[87].mxu1  ;;  %v5751_v23 = vmul.f32 0.5, %v13334_v45  ;;  %v5753_v45 = vmul.f32 0.5, %v13346_v55 }
 0xbc3   : > { %9410 = vtanh.f32 %v13449_v42  ;;  %v13455_v1 = vadd.f32 %v13288_v54, %v5703_v46 }
 0xbc4   : > { %9412 = vtanh.f32 %v5744_v4 }
 0xbc5   : > { %v9407_v53 = vpop.eup %9406  ;;  %9414 = vtanh.f32 %v13455_v1 }
 0xbc6   : > { %5972 = vrot.lane.b32.xlu1 %v9407_v53, %s9870_s30  ;;  %v5554_v39 = vpop.f32.mrb[88].mxu1  ;;  %9416 = vtanh.f32 %v5745_v30 }
 0xbc7   : > { %v5708_v7 = vadd.f32 %v13299_v15, %v5554_v39  ;;  %v8771_v14 = vpop.f32.mrb[89].mxu1  ;;  %v9409_v44 = vpop.eup %9408  ;;  %v5747_v15 = vmul.f32 0.5, %v13310_v17  ;;  %v5749_v17 = vmul.f32 0.5, %v13322_v49 }
 0xbc8   : > { %v5557_v0 = vpop.f32.mrb[90].mxu1  ;;  %5974 = vrot.lane.b32.xlu0 %v9409_v44, %s9870_s30 }
 0xbc9   : > { %v13463_v28 = vadd.f32 %v13288_v54, %v5708_v7  ;;  %v5711_v18 = vadd.f32 %v13302_v43, %v5557_v0  ;;  %v8772_v41 = vpop.f32.mrb[91].mxu1  ;;  %v5748_v43 = vmul.f32 0.5, %v13316_v5 }
 0xbcb   : > { %9418 = vtanh.f32 %v13463_v28  ;;  %v13469_v29 = vadd.f32 %v13288_v54, %v5711_v18 }
 0xbcc   : > { %9420 = vtanh.f32 %v5746_v57 }
 0xbcd   : > { %v9411_v19 = vpop.eup %9410  ;;  %9422 = vtanh.f32 %v13469_v29 }
 0xbce   : > { %5976 = vrot.lane.b32.xlu1 %v9411_v19, %s9870_s30  ;;  %v9413_v59 = vpop.eup %9412  ;;  %9424 = vtanh.f32 %v5747_v15 }
 0xbcf   : > { %v9415_v60 = vpop.eup %9414  ;;  %v5804_v54 = vmul.f32 0.5, %v9413_v59  ;;  %9426 = vtanh.f32 %v5748_v43 }
 0xbd0   : > { %5978 = vrot.lane.b32.xlu0 %v9415_v60, %s9870_s30  ;;  %v9417_v51 = vpop.eup %9416  ;;  %9428 = vtanh.f32 %v5749_v17 }
 0xbd1   : > { %v5805_v12 = vmul.f32 0.5, %v9417_v51  ;;  %v13484_v16 = vadd.f32 0.5, %v5804_v54 }
 0xbd3   : > { %v13489_v49 = vadd.f32 0.5, %v5805_v12 }
 0xbd5   : > { %v9419_v50 = vpop.eup %9418 }
 0xbd6   : > { %5980 = vrot.lane.b32.xlu1 %v9419_v50, %s9870_s30  ;;  %v9421_v9 = vpop.eup %9420  ;;  %v5755_v50 = vmul.f32 0.5, %v13358_v11 }
 0xbd7   : > { %v5925_v38 = vpop.permute.xlu1 %5924  ;;  %v9423_v5 = vpop.eup %9422  ;;  %v5806_v35 = vmul.f32 0.5, %v9421_v9 }
 0xbd8   : > { %v6014_v33 = vmul.f32 %v5925_v38, %v13484_v16  ;;  %5982 = vrot.lane.b32.xlu0 %v9423_v5, %s9870_s30  ;;  %v9425_v22 = vpop.eup %9424 }
 0xbd9   : > { %v5927_v3 = vpop.permute.xlu0 %5926  ;;  %v5807_v4 = vmul.f32 0.5, %v9425_v22  ;;  %v13493_v46 = vadd.f32 0.5, %v5806_v35  ;;  %v9427_v47 = vpop.eup %9426 }
 0xbda   : > { %9430 = vtanh.f32 %v6014_v33  ;;  %v6015_v36 = vmul.f32 %v5927_v3, %v13489_v49  ;;  %v9429_v39 = vpop.eup %9428  ;;  %v5808_v14 = vmul.f32 0.5, %v9427_v47 }
 0xbdb   : > { %9432 = vtanh.f32 %v5750_v6  ;;  %v13496_v53 = vadd.f32 0.5, %v5807_v4  ;;  %v5809_v57 = vmul.f32 0.5, %v9429_v39 }
 0xbdc   : > { %9434 = vtanh.f32 %v6015_v36  ;;  %v13501_v41 = vadd.f32 0.5, %v5808_v14  ;;  %v5757_v36 = vmul.f32 0.5, %v13370_v10  ;;  %v5759_v14 = vmul.f32 0.5, %v13382_v34 }
 0xbdd   : > { %9436 = vtanh.f32 %v5751_v23  ;;  %v13505_v60 = vadd.f32 0.5, %v5809_v57 }
 0xbdf   : > { %v5929_v8 = vpop.permute.xlu1 %5928 }
 0xbe0   : > { %v6016_v30 = vmul.f32 %v5929_v8, %v13493_v46 }
 0xbe1   : > { %v5931_v7 = vpop.permute.xlu0 %5930 }
 0xbe2   : > { %9438 = vtanh.f32 %v6016_v30  ;;  %v6017_v44 = vmul.f32 %v5931_v7, %v13496_v53 }
 0xbe4   : > { %v9431_v0 = vpop.eup %9430  ;;  %9440 = vtanh.f32 %v6017_v44 }
 0xbe5   : > { %6104 = vrot.lane.b32.xlu1 %v9431_v0, %s14908_s2  ;;  %v9433_v18 = vpop.eup %9432  ;;  %9442 = vtanh.f32 %v5753_v45 }
 0xbe6   : > { %v9435_v15 = vpop.eup %9434  ;;  %v5810_v55 = vmul.f32 0.5, %v9433_v18 }
 0xbe7   : > { %v5933_v19 = vpop.permute.xlu1 %5932  ;;  %6106 = vrot.lane.b32.xlu0 %v9435_v15, %s14908_s2  ;;  %v9437_v43 = vpop.eup %9436  ;;  %v5761_v15 = vmul.f32 0.5, %v13394_v31 }
 0xbe8   : > { %v6018_v59 = vmul.f32 %v5933_v19, %v13501_v41  ;;  %v5811_v12 = vmul.f32 0.5, %v9437_v43  ;;  %v13510_v9 = vadd.f32 0.5, %v5810_v55 }
 0xbe9   : > { %v5935_v51 = vpop.permute.xlu0 %5934 }
 0xbea   : > { %9444 = vtanh.f32 %v6018_v59  ;;  %v6019_v54 = vmul.f32 %v5935_v51, %v13505_v60  ;;  %v13514_v33 = vadd.f32 0.5, %v5811_v12  ;;  %v5754_v12 = vmul.f32 0.5, %v13352_v25 }
 0xbeb   : > { %v5758_v25 = vmul.f32 0.5, %v13376_v61  ;;  %v5760_v61 = vmul.f32 0.5, %v13388_v21 }
 0xbec   : > { %v9439_v17 = vpop.eup %9438  ;;  %9446 = vtanh.f32 %v6019_v54  ;;  %v5752_v54 = vmul.f32 0.5, %v13340_v24  ;;  %v5756_v24 = vmul.f32 0.5, %v13364_v13  ;;  %v13551_v13 = vld [vmem:[%s14773_s17] ss:$0 sm:$0xff] }
 0xbed   : > { %6108 = vrot.lane.b32.xlu1 %v9439_v17, %s14908_s2  ;;  %9448 = vtanh.f32 %v5755_v50  ;;  %v5763_v17 = vmul.f32 0.5, %v13406_v40  ;;  %v5765_v40 = vmul.f32 0.5, %v13418_v26 }
 0xbee   : > { %v9441_v38 = vpop.eup %9440 }
 0xbef   : > { %v5937_v5 = vpop.permute.xlu1 %5936  ;;  %6110 = vrot.lane.b32.xlu0 %v9441_v38, %s14908_s2  ;;  %v9443_v22 = vpop.eup %9442 }
 0xbf0   : > { %v6020_v6 = vmul.f32 %v5937_v5, %v13510_v9  ;;  %v5813_v23 = vmul.f32 0.5, %v9443_v22 }
 0xbf1   : > { %v5939_v3 = vpop.permute.xlu0 %5938 }
 0xbf2   : > { %9450 = vtanh.f32 %v6020_v6  ;;  %v6021_v11 = vmul.f32 %v5939_v3, %v13514_v33  ;;  %v13520_v47 = vadd.f32 0.5, %v5813_v23 }
 0xbf4   : > { %v9445_v35 = vpop.eup %9444  ;;  %9452 = vtanh.f32 %v6021_v11  ;;  %v9820_v11 = vld [vmem:[%s10001_s26 + $0xd8] sm:$0xff] }
 0xbf5   : > { %6112 = vrot.lane.b32.xlu1 %v9445_v35, %s14908_s2  ;;  %9454 = vtanh.f32 %v5757_v36  ;;  %v4150_v35 = vmax.f32 %v9820_v11, 0.0 }
 0xbf6   : > { %v9447_v4 = vpop.eup %9446 }
 0xbf7   : > { %6114 = vrot.lane.b32.xlu0 %v9447_v4, %s14908_s2  ;;  %v9449_v8 = vpop.eup %9448  ;;  %v4186_v26 = vmul.f32 %v13551_v13, %v4150_v35 }
 0xbf8   : > { %v5815_v10 = vmul.f32 0.5, %v9449_v8 }
 0xbf9   : > { %v5943_v30 = vpop.permute.xlu0 %5942 }
 0xbfa   : > { %v6023_v39 = vmul.f32 %v5943_v30, %v13520_v47  ;;  %v13526_v0 = vadd.f32 0.5, %v5815_v10 }
 0xbfc   : > { %v9451_v7 = vpop.eup %9450  ;;  %9456 = vtanh.f32 %v6023_v39 }
 0xbfd   : > { %6116 = vrot.lane.b32.xlu1 %v9451_v7, %s14908_s2  ;;  %9458 = vtanh.f32 %v5759_v14  ;;  %v5767_v7 = vmul.f32 0.5, %v13430_v62 }
 0xbfe   : > { %v9453_v44 = vpop.eup %9452 }
 0xbff   : > { %6118 = vrot.lane.b32.xlu0 %v9453_v44, %s14908_s2  ;;  %v9455_v45 = vpop.eup %9454 }
 0xc00   : > { %v5817_v19 = vmul.f32 0.5, %v9455_v45  ;;  %v4270_v45 = vsel %vm713_vm2, %v4186_v26, 0.0  ;;  %v5768_v26 = vmul.f32 0.5, %v13436_v52  ;;  %v5772_v52 = vmul.f32 0.5, %v13463_v28 }
 0xc01   : > { %v5947_v57 = vpop.permute.xlu0 %5946 }
 0xc02   : > { %v6025_v18 = vmul.f32 %v5947_v57, %v13526_v0  ;;  %v13531_v34 = vadd.f32 0.5, %v5817_v19 }
 0xc04   : > { %9460 = vtanh.f32 %v6025_v18  ;;  %v5941_v18 = vpop.permute.xlu1 %5940 }
 0xc05   : > { %9462 = vtanh.f32 %v5761_v15  ;;  %v5762_v15 = vmul.f32 0.5, %v13401_v48 }
 0xc06   : > { %v9457_v59 = vpop.eup %9456 }
 0xc07   : > { %6122 = vrot.lane.b32.xlu0 %v9457_v59, %s14908_s2  ;;  %v9459_v43 = vpop.eup %9458 }
 0xc08   : > { %v5819_v50 = vmul.f32 0.5, %v9459_v43 }
 0xc09   : > { %v5951_v51 = vpop.permute.xlu0 %5950 }
 0xc0a   : > { %v6027_v55 = vmul.f32 %v5951_v51, %v13531_v34  ;;  %v13538_v38 = vadd.f32 0.5, %v5819_v50  ;;  %v5769_v50 = vmul.f32 0.5, %v13442_v32 }
 0xc0c   : > { %9464 = vtanh.f32 %v6027_v55  ;;  %v5945_v55 = vpop.permute.xlu1 %5944 }
 0xc0d   : > { %9466 = vtanh.f32 %v5752_v54 }
 0xc0e   : > { %v9461_v31 = vpop.eup %9460  ;;  %9468 = vtanh.f32 %v5763_v17  ;;  %v5764_v17 = vmul.f32 0.5, %v13413_v2 }
 0xc0f   : > { %6126 = vrot.lane.b32.xlu0 %v9461_v31, %s14908_s2  ;;  %v9463_v5 = vpop.eup %9462  ;;  %9470 = vtanh.f32 %v5754_v12 }
 0xc10   : > { %v5821_v3 = vmul.f32 0.5, %v9463_v5 }
 0xc11   : > { %v5955_v6 = vpop.permute.xlu0 %5954 }
 0xc12   : > { %v6029_v22 = vmul.f32 %v5955_v6, %v13538_v38  ;;  %v13546_v23 = vadd.f32 0.5, %v5821_v3  ;;  %v5766_v3 = vmul.f32 0.5, %v13424_v37 }
 0xc14   : > { %9472 = vtanh.f32 %v6029_v22 }
 0xc15   : > { %9474 = vtanh.f32 %v5756_v24 }
 0xc16   : > { %v9465_v36 = vpop.eup %9464  ;;  %9476 = vtanh.f32 %v5765_v40  ;;  %v5949_v40 = vpop.permute.xlu1 %5948 }
 0xc17   : > { %6130 = vrot.lane.b32.xlu0 %v9465_v36, %s14908_s2  ;;  %v9467_v4 = vpop.eup %9466  ;;  %9478 = vtanh.f32 %v5758_v25 }
 0xc18   : > { %v9469_v30 = vpop.eup %9468  ;;  %v5812_v14 = vmul.f32 0.5, %v9467_v4 }
 0xc19   : > { %v5959_v8 = vpop.permute.xlu0 %5958  ;;  %v9471_v10 = vpop.eup %9470  ;;  %v5823_v44 = vmul.f32 0.5, %v9469_v30  ;;  %v5771_v30 = vmul.f32 0.5, %v13455_v1 }
 0xc1a   : > { %v6031_v39 = vmul.f32 %v5959_v8, %v13546_v23  ;;  %v13560_v19 = vadd.f32 0.5, %v5812_v14  ;;  %v5814_v59 = vmul.f32 0.5, %v9471_v10  ;;  %v5953_v4 = vpop.permute.xlu1 %5952  ;;  %v5770_v14 = vmul.f32 0.5, %v13449_v42 }
 0xc1b   : > { %v13562_v62 = vadd.f32 0.5, %v5823_v44 }
 0xc1c   : > { %9480 = vtanh.f32 %v6031_v39  ;;  %v6022_v51 = vmul.f32 %v5941_v18, %v13560_v19  ;;  %v13568_v31 = vadd.f32 0.5, %v5814_v59 }
 0xc1d   : > { %9482 = vtanh.f32 %v5760_v61 }
 0xc1e   : > { %v9473_v57 = vpop.eup %9472  ;;  %9484 = vtanh.f32 %v5767_v7  ;;  %v6024_v24 = vmul.f32 %v5945_v55, %v13568_v31 }
 0xc1f   : > { %6134 = vrot.lane.b32.xlu0 %v9473_v57, %s14908_s2  ;;  %v9475_v21 = vpop.eup %9474  ;;  %9486 = vtanh.f32 %v5762_v15 }
 0xc20   : > { %v9477_v43 = vpop.eup %9476  ;;  %v5816_v12 = vmul.f32 0.5, %v9475_v21 }
 0xc21   : > { %4271 = vadd.xlane.f32.xlu1 %v4270_v45  ;;  %v9479_v5 = vpop.eup %9478  ;;  %v5825_v6 = vmul.f32 0.5, %v9477_v43  ;;  %v5957_v45 = vpop.permute.xlu1 %5956 }
 0xc22   : > { %v5963_v54 = vpop.permute.xlu0 %5962  ;;  %v13573_v2 = vadd.f32 0.5, %v5816_v12  ;;  %v5818_v32 = vmul.f32 0.5, %v9479_v5 }
 0xc23   : > { %v6033_v48 = vmul.f32 %v5963_v54, %v13562_v62  ;;  %v13575_v35 = vadd.f32 0.5, %v5825_v6 }
 0xc24   : > { %v6026_v25 = vmul.f32 %v5949_v40, %v13573_v2  ;;  %v13581_v39 = vadd.f32 0.5, %v5818_v32 }
 0xc25   : > { %9488 = vtanh.f32 %v6033_v48 }
 0xc26   : > { %v9481_v22 = vpop.eup %9480  ;;  %9490 = vtanh.f32 %v6022_v51  ;;  %v6028_v44 = vmul.f32 %v5953_v4, %v13581_v39  ;;  %v5961_v51 = vpop.permute.xlu1 %5960 }
 0xc27   : > { %9492 = vtanh.f32 %v5764_v17  ;;  %6138 = vrot.lane.b32.xlu0 %v9481_v22, %s14908_s2  ;;  %v9483_v11 = vpop.eup %9482  ;;  %v5773_v17 = vmul.f32 0.5, %v13469_v29 }
 0xc28   : > { %9494 = vtanh.f32 %v5769_v50  ;;  %v9485_v36 = vpop.eup %9484  ;;  %v5820_v61 = vmul.f32 0.5, %v9483_v11 }
 0xc29   : > { %9496 = vtanh.f32 %v6024_v24  ;;  %v9487_v7 = vpop.eup %9486  ;;  %v5827_v10 = vmul.f32 0.5, %v9485_v36 }
 0xc2a   : > { %v5967_v8 = vpop.permute.xlu0 %5966  ;;  %9498 = vtanh.f32 %v5766_v3  ;;  %v13586_v15 = vadd.f32 0.5, %v5820_v61  ;;  %v5822_v1 = vmul.f32 0.5, %v9487_v7  ;;  %v5965_v22 = vpop.permute.xlu1 %5964 }
 0xc2b   : > { %v6035_v37 = vmul.f32 %v5967_v8, %v13575_v35  ;;  %v13589_v42 = vadd.f32 0.5, %v5827_v10 }
 0xc2c   : > { %v6030_v43 = vmul.f32 %v5957_v45, %v13586_v15  ;;  %v13595_v48 = vadd.f32 0.5, %v5822_v1 }
 0xc2d   : > { %9500 = vtanh.f32 %v6035_v37 }
 0xc2e   : > { %9502 = vtanh.f32 %v6026_v25  ;;  %v6032_v6 = vmul.f32 %v5961_v51, %v13595_v48 }
 0xc2f   : > { %v9489_v57 = vpop.eup %9488  ;;  %9504 = vtanh.f32 %v5768_v26 }
 0xc30   : > { %v9491_v18 = vpop.eup %9490  ;;  %9506 = vtanh.f32 %v5771_v30  ;;  %6142 = vrot.lane.b32.xlu0 %v9489_v57, %s14908_s2  ;;  %v5969_v4 = vpop.permute.xlu1 %5968 }
 0xc31   : > { %v9493_v59 = vpop.eup %9492  ;;  %9508 = vtanh.f32 %v5770_v14 }
 0xc32   : > { %6120 = vrot.lane.b32.xlu1 %v9491_v18, %s14908_s2  ;;  %v9495_v21 = vpop.eup %9494  ;;  %9510 = vtanh.f32 %v6028_v44  ;;  %v5971_v55 = vpop.permute.xlu0 %5970  ;;  %v5824_v50 = vmul.f32 0.5, %v9493_v59 }
 0xc33   : > { %v6037_v54 = vmul.f32 %v5971_v55, %v13589_v42  ;;  %v9497_v28 = vpop.eup %9496  ;;  %9512 = vtanh.f32 %v5772_v52  ;;  %v5829_v5 = vmul.f32 0.5, %v9495_v21 }
 0xc34   : > { %v9499_v12 = vpop.eup %9498  ;;  %v13599_v3 = vadd.f32 0.5, %v5824_v50 }
 0xc35   : > { %9514 = vtanh.f32 %v6037_v54  ;;  %v5826_v32 = vmul.f32 0.5, %v9499_v12  ;;  %v13602_v11 = vadd.f32 0.5, %v5829_v5 }
 0xc36   : > { %6124 = vrot.lane.b32.xlu1 %v9497_v28, %s14908_s2  ;;  %9516 = vtanh.f32 %v6030_v43  ;;  %v6034_v25 = vmul.f32 %v5965_v22, %v13599_v3 }
 0xc37   : > { %v9501_v24 = vpop.eup %9500  ;;  %9518 = vtanh.f32 %v5773_v17  ;;  %v13607_v61 = vadd.f32 0.5, %v5826_v32 }
 0xc38   : > { %v9503_v40 = vpop.eup %9502  ;;  %6146 = vrot.lane.b32.xlu0 %v9501_v24, %s14908_s2  ;;  %9520 = vtanh.f32 %v6032_v6  ;;  %v5973_v45 = vpop.permute.xlu1 %5972 }
 0xc39   : > { %v9505_v29 = vpop.eup %9504  ;;  %v6036_v44 = vmul.f32 %v5969_v4, %v13607_v61 }
 0xc3a   : > { %6128 = vrot.lane.b32.xlu1 %v9503_v40, %s14908_s2  ;;  %v9507_v36 = vpop.eup %9506  ;;  %v5975_v8 = vpop.permute.xlu0 %5974  ;;  %v5828_v7 = vmul.f32 0.5, %v9505_v29 }
 0xc3b   : > { %v9509_v26 = vpop.eup %9508  ;;  %v6039_v37 = vmul.f32 %v5975_v8, %v13602_v11  ;;  %v5831_v14 = vmul.f32 0.5, %v9507_v36 }
 0xc3c   : > { %v9511_v30 = vpop.eup %9510  ;;  %v5830_v18 = vmul.f32 0.5, %v9509_v26  ;;  %v13611_v1 = vadd.f32 0.5, %v5828_v7 }
 0xc3d   : > { %9522 = vtanh.f32 %v6039_v37  ;;  %v9513_v10 = vpop.eup %9512  ;;  %v13614_v59 = vadd.f32 0.5, %v5831_v14 }
 0xc3e   : > { %6132 = vrot.lane.b32.xlu1 %v9511_v30, %s14908_s2  ;;  %9524 = vtanh.f32 %v6034_v25  ;;  %v6038_v43 = vmul.f32 %v5973_v45, %v13611_v1  ;;  %v5832_v54 = vmul.f32 0.5, %v9513_v10  ;;  %v13618_v28 = vadd.f32 0.5, %v5830_v18 }
 0xc3f   : > { %v9515_v57 = vpop.eup %9514  ;;  %9526 = vtanh.f32 %v6036_v44 }
 0xc40   : > { %v9517_v52 = vpop.eup %9516  ;;  %6150 = vrot.lane.b32.xlu0 %v9515_v57, %s14908_s2  ;;  %v5977_v51 = vpop.permute.xlu1 %5976  ;;  %v13623_v6 = vadd.f32 0.5, %v5832_v54 }
 0xc41   : > { %v9519_v21 = vpop.eup %9518  ;;  %v6040_v12 = vmul.f32 %v5977_v51, %v13618_v28 }
 0xc42   : > { %6136 = vrot.lane.b32.xlu1 %v9517_v52, %s14908_s2  ;;  %v5979_v55 = vpop.permute.xlu0 %5978  ;;  %v9521_v50 = vpop.eup %9520  ;;  %v5833_v5 = vmul.f32 0.5, %v9519_v21 }
 0xc43   : > { %v6041_v17 = vmul.f32 %v5979_v55, %v13614_v59 }
 0xc44   : > { %v13627_v29 = vadd.f32 0.5, %v5833_v5 }
 0xc45   : > { %9528 = vtanh.f32 %v6041_v17 }
 0xc46   : > { %6140 = vrot.lane.b32.xlu1 %v9521_v50, %s14908_s2  ;;  %9530 = vtanh.f32 %v6038_v43  ;;  %v9822_v50 = vld [vmem:[%s10001_s26 + $0xe8] sm:$0xff] }
 0xc47   : > { %v9523_v22 = vpop.eup %9522  ;;  %9532 = vtanh.f32 %v6040_v12 }
 0xc48   : > { %v5981_v24 = vpop.permute.xlu1 %5980  ;;  %v9525_v40 = vpop.eup %9524  ;;  %6154 = vrot.lane.b32.xlu0 %v9523_v22, %s14908_s2 }
 0xc49   : > { %v6042_v32 = vmul.f32 %v5981_v24, %v13623_v6  ;;  %v9527_v4 = vpop.eup %9526 }
 0xc4a   : > { %6144 = vrot.lane.b32.xlu1 %v9525_v40, %s14908_s2  ;;  %v5983_v36 = vpop.permute.xlu0 %5982 }
 0xc4b   : > { %9534 = vtanh.f32 %v6042_v32  ;;  %v6043_v25 = vmul.f32 %v5983_v36, %v13627_v29  ;;  %v14909_v32 = vld [vmem:[#allocation3_spill] sm:$0xff] }
 0xc4d   : > { %9536 = vtanh.f32 %v6043_v25 }
 0xc4e   : > { %6148 = vrot.lane.b32.xlu1 %v9527_v4, %s14908_s2 }
 0xc4f   : > { %v9529_v8 = vpop.eup %9528 }
 0xc50   : > { %v9531_v26 = vpop.eup %9530  ;;  %6158 = vrot.lane.b32.xlu0 %v9529_v8, %s14908_s2 }
 0xc51   : > { %v9533_v37 = vpop.eup %9532 }
 0xc52   : > { %6152 = vrot.lane.b32.xlu1 %v9531_v26, %s14908_s2 }
 0xc55   : > { %v9535_v30 = vpop.eup %9534 }
 0xc56   : > { %6160 = vrot.lane.b32.xlu0 %v9535_v30, %s14908_s2  ;;  %6156 = vrot.lane.b32.xlu1 %v9533_v37, %s14908_s2 }
 0xc57   : > { %v6105_v7 = vpop.permute.xlu1 %6104  ;;  %v9537_v14 = vpop.eup %9536 }
 0xc58   : > { %v6194_v44 = vmul.f32 %v6105_v7, %v13484_v16 }
 0xc59   : > { %v6107_v10 = vpop.permute.xlu0 %6106 }
 0xc5a   : > { %6162 = vrot.lane.b32.xlu0 %v9537_v14, %s14908_s2  ;;  %v13639_v45 = vmul.f32 %v6107_v10, %v13489_v49  ;;  %v6962_v40 = vmax.f32 %v6194_v44, 0.0  ;;  %v14910_v10 = vld [vmem:[#allocation59_spill] sm:$0xff] }
 0xc5c   : > { %v6224_v57 = vpack.c.bf16 %v13639_v45, %v6194_v44  ;;  %v6992_v36 = vmul.f32 %v6962_v40, %v14909_v32  ;;  %v4120_v44 = vadd.f32 %v13474_v27, %v14910_v10 }
 0xc5e   : > { %6254 = vrot.lane.b32.xlu0 %v6224_v57, %s9872_s21 }
 0xc5f   : > { %v6109_v18 = vpop.permute.xlu1 %6108 }
 0xc60   : > { %v6196_v21 = vmul.f32 %v6109_v18, %v13493_v46  ;;  %v4152_v46 = vmax.f32 %v9822_v50, 0.0 }
 0xc61   : > { %v6111_v52 = vpop.permute.xlu0 %6110 }
 0xc62   : > { %v13645_v43 = vmul.f32 %v6111_v52, %v13496_v53  ;;  %v4188_v24 = vmul.f32 %v13551_v13, %v4152_v46  ;;  %v6964_v25 = vmax.f32 %v6196_v21, 0.0 }
 0xc64   : > { %v6225_v51 = vpack.c.bf16 %v13645_v43, %v6196_v21  ;;  %v13678_v21 = vld [vmem:[#allocation2] ss:$0 sm:$0xff] }
 0xc66   : > { %6256 = vrot.lane.b32.xlu0 %v6225_v51, %s9872_s21 }
 0xc67   : > { %v6113_v16 = vpop.permute.xlu1 %6112 }
 0xc68   : > { %v6198_v49 = vmul.f32 %v6113_v16, %v13501_v41 }
 0xc69   : > { %v6115_v55 = vpop.permute.xlu0 %6114 }
 0xc6a   : > { %v13651_v54 = vmul.f32 %v6115_v55, %v13505_v60  ;;  %v4276_v60 = vsel %vm713_vm2, %v4188_v24, 0.0  ;;  %v6966_v4 = vmax.f32 %v6198_v49, 0.0 }
 0xc6c   : > { %v6226_v17 = vpack.c.bf16 %v13651_v54, %v6198_v49 }
 0xc6e   : > { %6258 = vrot.lane.b32.xlu0 %v6226_v17, %s9872_s21 }
 0xc6f   : > { %v6117_v12 = vpop.permute.xlu1 %6116 }
 0xc70   : > { %v6200_v5 = vmul.f32 %v6117_v12, %v13510_v9  ;;  %v6994_v9 = vmul.f32 %v6964_v25, %v14909_v32 }
 0xc71   : > { %v6119_v53 = vpop.permute.xlu0 %6118 }
 0xc72   : > { %v13658_v22 = vmul.f32 %v6119_v53, %v13514_v33  ;;  %v6996_v33 = vmul.f32 %v6966_v4, %v14909_v32  ;;  %v6968_v8 = vmax.f32 %v6200_v5, 0.0 }
 0xc74   : > { %v6227_v41 = vpack.c.bf16 %v13658_v22, %v6200_v5  ;;  %v6998_v26 = vmul.f32 %v6968_v8, %v14909_v32 }
 0xc76   : > { %6260 = vrot.lane.b32.xlu0 %v6227_v41, %s9872_s21 }
 0xc79   : > { %v6123_v37 = vpop.permute.xlu0 %6122 }
 0xc7a   : > { %4277 = vadd.xlane.f32.xlu1 %v4276_v60  ;;  %v13682_v55 = vmul.f32 %v6123_v37, %v13520_v47 }
 0xc81   : > { %v6127_v30 = vpop.permute.xlu0 %6126 }
 0xc82   : > { %v13691_v12 = vmul.f32 %v6127_v30, %v13526_v0 }
 0xc89   : > { %v6131_v7 = vpop.permute.xlu0 %6130 }
 0xc8a   : > { %v13701_v60 = vmul.f32 %v6131_v7, %v13531_v34 }
 0xc8b   : > { %7052 = vrot.lane.b32.xlu1 %v6992_v36, %s9872_s21 }
 0xc8f   : > { %7056 = vrot.lane.b32.xlu1 %v6994_v9, %s9872_s21 }
 0xc91   : > { %v13672_v14 = vpop.permute.xlu0 %6134 }
 0xc93   : > { %7060 = vrot.lane.b32.xlu1 %v6996_v33, %s9872_s21 }
 0xc97   : > { %7064 = vrot.lane.b32.xlu1 %v6998_v26, %s9872_s21 }
 0xc99   : > { %v13676_v52 = vpop.permute.xlu0 %6138 }
 0xca2   : > { %v13687_v17 = vpop.permute.xlu0 %6142 }
 0xcaa   : > { %v13696_v47 = vpop.permute.xlu0 %6146 }
 0xcae   : > { %v4272_v57 = vpop.xlane.xlu1 %4271 }
 0xcaf   : > { %v4306_v18 = vadd.f32 %v4272_v57, %v4120_v44 }
 0xcb1   : > { %v4342_v51 = vadd.f32 %v13678_v21, %v4306_v18 }
 0xcb2   : > { %v6121_v16 = vpop.permute.xlu1 %6120 }
 0xcb3   : > { %4373 = vst.msk [vmem:[%s13011_s22 + $0xd8] sm:$0xff] %vm4345_vm5, %v4342_v51  ;;  %v6202_v49 = vmul.f32 %v6121_v16, %v13560_v19 }
 0xcb5   : > { %v6228_v27 = vpack.c.bf16 %v13682_v55, %v6202_v49  ;;  %v6970_v50 = vmax.f32 %v6202_v49, 0.0 }
 0xcb6   : > { %v6125_v46 = vpop.permute.xlu1 %6124 }
 0xcb7   : > { %v7000_v53 = vmul.f32 %v6970_v50, %v14909_v32  ;;  %v6204_v5 = vmul.f32 %v6125_v46, %v13568_v31  ;;  %6262 = vrot.lane.b32.xlu0 %v6228_v27, %s9872_s21  ;;  %v6151_v31 = vpop.permute.xlu0 %6150  ;;  %v9824_v27 = vld [vmem:[%s10001_s26 + $0xe0] sm:$0xff] }
 0xcb8   : > { %v13713_v44 = vmul.f32 %v6151_v31, %v13589_v42 }
 0xcb9   : > { %v6229_v24 = vpack.c.bf16 %v13691_v12, %v6204_v5  ;;  %v6972_v19 = vmax.f32 %v6204_v5, 0.0  ;;  %7068 = vrot.lane.b32.xlu1 %v7000_v53, %s9872_s21 }
 0xcba   : > { %v6129_v41 = vpop.permute.xlu1 %6128 }
 0xcbb   : > { %v7002_v0 = vmul.f32 %v6972_v19, %v14909_v32  ;;  %v6206_v40 = vmul.f32 %v6129_v41, %v13573_v2  ;;  %6264 = vrot.lane.b32.xlu0 %v6229_v24, %s9872_s21  ;;  %v6155_v33 = vpop.permute.xlu0 %6154 }
 0xcbc   : > { %v13726_v46 = vmul.f32 %v6155_v33, %v13602_v11 }
 0xcbd   : > { %v6230_v36 = vpack.c.bf16 %v13701_v60, %v6206_v40  ;;  %v6974_v25 = vmax.f32 %v6206_v40, 0.0  ;;  %7072 = vrot.lane.b32.xlu1 %v7002_v0, %s9872_s21 }
 0xcbe   : > { %v6133_v9 = vpop.permute.xlu1 %6132 }
 0xcbf   : > { %v7004_v4 = vmul.f32 %v6974_v25, %v14909_v32  ;;  %6266 = vrot.lane.b32.xlu0 %v6230_v36, %s9872_s21  ;;  %v6208_v7 = vmul.f32 %v6133_v9, %v13581_v39  ;;  %v4151_v39 = vmax.f32 %v9824_v27, 0.0 }
 0xcc1   : > { %7076 = vrot.lane.b32.xlu1 %v7004_v4, %s9872_s21  ;;  %v6976_v18 = vmax.f32 %v6208_v7, 0.0  ;;  %v4187_v53 = vmul.f32 %v13551_v13, %v4151_v39  ;;  %v6215_v39 = vmul.f32 %v13696_v47, %v13575_v35  ;;  %v6973_v47 = vmax.f32 %v13691_v12, 0.0 }
 0xcc2   : > { %v6137_v34 = vpop.permute.xlu1 %6136  ;;  %v6159_v8 = vpop.permute.xlu0 %6158 }
 0xcc3   : > { %v7006_v50 = vmul.f32 %v6976_v18, %v14909_v32  ;;  %v6210_v42 = vmul.f32 %v6137_v34, %v13586_v15  ;;  %v4273_v15 = vsel %vm713_vm2, %v4187_v53, 0.0  ;;  %v13740_v40 = vmul.f32 %v6159_v8, %v13614_v59 }
 0xcc4   : > { %v7003_v53 = vmul.f32 %v6973_v47, %v14909_v32 }
 0xcc5   : > { %v6978_v5 = vmax.f32 %v6210_v42, 0.0 }
 0xcc6   : > { %v6141_v2 = vpop.permute.xlu1 %6140 }
 0xcc7   : > { %v7008_v11 = vmul.f32 %v6978_v5, %v14909_v32  ;;  %v6975_v5 = vmax.f32 %v13701_v60, 0.0 }
 0xcc8   : > { %v6161_v26 = vpop.permute.xlu0 %6160 }
 0xcc9   : > { %v13754_v9 = vmul.f32 %v6161_v26, %v13623_v6  ;;  %v6209_v6 = vmul.f32 %v13672_v14, %v13538_v38  ;;  %v6963_v26 = vmax.f32 %v13639_v45, 0.0  ;;  %v6211_v38 = vmul.f32 %v13676_v52, %v13546_v23 }
 0xcca   : > { %v6145_v37 = vpop.permute.xlu1 %6144  ;;  %v6965_v45 = vmax.f32 %v13645_v43, 0.0  ;;  %v6967_v23 = vmax.f32 %v13651_v54, 0.0 }
 0xccc   : > { %v6163_v30 = vpop.permute.xlu0 %6162  ;;  %v6995_v18 = vmul.f32 %v6965_v45, %v14909_v32 }
 0xccd   : > { %v13751_v59 = vmul.f32 %v6163_v30, %v13627_v29 }
 0xcce   : > { %v6149_v10 = vpop.permute.xlu1 %6148 }
 0xccf   : > { %v6216_v57 = vmul.f32 %v6149_v10, %v13607_v61  ;;  %v6238_v33 = vpack.c.bf16 %v13751_v59, %v13754_v9 }
 0xcd0   : > { %v6255_v16 = vpop.permute.xlu0 %6254 }
 0xcd1   : > { %v6235_v51 = vpack.c.bf16 %v13713_v44, %v6216_v57  ;;  %8842 = vmatmul.mubr.msk.bf16.vlgmr.msra.gmra.mrb[92].mxu1 %vm1400_vm4, %v6255_v16  ;;  %v6984_v29 = vmax.f32 %v6216_v57, 0.0  ;;  %v6993_v57 = vmul.f32 %v6963_v26, %v14909_v32  ;;  %v14911_v16 = vld [vmem:[#allocation60_spill] sm:$0xff] }
 0xcd2   : > { %v6153_v49 = vpop.permute.xlu1 %6152  ;;  %8845 = vmatprep.mubr.msk.bf16.mxu1 %vm9868_vm1, %v14811_v63  ;;  %v4122_v43 = vadd.f32 %v13478_v20, %v14911_v16 }
 0xcd3   : > { %6276 = vrot.lane.b32.xlu1 %v6235_v51, %s9872_s21  ;;  %v6218_v61 = vmul.f32 %v6153_v49, %v13611_v1  ;;  %v6212_v1 = vmul.f32 %v6141_v2, %v13595_v48  ;;  %v7014_v8 = vmul.f32 %v6984_v29, %v14909_v32  ;;  %v6213_v51 = vmul.f32 %v13687_v17, %v13562_v62  ;;  %v9829_v29 = vld [vmem:[%s10001_s26 + $0x138] sm:$0xff] }
 0xcd4   : > { %v6997_v49 = vmul.f32 %v6967_v23, %v14909_v32  ;;  %v6969_v62 = vmax.f32 %v13658_v22, 0.0  ;;  %v9825_v22 = vld [vmem:[%s10001_s26 + $0xf8] sm:$0xff] }
 0xcd5   : > { %v6236_v24 = vpack.c.bf16 %v13726_v46, %v6218_v61  ;;  %v6980_v31 = vmax.f32 %v6212_v1, 0.0  ;;  %v6986_v2 = vmax.f32 %v6218_v61, 0.0  ;;  %v6233_v52 = vpack.c.bf16 %v6213_v51, %v6212_v1  ;;  %v9827_v1 = vld [vmem:[%s10001_s26 + $0x118] sm:$0xff] }
 0xcd6   : > { %v6157_v41 = vpop.permute.xlu1 %6156  ;;  %v6999_v20 = vmul.f32 %v6969_v62, %v14909_v32  ;;  %v7533_v61 = vmax.f32 %v9825_v22, 0.0 }
 0xcd7   : > { %7080 = vrot.lane.b32.xlu1 %v7006_v50, %s9872_s21  ;;  %v6220_v0 = vmul.f32 %v6157_v41, %v13618_v28  ;;  %v7010_v48 = vmul.f32 %v6980_v31, %v14909_v32  ;;  %v6214_v28 = vmul.f32 %v6145_v37, %v13599_v3  ;;  %v6231_v37 = vpack.c.bf16 %v6209_v6, %v6208_v7 }
 0xcd8   : > { %v6257_v19 = vpop.permute.xlu0 %6256  ;;  %v7016_v30 = vmul.f32 %v6986_v2, %v14909_v32  ;;  %v6232_v7 = vpack.c.bf16 %v6211_v38, %v6210_v42  ;;  %v6971_v42 = vmax.f32 %v13682_v55, 0.0  ;;  %v9826_v55 = vld [vmem:[%s10001_s26 + $0x108] sm:$0xff]  ;;  %v7005_v41 = vmul.f32 %v6975_v5, %v14909_v32  ;;  %v9835_v5 = vld [vmem:[%s10001_s26 + $0x198] sm:$0xff] }
 0xcd9   : > { %8846 = vmatmul.mubr.msk.bf16.gmra.mrb[96].mxu1 %vm1400_vm4, %v6257_v19  ;;  %v6237_v36 = vpack.c.bf16 %v13740_v40, %v6220_v0  ;;  %v6982_v4 = vmax.f32 %v6214_v28, 0.0  ;;  %v6988_v10 = vmax.f32 %v6220_v0, 0.0  ;;  %v6234_v17 = vpack.c.bf16 %v6215_v39, %v6214_v28 }
 0xcda   : > { %8849 = vmatprep.mubr.msk.bf16.mxu1 %vm9868_vm1, %v14811_v63  ;;  %v7001_v35 = vmul.f32 %v6971_v42, %v14909_v32  ;;  %v7535_v19 = vmax.f32 %v9826_v55, 0.0  ;;  %v7537_v0 = vmax.f32 %v9827_v1, 0.0  ;;  %v6979_v31 = vmax.f32 %v6211_v38, 0.0  ;;  %v9837_v1 = vld [vmem:[%s10001_s26 + $0x1b8] sm:$0xff] }
 0xcdb   : > { %6278 = vrot.lane.b32.xlu1 %v6236_v24, %s9872_s21  ;;  %v7012_v3 = vmul.f32 %v6982_v4, %v14909_v32  ;;  %v7018_v14 = vmul.f32 %v6988_v10, %v14909_v32  ;;  %v7563_v24 = vmul.f32 %v13551_v13, %v7533_v61  ;;  %v6983_v2 = vmax.f32 %v6215_v39, 0.0 }
 0xcdc   : > { %v7009_v4 = vmul.f32 %v6979_v31, %v14909_v32 }
 0xcdd   : > { %v7595_v12 = vsel %vm713_vm2, %v7563_v24, 0.0  ;;  %v7013_v38 = vmul.f32 %v6983_v2, %v14909_v32  ;;  %v7553_v24 = vmax.f32 %v9835_v5, 0.0 }
 0xcde   : > { %4274 = vadd.xlane.f32.xlu0 %v4273_v15  ;;  %v6977_v15 = vmax.f32 %v6209_v6, 0.0  ;;  %v7541_v6 = vmax.f32 %v9829_v29, 0.0 }
 0xcdf   : > { %7084 = vrot.lane.b32.xlu1 %v7008_v11, %s9872_s21  ;;  %v7565_v11 = vmul.f32 %v13551_v13, %v7535_v19  ;;  %v7583_v19 = vmul.f32 %v13551_v13, %v7553_v24 }
 0xce0   : > { %v6259_v25 = vpop.permute.xlu0 %6258  ;;  %v7007_v60 = vmul.f32 %v6977_v15, %v14909_v32 }
 0xce1   : > { %8850 = vmatmul.mubr.msk.bf16.gmra.mrb[100].mxu1 %vm1400_vm4, %v6259_v25  ;;  %v7567_v25 = vmul.f32 %v13551_v13, %v7537_v0  ;;  %v7557_v0 = vmax.f32 %v9837_v1, 0.0 }
 0xce2   : > { %8853 = vmatprep.mubr.msk.bf16.mxu1 %vm9868_vm1, %v14811_v63 }
 0xce3   : > { %6280 = vrot.lane.b32.xlu1 %v6237_v36, %s9872_s21  ;;  %v7601_v36 = vsel %vm713_vm2, %v7565_v11, 0.0 }
 0xce7   : > { %7088 = vrot.lane.b32.xlu1 %v7010_v48, %s9872_s21  ;;  %v9828_v48 = vld [vmem:[%s10001_s26 + $0x128] sm:$0xff] }
 0xce8   : > { %v6261_v34 = vpop.permute.xlu0 %6260  ;;  %v7539_v28 = vmax.f32 %v9828_v48, 0.0 }
 0xce9   : > { %8854 = vmatmul.mubr.msk.bf16.gmra.mrb[104].mxu1 %vm1400_vm4, %v6261_v34  ;;  %v7607_v34 = vsel %vm713_vm2, %v7567_v25, 0.0  ;;  %v9838_v25 = vld [vmem:[%s10001_s26 + $0x1c8] sm:$0xff] }
 0xcea   : > { %8857 = vmatprep.mubr.msk.bf16.mxu1 %vm9868_vm1, %v14811_v63  ;;  %v7559_v48 = vmax.f32 %v9838_v25, 0.0 }
 0xceb   : > { %6282 = vrot.lane.b32.xlu1 %v6238_v33, %s9872_s21  ;;  %v6981_v33 = vmax.f32 %v6213_v51, 0.0 }
 0xcef   : > { %7092 = vrot.lane.b32.xlu1 %v7012_v3, %s9872_s21  ;;  %v7569_v3 = vmul.f32 %v13551_v13, %v7539_v28 }
 0xcf1   : > { %v7613_v26 = vsel %vm713_vm2, %v7569_v3, 0.0 }
 0xcf3   : > { %7096 = vrot.lane.b32.xlu1 %v7014_v8, %s9872_s21  ;;  %v7011_v8 = vmul.f32 %v6981_v33, %v14909_v32  ;;  %v7589_v33 = vmul.f32 %v13551_v13, %v7559_v48 }
 0xcf4   : > { %6268 = vrot.lane.b32.xlu0 %v6231_v37, %s9872_s21  ;;  %v7571_v37 = vmul.f32 %v13551_v13, %v7541_v6 }
 0xcf5   : > { %v7673_v29 = vsel %vm713_vm2, %v7589_v33, 0.0  ;;  %v9849_v33 = vld [vmem:[%s10001_s26 + $0x190] sm:$0xff] }
 0xcf6   : > { %v7619_v45 = vsel %vm713_vm2, %v7571_v37, 0.0 }
 0xcf7   : > { %7100 = vrot.lane.b32.xlu1 %v7016_v30, %s9872_s21  ;;  %v9830_v30 = vld [vmem:[%s10001_s26 + $0x148] sm:$0xff] }
 0xcf8   : > { %7054 = vrot.lane.b32.xlu0 %v6993_v57, %s9872_s21  ;;  %v7543_v10 = vmax.f32 %v9830_v30, 0.0 }
 0xcfb   : > { %7104 = vrot.lane.b32.xlu1 %v7018_v14, %s9872_s21  ;;  %v6985_v14 = vmax.f32 %v13713_v44, 0.0 }
 0xcfc   : > { %6270 = vrot.lane.b32.xlu0 %v6232_v7, %s9872_s21  ;;  %v7573_v7 = vmul.f32 %v13551_v13, %v7543_v10  ;;  %v9841_v10 = vld [vmem:[%s10001_s26 + $0x110] sm:$0xff] }
 0xcfd   : > { %v7015_v23 = vmul.f32 %v6985_v14, %v14909_v32 }
 0xcfe   : > { %v7625_v44 = vsel %vm713_vm2, %v7573_v7, 0.0  ;;  %v9842_v7 = vld [vmem:[%s10001_s26 + $0x120] sm:$0xff] }
 0xd00   : > { %7058 = vrot.lane.b32.xlu0 %v6995_v18, %s9872_s21  ;;  %v9831_v18 = vld [vmem:[%s10001_s26 + $0x158] sm:$0xff] }
 0xd01   : > { %v7545_v51 = vmax.f32 %v9831_v18, 0.0  ;;  %v7538_v18 = vmax.f32 %v9842_v7, 0.0 }
 0xd03   : > { %v7575_v16 = vmul.f32 %v13551_v13, %v7545_v51 }
 0xd04   : > { %6272 = vrot.lane.b32.xlu0 %v6233_v52, %s9872_s21  ;;  %v6987_v52 = vmax.f32 %v13726_v46, 0.0 }
 0xd05   : > { %v7631_v46 = vsel %vm713_vm2, %v7575_v16, 0.0 }
 0xd06   : > { %v7017_v39 = vmul.f32 %v6987_v52, %v14909_v32  ;;  %v7568_v52 = vmul.f32 %v13551_v13, %v7538_v18 }
 0xd07   : > { %v4278_v27 = vpop.xlane.xlu1 %4277 }
 0xd08   : > { %v4308_v50 = vadd.f32 %v4278_v27, %v4122_v43  ;;  %7062 = vrot.lane.b32.xlu0 %v6997_v49, %s9872_s21  ;;  %v9832_v43 = vld [vmem:[%s10001_s26 + $0x168] sm:$0xff] }
 0xd09   : > { %v7547_v49 = vmax.f32 %v9832_v43, 0.0  ;;  %v6990_v43 = vmax.f32 %v13754_v9, 0.0  ;;  %v9845_v9 = vld [vmem:[%s10001_s26 + $0x150] sm:$0xff] }
 0xd0a   : > { %v4344_v54 = vadd.f32 %v13678_v21, %v4308_v50  ;;  %v6989_v50 = vmax.f32 %v13740_v40, 0.0 }
 0xd0b   : > { %v7577_v62 = vmul.f32 %v13551_v13, %v7547_v49  ;;  %v7610_v49 = vsel %vm713_vm2, %v7568_v52, 0.0  ;;  %v9852_v52 = vld [vmem:[%s14773_s17] ss:$0 sm:$0xff] }
 0xd0c   : > { %4375 = vst.msk [vmem:[%s13011_s22 + $0xe8] sm:$0xff] %vm4345_vm5, %v4344_v54  ;;  %6274 = vrot.lane.b32.xlu0 %v6234_v17, %s9872_s21  ;;  %v9833_v17 = vld [vmem:[%s10001_s26 + $0x178] sm:$0xff] }
 0xd0d   : > { %v7549_v54 = vmax.f32 %v9833_v17, 0.0  ;;  %v7637_v40 = vsel %vm713_vm2, %v7577_v62, 0.0 }
 0xd0f   : > { %v7579_v42 = vmul.f32 %v13551_v13, %v7549_v54 }
 0xd10   : > { %7066 = vrot.lane.b32.xlu0 %v6999_v20, %s9872_s21  ;;  %v7019_v20 = vmul.f32 %v6989_v50, %v14909_v32 }
 0xd11   : > { %v7643_v61 = vsel %vm713_vm2, %v7579_v42, 0.0 }
 0xd14   : > { %7070 = vrot.lane.b32.xlu0 %v7001_v35, %s9872_s21  ;;  %v9834_v35 = vld [vmem:[%s10001_s26 + $0x188] sm:$0xff] }
 0xd15   : > { %v7551_v47 = vmax.f32 %v9834_v35, 0.0 }
 0xd18   : > { %7074 = vrot.lane.b32.xlu0 %v7003_v53, %s9872_s21  ;;  %v7581_v53 = vmul.f32 %v13551_v13, %v7551_v47  ;;  %v9846_v47 = vld [vmem:[%s10001_s26 + $0x160] sm:$0xff] }
 0xd1a   : > { %v7649_v55 = vsel %vm713_vm2, %v7581_v53, 0.0 }
 0xd1c   : > { %7078 = vrot.lane.b32.xlu0 %v7005_v41, %s9872_s21  ;;  %v9836_v41 = vld [vmem:[%s10001_s26 + $0x1a8] sm:$0xff] }
 0xd1d   : > { %v7555_v15 = vmax.f32 %v9836_v41, 0.0 }
 0xd1f   : > { %7596 = vadd.xlane.f32.xlu1 %v7595_v12  ;;  %v7655_v12 = vsel %vm713_vm2, %v7583_v19, 0.0  ;;  %v7585_v11 = vmul.f32 %v13551_v13, %v7555_v15  ;;  %v9847_v15 = vld [vmem:[%s10001_s26 + $0x170] sm:$0xff] }
 0xd20   : > { %7082 = vrot.lane.b32.xlu0 %v7007_v60, %s9872_s21  ;;  %v13871_v60 = vpop.permute.xlu1 %7052 }
 0xd21   : > { %v7661_v31 = vsel %vm713_vm2, %v7585_v11, 0.0 }
 0xd23   : > { %7602 = vadd.xlane.f32.xlu1 %v7601_v36  ;;  %v7587_v36 = vmul.f32 %v13551_v13, %v7557_v0 }
 0xd24   : > { %7086 = vrot.lane.b32.xlu0 %v7009_v4, %s9872_s21  ;;  %v13876_v28 = vpop.permute.xlu1 %7056 }
 0xd25   : > { %v7667_v4 = vsel %vm713_vm2, %v7587_v36, 0.0 }
 0xd27   : > { %7608 = vadd.xlane.f32.xlu1 %v7607_v34  ;;  %v9839_v34 = vld [vmem:[%s10001_s26 + $0xf0] sm:$0xff] }
 0xd28   : > { %7090 = vrot.lane.b32.xlu0 %v7011_v8, %s9872_s21  ;;  %v7532_v3 = vmax.f32 %v9839_v34, 0.0  ;;  %v9840_v8 = vld [vmem:[%s10001_s26 + $0x100] sm:$0xff]  ;;  %v7552_v34 = vmax.f32 %v9849_v33, 0.0 }
 0xd29   : > { %v6263_v57 = vpop.permute.xlu0 %6262  ;;  %v7534_v2 = vmax.f32 %v9840_v8, 0.0 }
 0xd2a   : > { %8858 = vmatmul.mubr.msk.bf16.gmra.mrb[108].mxu1 %vm1400_vm4, %v6263_v57  ;;  %v7562_v6 = vmul.f32 %v13551_v13, %v7532_v3  ;;  %v7536_v57 = vmax.f32 %v9841_v10, 0.0  ;;  %v7582_v8 = vmul.f32 %v13551_v13, %v7552_v34 }
 0xd2b   : > { %7614 = vadd.xlane.f32.xlu1 %v7613_v26  ;;  %8861 = vmatprep.mubr.msk.bf16.mxu1 %vm9868_vm1, %v14811_v63  ;;  %v13884_v26 = vpop.permute.xlu1 %7060  ;;  %v7564_v30 = vmul.f32 %v13551_v13, %v7534_v2  ;;  %v9850_v2 = vld [vmem:[%s10001_s26 + $0x1a0] sm:$0xff] }
 0xd2c   : > { %7094 = vrot.lane.b32.xlu0 %v7013_v38, %s9872_s21  ;;  %v7592_v37 = vsel %vm713_vm2, %v7562_v6, 0.0  ;;  %v7652_v10 = vsel %vm713_vm2, %v7582_v8, 0.0 }
 0xd2d   : > { %v6265_v27 = vpop.permute.xlu0 %6264  ;;  %v7598_v14 = vsel %vm713_vm2, %v7564_v30, 0.0 }
 0xd2f   : > { %7620 = vadd.xlane.f32.xlu1 %v7619_v45  ;;  %v13889_v38 = vpop.permute.xlu1 %7064  ;;  %v7566_v45 = vmul.f32 %v13551_v13, %v7536_v57 }
 0xd30   : > { %7098 = vrot.lane.b32.xlu0 %v7015_v23, %s9872_s21 }
 0xd31   : > { %v6267_v22 = vpop.permute.xlu0 %6266  ;;  %v7604_v23 = vsel %vm713_vm2, %v7566_v45, 0.0 }
 0xd32   : > { %8862 = vmatmul.mubr.msk.bf16.gmra.mrb[112].mxu1 %vm1400_vm4, %v6265_v27 }
 0xd33   : > { %7626 = vadd.xlane.f32.xlu1 %v7625_v44  ;;  %8865 = vmatprep.mubr.msk.bf16.mxu1 %vm9868_vm1, %v14811_v63  ;;  %v13894_v51 = vpop.permute.xlu1 %7068  ;;  %v9843_v44 = vld [vmem:[%s10001_s26 + $0x130] sm:$0xff] }
 0xd34   : > { %7102 = vrot.lane.b32.xlu0 %v7017_v39, %s9872_s21  ;;  %v7540_v16 = vmax.f32 %v9843_v44, 0.0  ;;  %v9844_v39 = vld [vmem:[%s10001_s26 + $0x140] sm:$0xff] }
 0xd35   : > { %v7542_v50 = vmax.f32 %v9844_v39, 0.0 }
 0xd36   : > { %v7570_v27 = vmul.f32 %v13551_v13, %v7540_v16  ;;  %v9853_v16 = vld [vmem:[%s10001_s26 + $0x1c0] sm:$0xff] }
 0xd37   : > { %7632 = vadd.xlane.f32.xlu1 %v7631_v46  ;;  %v7020_v46 = vmul.f32 %v6990_v43, %v14909_v32  ;;  %v13904_v62 = vpop.permute.xlu1 %7072  ;;  %v7572_v54 = vmul.f32 %v13551_v13, %v7542_v50  ;;  %v7558_v43 = vmax.f32 %v9853_v16, 0.0 }
 0xd38   : > { %7106 = vrot.lane.b32.xlu0 %v7019_v20, %s9872_s21  ;;  %v7616_v17 = vsel %vm713_vm2, %v7570_v27, 0.0  ;;  %v7544_v20 = vmax.f32 %v9845_v9, 0.0 }
 0xd39   : > { %v7622_v42 = vsel %vm713_vm2, %v7572_v54, 0.0  ;;  %v7588_v39 = vmul.f32 %v9852_v52, %v7558_v43 }
 0xd3a   : > { %8866 = vmatmul.mubr.msk.bf16.gmra.mrb[116].mxu1 %vm1400_vm4, %v6267_v22  ;;  %v7574_v35 = vmul.f32 %v13551_v13, %v7544_v20  ;;  %v7546_v22 = vmax.f32 %v9846_v47, 0.0 }
 0xd3b   : > { %7638 = vadd.xlane.f32.xlu1 %v7637_v40  ;;  %8869 = vmatprep.mubr.msk.bf16.mxu1 %vm9868_vm1, %v14811_v63  ;;  %v13910_v40 = vpop.permute.xlu1 %7076 }
 0xd3c   : > { %v7628_v19 = vsel %vm713_vm2, %v7574_v35, 0.0  ;;  %v7576_v41 = vmul.f32 %v13551_v13, %v7546_v22 }
 0xd3f   : > { %7644 = vadd.xlane.f32.xlu1 %v7643_v61  ;;  %v14912_v61 = vld [vmem:[#allocation58_spill] sm:$0xff] }
 0xd40   : > { %v4121_v53 = vadd.f32 %v13481_v56, %v14912_v61  ;;  %v7634_v56 = vsel %vm713_vm2, %v7576_v41, 0.0 }
 0xd43   : > { %7650 = vadd.xlane.f32.xlu1 %v7649_v55 }
 0xd45   : > { %v13917_v24 = vpop.permute.xlu1 %6276 }
 0xd47   : > { %7656 = vadd.xlane.f32.xlu1 %v7655_v12  ;;  %v7548_v12 = vmax.f32 %v9847_v15, 0.0 }
 0xd49   : > { %v7578_v0 = vmul.f32 %v13551_v13, %v7548_v12  ;;  %v13931_v25 = vpop.permute.xlu1 %7080 }
 0xd4b   : > { %7662 = vadd.xlane.f32.xlu1 %v7661_v31  ;;  %v9848_v31 = vld [vmem:[%s10001_s26 + $0x180] sm:$0xff]  ;;  %v7640_v48 = vsel %vm713_vm2, %v7578_v0, 0.0 }
 0xd4c   : > { %v7550_v36 = vmax.f32 %v9848_v31, 0.0 }
 0xd4f   : > { %7668 = vadd.xlane.f32.xlu1 %v7667_v4  ;;  %v7580_v4 = vmul.f32 %v13551_v13, %v7550_v36 }
 0xd51   : > { %v7646_v6 = vsel %vm713_vm2, %v7580_v4, 0.0 }
 0xd53   : > { %7674 = vadd.xlane.f32.xlu1 %v7673_v29  ;;  %v6279_v29 = vpop.permute.xlu1 %6278 }
 0xd57   : > { %7593 = vadd.xlane.f32.xlu0 %v7592_v37  ;;  %v7554_v37 = vmax.f32 %v9850_v2, 0.0  ;;  %v13947_v7 = vpop.permute.xlu1 %7084 }
 0xd59   : > { %v7584_v57 = vmul.f32 %v13551_v13, %v7554_v37 }
 0xd5b   : > { %7599 = vadd.xlane.f32.xlu0 %v7598_v14  ;;  %v9851_v14 = vld [vmem:[%s10001_s26 + $0x1b0] sm:$0xff] }
 0xd5c   : > { %v7556_v45 = vmax.f32 %v9851_v14, 0.0 }
 0xd5e   : > { %v7586_v44 = vmul.f32 %v9852_v52, %v7556_v45 }
 0xd5f   : > { %7605 = vadd.xlane.f32.xlu0 %v7604_v23  ;;  %v7658_v23 = vsel %vm713_vm2, %v7584_v57, 0.0 }
 0xd60   : > { %v7664_v27 = vsel %vm713_vm2, %v7586_v44, 0.0 }
 0xd63   : > { %7611 = vadd.xlane.f32.xlu0 %v7610_v49  ;;  %v6281_v49 = vpop.permute.xlu1 %6280 }
 0xd64   : > { %7108 = vrot.lane.b32.xlu1 %v7020_v46, %s9872_s21  ;;  %v7142_v46 = vsel %vm1400_vm4, %v13871_v60, 0.0 }
 0xd67   : > { %7617 = vadd.xlane.f32.xlu0 %v7616_v17  ;;  %v7670_v17 = vsel %vm713_vm2, %v7588_v39, 0.0  ;;  %v13964_v54 = vpop.permute.xlu1 %7088 }
 0xd6b   : > { %7623 = vadd.xlane.f32.xlu0 %v7622_v42  ;;  %v4275_v5 = vpop.xlane.xlu0 %4274  ;;  %v6283_v47 = vpop.permute.xlu1 %6282 }
 0xd6c   : > { %v4307_v55 = vadd.f32 %v4275_v5, %v4121_v53 }
 0xd6e   : > { %v4343_v11 = vadd.f32 %v13678_v21, %v4307_v55 }
 0xd6f   : > { %7629 = vadd.xlane.f32.xlu0 %v7628_v19  ;;  %v6269_v1 = vpop.permute.xlu0 %6268  ;;  %v13973_v61 = vpop.permute.xlu1 %7092 }
 0xd70   : > { %4374 = vst.msk [vmem:[%s13011_s22 + $0xe0] sm:$0xff] %vm4345_vm5, %v4343_v11  ;;  %8870 = vmatmul.mubr.msk.bf16.gmra.mrb[120].mxu1 %vm1400_vm4, %v6269_v1 }
 0xd71   : > { %8873 = vmatprep.mubr.msk.bf16.mxu1 %vm9868_vm1, %v14811_v63 }
 0xd73   : > { %7635 = vadd.xlane.f32.xlu0 %v7634_v56  ;;  %v13933_v21 = vpop.permute.xlu0 %7054  ;;  %v13981_v41 = vpop.permute.xlu1 %7096 }
 0xd77   : > { %7641 = vadd.xlane.f32.xlu0 %v7640_v48  ;;  %v6271_v3 = vpop.permute.xlu0 %6270 }
 0xd78   : > { %8874 = vmatmul.mubr.msk.bf16.gmra.mrb[124].mxu1 %vm1400_vm4, %v6271_v3 }
 0xd79   : > { %8877 = vmatprep.mubr.msk.bf16.mxu1 %vm9868_vm1, %v14811_v63 }
 0xd7b   : > { %7647 = vadd.xlane.f32.xlu0 %v7646_v6  ;;  %v7059_v30 = vpop.permute.xlu0 %7058 }
 0xd7c   : > { %v7151_v20 = vsel %vm1400_vm4, %v7059_v30, 0.0 }
 0xd7f   : > { %7653 = vadd.xlane.f32.xlu0 %v7652_v10  ;;  %v6273_v18 = vpop.permute.xlu0 %6272 }
 0xd80   : > { %8878 = vmatmul.mubr.msk.bf16.gmra.mrb[128].mxu1 %vm1400_vm4, %v6273_v18 }
 0xd81   : > { %8881 = vmatprep.mubr.msk.bf16.mxu1 %vm9868_vm1, %v14811_v63 }
 0xd83   : > { %7659 = vadd.xlane.f32.xlu0 %v7658_v23  ;;  %v7063_v13 = vpop.permute.xlu0 %7062 }
 0xd84   : > { %v7157_v35 = vsel %vm1400_vm4, %v7063_v13, 0.0 }
 0xd87   : > { %7665 = vadd.xlane.f32.xlu0 %v7664_v27  ;;  %v6275_v50 = vpop.permute.xlu0 %6274 }
 0xd88   : > { %7143 = vadd.xlane.f32.xlu1 %v7142_v46  ;;  %8882 = vmatmul.mubr.msk.bf16.gmra.mrb[132].mxu1 %vm1400_vm4, %v6275_v50  ;;  %v7145_v46 = vsel %vm1400_vm4, %v13933_v21, 0.0  ;;  %v7166_v21 = vsel %vm1400_vm4, %v13894_v51, 0.0  ;;  %v7190_v51 = vsel %vm1400_vm4, %v13947_v7, 0.0  ;;  %v7208_v7 = vsel %vm1400_vm4, %v13981_v41, 0.0 }
 0xd89   : > { %8885 = vmatprep.mubr.msk.bf16.mxu1 %vm9868_vm1, %v14811_v63 }
 0xd8b   : > { %7671 = vadd.xlane.f32.xlu0 %v7670_v17  ;;  %v7067_v9 = vpop.permute.xlu0 %7066 }
 0xd8c   : > { %7152 = vadd.xlane.f32.xlu1 %v7151_v20  ;;  %v7163_v22 = vsel %vm1400_vm4, %v7067_v9, 0.0  ;;  %v7148_v20 = vsel %vm1400_vm4, %v13876_v28, 0.0  ;;  %v7172_v28 = vsel %vm1400_vm4, %v13904_v62, 0.0  ;;  %v7196_v62 = vsel %vm1400_vm4, %v13964_v54, 0.0 }
 0xd8f   : > { %v7071_v42 = vpop.permute.xlu0 %7070 }
 0xd90   : > { %7158 = vadd.xlane.f32.xlu1 %v7157_v35  ;;  %8886 = vmatmul.mubr.msk.bf16.gmra.mrb[136].mxu1 %vm1400_vm4, %v13917_v24  ;;  %v7169_v5 = vsel %vm1400_vm4, %v7071_v42, 0.0  ;;  %v6991_v24 = vmax.f32 %v13751_v59, 0.0  ;;  %v13989_v59 = vpop.permute.xlu1 %7100  ;;  %v7154_v35 = vsel %vm1400_vm4, %v13884_v26, 0.0  ;;  %v7178_v26 = vsel %vm1400_vm4, %v13910_v40, 0.0 }
 0xd91   : > { %8889 = vmatprep.mubr.msk.bf16.mxu1 %vm9868_vm1, %v14811_v63  ;;  %v7202_v40 = vsel %vm1400_vm4, %v13973_v61, 0.0  ;;  %v7214_v54 = vsel %vm1400_vm4, %v13989_v59, 0.0  ;;  %v14091_v59 = vld [vmem:[%s14770_s14] ss:$0 sm:$0xff] }
 0xd92   : > { %v7021_v15 = vmul.f32 %v6991_v24, %v14909_v32 }
 0xd93   : > { %v7075_v60 = vpop.permute.xlu0 %7074 }
 0xd94   : > { %7164 = vadd.xlane.f32.xlu1 %v7163_v22  ;;  %v7175_v19 = vsel %vm1400_vm4, %v7075_v60, 0.0  ;;  %v13997_v4 = vpop.permute.xlu1 %7104  ;;  %v7160_v60 = vsel %vm1400_vm4, %v13889_v38, 0.0  ;;  %v7184_v38 = vsel %vm1400_vm4, %v13931_v25, 0.0 }
 0xd95   : > { %v7220_v61 = vsel %vm1400_vm4, %v13997_v4, 0.0 }
 0xd97   : > { %v7079_v53 = vpop.permute.xlu0 %7078 }
 0xd98   : > { %8890 = vmatmul.mubr.msk.bf16.gmra.mrb[140].mxu1 %vm1400_vm4, %v6279_v29  ;;  %7170 = vadd.xlane.f32.xlu1 %v7169_v5  ;;  %v7181_v11 = vsel %vm1400_vm4, %v7079_v53, 0.0 }
 0xd99   : > { %8893 = vmatprep.mubr.msk.bf16.mxu1 %vm9868_vm1, %v14811_v63 }
 0xd9b   : > { %v7083_v55 = vpop.permute.xlu0 %7082 }
 0xd9c   : > { %7176 = vadd.xlane.f32.xlu1 %v7175_v19  ;;  %v7187_v56 = vsel %vm1400_vm4, %v7083_v55, 0.0 }
 0xd9f   : > { %v7087_v12 = vpop.permute.xlu0 %7086 }
 0xda0   : > { %8894 = vmatmul.mubr.msk.bf16.gmra.mrb[144].mxu1 %vm1400_vm4, %v6281_v49  ;;  %7182 = vadd.xlane.f32.xlu1 %v7181_v11  ;;  %v7193_v48 = vsel %vm1400_vm4, %v7087_v12, 0.0 }
 0xda1   : > { %7110 = vrot.lane.b32.xlu0 %v7021_v15, %s9872_s21  ;;  %8897 = vmatprep.mubr.msk.bf16.mxu1 %vm9868_vm1, %v14811_v63 }
 0xda3   : > { %v7091_v1 = vpop.permute.xlu0 %7090 }
 0xda4   : > { %7188 = vadd.xlane.f32.xlu1 %v7187_v56  ;;  %v13992_v0 = vpop.f32.mrb[92].mxu1  ;;  %v7199_v34 = vsel %vm1400_vm4, %v7091_v1, 0.0 }
 0xda5   : > { %v8843_v32 = vpop.f32.mrb[93].mxu1  ;;  %v14095_v4 = vadd.f32 %v14091_v59, %v13992_v0 }
 0xda6   : > { %v13994_v31 = vpop.f32.mrb[94].mxu1 }
 0xda7   : > { %v7095_v36 = vpop.permute.xlu0 %7094  ;;  %v8844_v33 = vpop.f32.mrb[95].mxu1  ;;  %9538 = vtanh.f32 %v14095_v4 }
 0xda8   : > { %8898 = vmatmul.mubr.msk.bf16.gmra.mrb[148].mxu1 %vm1400_vm4, %v6283_v47  ;;  %7194 = vadd.xlane.f32.xlu1 %v7193_v48  ;;  %v7205_v2 = vsel %vm1400_vm4, %v7095_v36, 0.0 }
 0xdab   : > { %v7099_v63 = vpop.permute.xlu0 %7098 }
 0xdac   : > { %v14001_v3 = vpop.xlane.xlu1 %7596  ;;  %7200 = vadd.xlane.f32.xlu1 %v7199_v34  ;;  %v14003_v29 = vpop.f32.mrb[96].mxu1  ;;  %v7211_v57 = vsel %vm1400_vm4, %v7099_v63, 0.0 }
 0xdad   : > { %v8847_v6 = vpop.f32.mrb[97].mxu1 }
 0xdae   : > { %v14005_v8 = vpop.f32.mrb[98].mxu1 }
 0xdaf   : > { %v8848_v37 = vpop.f32.mrb[99].mxu1  ;;  %v7103_v10 = vpop.permute.xlu0 %7102 }
 0xdb0   : > { %v14008_v30 = vpop.xlane.xlu1 %7602  ;;  %7206 = vadd.xlane.f32.xlu1 %v7205_v2  ;;  %v7217_v44 = vsel %vm1400_vm4, %v7103_v10, 0.0  ;;  %v14102_v2 = vadd.f32 %v14091_v59, %v14005_v8 }
 0xdb2   : > { %9540 = vtanh.f32 %v14102_v2 }
 0xdb3   : > { %v7107_v23 = vpop.permute.xlu0 %7106 }
 0xdb4   : > { %v14011_v14 = vpop.xlane.xlu1 %7608  ;;  %7212 = vadd.xlane.f32.xlu1 %v7211_v57  ;;  %v14013_v45 = vpop.f32.mrb[100].mxu1  ;;  %v7223_v13 = vsel %vm1400_vm4, %v7107_v23, 0.0 }
 0xdb5   : > { %v8851_v18 = vpop.f32.mrb[101].mxu1 }
 0xdb6   : > { %v14015_v52 = vpop.f32.mrb[102].mxu1 }
 0xdb7   : > { %v8852_v16 = vpop.f32.mrb[103].mxu1  ;;  %v14109_v0 = vadd.f32 %v14091_v59, %v14015_v52 }
 0xdb8   : > { %v14018_v43 = vpop.xlane.xlu1 %7614  ;;  %7218 = vadd.xlane.f32.xlu1 %v7217_v44 }
 0xdb9   : > { %9542 = vtanh.f32 %v14109_v0 }
 0xdbc   : > { %v14021_v49 = vpop.xlane.xlu1 %7620  ;;  %7224 = vadd.xlane.f32.xlu1 %v7223_v13  ;;  %v14023_v27 = vpop.f32.mrb[104].mxu1 }
 0xdbd   : > { %v8855_v39 = vpop.f32.mrb[105].mxu1  ;;  %v9539_v13 = vpop.eup %9538 }
 0xdbe   : > { %v14025_v50 = vpop.f32.mrb[106].mxu1 }
 0xdbf   : > { %v8856_v17 = vpop.f32.mrb[107].mxu1  ;;  %v14116_v8 = vadd.f32 %v14091_v59, %v14025_v50 }
 0xdc0   : > { %v14029_v9 = vpop.xlane.xlu1 %7626  ;;  %7146 = vadd.xlane.f32.xlu0 %v7145_v46 }
 0xdc1   : > { %14913 = vst [vmem:[#allocation31_spill] sm:$0xff] %v14029_v9  ;;  %9544 = vtanh.f32 %v14116_v8 }
 0xdc4   : > { %v14033_v42 = vpop.xlane.xlu1 %7632  ;;  %7149 = vadd.xlane.f32.xlu0 %v7148_v20 }
 0xdc5   : > { %14914 = vst [vmem:[#allocation4_spill] sm:$0xff] %v14033_v42 }
 0xdc8   : > { %7155 = vadd.xlane.f32.xlu0 %v7154_v35  ;;  %v14037_v47 = vpop.xlane.xlu1 %7638 }
 0xdc9   : > { %14915 = vst [vmem:[#allocation33_spill] sm:$0xff] %v14037_v47 }
 0xdcc   : > { %7161 = vadd.xlane.f32.xlu0 %v7160_v60  ;;  %v14043_v22 = vpop.xlane.xlu1 %7644  ;;  %v9541_v60 = vpop.eup %9540 }
 0xdcd   : > { %14916 = vst [vmem:[#allocation7_spill] sm:$0xff] %v14043_v22 }
 0xdd0   : > { %7167 = vadd.xlane.f32.xlu0 %v7166_v21  ;;  %v14047_v53 = vpop.xlane.xlu1 %7650 }
 0xdd1   : > { %14917 = vst [vmem:[#allocation34_spill] sm:$0xff] %v14047_v53 }
 0xdd4   : > { %7173 = vadd.xlane.f32.xlu0 %v7172_v28  ;;  %v14053_v5 = vpop.xlane.xlu1 %7656  ;;  %v9543_v28 = vpop.eup %9542 }
 0xdd5   : > { %14918 = vst [vmem:[#allocation32_spill] sm:$0xff] %v14053_v5 }
 0xdd8   : > { %7179 = vadd.xlane.f32.xlu0 %v7178_v26  ;;  %v14057_v24 = vpop.xlane.xlu1 %7662 }
 0xdd9   : > { %14919 = vst [vmem:[#allocation9_spill] sm:$0xff] %v14057_v24 }
 0xddc   : > { %7185 = vadd.xlane.f32.xlu0 %v7184_v38  ;;  %v14065_v19 = vpop.xlane.xlu1 %7668 }
 0xddd   : > { %14920 = vst [vmem:[#allocation5_spill] sm:$0xff] %v14065_v19 }
 0xde0   : > { %7191 = vadd.xlane.f32.xlu0 %v7190_v51  ;;  %v14073_v12 = vpop.xlane.xlu1 %7674  ;;  %v9545_v51 = vpop.eup %9544 }
 0xde1   : > { %14921 = vst [vmem:[#allocation35_spill] sm:$0xff] %v14073_v12 }
 0xde4   : > { %7197 = vadd.xlane.f32.xlu0 %v7196_v62  ;;  %v14061_v55 = vpop.xlane.xlu0 %7593  ;;  %v7109_v1 = vpop.permute.xlu1 %7108 }
 0xde5   : > { %v7226_v41 = vsel %vm1400_vm4, %v7109_v1, 0.0  ;;  %v14153_v1 = vadd.f32 %v14091_v59, %v14003_v29 }
 0xde8   : > { %7203 = vadd.xlane.f32.xlu0 %v7202_v40  ;;  %v14067_v25 = vpop.xlane.xlu0 %7599 }
 0xdec   : > { %7209 = vadd.xlane.f32.xlu0 %v7208_v7  ;;  %v14071_v15 = vpop.xlane.xlu0 %7605 }
 0xdf0   : > { %7215 = vadd.xlane.f32.xlu0 %v7214_v54  ;;  %v14077_v11 = vpop.xlane.xlu0 %7611  ;;  %v14147_v54 = vadd.f32 %v14091_v59, %v13994_v31  ;;  %v14164_v31 = vadd.f32 %v14091_v59, %v14023_v27 }
 0xdf4   : > { %7221 = vadd.xlane.f32.xlu0 %v7220_v61  ;;  %v14081_v56 = vpop.xlane.xlu0 %7617 }
 0xdf8   : > { %7227 = vadd.xlane.f32.xlu0 %v7226_v41  ;;  %v14084_v32 = vpop.xlane.xlu0 %7623 }
 0xdf9   : > { %14922 = vst [vmem:[#allocation6_spill] sm:$0xff] %v14084_v32 }
 0xdfc   : > { %v14086_v36 = vpop.xlane.xlu0 %7629 }
 0xdfd   : > { %14923 = vst [vmem:[#allocation36_spill] sm:$0xff] %v14086_v36  ;;  %v6395_v48 = vpop.f32.mrb[108].mxu1 }
 0xdfe   : > { %v8859_v33 = vpop.f32.mrb[109].mxu1  ;;  %v14169_v29 = vadd.f32 %v14091_v59, %v6395_v48 }
 0xdff   : > { %v6398_v63 = vpop.f32.mrb[110].mxu1  ;;  %v14159_v33 = vadd.f32 %v14091_v59, %v14013_v45 }
 0xe00   : > { %v14097_v34 = vpop.xlane.xlu0 %7635  ;;  %v8860_v6 = vpop.f32.mrb[111].mxu1  ;;  %v14123_v52 = vadd.f32 %v14091_v59, %v6398_v63 }
 0xe01   : > { %14924 = vst [vmem:[#allocation11_spill] sm:$0xff] %v14097_v34 }
 0xe02   : > { %9546 = vtanh.f32 %v14123_v52 }
 0xe04   : > { %v14104_v37 = vpop.xlane.xlu0 %7641 }
 0xe05   : > { %14925 = vst [vmem:[#allocation37_spill] sm:$0xff] %v14104_v37  ;;  %v6403_v10 = vpop.f32.mrb[112].mxu1 }
 0xe06   : > { %v8863_v57 = vpop.f32.mrb[113].mxu1  ;;  %v14174_v45 = vadd.f32 %v14091_v59, %v6403_v10 }
 0xe07   : > { %v6406_v18 = vpop.f32.mrb[114].mxu1 }
 0xe08   : > { %v14111_v23 = vpop.xlane.xlu0 %7647  ;;  %v8864_v44 = vpop.f32.mrb[115].mxu1  ;;  %v14130_v50 = vadd.f32 %v14091_v59, %v6406_v18 }
 0xe09   : > { %14926 = vst [vmem:[#allocation8_spill] sm:$0xff] %v14111_v23 }
 0xe0a   : > { %9548 = vtanh.f32 %v14130_v50 }
 0xe0c   : > { %v14118_v16 = vpop.xlane.xlu0 %7653  ;;  %v9547_v40 = vpop.eup %9546 }
 0xe0d   : > { %14927 = vst [vmem:[#allocation38_spill] sm:$0xff] %v14118_v16  ;;  %v6411_v39 = vpop.f32.mrb[116].mxu1 }
 0xe0e   : > { %6662 = vrot.lane.b32.xlu0 %v9539_v13, %s9870_s30  ;;  %v8867_v46 = vpop.f32.mrb[117].mxu1  ;;  %v14179_v27 = vadd.f32 %v14091_v59, %v6411_v39 }
 0xe0f   : > { %v6414_v17 = vpop.f32.mrb[118].mxu1 }
 0xe10   : > { %v14125_v20 = vpop.xlane.xlu0 %7659  ;;  %v8868_v35 = vpop.f32.mrb[119].mxu1  ;;  %v14137_v26 = vadd.f32 %v14091_v59, %v6414_v17 }
 0xe11   : > { %14928 = vst [vmem:[#allocation13_spill] sm:$0xff] %v14125_v20 }
 0xe12   : > { %6668 = vrot.lane.b32.xlu0 %v9541_v60, %s9870_s30  ;;  %9550 = vtanh.f32 %v14137_v26 }
 0xe13   : > { %9552 = vtanh.f32 %v14147_v54 }
 0xe14   : > { %v14132_v21 = vpop.xlane.xlu0 %7665  ;;  %v9549_v61 = vpop.eup %9548  ;;  %9554 = vtanh.f32 %v14153_v1 }
 0xe15   : > { %14929 = vst [vmem:[#allocation44_spill] sm:$0xff] %v14132_v21  ;;  %9556 = vtanh.f32 %v14159_v33 }
 0xe16   : > { %6672 = vrot.lane.b32.xlu0 %v9543_v28, %s9870_s30  ;;  %9558 = vtanh.f32 %v14164_v31 }
 0xe17   : > { %9560 = vtanh.f32 %v14169_v29 }
 0xe18   : > { %v14139_v38 = vpop.xlane.xlu0 %7671  ;;  %9562 = vtanh.f32 %v14174_v45 }
 0xe19   : > { %14930 = vst [vmem:[#allocation39_spill] sm:$0xff] %v14139_v38  ;;  %9564 = vtanh.f32 %v14179_v27 }
 0xe1a   : > { %6676 = vrot.lane.b32.xlu0 %v9545_v51, %s9870_s30 }
 0xe1c   : > { %v7111_v62 = vpop.permute.xlu0 %7110  ;;  %v9551_v41 = vpop.eup %9550 }
 0xe1d   : > { %v7229_v7 = vsel %vm1400_vm4, %v7111_v62, 0.0  ;;  %v9553_v63 = vpop.eup %9552 }
 0xe1e   : > { %7230 = vadd.xlane.f32.xlu1 %v7229_v7  ;;  %6680 = vrot.lane.b32.xlu0 %v9547_v40, %s9870_s30  ;;  %v9555_v6 = vpop.eup %9554 }
 0xe1f   : > { %v9557_v57 = vpop.eup %9556 }
 0xe20   : > { %v9559_v18 = vpop.eup %9558 }
 0xe21   : > { %v9561_v48 = vpop.eup %9560 }
 0xe22   : > { %6684 = vrot.lane.b32.xlu0 %v9549_v61, %s9870_s30  ;;  %v9563_v44 = vpop.eup %9562 }
 0xe23   : > { %v9565_v35 = vpop.eup %9564 }
 0xe26   : > { %6688 = vrot.lane.b32.xlu0 %v9551_v41, %s9870_s30 }
 0xe2f   : > { %6664 = vrot.lane.b32.xlu1 %v9553_v63, %s9870_s30 }
 0xe33   : > { %6666 = vrot.lane.b32.xlu1 %v9555_v6, %s9870_s30 }
 0xe37   : > { %6670 = vrot.lane.b32.xlu1 %v9557_v57, %s9870_s30 }
 0xe3b   : > { %6674 = vrot.lane.b32.xlu1 %v9559_v18, %s9870_s30 }
 0xe3f   : > { %6678 = vrot.lane.b32.xlu1 %v9561_v48, %s9870_s30 }
 0xe43   : > { %6682 = vrot.lane.b32.xlu1 %v9563_v44, %s9870_s30  ;;  %v6419_v10 = vpop.f32.mrb[120].mxu1 }
 0xe44   : > { %v14186_v13 = vadd.f32 %v14091_v59, %v6419_v10  ;;  %v8871_v46 = vpop.f32.mrb[121].mxu1 }
 0xe45   : > { %v6422_v17 = vpop.f32.mrb[122].mxu1 }
 0xe46   : > { %9566 = vtanh.f32 %v14186_v13  ;;  %v14190_v39 = vadd.f32 %v14091_v59, %v6422_v17  ;;  %v8872_v60 = vpop.f32.mrb[123].mxu1 }
 0xe47   : > { %6686 = vrot.lane.b32.xlu1 %v9565_v35, %s9870_s30 }
 0xe48   : > { %9568 = vtanh.f32 %v14190_v39 }
 0xe4b   : > { %v6427_v28 = vpop.f32.mrb[124].mxu1 }
 0xe4c   : > { %v14195_v51 = vadd.f32 %v14091_v59, %v6427_v28  ;;  %v8875_v62 = vpop.f32.mrb[125].mxu1  ;;  %v14217_v28 = vpop.xlane.xlu1 %7143 }
 0xe4d   : > { %v14197_v40 = vpop.xlane.xlu0 %7146  ;;  %v6430_v7 = vpop.f32.mrb[126].mxu1 }
 0xe4e   : > { %9570 = vtanh.f32 %v14195_v51  ;;  %v14201_v61 = vadd.f32 %v14091_v59, %v6430_v7  ;;  %v8876_v41 = vpop.f32.mrb[127].mxu1 }
 0xe50   : > { %v9567_v63 = vpop.eup %9566  ;;  %9572 = vtanh.f32 %v14201_v61 }
 0xe51   : > { %v14204_v6 = vpop.xlane.xlu0 %7149  ;;  %6690 = vrot.lane.b32.xlu1 %v9567_v63, %s9870_s30 }
 0xe52   : > { %v9569_v57 = vpop.eup %9568 }
 0xe53   : > { %v6435_v18 = vpop.f32.mrb[128].mxu1  ;;  %6692 = vrot.lane.b32.xlu0 %v9569_v57, %s9870_s30 }
 0xe54   : > { %v14209_v48 = vadd.f32 %v14091_v59, %v6435_v18  ;;  %v8879_v44 = vpop.f32.mrb[129].mxu1 }
 0xe55   : > { %v14211_v10 = vpop.xlane.xlu0 %7155  ;;  %v6438_v46 = vpop.f32.mrb[130].mxu1 }
 0xe56   : > { %9574 = vtanh.f32 %v14209_v48  ;;  %v14215_v17 = vadd.f32 %v14091_v59, %v6438_v46  ;;  %v8880_v35 = vpop.f32.mrb[131].mxu1  ;;  %v14229_v46 = vpop.xlane.xlu1 %7152 }
 0xe58   : > { %v9571_v60 = vpop.eup %9570  ;;  %9576 = vtanh.f32 %v14215_v17 }
 0xe59   : > { %v14220_v62 = vpop.xlane.xlu0 %7161  ;;  %6694 = vrot.lane.b32.xlu1 %v9571_v60, %s9870_s30 }
 0xe5a   : > { %v9573_v7 = vpop.eup %9572 }
 0xe5b   : > { %v6443_v41 = vpop.f32.mrb[132].mxu1  ;;  %6696 = vrot.lane.b32.xlu0 %v9573_v7, %s9870_s30 }
 0xe5c   : > { %v14225_v63 = vadd.f32 %v14091_v59, %v6443_v41  ;;  %v8883_v57 = vpop.f32.mrb[133].mxu1 }
 0xe5d   : > { %v14227_v18 = vpop.xlane.xlu0 %7167  ;;  %v6446_v44 = vpop.f32.mrb[134].mxu1 }
 0xe5e   : > { %9578 = vtanh.f32 %v14225_v63  ;;  %v14233_v35 = vadd.f32 %v14091_v59, %v6446_v44  ;;  %v8884_v12 = vpop.f32.mrb[135].mxu1  ;;  %v14239_v57 = vpop.xlane.xlu1 %7158 }
 0xe60   : > { %v9575_v60 = vpop.eup %9574  ;;  %9580 = vtanh.f32 %v14233_v35 }
 0xe61   : > { %v14236_v38 = vpop.xlane.xlu0 %7173  ;;  %6698 = vrot.lane.b32.xlu1 %v9575_v60, %s9870_s30 }
 0xe62   : > { %14931 = vst [vmem:[#allocation19_spill] sm:$0xff] %v14236_v38  ;;  %v9577_v7 = vpop.eup %9576 }
 0xe63   : > { %v6451_v41 = vpop.f32.mrb[136].mxu1  ;;  %6700 = vrot.lane.b32.xlu0 %v9577_v7, %s9870_s30  ;;  %v14255_v7 = vpop.xlane.xlu1 %7164 }
 0xe64   : > { %v14243_v19 = vadd.f32 %v14091_v59, %v6451_v41  ;;  %v8887_v21 = vpop.f32.mrb[137].mxu1 }
 0xe65   : > { %v14245_v44 = vpop.xlane.xlu0 %7179  ;;  %v6454_v12 = vpop.f32.mrb[138].mxu1 }
 0xe66   : > { %14932 = vst [vmem:[#allocation10_spill] sm:$0xff] %v14245_v44  ;;  %9582 = vtanh.f32 %v14243_v19  ;;  %v14249_v24 = vadd.f32 %v14091_v59, %v6454_v12  ;;  %v8888_v20 = vpop.f32.mrb[139].mxu1 }
 0xe67   : > { %v14267_v22 = vpop.xlane.xlu1 %7170 }
 0xe68   : > { %v9579_v60 = vpop.eup %9578  ;;  %9584 = vtanh.f32 %v14249_v24 }
 0xe69   : > { %v14252_v5 = vpop.xlane.xlu0 %7185  ;;  %6702 = vrot.lane.b32.xlu1 %v9579_v60, %s9870_s30 }
 0xe6a   : > { %14933 = vst [vmem:[#allocation46_spill] sm:$0xff] %v14252_v5  ;;  %v9581_v41 = vpop.eup %9580 }
 0xe6b   : > { %v6459_v21 = vpop.f32.mrb[140].mxu1  ;;  %6704 = vrot.lane.b32.xlu0 %v9581_v41, %s9870_s30  ;;  %v14280_v5 = vpop.xlane.xlu1 %7176 }
 0xe6c   : > { %v14259_v16 = vadd.f32 %v14091_v59, %v6459_v21  ;;  %v8891_v53 = vpop.f32.mrb[141].mxu1  ;;  %14937 = vst [vmem:[#allocation48_spill] sm:$0xff] %v14280_v5 }
 0xe6d   : > { %v14261_v12 = vpop.xlane.xlu0 %7191  ;;  %v6462_v20 = vpop.f32.mrb[142].mxu1  ;;  %v6482_v53 = vmul.f32 0.5, %v14095_v4 }
 0xe6e   : > { %14934 = vst [vmem:[#allocation40_spill] sm:$0xff] %v14261_v12  ;;  %9586 = vtanh.f32 %v14259_v16  ;;  %v14265_v23 = vadd.f32 %v14091_v59, %v6462_v20  ;;  %v8892_v37 = vpop.f32.mrb[143].mxu1 }
 0xe70   : > { %v9583_v60 = vpop.eup %9582  ;;  %9588 = vtanh.f32 %v14265_v23 }
 0xe71   : > { %v14270_v34 = vpop.xlane.xlu0 %7197  ;;  %6706 = vrot.lane.b32.xlu1 %v9583_v60, %s9870_s30 }
 0xe72   : > { %14935 = vst [vmem:[#allocation21_spill] sm:$0xff] %v14270_v34  ;;  %v9585_v41 = vpop.eup %9584 }
 0xe73   : > { %v6467_v21 = vpop.f32.mrb[144].mxu1  ;;  %6708 = vrot.lane.b32.xlu0 %v9585_v41, %s9870_s30 }
 0xe74   : > { %v14276_v12 = vadd.f32 %v14091_v59, %v6467_v21  ;;  %v8895_v20 = vpop.f32.mrb[145].mxu1 }
 0xe75   : > { %v14278_v37 = vpop.xlane.xlu0 %7203  ;;  %v6470_v47 = vpop.f32.mrb[146].mxu1 }
 0xe76   : > { %14936 = vst [vmem:[#allocation15_spill] sm:$0xff] %v14278_v37  ;;  %9590 = vtanh.f32 %v14276_v12  ;;  %v14284_v34 = vadd.f32 %v14091_v59, %v6470_v47  ;;  %v8896_v60 = vpop.f32.mrb[147].mxu1  ;;  %v14290_v37 = vpop.xlane.xlu1 %7182 }
 0xe77   : > { %9592 = vtanh.f32 %v6482_v53  ;;  %14939 = vst [vmem:[#allocation23_spill] sm:$0xff] %v14290_v37 }
 0xe78   : > { %v9587_v4 = vpop.eup %9586  ;;  %9594 = vtanh.f32 %v14284_v34 }
 0xe79   : > { %v14287_v41 = vpop.xlane.xlu0 %7209  ;;  %6710 = vrot.lane.b32.xlu1 %v9587_v4, %s9870_s30 }
 0xe7a   : > { %14938 = vst [vmem:[#allocation41_spill] sm:$0xff] %v14287_v41  ;;  %v9589_v21 = vpop.eup %9588 }
 0xe7b   : > { %v6475_v20 = vpop.f32.mrb[148].mxu1  ;;  %6712 = vrot.lane.b32.xlu0 %v9589_v21, %s9870_s30 }
 0xe7c   : > { %v14294_v36 = vadd.f32 %v14091_v59, %v6475_v20  ;;  %v8899_v47 = vpop.f32.mrb[149].mxu1  ;;  %v14306_v20 = vpop.xlane.xlu1 %7188 }
 0xe7d   : > { %v14296_v42 = vpop.xlane.xlu0 %7215  ;;  %v6478_v53 = vpop.f32.mrb[150].mxu1  ;;  %14942 = vst [vmem:[#allocation42_spill] sm:$0xff] %v14306_v20 }
 0xe7e   : > { %14940 = vst [vmem:[#allocation12_spill] sm:$0xff] %v14296_v42  ;;  %9596 = vtanh.f32 %v14294_v36  ;;  %v14300_v60 = vadd.f32 %v14091_v59, %v6478_v53  ;;  %v8900_v41 = vpop.f32.mrb[151].mxu1 }
 0xe80   : > { %v9591_v4 = vpop.eup %9590  ;;  %9598 = vtanh.f32 %v14300_v60  ;;  %v14313_v41 = vpop.xlane.xlu1 %7194 }
 0xe81   : > { %v9593_v44 = vpop.eup %9592  ;;  %v14303_v37 = vpop.xlane.xlu0 %7221  ;;  %6714 = vrot.lane.b32.xlu1 %v9591_v4, %s9870_s30  ;;  %14944 = vst [vmem:[#allocation17_spill] sm:$0xff] %v14313_v41 }
 0xe82   : > { %14941 = vst [vmem:[#allocation50_spill] sm:$0xff] %v14303_v37  ;;  %v9595_v21 = vpop.eup %9594  ;;  %v6542_v47 = vmul.f32 0.5, %v9593_v44 }
 0xe83   : > { %6716 = vrot.lane.b32.xlu0 %v9595_v21, %s9870_s30 }
 0xe84   : > { %v14311_v59 = vadd.f32 0.5, %v6542_v47  ;;  %v14318_v4 = vpop.xlane.xlu1 %7200  ;;  %v6483_v47 = vmul.f32 0.5, %v14147_v54  ;;  %v6491_v54 = vmul.f32 0.5, %v14123_v52  ;;  %v6495_v52 = vmul.f32 0.5, %v14137_v26 }
 0xe85   : > { %v14309_v42 = vpop.xlane.xlu0 %7227  ;;  %14945 = vst [vmem:[#allocation52_spill] sm:$0xff] %v14318_v4 }
 0xe86   : > { %14943 = vst [vmem:[#allocation25_spill] sm:$0xff] %v14309_v42  ;;  %v6485_v42 = vmul.f32 0.5, %v14102_v2  ;;  %v6488_v2 = vmul.f32 0.5, %v14164_v31 }
 0xe88   : > { %v9597_v32 = vpop.eup %9596  ;;  %v14320_v21 = vpop.xlane.xlu1 %7206 }
 0xe89   : > { %v6663_v53 = vpop.permute.xlu0 %6662  ;;  %6718 = vrot.lane.b32.xlu1 %v9597_v32, %s9870_s30  ;;  %14946 = vst [vmem:[#allocation43_spill] sm:$0xff] %v14320_v21  ;;  %v6484_v32 = vmul.f32 0.5, %v14153_v1 }
 0xe8a   : > { %v6752_v37 = vmul.f32 %v6663_v53, %v14311_v59  ;;  %v9599_v9 = vpop.eup %9598 }
 0xe8b   : > { %6720 = vrot.lane.b32.xlu0 %v9599_v9, %s9870_s30  ;;  %v6486_v9 = vmul.f32 0.5, %v14159_v33  ;;  %v6493_v33 = vmul.f32 0.5, %v14130_v50 }
 0xe8c   : > { %9600 = vtanh.f32 %v6752_v37  ;;  %v14325_v41 = vpop.xlane.xlu1 %7212  ;;  %v6487_v37 = vmul.f32 0.5, %v14109_v0  ;;  %v6490_v0 = vmul.f32 0.5, %v14169_v29 }
 0xe8d   : > { %14947 = vst [vmem:[#allocation27_spill] sm:$0xff] %v14325_v41  ;;  %9602 = vtanh.f32 %v6483_v47  ;;  %v6669_v21 = vpop.permute.xlu0 %6668 }
 0xe8e   : > { %9604 = vtanh.f32 %v6485_v42 }
 0xe8f   : > { %9606 = vtanh.f32 %v6484_v32 }
 0xe90   : > { %v14330_v53 = vpop.xlane.xlu1 %7218  ;;  %9608 = vtanh.f32 %v6487_v37 }
 0xe91   : > { %14948 = vst [vmem:[#allocation14_spill] sm:$0xff] %v14330_v53  ;;  %9610 = vtanh.f32 %v6486_v9  ;;  %v6673_v32 = vpop.permute.xlu0 %6672 }
 0xe94   : > { %v14335_v1 = vpop.xlane.xlu1 %7224 }
 0xe95   : > { %14949 = vst [vmem:[#allocation54_spill] sm:$0xff] %v14335_v1  ;;  %v6677_v4 = vpop.permute.xlu0 %6676 }
 0xe96   : > { %v9601_v44 = vpop.eup %9600 }
 0xe97   : > { %6842 = vrot.lane.b32.xlu1 %v9601_v44, %s14908_s2  ;;  %v6489_v44 = vmul.f32 0.5, %v14116_v8  ;;  %v9603_v47 = vpop.eup %9602 }
 0xe98   : > { %v9605_v42 = vpop.eup %9604  ;;  %v6543_v37 = vmul.f32 0.5, %v9603_v47 }
 0xe99   : > { %9612 = vtanh.f32 %v6489_v44  ;;  %v9607_v8 = vpop.eup %9606  ;;  %v6545_v53 = vmul.f32 0.5, %v9605_v42  ;;  %v6492_v44 = vmul.f32 0.5, %v14174_v45 }
 0xe9a   : > { %9614 = vtanh.f32 %v6488_v2  ;;  %v9609_v31 = vpop.eup %9608  ;;  %v14343_v1 = vadd.f32 0.5, %v6543_v37  ;;  %v6544_v2 = vmul.f32 0.5, %v9607_v8 }
 0xe9b   : > { %9616 = vtanh.f32 %v6491_v54  ;;  %v9611_v29 = vpop.eup %9610  ;;  %v6494_v54 = vmul.f32 0.5, %v14179_v27  ;;  %v14346_v50 = vadd.f32 0.5, %v6545_v53  ;;  %v6547_v47 = vmul.f32 0.5, %v9609_v31 }
 0xe9c   : > { %9618 = vtanh.f32 %v6490_v0  ;;  %v14351_v0 = vadd.f32 0.5, %v6544_v2 }
 0xe9d   : > { %9620 = vtanh.f32 %v6493_v33  ;;  %v6755_v26 = vmul.f32 %v6669_v21, %v14346_v50  ;;  %v6546_v33 = vmul.f32 0.5, %v9611_v29  ;;  %v14353_v27 = vadd.f32 0.5, %v6547_v47  ;;  %v6681_v21 = vpop.permute.xlu0 %6680 }
 0xe9e   : > { %9622 = vtanh.f32 %v6492_v44  ;;  %v6496_v44 = vmul.f32 0.5, %v14186_v13  ;;  %v6499_v13 = vmul.f32 0.5, %v14201_v61  ;;  %v6500_v61 = vmul.f32 0.5, %v14209_v48 }
 0xe9f   : > { %9624 = vtanh.f32 %v6495_v52  ;;  %v14358_v52 = vadd.f32 0.5, %v6546_v33 }
 0xea3   : > { %v9613_v42 = vpop.eup %9612 }
 0xea4   : > { %v9615_v37 = vpop.eup %9614  ;;  %v6549_v53 = vmul.f32 0.5, %v9613_v42 }
 0xea5   : > { %v9617_v31 = vpop.eup %9616  ;;  %v6548_v2 = vmul.f32 0.5, %v9615_v37 }
 0xea6   : > { %v9619_v29 = vpop.eup %9618  ;;  %v14361_v47 = vadd.f32 0.5, %v6549_v53  ;;  %v6551_v42 = vmul.f32 0.5, %v9617_v31 }
 0xea7   : > { %v9621_v20 = vpop.eup %9620  ;;  %v14366_v33 = vadd.f32 0.5, %v6548_v2  ;;  %v6550_v37 = vmul.f32 0.5, %v9619_v29 }
 0xea8   : > { %v6553_v53 = vmul.f32 0.5, %v9621_v20 }
 0xea9   : > { %v14374_v29 = vadd.f32 0.5, %v6550_v37 }
 0xeab   : > { %v14339_v9 = vpop.xlane.xlu1 %7230 }
 0xeac   : > { %14950 = vst [vmem:[#allocation45_spill] sm:$0xff] %v14339_v9  ;;  %v6497_v9 = vmul.f32 0.5, %v14190_v39 }
 0xeaf   : > { %v6665_v41 = vpop.permute.xlu1 %6664 }
 0xeb0   : > { %v6753_v45 = vmul.f32 %v6665_v41, %v14343_v1  ;;  %v6757_v41 = vmul.f32 %v6673_v32, %v14353_v27  ;;  %v6759_v32 = vmul.f32 %v6677_v4, %v14361_v47 }
 0xeb2   : > { %9626 = vtanh.f32 %v6753_v45 }
 0xeb3   : > { %9628 = vtanh.f32 %v6494_v54  ;;  %v6667_v8 = vpop.permute.xlu1 %6666  ;;  %v6498_v54 = vmul.f32 0.5, %v14195_v51  ;;  %v14368_v51 = vadd.f32 0.5, %v6551_v42  ;;  %v14376_v42 = vadd.f32 0.5, %v6553_v53 }
 0xeb4   : > { %9630 = vtanh.f32 %v6497_v9  ;;  %v6754_v39 = vmul.f32 %v6667_v8, %v14351_v0 }
 0xeb5   : > { %9632 = vtanh.f32 %v6755_v26  ;;  %v9623_v26 = vpop.eup %9622  ;;  %v6761_v4 = vmul.f32 %v6681_v21, %v14368_v51 }
 0xeb6   : > { %9634 = vtanh.f32 %v6754_v39  ;;  %v9625_v8 = vpop.eup %9624 }
 0xeb7   : > { %v6671_v45 = vpop.permute.xlu1 %6670  ;;  %9636 = vtanh.f32 %v6496_v44  ;;  %v6685_v44 = vpop.permute.xlu0 %6684 }
 0xeb8   : > { %v6756_v9 = vmul.f32 %v6671_v45, %v14358_v52  ;;  %9638 = vtanh.f32 %v6757_v41  ;;  %v6763_v21 = vmul.f32 %v6685_v44, %v14376_v42 }
 0xeba   : > { %9640 = vtanh.f32 %v6756_v9 }
 0xebb   : > { %9642 = vtanh.f32 %v6498_v54  ;;  %v6675_v31 = vpop.permute.xlu1 %6674  ;;  %v6552_v54 = vmul.f32 0.5, %v9623_v26  ;;  %v6689_v26 = vpop.permute.xlu0 %6688 }
 0xebc   : > { %v9627_v39 = vpop.eup %9626  ;;  %9644 = vtanh.f32 %v6499_v13  ;;  %v6758_v41 = vmul.f32 %v6675_v31, %v14366_v33  ;;  %v6555_v13 = vmul.f32 0.5, %v9625_v8  ;;  %v6501_v31 = vmul.f32 0.5, %v14215_v17 }
 0xebd   : > { %v9629_v45 = vpop.eup %9628  ;;  %9646 = vtanh.f32 %v6759_v32  ;;  %6844 = vrot.lane.b32.xlu0 %v9627_v39, %s14908_s2  ;;  %v14383_v53 = vadd.f32 0.5, %v6552_v54 }
 0xebe   : > { %v9631_v2 = vpop.eup %9630  ;;  %9648 = vtanh.f32 %v6758_v41  ;;  %v6554_v8 = vmul.f32 0.5, %v9629_v45  ;;  %v14385_v41 = vadd.f32 0.5, %v6555_v13 }
 0xebf   : > { %v9633_v20 = vpop.eup %9632  ;;  %v6679_v9 = vpop.permute.xlu1 %6678  ;;  %9650 = vtanh.f32 %v6500_v61  ;;  %v6557_v17 = vmul.f32 0.5, %v9631_v2 }
 0xec0   : > { %v9635_v48 = vpop.eup %9634  ;;  %v6760_v32 = vmul.f32 %v6679_v9, %v14374_v29  ;;  %9652 = vtanh.f32 %v6761_v4  ;;  %v6502_v4 = vmul.f32 0.5, %v14225_v63  ;;  %v14392_v13 = vadd.f32 0.5, %v6554_v8 }
 0xec1   : > { %6846 = vrot.lane.b32.xlu1 %v9635_v48, %s14908_s2  ;;  %6848 = vrot.lane.b32.xlu0 %v9633_v20, %s14908_s2  ;;  %v9637_v37 = vpop.eup %9636  ;;  %v6765_v20 = vmul.f32 %v6689_v26, %v14385_v41 }
 0xec2   : > { %9654 = vtanh.f32 %v6760_v32  ;;  %v9639_v39 = vpop.eup %9638  ;;  %v6556_v2 = vmul.f32 0.5, %v9637_v37 }
 0xec3   : > { %v6683_v61 = vpop.permute.xlu1 %6682  ;;  %9656 = vtanh.f32 %v6501_v31  ;;  %v14394_v31 = vadd.f32 0.5, %v6557_v17 }
 0xec4   : > { %v9641_v38 = vpop.eup %9640  ;;  %v6762_v44 = vmul.f32 %v6683_v61, %v14383_v53  ;;  %9658 = vtanh.f32 %v6763_v21  ;;  %v6503_v21 = vmul.f32 0.5, %v14233_v35  ;;  %v14401_v37 = vadd.f32 0.5, %v6556_v2 }
 0xec5   : > { %v9643_v9 = vpop.eup %9642  ;;  %6850 = vrot.lane.b32.xlu1 %v9641_v38, %s14908_s2  ;;  %6852 = vrot.lane.b32.xlu0 %v9639_v39, %s14908_s2  ;;  %v6693_v54 = vpop.permute.xlu0 %6692  ;;  %v6504_v35 = vmul.f32 0.5, %v14243_v19 }
 0xec6   : > { %v9645_v45 = vpop.eup %9644  ;;  %9660 = vtanh.f32 %v6762_v44  ;;  %v6767_v38 = vmul.f32 %v6693_v54, %v14394_v31  ;;  %v6558_v61 = vmul.f32 0.5, %v9643_v9 }
 0xec7   : > { %v9647_v48 = vpop.eup %9646  ;;  %v6687_v63 = vpop.permute.xlu1 %6686  ;;  %9662 = vtanh.f32 %v6502_v4  ;;  %v6559_v8 = vmul.f32 0.5, %v9645_v45 }
 0xec8   : > { %v9649_v32 = vpop.eup %9648  ;;  %v6764_v26 = vmul.f32 %v6687_v63, %v14392_v13  ;;  %9664 = vtanh.f32 %v6765_v20 }
 0xec9   : > { %6854 = vrot.lane.b32.xlu1 %v9649_v32, %s14908_s2  ;;  %6856 = vrot.lane.b32.xlu0 %v9647_v48, %s14908_s2  ;;  %v9651_v39 = vpop.eup %9650  ;;  %v14405_v54 = vadd.f32 0.5, %v6559_v8  ;;  %v14409_v48 = vadd.f32 0.5, %v6558_v61 }
 0xeca   : > { %9666 = vtanh.f32 %v6764_v26  ;;  %v9653_v17 = vpop.eup %9652  ;;  %v6560_v9 = vmul.f32 0.5, %v9651_v39  ;;  %v6505_v26 = vmul.f32 0.5, %v14249_v24 }
 0xecb   : > { %v6691_v44 = vpop.permute.xlu1 %6690  ;;  %9668 = vtanh.f32 %v6503_v21 }
 0xecc   : > { %v9655_v4 = vpop.eup %9654  ;;  %v6766_v20 = vmul.f32 %v6691_v44, %v14401_v37  ;;  %9670 = vtanh.f32 %v6767_v38  ;;  %v14416_v61 = vadd.f32 0.5, %v6560_v9 }
 0xecd   : > { %6858 = vrot.lane.b32.xlu1 %v9655_v4, %s14908_s2  ;;  %6860 = vrot.lane.b32.xlu0 %v9653_v17, %s14908_s2  ;;  %v9657_v45 = vpop.eup %9656  ;;  %v6697_v2 = vpop.permute.xlu0 %6696 }
 0xece   : > { %9672 = vtanh.f32 %v6766_v20  ;;  %v9659_v63 = vpop.eup %9658  ;;  %v6769_v32 = vmul.f32 %v6697_v2, %v14405_v54  ;;  %v6561_v8 = vmul.f32 0.5, %v9657_v45 }
 0xecf   : > { %v6695_v21 = vpop.permute.xlu1 %6694  ;;  %9674 = vtanh.f32 %v6504_v35  ;;  %v6506_v35 = vmul.f32 0.5, %v14259_v16 }
 0xed0   : > { %v9661_v19 = vpop.eup %9660  ;;  %v6768_v38 = vmul.f32 %v6695_v21, %v14409_v48  ;;  %9676 = vtanh.f32 %v6769_v32  ;;  %v14420_v20 = vadd.f32 0.5, %v6561_v8 }
 0xed1   : > { %6862 = vrot.lane.b32.xlu1 %v9661_v19, %s14908_s2  ;;  %6864 = vrot.lane.b32.xlu0 %v9659_v63, %s14908_s2  ;;  %v9663_v17 = vpop.eup %9662  ;;  %v6507_v19 = vmul.f32 0.5, %v14265_v23 }
 0xed2   : > { %9678 = vtanh.f32 %v6768_v38  ;;  %v9665_v39 = vpop.eup %9664  ;;  %v6562_v63 = vmul.f32 0.5, %v9663_v17  ;;  %v6508_v17 = vmul.f32 0.5, %v14276_v12 }
 0xed3   : > { %v6699_v44 = vpop.permute.xlu1 %6698  ;;  %9680 = vtanh.f32 %v6505_v26 }
 0xed4   : > { %v9667_v4 = vpop.eup %9666  ;;  %v6770_v24 = vmul.f32 %v6699_v44, %v14416_v61  ;;  %v14428_v38 = vadd.f32 0.5, %v6562_v63 }
 0xed5   : > { %6866 = vrot.lane.b32.xlu1 %v9667_v4, %s14908_s2  ;;  %6868 = vrot.lane.b32.xlu0 %v9665_v39, %s14908_s2  ;;  %v9669_v2 = vpop.eup %9668  ;;  %v6701_v45 = vpop.permute.xlu0 %6700 }
 0xed6   : > { %9682 = vtanh.f32 %v6770_v24  ;;  %v9671_v9 = vpop.eup %9670  ;;  %v6771_v32 = vmul.f32 %v6701_v45, %v14420_v20  ;;  %v6563_v16 = vmul.f32 0.5, %v9669_v2 }
 0xed7   : > { %9684 = vtanh.f32 %v6506_v35 }
 0xed8   : > { %v9673_v21 = vpop.eup %9672  ;;  %9686 = vtanh.f32 %v6771_v32  ;;  %v14432_v35 = vadd.f32 0.5, %v6563_v16 }
 0xed9   : > { %6870 = vrot.lane.b32.xlu1 %v9673_v21, %s14908_s2  ;;  %6872 = vrot.lane.b32.xlu0 %v9671_v9, %s14908_s2  ;;  %v9675_v26 = vpop.eup %9674  ;;  %9688 = vtanh.f32 %v6507_v19  ;;  %v6509_v9 = vmul.f32 0.5, %v14284_v34 }
 0xeda   : > { %v9677_v8 = vpop.eup %9676  ;;  %v6564_v2 = vmul.f32 0.5, %v9675_v26 }
 0xedb   : > { %v6703_v39 = vpop.permute.xlu1 %6702 }
 0xedc   : > { %v9679_v44 = vpop.eup %9678  ;;  %v6772_v4 = vmul.f32 %v6703_v39, %v14428_v38  ;;  %v14439_v21 = vadd.f32 0.5, %v6564_v2 }
 0xedd   : > { %6874 = vrot.lane.b32.xlu1 %v9679_v44, %s14908_s2  ;;  %6876 = vrot.lane.b32.xlu0 %v9677_v8, %s14908_s2  ;;  %v9681_v23 = vpop.eup %9680  ;;  %v6705_v24 = vpop.permute.xlu0 %6704  ;;  %v6510_v8 = vmul.f32 0.5, %v14294_v36 }
 0xede   : > { %9690 = vtanh.f32 %v6772_v4  ;;  %v6773_v45 = vmul.f32 %v6705_v24, %v14432_v35  ;;  %v6565_v12 = vmul.f32 0.5, %v9681_v23  ;;  %v6511_v24 = vmul.f32 0.5, %v14300_v60 }
 0xedf   : > { %9692 = vtanh.f32 %v6508_v17 }
 0xee0   : > { %v9683_v63 = vpop.eup %9682  ;;  %9694 = vtanh.f32 %v6773_v45  ;;  %v14444_v39 = vadd.f32 0.5, %v6565_v12 }
 0xee1   : > { %6878 = vrot.lane.b32.xlu1 %v9683_v63, %s14908_s2  ;;  %v9685_v32 = vpop.eup %9684  ;;  %9696 = vtanh.f32 %v6509_v9 }
 0xee2   : > { %v9687_v19 = vpop.eup %9686  ;;  %v6566_v17 = vmul.f32 0.5, %v9685_v32 }
 0xee3   : > { %v6707_v16 = vpop.permute.xlu1 %6706  ;;  %6880 = vrot.lane.b32.xlu0 %v9687_v19, %s14908_s2  ;;  %v9689_v44 = vpop.eup %9688 }
 0xee4   : > { %v6774_v26 = vmul.f32 %v6707_v16, %v14439_v21  ;;  %v6567_v36 = vmul.f32 0.5, %v9689_v44  ;;  %v14449_v45 = vadd.f32 0.5, %v6566_v17 }
 0xee5   : > { %v6709_v34 = vpop.permute.xlu0 %6708 }
 0xee6   : > { %9698 = vtanh.f32 %v6774_v26  ;;  %v6775_v4 = vmul.f32 %v6709_v34, %v14444_v39  ;;  %v14453_v32 = vadd.f32 0.5, %v6567_v36 }
 0xee7   : > { %9700 = vtanh.f32 %v6510_v8 }
 0xee8   : > { %v9691_v23 = vpop.eup %9690  ;;  %9702 = vtanh.f32 %v6775_v4 }
 0xee9   : > { %6882 = vrot.lane.b32.xlu1 %v9691_v23, %s14908_s2  ;;  %v9693_v2 = vpop.eup %9692  ;;  %9704 = vtanh.f32 %v6511_v24 }
 0xeea   : > { %v9695_v63 = vpop.eup %9694  ;;  %v6568_v60 = vmul.f32 0.5, %v9693_v2 }
 0xeeb   : > { %v6711_v9 = vpop.permute.xlu1 %6710  ;;  %6884 = vrot.lane.b32.xlu0 %v9695_v63, %s14908_s2  ;;  %v9697_v19 = vpop.eup %9696 }
 0xeec   : > { %v6776_v12 = vmul.f32 %v6711_v9, %v14449_v45  ;;  %v6569_v44 = vmul.f32 0.5, %v9697_v19  ;;  %v14457_v17 = vadd.f32 0.5, %v6568_v60 }
 0xeed   : > { %v6713_v16 = vpop.permute.xlu0 %6712 }
 0xeee   : > { %9706 = vtanh.f32 %v6776_v12  ;;  %v6777_v8 = vmul.f32 %v6713_v16, %v14453_v32  ;;  %v14461_v36 = vadd.f32 0.5, %v6569_v44 }
 0xef0   : > { %v9699_v26 = vpop.eup %9698  ;;  %9708 = vtanh.f32 %v6777_v8 }
 0xef1   : > { %6886 = vrot.lane.b32.xlu1 %v9699_v26, %s14908_s2  ;;  %v9701_v34 = vpop.eup %9700 }
 0xef2   : > { %v9703_v4 = vpop.eup %9702  ;;  %v6570_v9 = vmul.f32 0.5, %v9701_v34 }
 0xef3   : > { %v6715_v23 = vpop.permute.xlu1 %6714  ;;  %6888 = vrot.lane.b32.xlu0 %v9703_v4, %s14908_s2  ;;  %v9705_v63 = vpop.eup %9704 }
 0xef4   : > { %v6778_v24 = vmul.f32 %v6715_v23, %v14457_v17  ;;  %v6571_v19 = vmul.f32 0.5, %v9705_v63  ;;  %v14465_v60 = vadd.f32 0.5, %v6570_v9 }
 0xef5   : > { %v6717_v2 = vpop.permute.xlu0 %6716 }
 0xef6   : > { %9710 = vtanh.f32 %v6778_v24  ;;  %v6779_v12 = vmul.f32 %v6717_v2, %v14461_v36  ;;  %v14469_v44 = vadd.f32 0.5, %v6571_v19 }
 0xef8   : > { %v9707_v16 = vpop.eup %9706  ;;  %9712 = vtanh.f32 %v6779_v12 }
 0xef9   : > { %6890 = vrot.lane.b32.xlu1 %v9707_v16, %s14908_s2 }
 0xefa   : > { %v9709_v8 = vpop.eup %9708 }
 0xefb   : > { %v6719_v26 = vpop.permute.xlu1 %6718  ;;  %6892 = vrot.lane.b32.xlu0 %v9709_v8, %s14908_s2 }
 0xefc   : > { %v6780_v23 = vmul.f32 %v6719_v26, %v14465_v60 }
 0xefd   : > { %v6721_v4 = vpop.permute.xlu0 %6720 }
 0xefe   : > { %9714 = vtanh.f32 %v6780_v23  ;;  %v6781_v34 = vmul.f32 %v6721_v4, %v14469_v44 }
 0xf00   : > { %v9711_v24 = vpop.eup %9710  ;;  %9716 = vtanh.f32 %v6781_v34 }
 0xf01   : > { %6894 = vrot.lane.b32.xlu1 %v9711_v24, %s14908_s2 }
 0xf02   : > { %v9713_v2 = vpop.eup %9712 }
 0xf03   : > { %6896 = vrot.lane.b32.xlu0 %v9713_v2, %s14908_s2 }
 0xf08   : > { %v9715_v63 = vpop.eup %9714 }
 0xf09   : > { %v6843_v9 = vpop.permute.xlu1 %6842  ;;  %6898 = vrot.lane.b32.xlu1 %v9715_v63, %s14908_s2 }
 0xf0a   : > { %v6932_v12 = vmul.f32 %v6843_v9, %v14311_v59  ;;  %v9717_v16 = vpop.eup %9716 }
 0xf0b   : > { %6900 = vrot.lane.b32.xlu0 %v9717_v16, %s14908_s2 }
 0xf0c   : > { %v7232_v19 = vmax.f32 %v6932_v12, 0.0 }
 0xf0e   : > { %v7262_v8 = vmul.f32 %v7232_v19, %v11972_v58 }
 0xf10   : > { %7322 = vrot.lane.b32.xlu0 %v7262_v8, %s9872_s21 }
 0xf2f   : > { %v6845_v26 = vpop.permute.xlu0 %6844 }
 0xf30   : > { %v6933_v23 = vmul.f32 %v6845_v26, %v14343_v1 }
 0xf32   : > { %v7233_v4 = vmax.f32 %v6933_v23, 0.0 }
 0xf33   : > { %v6847_v34 = vpop.permute.xlu1 %6846  ;;  %v6849_v24 = vpop.permute.xlu0 %6848 }
 0xf34   : > { %v7263_v2 = vmul.f32 %v7233_v4, %v11972_v58  ;;  %v6934_v63 = vmul.f32 %v6847_v34, %v14351_v0  ;;  %v6935_v59 = vmul.f32 %v6849_v24, %v14346_v50 }
 0xf36   : > { %v7234_v9 = vmax.f32 %v6934_v63, 0.0  ;;  %v7235_v12 = vmax.f32 %v6935_v59, 0.0  ;;  %7324 = vrot.lane.b32.xlu1 %v7263_v2, %s9872_s21 }
 0xf37   : > { %v6851_v16 = vpop.permute.xlu1 %6850  ;;  %v6853_v19 = vpop.permute.xlu0 %6852 }
 0xf38   : > { %v7264_v8 = vmul.f32 %v7234_v9, %v11972_v58  ;;  %v7265_v5 = vmul.f32 %v7235_v12, %v11972_v58  ;;  %v6936_v1 = vmul.f32 %v6851_v16, %v14358_v52  ;;  %v6937_v26 = vmul.f32 %v6853_v19, %v14353_v27 }
 0xf3a   : > { %v7236_v23 = vmax.f32 %v6936_v1, 0.0  ;;  %v7237_v4 = vmax.f32 %v6937_v26, 0.0  ;;  %7326 = vrot.lane.b32.xlu1 %v7264_v8, %s9872_s21  ;;  %7328 = vrot.lane.b32.xlu0 %v7265_v5, %s9872_s21 }
 0xf3b   : > { %v6855_v50 = vpop.permute.xlu1 %6854  ;;  %v6857_v0 = vpop.permute.xlu0 %6856 }
 0xf3c   : > { %v7266_v34 = vmul.f32 %v7236_v23, %v11972_v58  ;;  %v7267_v24 = vmul.f32 %v7237_v4, %v11972_v58  ;;  %v6938_v2 = vmul.f32 %v6855_v50, %v14366_v33  ;;  %v6939_v63 = vmul.f32 %v6857_v0, %v14361_v47 }
 0xf3e   : > { %v7238_v59 = vmax.f32 %v6938_v2, 0.0  ;;  %v7239_v52 = vmax.f32 %v6939_v63, 0.0  ;;  %7330 = vrot.lane.b32.xlu1 %v7266_v34, %s9872_s21  ;;  %7332 = vrot.lane.b32.xlu0 %v7267_v24, %s9872_s21 }
 0xf3f   : > { %v6859_v27 = vpop.permute.xlu1 %6858  ;;  %v6861_v9 = vpop.permute.xlu0 %6860 }
 0xf40   : > { %v7268_v5 = vmul.f32 %v7238_v59, %v11972_v58  ;;  %v7269_v12 = vmul.f32 %v7239_v52, %v11972_v58  ;;  %v6940_v16 = vmul.f32 %v6859_v27, %v14374_v29  ;;  %v6941_v19 = vmul.f32 %v6861_v9, %v14368_v51 }
 0xf42   : > { %v7240_v8 = vmax.f32 %v6940_v16, 0.0  ;;  %v7241_v33 = vmax.f32 %v6941_v19, 0.0  ;;  %7334 = vrot.lane.b32.xlu1 %v7268_v5, %s9872_s21  ;;  %7336 = vrot.lane.b32.xlu0 %v7269_v12, %s9872_s21 }
 0xf43   : > { %v6863_v47 = vpop.permute.xlu1 %6862  ;;  %v6865_v1 = vpop.permute.xlu0 %6864 }
 0xf44   : > { %v7270_v26 = vmul.f32 %v7240_v8, %v11972_v58  ;;  %v7271_v23 = vmul.f32 %v7241_v33, %v11972_v58  ;;  %v6942_v4 = vmul.f32 %v6863_v47, %v14383_v53  ;;  %v6943_v50 = vmul.f32 %v6865_v1, %v14376_v42 }
 0xf46   : > { %v7242_v0 = vmax.f32 %v6942_v4, 0.0  ;;  %v7243_v29 = vmax.f32 %v6943_v50, 0.0  ;;  %7338 = vrot.lane.b32.xlu1 %v7270_v26, %s9872_s21  ;;  %7340 = vrot.lane.b32.xlu0 %v7271_v23, %s9872_s21 }
 0xf47   : > { %v6867_v51 = vpop.permute.xlu1 %6866  ;;  %v6869_v34 = vpop.permute.xlu0 %6868 }
 0xf48   : > { %v7272_v24 = vmul.f32 %v7242_v0, %v11972_v58  ;;  %v7273_v2 = vmul.f32 %v7243_v29, %v11972_v58  ;;  %v6944_v63 = vmul.f32 %v6867_v51, %v14392_v13  ;;  %v6945_v59 = vmul.f32 %v6869_v34, %v14385_v41 }
 0xf4a   : > { %v7244_v52 = vmax.f32 %v6944_v63, 0.0  ;;  %v7245_v53 = vmax.f32 %v6945_v59, 0.0  ;;  %7342 = vrot.lane.b32.xlu1 %v7272_v24, %s9872_s21  ;;  %7344 = vrot.lane.b32.xlu0 %v7273_v2, %s9872_s21 }
 0xf4b   : > { %v6871_v42 = vpop.permute.xlu1 %6870  ;;  %v6873_v27 = vpop.permute.xlu0 %6872 }
 0xf4c   : > { %v7274_v9 = vmul.f32 %v7244_v52, %v11972_v58  ;;  %v7275_v5 = vmul.f32 %v7245_v53, %v11972_v58  ;;  %v6946_v12 = vmul.f32 %v6871_v42, %v14401_v37  ;;  %v6947_v16 = vmul.f32 %v6873_v27, %v14394_v31 }
 0xf4e   : > { %v7246_v19 = vmax.f32 %v6946_v12, 0.0  ;;  %v7247_v13 = vmax.f32 %v6947_v16, 0.0  ;;  %7346 = vrot.lane.b32.xlu1 %v7274_v9, %s9872_s21  ;;  %7348 = vrot.lane.b32.xlu0 %v7275_v5, %s9872_s21 }
 0xf4f   : > { %v6875_v41 = vpop.permute.xlu1 %6874  ;;  %v6877_v8 = vpop.permute.xlu0 %6876 }
 0xf50   : > { %v7276_v33 = vmul.f32 %v7246_v19, %v11972_v58  ;;  %v7277_v47 = vmul.f32 %v7247_v13, %v11972_v58  ;;  %v6948_v1 = vmul.f32 %v6875_v41, %v14409_v48  ;;  %v6949_v26 = vmul.f32 %v6877_v8, %v14405_v54 }
 0xf52   : > { %v7248_v23 = vmax.f32 %v6948_v1, 0.0  ;;  %v7249_v37 = vmax.f32 %v6949_v26, 0.0  ;;  %7350 = vrot.lane.b32.xlu1 %v7276_v33, %s9872_s21  ;;  %7352 = vrot.lane.b32.xlu0 %v7277_v47, %s9872_s21 }
 0xf53   : > { %v6879_v31 = vpop.permute.xlu1 %6878 }
 0xf54   : > { %v7278_v4 = vmul.f32 %v7248_v23, %v11972_v58  ;;  %v7279_v50 = vmul.f32 %v7249_v37, %v11972_v58  ;;  %v6950_v0 = vmul.f32 %v6879_v31, %v14416_v61 }
 0xf55   : > { %v6881_v51 = vpop.permute.xlu0 %6880 }
 0xf56   : > { %v7250_v29 = vmax.f32 %v6950_v0, 0.0  ;;  %7354 = vrot.lane.b32.xlu1 %v7278_v4, %s9872_s21  ;;  %7356 = vrot.lane.b32.xlu0 %v7279_v50, %s9872_s21  ;;  %v6951_v54 = vmul.f32 %v6881_v51, %v14420_v20 }
 0xf58   : > { %v7280_v48 = vmul.f32 %v7250_v29, %v11972_v58  ;;  %v7251_v34 = vmax.f32 %v6951_v54, 0.0 }
 0xf5a   : > { %7358 = vrot.lane.b32.xlu1 %v7280_v48, %s9872_s21  ;;  %v7281_v24 = vmul.f32 %v7251_v34, %v11972_v58 }
 0xf5b   : > { %v6883_v2 = vpop.permute.xlu1 %6882 }
 0xf5c   : > { %v6952_v63 = vmul.f32 %v6883_v2, %v14428_v38  ;;  %7360 = vrot.lane.b32.xlu0 %v7281_v24, %s9872_s21 }
 0xf5d   : > { %v6885_v59 = vpop.permute.xlu0 %6884 }
 0xf5e   : > { %v7252_v61 = vmax.f32 %v6952_v63, 0.0  ;;  %v6953_v52 = vmul.f32 %v6885_v59, %v14432_v35 }
 0xf60   : > { %v7282_v53 = vmul.f32 %v7252_v61, %v11972_v58  ;;  %v7253_v42 = vmax.f32 %v6953_v52, 0.0 }
 0xf62   : > { %7362 = vrot.lane.b32.xlu1 %v7282_v53, %s9872_s21  ;;  %v7283_v20 = vmul.f32 %v7253_v42, %v11972_v58 }
 0xf63   : > { %v6887_v27 = vpop.permute.xlu1 %6886 }
 0xf64   : > { %v6954_v9 = vmul.f32 %v6887_v27, %v14439_v21  ;;  %7364 = vrot.lane.b32.xlu0 %v7283_v20, %s9872_s21 }
 0xf65   : > { %v6889_v38 = vpop.permute.xlu0 %6888 }
 0xf66   : > { %v7254_v5 = vmax.f32 %v6954_v9, 0.0  ;;  %v6955_v12 = vmul.f32 %v6889_v38, %v14444_v39 }
 0xf68   : > { %v7284_v16 = vmul.f32 %v7254_v5, %v11972_v58  ;;  %v7255_v19 = vmax.f32 %v6955_v12, 0.0 }
 0xf6a   : > { %7366 = vrot.lane.b32.xlu1 %v7284_v16, %s9872_s21  ;;  %v7285_v35 = vmul.f32 %v7255_v19, %v11972_v58 }
 0xf6b   : > { %v6891_v13 = vpop.permute.xlu1 %6890 }
 0xf6c   : > { %v6956_v41 = vmul.f32 %v6891_v13, %v14449_v45  ;;  %7368 = vrot.lane.b32.xlu0 %v7285_v35, %s9872_s21 }
 0xf6d   : > { %v6893_v21 = vpop.permute.xlu0 %6892 }
 0xf6e   : > { %v7256_v8 = vmax.f32 %v6956_v41, 0.0  ;;  %v6957_v33 = vmul.f32 %v6893_v21, %v14453_v32 }
 0xf70   : > { %v7286_v47 = vmul.f32 %v7256_v8, %v11972_v58  ;;  %v7257_v1 = vmax.f32 %v6957_v33, 0.0 }
 0xf72   : > { %7370 = vrot.lane.b32.xlu1 %v7286_v47, %s9872_s21  ;;  %v7287_v39 = vmul.f32 %v7257_v1, %v11972_v58 }
 0xf73   : > { %v6895_v26 = vpop.permute.xlu1 %6894 }
 0xf74   : > { %v6958_v23 = vmul.f32 %v6895_v26, %v14457_v17  ;;  %7372 = vrot.lane.b32.xlu0 %v7287_v39, %s9872_s21 }
 0xf75   : > { %v6897_v45 = vpop.permute.xlu0 %6896 }
 0xf76   : > { %v7258_v37 = vmax.f32 %v6958_v23, 0.0  ;;  %v6959_v31 = vmul.f32 %v6897_v45, %v14461_v36 }
 0xf78   : > { %v7288_v4 = vmul.f32 %v7258_v37, %v11972_v58  ;;  %v7259_v50 = vmax.f32 %v6959_v31, 0.0 }
 0xf7a   : > { %7374 = vrot.lane.b32.xlu1 %v7288_v4, %s9872_s21  ;;  %v7289_v32 = vmul.f32 %v7259_v50, %v11972_v58 }
 0xf7b   : > { %v6899_v0 = vpop.permute.xlu1 %6898 }
 0xf7c   : > { %v6960_v29 = vmul.f32 %v6899_v0, %v14465_v60  ;;  %7376 = vrot.lane.b32.xlu0 %v7289_v32, %s9872_s21 }
 0xf7d   : > { %v6901_v17 = vpop.permute.xlu0 %6900 }
 0xf7e   : > { %v7260_v51 = vmax.f32 %v6960_v29, 0.0  ;;  %v6961_v54 = vmul.f32 %v6901_v17, %v14469_v44 }
 0xf80   : > { %v7290_v48 = vmul.f32 %v7260_v51, %v11972_v58  ;;  %v7261_v34 = vmax.f32 %v6961_v54, 0.0 }
 0xf82   : > { %7378 = vrot.lane.b32.xlu1 %v7290_v48, %s9872_s21  ;;  %v7291_v36 = vmul.f32 %v7261_v34, %v11972_v58  ;;  %v7323_v24 = vpop.permute.xlu0 %7322 }
 0xf83   : > { %v7412_v2 = vsel %vm1400_vm4, %v7323_v24, 0.0 }
 0xf84   : > { %7380 = vrot.lane.b32.xlu0 %v7291_v36, %s9872_s21 }
 0xfa6   : > { %7413 = vadd.xlane.f32.xlu1 %v7412_v2 }
 0xfa8   : > { %v7325_v60 = vpop.permute.xlu1 %7324 }
 0xfa9   : > { %v7415_v63 = vsel %vm1400_vm4, %v7325_v60, 0.0 }
 0xfaa   : > { %7416 = vadd.xlane.f32.xlu0 %v7415_v63 }
 0xfac   : > { %v7327_v61 = vpop.permute.xlu1 %7326  ;;  %v7329_v59 = vpop.permute.xlu0 %7328 }
 0xfad   : > { %v7418_v44 = vsel %vm1400_vm4, %v7327_v61, 0.0  ;;  %v7421_v52 = vsel %vm1400_vm4, %v7329_v59, 0.0 }
 0xfae   : > { %7419 = vadd.xlane.f32.xlu0 %v7418_v44  ;;  %7422 = vadd.xlane.f32.xlu1 %v7421_v52 }
 0xfb0   : > { %v7331_v53 = vpop.permute.xlu1 %7330  ;;  %v7333_v58 = vpop.permute.xlu0 %7332 }
 0xfb1   : > { %v7424_v42 = vsel %vm1400_vm4, %v7331_v53, 0.0  ;;  %v7427_v20 = vsel %vm1400_vm4, %v7333_v58, 0.0 }
 0xfb2   : > { %7425 = vadd.xlane.f32.xlu0 %v7424_v42  ;;  %7428 = vadd.xlane.f32.xlu1 %v7427_v20  ;;  %v9855_v20 = vld [vmem:[%s10001_s26 + $0x1d0] sm:$0xff] }
 0xfb4   : > { %v7335_v27 = vpop.permute.xlu1 %7334  ;;  %v7337_v9 = vpop.permute.xlu0 %7336 }
 0xfb5   : > { %v7430_v5 = vsel %vm1400_vm4, %v7335_v27, 0.0  ;;  %v7433_v38 = vsel %vm1400_vm4, %v7337_v9, 0.0  ;;  %v7560_v27 = vmax.f32 %v9855_v20, 0.0  ;;  %v14954_v20 = vld [vmem:[#allocation6_spill] sm:$0xff] }
 0xfb6   : > { %7431 = vadd.xlane.f32.xlu0 %v7430_v5  ;;  %7434 = vadd.xlane.f32.xlu1 %v7433_v38  ;;  %v9856_v5 = vld [vmem:[%s10001_s26 + $0x1d8] sm:$0xff] }
 0xfb7   : > { %v7561_v38 = vmax.f32 %v9856_v5, 0.0 }
 0xfb8   : > { %v7339_v12 = vpop.permute.xlu1 %7338  ;;  %v7341_v16 = vpop.permute.xlu0 %7340 }
 0xfb9   : > { %v7436_v19 = vsel %vm1400_vm4, %v7339_v12, 0.0  ;;  %v7439_v35 = vsel %vm1400_vm4, %v7341_v16, 0.0  ;;  %v9857_v12 = vld [vmem:[%s14773_s17] ss:$0 sm:$0xff] }
 0xfba   : > { %7437 = vadd.xlane.f32.xlu0 %v7436_v19  ;;  %7440 = vadd.xlane.f32.xlu1 %v7439_v35  ;;  %v7590_v16 = vmul.f32 %v9857_v12, %v7560_v27 }
 0xfbc   : > { %v7343_v13 = vpop.permute.xlu1 %7342  ;;  %v7345_v41 = vpop.permute.xlu0 %7344 }
 0xfbd   : > { %v7442_v8 = vsel %vm1400_vm4, %v7343_v13, 0.0  ;;  %v7445_v21 = vsel %vm1400_vm4, %v7345_v41, 0.0  ;;  %v7591_v13 = vmul.f32 %v9857_v12, %v7561_v38  ;;  %v14955_v12 = vld [vmem:[#allocation23_spill] sm:$0xff] }
 0xfbe   : > { %7443 = vadd.xlane.f32.xlu0 %v7442_v8  ;;  %7446 = vadd.xlane.f32.xlu1 %v7445_v21  ;;  %v7676_v8 = vsel %vm713_vm2, %v7590_v16, 0.0 }
 0xfc0   : > { %v7347_v33 = vpop.permute.xlu1 %7346  ;;  %v7349_v47 = vpop.permute.xlu0 %7348 }
 0xfc1   : > { %v7448_v1 = vsel %vm1400_vm4, %v7347_v33, 0.0  ;;  %v7451_v39 = vsel %vm1400_vm4, %v7349_v47, 0.0  ;;  %v7679_v33 = vsel %vm713_vm2, %v7591_v13, 0.0  ;;  %v14957_v13 = vld [vmem:[#allocation4_spill] sm:$0xff] }
 0xfc2   : > { %7449 = vadd.xlane.f32.xlu0 %v7448_v1  ;;  %7452 = vadd.xlane.f32.xlu1 %v7451_v39 }
 0xfc4   : > { %v7351_v26 = vpop.permute.xlu1 %7350  ;;  %v7353_v23 = vpop.permute.xlu0 %7352 }
 0xfc5   : > { %v7454_v37 = vsel %vm1400_vm4, %v7351_v26, 0.0  ;;  %v7457_v45 = vsel %vm1400_vm4, %v7353_v23, 0.0  ;;  %v14605_v23 = vld [vmem:[#allocation2] ss:$0 sm:$0xff] }
 0xfc6   : > { %7455 = vadd.xlane.f32.xlu0 %v7454_v37  ;;  %7458 = vadd.xlane.f32.xlu1 %v7457_v45 }
 0xfc8   : > { %v7355_v31 = vpop.permute.xlu1 %7354  ;;  %v7357_v4 = vpop.permute.xlu0 %7356 }
 0xfc9   : > { %v7460_v50 = vsel %vm1400_vm4, %v7355_v31, 0.0  ;;  %v7463_v32 = vsel %vm1400_vm4, %v7357_v4, 0.0 }
 0xfca   : > { %7461 = vadd.xlane.f32.xlu0 %v7460_v50  ;;  %7464 = vadd.xlane.f32.xlu1 %v7463_v32 }
 0xfcc   : > { %v7359_v0 = vpop.permute.xlu1 %7358 }
 0xfcd   : > { %v7466_v29 = vsel %vm1400_vm4, %v7359_v0, 0.0 }
 0xfce   : > { %7467 = vadd.xlane.f32.xlu0 %v7466_v29  ;;  %v7361_v51 = vpop.permute.xlu0 %7360 }
 0xfcf   : > { %v7469_v17 = vsel %vm1400_vm4, %v7361_v51, 0.0 }
 0xfd0   : > { %7470 = vadd.xlane.f32.xlu1 %v7469_v17 }
 0xfd4   : > { %v7363_v54 = vpop.permute.xlu1 %7362 }
 0xfd5   : > { %v7472_v48 = vsel %vm1400_vm4, %v7363_v54, 0.0 }
 0xfd6   : > { %7473 = vadd.xlane.f32.xlu0 %v7472_v48  ;;  %v7365_v34 = vpop.permute.xlu0 %7364 }
 0xfd7   : > { %v7475_v36 = vsel %vm1400_vm4, %v7365_v34, 0.0 }
 0xfd8   : > { %7476 = vadd.xlane.f32.xlu1 %v7475_v36 }
 0xfdc   : > { %v7367_v24 = vpop.permute.xlu1 %7366 }
 0xfdd   : > { %v7478_v2 = vsel %vm1400_vm4, %v7367_v24, 0.0 }
 0xfde   : > { %7479 = vadd.xlane.f32.xlu0 %v7478_v2  ;;  %v7369_v60 = vpop.permute.xlu0 %7368 }
 0xfdf   : > { %v7481_v63 = vsel %vm1400_vm4, %v7369_v60, 0.0 }
 0xfe0   : > { %7482 = vadd.xlane.f32.xlu1 %v7481_v63 }
 0xfe4   : > { %v7371_v61 = vpop.permute.xlu1 %7370 }
 0xfe5   : > { %v7484_v59 = vsel %vm1400_vm4, %v7371_v61, 0.0 }
 0xfe6   : > { %7485 = vadd.xlane.f32.xlu0 %v7484_v59  ;;  %v7373_v44 = vpop.permute.xlu0 %7372 }
 0xfe7   : > { %v7487_v52 = vsel %vm1400_vm4, %v7373_v44, 0.0 }
 0xfe8   : > { %7488 = vadd.xlane.f32.xlu1 %v7487_v52 }
 0xfec   : > { %v7375_v53 = vpop.permute.xlu1 %7374 }
 0xfed   : > { %v7490_v58 = vsel %vm1400_vm4, %v7375_v53, 0.0  ;;  %v14951_v53 = vld [vmem:[#allocation48_spill] sm:$0xff] }
 0xfee   : > { %7491 = vadd.xlane.f32.xlu0 %v7490_v58  ;;  %v7377_v42 = vpop.permute.xlu0 %7376  ;;  %v14952_v58 = vld [vmem:[#allocation19_spill] sm:$0xff] }
 0xfef   : > { %v7493_v9 = vsel %vm1400_vm4, %v7377_v42, 0.0  ;;  %v14953_v42 = vld [vmem:[#allocation31_spill] sm:$0xff] }
 0xff0   : > { %7494 = vadd.xlane.f32.xlu1 %v7493_v9 }
 0xff4   : > { %v7379_v19 = vpop.permute.xlu1 %7378 }
 0xff5   : > { %v7496_v35 = vsel %vm1400_vm4, %v7379_v19, 0.0  ;;  %v14956_v19 = vld [vmem:[#allocation10_spill] sm:$0xff] }
 0xff6   : > { %7497 = vadd.xlane.f32.xlu0 %v7496_v35  ;;  %v7381_v41 = vpop.permute.xlu0 %7380 }
 0xff7   : > { %v7499_v21 = vsel %vm1400_vm4, %v7381_v41, 0.0 }
 0xff8   : > { %7500 = vadd.xlane.f32.xlu1 %v7499_v21 }
 0xffa   : > { %7677 = vadd.xlane.f32.xlu0 %v7676_v8  ;;  %v14958_v8 = vld [vmem:[#allocation36_spill] sm:$0xff] }
 0xffc   : > { %7680 = vadd.xlane.f32.xlu1 %v7679_v33 }
0x1033   : > { %v7414_v47 = vpop.xlane.xlu1 %7413 }
0x1034   : > { %v7502_v1 = vadd.f32 %v7414_v47, %v14217_v28 }
0x1036   : > { %v7682_v39 = vadd.f32 %v14061_v55, %v7502_v1 }
0x1037   : > { %v7417_v26 = vpop.xlane.xlu0 %7416 }
0x1038   : > { %v7712_v37 = vadd.f32 %v14605_v23, %v7682_v39  ;;  %v7503_v45 = vadd.f32 %v7417_v26, %v14197_v40  ;;  %v14959_v26 = vld [vmem:[#allocation42_spill] sm:$0xff] }
0x103a   : > { %7742 = vst.msk [vmem:[%s13011_s22 + $0xf0] sm:$0xff] %vm4345_vm5, %v7712_v37  ;;  %v7683_v31 = vadd.f32 %v14001_v3, %v7503_v45  ;;  %v14960_v45 = vld [vmem:[#allocation46_spill] sm:$0xff] }
0x103b   : > { %v7423_v4 = vpop.xlane.xlu1 %7422  ;;  %v7420_v50 = vpop.xlane.xlu0 %7419 }
0x103c   : > { %v7713_v32 = vadd.f32 %v14605_v23, %v7683_v31  ;;  %v7505_v28 = vadd.f32 %v7423_v4, %v14229_v46  ;;  %v7504_v55 = vadd.f32 %v7420_v50, %v14204_v6  ;;  %v14961_v4 = vld [vmem:[#allocation33_spill] sm:$0xff] }
0x103e   : > { %7743 = vst.msk [vmem:[%s13011_s22 + $0xf8] sm:$0xff] %vm4345_vm5, %v7713_v32  ;;  %v7685_v0 = vadd.f32 %v14008_v30, %v7505_v28  ;;  %v7684_v40 = vadd.f32 %v14067_v25, %v7504_v55  ;;  %v14962_v32 = vld [vmem:[#allocation11_spill] sm:$0xff] }
0x103f   : > { %v7429_v29 = vpop.xlane.xlu1 %7428  ;;  %v7426_v51 = vpop.xlane.xlu0 %7425 }
0x1040   : > { %v7715_v3 = vadd.f32 %v14605_v23, %v7685_v0  ;;  %v7714_v17 = vadd.f32 %v14605_v23, %v7684_v40  ;;  %v7507_v54 = vadd.f32 %v7429_v29, %v14239_v57  ;;  %v7506_v46 = vadd.f32 %v7426_v51, %v14211_v10  ;;  %v14963_v51 = vld [vmem:[#allocation17_spill] sm:$0xff] }
0x1042   : > { %7745 = vst.msk [vmem:[%s13011_s22 + $0x108] sm:$0xff] %vm4345_vm5, %v7715_v3  ;;  %7744 = vst.msk [vmem:[%s13011_s22 + $0x100] sm:$0xff] %vm4345_vm5, %v7714_v17  ;;  %v7687_v30 = vadd.f32 %v14011_v14, %v7507_v54  ;;  %v7686_v25 = vadd.f32 %v14071_v15, %v7506_v46  ;;  %v14964_v17 = vld [vmem:[#allocation40_spill] sm:$0xff]  ;;  %v14965_v46 = vld [vmem:[#allocation7_spill] sm:$0xff] }
0x1043   : > { %v7435_v6 = vpop.xlane.xlu1 %7434  ;;  %v7432_v48 = vpop.xlane.xlu0 %7431 }
0x1044   : > { %v7717_v34 = vadd.f32 %v14605_v23, %v7687_v30  ;;  %v7716_v36 = vadd.f32 %v14605_v23, %v7686_v25  ;;  %v7509_v57 = vadd.f32 %v7435_v6, %v14255_v7  ;;  %v7508_v10 = vadd.f32 %v7432_v48, %v14220_v62  ;;  %v14966_v25 = vld [vmem:[#allocation37_spill] sm:$0xff] }
0x1046   : > { %7747 = vst.msk [vmem:[%s13011_s22 + $0x118] sm:$0xff] %vm4345_vm5, %v7717_v34  ;;  %7746 = vst.msk [vmem:[%s13011_s22 + $0x110] sm:$0xff] %vm4345_vm5, %v7716_v36  ;;  %v7689_v14 = vadd.f32 %v14018_v43, %v7509_v57  ;;  %v7688_v15 = vadd.f32 %v14077_v11, %v7508_v10  ;;  %v14967_v57 = vld [vmem:[#allocation21_spill] sm:$0xff] }
0x1047   : > { %v7441_v24 = vpop.xlane.xlu1 %7440  ;;  %v7438_v2 = vpop.xlane.xlu0 %7437 }
0x1048   : > { %v7719_v60 = vadd.f32 %v14605_v23, %v7689_v14  ;;  %v7718_v63 = vadd.f32 %v14605_v23, %v7688_v15  ;;  %v7511_v7 = vadd.f32 %v7441_v24, %v14267_v22  ;;  %v7510_v62 = vadd.f32 %v7438_v2, %v14227_v18  ;;  %v14968_v14 = vld [vmem:[#allocation8_spill] sm:$0xff] }
0x1049   : > { %v14969_v2 = vld [vmem:[#allocation52_spill] sm:$0xff] }
0x104a   : > { %7749 = vst.msk [vmem:[%s13011_s22 + $0x128] sm:$0xff] %vm4345_vm5, %v7719_v60  ;;  %7748 = vst.msk [vmem:[%s13011_s22 + $0x120] sm:$0xff] %vm4345_vm5, %v7718_v63  ;;  %v7691_v43 = vadd.f32 %v14021_v49, %v7511_v7  ;;  %v7690_v11 = vadd.f32 %v14081_v56, %v7510_v62  ;;  %v14970_v7 = vld [vmem:[#allocation34_spill] sm:$0xff] }
0x104b   : > { %v7447_v61 = vpop.xlane.xlu1 %7446  ;;  %v7444_v59 = vpop.xlane.xlu0 %7443 }
0x104c   : > { %v7721_v44 = vadd.f32 %v14605_v23, %v7691_v43  ;;  %v7720_v52 = vadd.f32 %v14605_v23, %v7690_v11  ;;  %v7513_v22 = vadd.f32 %v7447_v61, %v14951_v53  ;;  %v7512_v18 = vadd.f32 %v7444_v59, %v14952_v58  ;;  %v14971_v61 = vld [vmem:[#allocation15_spill] sm:$0xff] }
0x104e   : > { %7751 = vst.msk [vmem:[%s13011_s22 + $0x138] sm:$0xff] %vm4345_vm5, %v7721_v44  ;;  %7750 = vst.msk [vmem:[%s13011_s22 + $0x130] sm:$0xff] %vm4345_vm5, %v7720_v52  ;;  %v7693_v49 = vadd.f32 %v14953_v42, %v7513_v22  ;;  %v7692_v56 = vadd.f32 %v14954_v20, %v7512_v18  ;;  %v14972_v44 = vld [vmem:[#allocation38_spill] sm:$0xff]  ;;  %v14973_v22 = vld [vmem:[#allocation43_spill] sm:$0xff] }
0x104f   : > { %v7453_v27 = vpop.xlane.xlu1 %7452  ;;  %v7450_v9 = vpop.xlane.xlu0 %7449  ;;  %v14974_v42 = vld [vmem:[#allocation32_spill] sm:$0xff] }
0x1050   : > { %v7723_v5 = vadd.f32 %v14605_v23, %v7693_v49  ;;  %v7722_v38 = vadd.f32 %v14605_v23, %v7692_v56  ;;  %v7515_v16 = vadd.f32 %v7453_v27, %v14955_v12  ;;  %v7514_v35 = vadd.f32 %v7450_v9, %v14956_v19  ;;  %v14975_v27 = vld [vmem:[#allocation41_spill] sm:$0xff] }
0x1052   : > { %7753 = vst.msk [vmem:[%s13011_s22 + $0x148] sm:$0xff] %vm4345_vm5, %v7723_v5  ;;  %7752 = vst.msk [vmem:[%s13011_s22 + $0x140] sm:$0xff] %vm4345_vm5, %v7722_v38  ;;  %v7695_v41 = vadd.f32 %v14957_v13, %v7515_v16  ;;  %v7694_v21 = vadd.f32 %v14958_v8, %v7514_v35  ;;  %v14976_v5 = vld [vmem:[#allocation13_spill] sm:$0xff]  ;;  %v14977_v16 = vld [vmem:[#allocation27_spill] sm:$0xff] }
0x1053   : > { %v7459_v33 = vpop.xlane.xlu1 %7458  ;;  %v7456_v47 = vpop.xlane.xlu0 %7455  ;;  %v14978_v13 = vld [vmem:[#allocation9_spill] sm:$0xff] }
0x1054   : > { %v7725_v1 = vadd.f32 %v14605_v23, %v7695_v41  ;;  %v7724_v39 = vadd.f32 %v14605_v23, %v7694_v21  ;;  %v7517_v37 = vadd.f32 %v7459_v33, %v14959_v26  ;;  %v7516_v31 = vadd.f32 %v7456_v47, %v14960_v45  ;;  %v14979_v33 = vld [vmem:[#allocation12_spill] sm:$0xff] }
0x1056   : > { %7755 = vst.msk [vmem:[%s13011_s22 + $0x158] sm:$0xff] %vm4345_vm5, %v7725_v1  ;;  %7754 = vst.msk [vmem:[%s13011_s22 + $0x150] sm:$0xff] %vm4345_vm5, %v7724_v39  ;;  %v7697_v50 = vadd.f32 %v14961_v4, %v7517_v37  ;;  %v7696_v28 = vadd.f32 %v14962_v32, %v7516_v31  ;;  %v14980_v1 = vld [vmem:[#allocation44_spill] sm:$0xff]  ;;  %v14981_v37 = vld [vmem:[#allocation14_spill] sm:$0xff] }
0x1057   : > { %v7465_v55 = vpop.xlane.xlu1 %7464  ;;  %v7462_v0 = vpop.xlane.xlu0 %7461  ;;  %v14982_v4 = vld [vmem:[#allocation5_spill] sm:$0xff] }
0x1058   : > { %v7727_v40 = vadd.f32 %v14605_v23, %v7697_v50  ;;  %v7726_v29 = vadd.f32 %v14605_v23, %v7696_v28  ;;  %v7519_v3 = vadd.f32 %v7465_v55, %v14963_v51  ;;  %v7518_v54 = vadd.f32 %v7462_v0, %v14964_v17  ;;  %v14983_v55 = vld [vmem:[#allocation50_spill] sm:$0xff] }
0x105a   : > { %7757 = vst.msk [vmem:[%s13011_s22 + $0x168] sm:$0xff] %vm4345_vm5, %v7727_v40  ;;  %7756 = vst.msk [vmem:[%s13011_s22 + $0x160] sm:$0xff] %vm4345_vm5, %v7726_v29  ;;  %v7699_v30 = vadd.f32 %v14965_v46, %v7519_v3  ;;  %v7698_v6 = vadd.f32 %v14966_v25, %v7518_v54  ;;  %v14984_v40 = vld [vmem:[#allocation39_spill] sm:$0xff]  ;;  %v14985_v3 = vld [vmem:[#allocation54_spill] sm:$0xff] }
0x105b   : > { %v7468_v48 = vpop.xlane.xlu0 %7467  ;;  %v14986_v46 = vld [vmem:[#allocation35_spill] sm:$0xff] }
0x105c   : > { %v7729_v34 = vadd.f32 %v14605_v23, %v7699_v30  ;;  %v7728_v36 = vadd.f32 %v14605_v23, %v7698_v6  ;;  %v7520_v10 = vadd.f32 %v7468_v48, %v14967_v57  ;;  %v14987_v48 = vld [vmem:[#allocation25_spill] sm:$0xff] }
0x105d   : > { %v7471_v24 = vpop.xlane.xlu1 %7470 }
0x105e   : > { %7759 = vst.msk [vmem:[%s13011_s22 + $0x178] sm:$0xff] %vm4345_vm5, %v7729_v34  ;;  %7758 = vst.msk [vmem:[%s13011_s22 + $0x170] sm:$0xff] %vm4345_vm5, %v7728_v36  ;;  %v7700_v15 = vadd.f32 %v14968_v14, %v7520_v10  ;;  %v7521_v60 = vadd.f32 %v7471_v24, %v14969_v2  ;;  %v14988_v14 = vld [vmem:[#allocation45_spill] sm:$0xff] }
0x1060   : > { %v7730_v63 = vadd.f32 %v14605_v23, %v7700_v15  ;;  %v7701_v62 = vadd.f32 %v14970_v7, %v7521_v60 }
0x1062   : > { %7760 = vst.msk [vmem:[%s13011_s22 + $0x180] sm:$0xff] %vm4345_vm5, %v7730_v63  ;;  %v7731_v43 = vadd.f32 %v14605_v23, %v7701_v62 }
0x1063   : > { %v7474_v11 = vpop.xlane.xlu0 %7473 }
0x1064   : > { %v7522_v59 = vadd.f32 %v7474_v11, %v14971_v61  ;;  %7761 = vst.msk [vmem:[%s13011_s22 + $0x188] sm:$0xff] %vm4345_vm5, %v7731_v43 }
0x1065   : > { %v7477_v53 = vpop.xlane.xlu1 %7476 }
0x1066   : > { %v7702_v52 = vadd.f32 %v14972_v44, %v7522_v59  ;;  %v7523_v58 = vadd.f32 %v7477_v53, %v14973_v22 }
0x1068   : > { %v7732_v18 = vadd.f32 %v14605_v23, %v7702_v52  ;;  %v7703_v49 = vadd.f32 %v14974_v42, %v7523_v58 }
0x106a   : > { %7762 = vst.msk [vmem:[%s13011_s22 + $0x190] sm:$0xff] %vm4345_vm5, %v7732_v18  ;;  %v7733_v20 = vadd.f32 %v14605_v23, %v7703_v49 }
0x106b   : > { %v7480_v56 = vpop.xlane.xlu0 %7479 }
0x106c   : > { %v7524_v9 = vadd.f32 %v7480_v56, %v14975_v27  ;;  %7763 = vst.msk [vmem:[%s13011_s22 + $0x198] sm:$0xff] %vm4345_vm5, %v7733_v20 }
0x106d   : > { %v7483_v12 = vpop.xlane.xlu1 %7482 }
0x106e   : > { %v7704_v38 = vadd.f32 %v14976_v5, %v7524_v9  ;;  %v7525_v19 = vadd.f32 %v7483_v12, %v14977_v16 }
0x1070   : > { %v7734_v35 = vadd.f32 %v14605_v23, %v7704_v38  ;;  %v7705_v41 = vadd.f32 %v14978_v13, %v7525_v19 }
0x1072   : > { %7764 = vst.msk [vmem:[%s13011_s22 + $0x1a0] sm:$0xff] %vm4345_vm5, %v7734_v35  ;;  %v7735_v8 = vadd.f32 %v14605_v23, %v7705_v41 }
0x1073   : > { %v7486_v21 = vpop.xlane.xlu0 %7485 }
0x1074   : > { %v7526_v47 = vadd.f32 %v7486_v21, %v14979_v33  ;;  %7765 = vst.msk [vmem:[%s13011_s22 + $0x1a8] sm:$0xff] %vm4345_vm5, %v7735_v8 }
0x1075   : > { %v7489_v26 = vpop.xlane.xlu1 %7488 }
0x1076   : > { %v7706_v39 = vadd.f32 %v14980_v1, %v7526_v47  ;;  %v7527_v45 = vadd.f32 %v7489_v26, %v14981_v37 }
0x1078   : > { %v7736_v31 = vadd.f32 %v14605_v23, %v7706_v39  ;;  %v7707_v50 = vadd.f32 %v14982_v4, %v7527_v45 }
0x107a   : > { %7766 = vst.msk [vmem:[%s13011_s22 + $0x1b0] sm:$0xff] %vm4345_vm5, %v7736_v31  ;;  %v7737_v32 = vadd.f32 %v14605_v23, %v7707_v50 }
0x107b   : > { %v7492_v28 = vpop.xlane.xlu0 %7491 }
0x107c   : > { %v7528_v0 = vadd.f32 %v7492_v28, %v14983_v55  ;;  %7767 = vst.msk [vmem:[%s13011_s22 + $0x1b8] sm:$0xff] %vm4345_vm5, %v7737_v32 }
0x107d   : > { %v7495_v51 = vpop.xlane.xlu1 %7494 }
0x107e   : > { %v7708_v29 = vadd.f32 %v14984_v40, %v7528_v0  ;;  %v7529_v17 = vadd.f32 %v7495_v51, %v14985_v3 }
0x1080   : > { %v7738_v54 = vadd.f32 %v14605_v23, %v7708_v29  ;;  %v7709_v30 = vadd.f32 %v14986_v46, %v7529_v17 }
0x1082   : > { %7768 = vst.msk [vmem:[%s13011_s22 + $0x1c0] sm:$0xff] %vm4345_vm5, %v7738_v54  ;;  %v7739_v25 = vadd.f32 %v14605_v23, %v7709_v30 }
0x1083   : > { %v7498_v6 = vpop.xlane.xlu0 %7497 }
0x1084   : > { %7769 = vst.msk [vmem:[%s13011_s22 + $0x1c8] sm:$0xff] %vm4345_vm5, %v7739_v25  ;;  %v7530_v34 = vadd.f32 %v7498_v6, %v14987_v48 }
0x1085   : > { %v7501_v36 = vpop.xlane.xlu1 %7500 }
0x1086   : > { %v7531_v15 = vadd.f32 %v7501_v36, %v14988_v14 }
0x1087   : > { %v7678_v57 = vpop.xlane.xlu0 %7677 }
0x1088   : > { %v7710_v10 = vadd.f32 %v7678_v57, %v7530_v34 }
0x1089   : > { %v7681_v2 = vpop.xlane.xlu1 %7680 }
0x108a   : > { %v7740_v24 = vadd.f32 %v14605_v23, %v7710_v10  ;;  %v7711_v60 = vadd.f32 %v7681_v2, %v7531_v15 }
0x108c   : > { %7770 = vst.msk [vmem:[%s13011_s22 + $0x1d0] sm:$0xff] %vm4345_vm5, %v7740_v24  ;;  %v7741_v63 = vadd.f32 %v14605_v23, %v7711_v60 }
0x108e   : > { %7771 = vst.msk [vmem:[%s13011_s22 + $0x1d8] sm:$0xff] %vm4345_vm5, %v7741_v63 }
0x108f PF: > { %s31_s20 = sadd.s32 1, %s9865_s20  }
0x1090   : > { %p28_p4 = scmp.ge.s32.totalorder %s31_s20, 4  }
0x1092   :  { %30 = sbr.rel (!%p28_p4) target bundleno = 5 (0x5), region = 126 }

</bundles_post_ra>
